<compile_context>
chip_gen: v7x
topology: tpu7x:2x2x1
jax: 0.10.0
libtpu: 0.0.40
codegen_flags: <defaults>
</compile_context>

<pallas_src>
import jax
import jax.numpy as jnp
from jax.experimental import pallas as pl
from jax.experimental.pallas import tpu as pltpu

KH = KW = 3   # kernel_size=3, stride=1, padding=1


def se_res_block_kernel(x_ref, w1_ref, b1_ref, wse1_ref, wse2_ref, w2_ref, b2_ref,
                        o_ref, pad_scr):
    Bt, Hp, Wp, C = pad_scr.shape
    H, W = Hp - 2, Wp - 2
    HW = H * W
    M = Bt * HW

    # ---- reset the padded conv-input scratch (single clear; keeps the 1-px border zero) ----
    pad_scr[...] = jnp.zeros((Bt, Hp, Wp, C), jnp.float32)

    # ---- unpack the lane-packed input block (Bt, H, W*C) -> (Bt, H, W, C), one interior store --
    xv = x_ref[...]                                                   # (Bt, H, W*C)
    x4 = jnp.concatenate(
        [xv[:, :, w * C:(w + 1) * C].reshape(Bt, H, 1, C) for w in range(W)], axis=2)
    pad_scr[:, 1:1 + H, 1:1 + W, :] = x4

    def conv3x3(w_ref, b_ref):
        # 9 fully-unrolled accumulating (M, C) @ (C, C) dots (static tap indices, no concat slab).
        acc = jnp.zeros((M, C), jnp.float32)
        for t in range(KH * KW):
            dh, dw = t // KW, t % KW
            lhs = pad_scr[:, dh:dh + H, dw:dw + W, :].reshape(M, C)   # free leading-dim reshape
            acc = acc + jnp.dot(lhs, w_ref[t * C:(t + 1) * C, :],
                                preferred_element_type=jnp.float32)
        return acc + b_ref[...]

    # ---- conv1 (3x3, pad 1, bias) + ReLU ----
    h1 = jnp.maximum(conv3x3(w1_ref, b1_ref), 0.0)                    # (M, C)

    # ---- SE layer, batched over the folded batch ----
    h1b = h1.reshape(Bt, HW, C)
    pooled = jnp.mean(h1b, axis=1)                                    # (Bt, C)   one reduction
    # FC1 (C -> Cr) + ReLU, FC2 (Cr -> C) + sigmoid as small VPU broadcast-multiply-reduce ops.
    z = jnp.maximum(
        jnp.sum(pooled[:, None, :] * wse1_ref[...][None, :, :], axis=-1), 0.0)   # (Bt, Cr)
    e = jnp.sum(z[:, :, None] * wse2_ref[...][None, :, :], axis=1)               # (Bt, C)
    scale = jax.nn.sigmoid(e)                                                    # (Bt, C)
    h1s = h1b * scale[:, None, :]                                                # (Bt, HW, C)
    # ONE interior store rebuilds the conv2 input (borders are still zero from the clear above).
    pad_scr[:, 1:1 + H, 1:1 + W, :] = h1s.reshape(Bt, H, W, C)

    # ---- conv2 (3x3, pad 1, bias) + residual add, lane-dense packed output store ----
    res4 = conv3x3(w2_ref, b2_ref).reshape(Bt, H, W, C)
    res_pk = jnp.concatenate([res4[:, :, w, :] for w in range(W)], axis=-1)      # (Bt, H, W*C)
    o_ref[...] = (x_ref[...] + res_pk).astype(o_ref.dtype)            # re-read x_ref here


def se_res_block(x_nchw, params):
    """x_nchw: (B, C, H, W) float32. params: (w1, b1, wse1, wse2, w2, b2) in PyTorch layouts."""
    w1, b1, wse1, wse2, w2, b2 = params
    B, C, H, W = x_nchw.shape
    Cr = wse1.shape[0]
    Hp, Wp = H + 2, W + 2

    # NHWC then pack W*C onto the minor (lane) axis: dense DMA + unmasked output stores.
    x_pk = jnp.transpose(x_nchw, (0, 2, 3, 1)).reshape(B, H, W * C).astype(jnp.float32)

    def flat_taps(w):
        # (Cout, Cin, KH, KW) -> (KH*KW*Cin, Cout): tap-major rows matching the kernel's loop.
        return jnp.transpose(w, (2, 3, 1, 0)).reshape(KH * KW * C, C).astype(jnp.float32)

    w1_t, w2_t = flat_taps(w1), flat_taps(w2)
    wse1_t = wse1.astype(jnp.float32)            # (Cr, C)  == W1 (out, in)
    wse2_t = wse2.T.astype(jnp.float32)          # (Cr, C)  == W2.T
    b1_r = b1.reshape(1, C).astype(jnp.float32)
    b2_r = b2.reshape(1, C).astype(jnp.float32)

    # Batch folding: >= 512 matmul rows per step when possible, but cap bt so the grid keeps
    # >= 2 steps on the "parallel" batch axis (v7x has 2 TensorCores per chip).
    hw = H * W
    target_bt = max(1, -(-512 // hw))
    max_bt = B if B < 2 else max(1, B // 2)
    bt = 1
    for cand in range(1, B + 1):
        if B % cand == 0 and cand <= min(target_bt, max_bt):
            bt = cand
    grid = (B // bt,)

    # Explicit VMEM budget (lane-padded estimates); stays under v5e's 16 MiB scoped default and
    # leaves headroom on v7x's 64 MiB physical VMEM.
    lane = 128
    est = (4 * bt * H * W * C * 4                 # in + out blocks, double-buffered
           + bt * Hp * Wp * lane * 4              # padded conv-input scratch (lane-padded)
           + 2 * KH * KW * C * lane * 4           # conv weights (lane-padded)
           + 6 * bt * hw * lane * 4)              # matmul / relayout temporaries
    vmem_limit = int(min(32 << 20, max(8 << 20, 2 * est)))

    out_pk = pl.pallas_call(
        se_res_block_kernel,
        out_shape=jax.ShapeDtypeStruct((B, H, W * C), jnp.float32),
        grid_spec=pltpu.PrefetchScalarGridSpec(
            num_scalar_prefetch=0,
            grid=grid,
            in_specs=[
                pl.BlockSpec((bt, H, W * C), lambda i: (i, 0, 0)),     # x, lane-dense block
                pl.BlockSpec((KH * KW * C, C), lambda i: (0, 0)),      # conv1 weight (9C, C)
                pl.BlockSpec((1, C), lambda i: (0, 0)),                # conv1 bias
                pl.BlockSpec((Cr, C), lambda i: (0, 0)),               # SE fc1 weight
                pl.BlockSpec((Cr, C), lambda i: (0, 0)),               # SE fc2 weight (transposed)
                pl.BlockSpec((KH * KW * C, C), lambda i: (0, 0)),      # conv2 weight (9C, C)
                pl.BlockSpec((1, C), lambda i: (0, 0)),                # conv2 bias
            ],
            out_specs=pl.BlockSpec((bt, H, W * C), lambda i: (i, 0, 0)),
            scratch_shapes=[pltpu.VMEM((bt, Hp, Wp, C), jnp.float32)],
        ),
        compiler_params=pltpu.CompilerParams(
            dimension_semantics=("parallel",),
            vmem_limit_bytes=vmem_limit,
        ),
    )(x_pk, w1_t, b1_r, wse1_t, wse2_t, w2_t, b2_r)

    return jnp.transpose(out_pk.reshape(B, H, W, C), (0, 3, 1, 2))     # back to NCHW


def reference(x_nchw, params):
    """Pure-JAX reference matching the PyTorch forward."""
    w1, b1, wse1, wse2, w2, b2 = params

    def conv(x, w, b):
        y = jax.lax.conv_general_dilated(x, w, (1, 1), ((1, 1), (1, 1)),
                                         dimension_numbers=("NCHW", "OIHW", "NCHW"))
        return y + b[None, :, None, None]

    h = jnp.maximum(conv(x_nchw, w1, b1), 0.0)
    y = jnp.mean(h, axis=(2, 3))                 # (B, C) adaptive avg pool to 1x1
    y = jnp.maximum(y @ wse1.T, 0.0)
    y = jax.nn.sigmoid(y @ wse2.T)
    h = h * y[:, :, None, None]
    res = conv(h, w2, b2)
    return x_nchw + res


if __name__ == "__main__":
    B, C, H, W = 4, 32, 16, 16       # in_channels=32 (module default), small spatial
    reduction = 16
    Cr = C // reduction

    key = jax.random.PRNGKey(0)
    ks = jax.random.split(key, 7)
    x = jax.random.normal(ks[0], (B, C, H, W), jnp.float32)
    w1 = jax.random.normal(ks[1], (C, C, KH, KW), jnp.float32) * 0.05
    b1 = jax.random.normal(ks[2], (C,), jnp.float32) * 0.05
    wse1 = jax.random.normal(ks[3], (Cr, C), jnp.float32) * 0.10   # Linear(C -> C//16), no bias
    wse2 = jax.random.normal(ks[4], (C, Cr), jnp.float32) * 0.10   # Linear(C//16 -> C), no bias
    w2 = jax.random.normal(ks[5], (C, C, KH, KW), jnp.float32) * 0.05
    b2 = jax.random.normal(ks[6], (C,), jnp.float32) * 0.05
    params = (w1, b1, wse1, wse2, w2, b2)

    out = jax.block_until_ready(se_res_block(x, params))
    ref = reference(x, params)

    assert out.shape == x.shape
    err = float(jnp.max(jnp.abs(out - ref)))
    assert jnp.allclose(out, ref, atol=2e-4, rtol=2e-4), err
    print("KERNEL_OK")
</pallas_src>

<mosaic_0001>
module attributes {stable_mosaic.version = 11 : i64} {
  func.func @se_res_block_kernel(%arg0: i32, %arg1: memref<2x16x512xf32, #tpu.memory_space<vmem>>, %arg2: memref<288x32xf32, #tpu.memory_space<vmem>>, %arg3: memref<1x32xf32, #tpu.memory_space<vmem>>, %arg4: memref<2x32xf32, #tpu.memory_space<vmem>>, %arg5: memref<2x32xf32, #tpu.memory_space<vmem>>, %arg6: memref<288x32xf32, #tpu.memory_space<vmem>>, %arg7: memref<1x32xf32, #tpu.memory_space<vmem>>, %arg8: memref<2x16x512xf32, #tpu.memory_space<vmem>>, %arg9: memref<2x18x18x32xf32, #tpu.memory_space<vmem>>) attributes {dimension_semantics = [#tpu.dimension_semantics<parallel>], iteration_bounds = array<i64: 2>, scalar_prefetch = 0 : i64, scratch_operands = 1 : i64, tpu.core_type = #tpu.core_type<tc>, window_params = [{transform_indices = @transform_0, window_bounds = array<i64: 2, 16, 512>}, {pipeline_mode = #tpu.pipeline_mode<synchronous>, transform_indices = @transform_1, window_bounds = array<i64: 288, 32>}, {pipeline_mode = #tpu.pipeline_mode<synchronous>, transform_indices = @transform_2, window_bounds = array<i64: 1, 32>}, {pipeline_mode = #tpu.pipeline_mode<synchronous>, transform_indices = @transform_3, window_bounds = array<i64: 2, 32>}, {pipeline_mode = #tpu.pipeline_mode<synchronous>, transform_indices = @transform_4, window_bounds = array<i64: 2, 32>}, {pipeline_mode = #tpu.pipeline_mode<synchronous>, transform_indices = @transform_5, window_bounds = array<i64: 288, 32>}, {pipeline_mode = #tpu.pipeline_mode<synchronous>, transform_indices = @transform_6, window_bounds = array<i64: 1, 32>}, {transform_indices = @transform_7, window_bounds = array<i64: 2, 16, 512>}]} {
    %cst = arith.constant 0.000000e+00 : f32
    %0 = vector.broadcast %cst : f32 to vector<2x18x18x32xf32>
    %c0 = arith.constant 0 : index
    %c0_0 = arith.constant 0 : index
    %c0_1 = arith.constant 0 : index
    %c0_2 = arith.constant 0 : index
    %1 = vector.load %arg9[%c0, %c0_0, %c0_1, %c0_2] : memref<2x18x18x32xf32, #tpu.memory_space<vmem>>, vector<2x18x18x32xf32>
    tpu.vector_store %arg9[%c0, %c0_0, %c0_1, %c0_2], %0 {strides = array<i32>} : memref<2x18x18x32xf32, #tpu.memory_space<vmem>>, vector<2x18x18x32xf32>,
    %c0_3 = arith.constant 0 : index
    %c0_4 = arith.constant 0 : index
    %c0_5 = arith.constant 0 : index
    %2 = vector.load %arg1[%c0_3, %c0_4, %c0_5] : memref<2x16x512xf32, #tpu.memory_space<vmem>>, vector<2x16x512xf32>
    %3 = vector.extract_strided_slice %2 {offsets = [0, 0, 0], sizes = [2, 16, 32], strides = [1, 1, 1]} : vector<2x16x512xf32> to vector<2x16x32xf32>
    %4 = vector.shape_cast %3 : vector<2x16x32xf32> to vector<2x16x1x32xf32>
    %5 = vector.extract_strided_slice %2 {offsets = [0, 0, 32], sizes = [2, 16, 32], strides = [1, 1, 1]} : vector<2x16x512xf32> to vector<2x16x32xf32>
    %6 = vector.shape_cast %5 : vector<2x16x32xf32> to vector<2x16x1x32xf32>
    %7 = vector.extract_strided_slice %2 {offsets = [0, 0, 64], sizes = [2, 16, 32], strides = [1, 1, 1]} : vector<2x16x512xf32> to vector<2x16x32xf32>
    %8 = vector.shape_cast %7 : vector<2x16x32xf32> to vector<2x16x1x32xf32>
    %9 = vector.extract_strided_slice %2 {offsets = [0, 0, 96], sizes = [2, 16, 32], strides = [1, 1, 1]} : vector<2x16x512xf32> to vector<2x16x32xf32>
    %10 = vector.shape_cast %9 : vector<2x16x32xf32> to vector<2x16x1x32xf32>
    %11 = vector.extract_strided_slice %2 {offsets = [0, 0, 128], sizes = [2, 16, 32], strides = [1, 1, 1]} : vector<2x16x512xf32> to vector<2x16x32xf32>
    %12 = vector.shape_cast %11 : vector<2x16x32xf32> to vector<2x16x1x32xf32>
    %13 = vector.extract_strided_slice %2 {offsets = [0, 0, 160], sizes = [2, 16, 32], strides = [1, 1, 1]} : vector<2x16x512xf32> to vector<2x16x32xf32>
    %14 = vector.shape_cast %13 : vector<2x16x32xf32> to vector<2x16x1x32xf32>
    %15 = vector.extract_strided_slice %2 {offsets = [0, 0, 192], sizes = [2, 16, 32], strides = [1, 1, 1]} : vector<2x16x512xf32> to vector<2x16x32xf32>
    %16 = vector.shape_cast %15 : vector<2x16x32xf32> to vector<2x16x1x32xf32>
    %17 = vector.extract_strided_slice %2 {offsets = [0, 0, 224], sizes = [2, 16, 32], strides = [1, 1, 1]} : vector<2x16x512xf32> to vector<2x16x32xf32>
    %18 = vector.shape_cast %17 : vector<2x16x32xf32> to vector<2x16x1x32xf32>
    %19 = vector.extract_strided_slice %2 {offsets = [0, 0, 256], sizes = [2, 16, 32], strides = [1, 1, 1]} : vector<2x16x512xf32> to vector<2x16x32xf32>
    %20 = vector.shape_cast %19 : vector<2x16x32xf32> to vector<2x16x1x32xf32>
    %21 = vector.extract_strided_slice %2 {offsets = [0, 0, 288], sizes = [2, 16, 32], strides = [1, 1, 1]} : vector<2x16x512xf32> to vector<2x16x32xf32>
    %22 = vector.shape_cast %21 : vector<2x16x32xf32> to vector<2x16x1x32xf32>
    %23 = vector.extract_strided_slice %2 {offsets = [0, 0, 320], sizes = [2, 16, 32], strides = [1, 1, 1]} : vector<2x16x512xf32> to vector<2x16x32xf32>
    %24 = vector.shape_cast %23 : vector<2x16x32xf32> to vector<2x16x1x32xf32>
    %25 = vector.extract_strided_slice %2 {offsets = [0, 0, 352], sizes = [2, 16, 32], strides = [1, 1, 1]} : vector<2x16x512xf32> to vector<2x16x32xf32>
    %26 = vector.shape_cast %25 : vector<2x16x32xf32> to vector<2x16x1x32xf32>
    %27 = vector.extract_strided_slice %2 {offsets = [0, 0, 384], sizes = [2, 16, 32], strides = [1, 1, 1]} : vector<2x16x512xf32> to vector<2x16x32xf32>
    %28 = vector.shape_cast %27 : vector<2x16x32xf32> to vector<2x16x1x32xf32>
    %29 = vector.extract_strided_slice %2 {offsets = [0, 0, 416], sizes = [2, 16, 32], strides = [1, 1, 1]} : vector<2x16x512xf32> to vector<2x16x32xf32>
    %30 = vector.shape_cast %29 : vector<2x16x32xf32> to vector<2x16x1x32xf32>
    %31 = vector.extract_strided_slice %2 {offsets = [0, 0, 448], sizes = [2, 16, 32], strides = [1, 1, 1]} : vector<2x16x512xf32> to vector<2x16x32xf32>
    %32 = vector.shape_cast %31 : vector<2x16x32xf32> to vector<2x16x1x32xf32>
    %33 = vector.extract_strided_slice %2 {offsets = [0, 0, 480], sizes = [2, 16, 32], strides = [1, 1, 1]} : vector<2x16x512xf32> to vector<2x16x32xf32>
    %34 = vector.shape_cast %33 : vector<2x16x32xf32> to vector<2x16x1x32xf32>
    %35 = tpu.concatenate %4, %6, %8, %10, %12, %14, %16, %18, %20, %22, %24, %26, %28, %30, %32, %34 in 2 : vector<2x16x1x32xf32>, vector<2x16x1x32xf32>, vector<2x16x1x32xf32>, vector<2x16x1x32xf32>, vector<2x16x1x32xf32>, vector<2x16x1x32xf32>, vector<2x16x1x32xf32>, vector<2x16x1x32xf32>, vector<2x16x1x32xf32>, vector<2x16x1x32xf32>, vector<2x16x1x32xf32>, vector<2x16x1x32xf32>, vector<2x16x1x32xf32>, vector<2x16x1x32xf32>, vector<2x16x1x32xf32>, vector<2x16x1x32xf32> -> vector<2x16x16x32xf32>
    %c0_6 = arith.constant 0 : index
    %c1 = arith.constant 1 : index
    %c1_7 = arith.constant 1 : index
    %c0_8 = arith.constant 0 : index
    %36 = vector.load %arg9[%c0_6, %c1, %c1_7, %c0_8] : memref<2x18x18x32xf32, #tpu.memory_space<vmem>>, vector<2x16x16x32xf32>
    tpu.vector_store %arg9[%c0_6, %c1, %c1_7, %c0_8], %35 {strides = array<i32>} : memref<2x18x18x32xf32, #tpu.memory_space<vmem>>, vector<2x16x16x32xf32>,
    %cst_9 = arith.constant 0.000000e+00 : f32
    %37 = vector.broadcast %cst_9 : f32 to vector<512x32xf32>
    %c0_10 = arith.constant 0 : index
    %c0_11 = arith.constant 0 : index
    %c0_12 = arith.constant 0 : index
    %c0_13 = arith.constant 0 : index
    %38 = vector.load %arg9[%c0_10, %c0_11, %c0_12, %c0_13] : memref<2x18x18x32xf32, #tpu.memory_space<vmem>>, vector<2x16x16x32xf32>
    %39 = vector.shape_cast %38 : vector<2x16x16x32xf32> to vector<512x32xf32>
    %c0_14 = arith.constant 0 : index
    %c0_15 = arith.constant 0 : index
    %40 = vector.load %arg2[%c0_14, %c0_15] : memref<288x32xf32, #tpu.memory_space<vmem>>, vector<32x32xf32>
    %cst_16 = arith.constant dense<0.000000e+00> : vector<512x32xf32>
    %41 = tpu.matmul %39, %40, %cst_16 {dimension_numbers = #tpu.dot_dimension_numbers<[1], [0], [0], [1], [0, 0, 1, 1], [], []>} : vector<512x32xf32>, vector<32x32xf32>, vector<512x32xf32> -> vector<512x32xf32>
    %42 = arith.addf %37, %41 : vector<512x32xf32>
    %c0_17 = arith.constant 0 : index
    %c0_18 = arith.constant 0 : index
    %c1_19 = arith.constant 1 : index
    %c0_20 = arith.constant 0 : index
    %43 = vector.load %arg9[%c0_17, %c0_18, %c1_19, %c0_20] : memref<2x18x18x32xf32, #tpu.memory_space<vmem>>, vector<2x16x16x32xf32>
    %44 = vector.shape_cast %43 : vector<2x16x16x32xf32> to vector<512x32xf32>
    %c32 = arith.constant 32 : index
    %c0_21 = arith.constant 0 : index
    %45 = vector.load %arg2[%c32, %c0_21] : memref<288x32xf32, #tpu.memory_space<vmem>>, vector<32x32xf32>
    %cst_22 = arith.constant dense<0.000000e+00> : vector<512x32xf32>
    %46 = tpu.matmul %44, %45, %cst_22 {dimension_numbers = #tpu.dot_dimension_numbers<[1], [0], [0], [1], [0, 0, 1, 1], [], []>} : vector<512x32xf32>, vector<32x32xf32>, vector<512x32xf32> -> vector<512x32xf32>
    %47 = arith.addf %42, %46 : vector<512x32xf32>
    %c0_23 = arith.constant 0 : index
    %c0_24 = arith.constant 0 : index
    %c2 = arith.constant 2 : index
    %c0_25 = arith.constant 0 : index
    %48 = vector.load %arg9[%c0_23, %c0_24, %c2, %c0_25] : memref<2x18x18x32xf32, #tpu.memory_space<vmem>>, vector<2x16x16x32xf32>
    %49 = vector.shape_cast %48 : vector<2x16x16x32xf32> to vector<512x32xf32>
    %c64 = arith.constant 64 : index
    %c0_26 = arith.constant 0 : index
    %50 = vector.load %arg2[%c64, %c0_26] : memref<288x32xf32, #tpu.memory_space<vmem>>, vector<32x32xf32>
    %cst_27 = arith.constant dense<0.000000e+00> : vector<512x32xf32>
    %51 = tpu.matmul %49, %50, %cst_27 {dimension_numbers = #tpu.dot_dimension_numbers<[1], [0], [0], [1], [0, 0, 1, 1], [], []>} : vector<512x32xf32>, vector<32x32xf32>, vector<512x32xf32> -> vector<512x32xf32>
    %52 = arith.addf %47, %51 : vector<512x32xf32>
    %c0_28 = arith.constant 0 : index
    %c1_29 = arith.constant 1 : index
    %c0_30 = arith.constant 0 : index
    %c0_31 = arith.constant 0 : index
    %53 = vector.load %arg9[%c0_28, %c1_29, %c0_30, %c0_31] : memref<2x18x18x32xf32, #tpu.memory_space<vmem>>, vector<2x16x16x32xf32>
    %54 = vector.shape_cast %53 : vector<2x16x16x32xf32> to vector<512x32xf32>
    %c96 = arith.constant 96 : index
    %c0_32 = arith.constant 0 : index
    %55 = vector.load %arg2[%c96, %c0_32] : memref<288x32xf32, #tpu.memory_space<vmem>>, vector<32x32xf32>
    %cst_33 = arith.constant dense<0.000000e+00> : vector<512x32xf32>
    %56 = tpu.matmul %54, %55, %cst_33 {dimension_numbers = #tpu.dot_dimension_numbers<[1], [0], [0], [1], [0, 0, 1, 1], [], []>} : vector<512x32xf32>, vector<32x32xf32>, vector<512x32xf32> -> vector<512x32xf32>
    %57 = arith.addf %52, %56 : vector<512x32xf32>
    %c0_34 = arith.constant 0 : index
    %c1_35 = arith.constant 1 : index
    %c1_36 = arith.constant 1 : index
    %c0_37 = arith.constant 0 : index
    %58 = vector.load %arg9[%c0_34, %c1_35, %c1_36, %c0_37] : memref<2x18x18x32xf32, #tpu.memory_space<vmem>>, vector<2x16x16x32xf32>
    %59 = vector.shape_cast %58 : vector<2x16x16x32xf32> to vector<512x32xf32>
    %c128 = arith.constant 128 : index
    %c0_38 = arith.constant 0 : index
    %60 = vector.load %arg2[%c128, %c0_38] : memref<288x32xf32, #tpu.memory_space<vmem>>, vector<32x32xf32>
    %cst_39 = arith.constant dense<0.000000e+00> : vector<512x32xf32>
    %61 = tpu.matmul %59, %60, %cst_39 {dimension_numbers = #tpu.dot_dimension_numbers<[1], [0], [0], [1], [0, 0, 1, 1], [], []>} : vector<512x32xf32>, vector<32x32xf32>, vector<512x32xf32> -> vector<512x32xf32>
    %62 = arith.addf %57, %61 : vector<512x32xf32>
    %c0_40 = arith.constant 0 : index
    %c1_41 = arith.constant 1 : index
    %c2_42 = arith.constant 2 : index
    %c0_43 = arith.constant 0 : index
    %63 = vector.load %arg9[%c0_40, %c1_41, %c2_42, %c0_43] : memref<2x18x18x32xf32, #tpu.memory_space<vmem>>, vector<2x16x16x32xf32>
    %64 = vector.shape_cast %63 : vector<2x16x16x32xf32> to vector<512x32xf32>
    %c160 = arith.constant 160 : index
    %c0_44 = arith.constant 0 : index
    %65 = vector.load %arg2[%c160, %c0_44] : memref<288x32xf32, #tpu.memory_space<vmem>>, vector<32x32xf32>
    %cst_45 = arith.constant dense<0.000000e+00> : vector<512x32xf32>
    %66 = tpu.matmul %64, %65, %cst_45 {dimension_numbers = #tpu.dot_dimension_numbers<[1], [0], [0], [1], [0, 0, 1, 1], [], []>} : vector<512x32xf32>, vector<32x32xf32>, vector<512x32xf32> -> vector<512x32xf32>
    %67 = arith.addf %62, %66 : vector<512x32xf32>
    %c0_46 = arith.constant 0 : index
    %c2_47 = arith.constant 2 : index
    %c0_48 = arith.constant 0 : index
    %c0_49 = arith.constant 0 : index
    %68 = vector.load %arg9[%c0_46, %c2_47, %c0_48, %c0_49] : memref<2x18x18x32xf32, #tpu.memory_space<vmem>>, vector<2x16x16x32xf32>
    %69 = vector.shape_cast %68 : vector<2x16x16x32xf32> to vector<512x32xf32>
    %c192 = arith.constant 192 : index
    %c0_50 = arith.constant 0 : index
    %70 = vector.load %arg2[%c192, %c0_50] : memref<288x32xf32, #tpu.memory_space<vmem>>, vector<32x32xf32>
    %cst_51 = arith.constant dense<0.000000e+00> : vector<512x32xf32>
    %71 = tpu.matmul %69, %70, %cst_51 {dimension_numbers = #tpu.dot_dimension_numbers<[1], [0], [0], [1], [0, 0, 1, 1], [], []>} : vector<512x32xf32>, vector<32x32xf32>, vector<512x32xf32> -> vector<512x32xf32>
    %72 = arith.addf %67, %71 : vector<512x32xf32>
    %c0_52 = arith.constant 0 : index
    %c2_53 = arith.constant 2 : index
    %c1_54 = arith.constant 1 : index
    %c0_55 = arith.constant 0 : index
    %73 = vector.load %arg9[%c0_52, %c2_53, %c1_54, %c0_55] : memref<2x18x18x32xf32, #tpu.memory_space<vmem>>, vector<2x16x16x32xf32>
    %74 = vector.shape_cast %73 : vector<2x16x16x32xf32> to vector<512x32xf32>
    %c224 = arith.constant 224 : index
    %c0_56 = arith.constant 0 : index
    %75 = vector.load %arg2[%c224, %c0_56] : memref<288x32xf32, #tpu.memory_space<vmem>>, vector<32x32xf32>
    %cst_57 = arith.constant dense<0.000000e+00> : vector<512x32xf32>
    %76 = tpu.matmul %74, %75, %cst_57 {dimension_numbers = #tpu.dot_dimension_numbers<[1], [0], [0], [1], [0, 0, 1, 1], [], []>} : vector<512x32xf32>, vector<32x32xf32>, vector<512x32xf32> -> vector<512x32xf32>
    %77 = arith.addf %72, %76 : vector<512x32xf32>
    %c0_58 = arith.constant 0 : index
    %c2_59 = arith.constant 2 : index
    %c2_60 = arith.constant 2 : index
    %c0_61 = arith.constant 0 : index
    %78 = vector.load %arg9[%c0_58, %c2_59, %c2_60, %c0_61] : memref<2x18x18x32xf32, #tpu.memory_space<vmem>>, vector<2x16x16x32xf32>
    %79 = vector.shape_cast %78 : vector<2x16x16x32xf32> to vector<512x32xf32>
    %c256 = arith.constant 256 : index
    %c0_62 = arith.constant 0 : index
    %80 = vector.load %arg2[%c256, %c0_62] : memref<288x32xf32, #tpu.memory_space<vmem>>, vector<32x32xf32>
    %cst_63 = arith.constant dense<0.000000e+00> : vector<512x32xf32>
    %81 = tpu.matmul %79, %80, %cst_63 {dimension_numbers = #tpu.dot_dimension_numbers<[1], [0], [0], [1], [0, 0, 1, 1], [], []>} : vector<512x32xf32>, vector<32x32xf32>, vector<512x32xf32> -> vector<512x32xf32>
    %82 = arith.addf %77, %81 : vector<512x32xf32>
    %c0_64 = arith.constant 0 : index
    %c0_65 = arith.constant 0 : index
    %83 = vector.load %arg3[%c0_64, %c0_65] : memref<1x32xf32, #tpu.memory_space<vmem>>, vector<1x32xf32>
    %84 = vector.broadcast %83 : vector<1x32xf32> to vector<512x32xf32>
    %85 = arith.addf %82, %84 : vector<512x32xf32>
    %cst_66 = arith.constant 0.000000e+00 : f32
    %86 = vector.broadcast %cst_66 : f32 to vector<512x32xf32>
    %87 = arith.maximumf %85, %86 : vector<512x32xf32>
    %88 = vector.shape_cast %87 : vector<512x32xf32> to vector<2x256x32xf32>
    %cst_67 = arith.constant dense<0.000000e+00> : vector<2x32xf32>
    %89 = vector.multi_reduction <add>, %88, %cst_67 [1] : vector<2x256x32xf32> to vector<2x32xf32>
    %cst_68 = arith.constant 2.560000e+02 : f32
    %90 = vector.broadcast %cst_68 : f32 to vector<2x32xf32>
    %91 = arith.divf %89, %90 : vector<2x32xf32>
    %92 = vector.shape_cast %91 : vector<2x32xf32> to vector<2x1x32xf32>
    %c0_69 = arith.constant 0 : index
    %c0_70 = arith.constant 0 : index
    %93 = vector.load %arg4[%c0_69, %c0_70] : memref<2x32xf32, #tpu.memory_space<vmem>>, vector<2x32xf32>
    %94 = vector.shape_cast %93 : vector<2x32xf32> to vector<1x2x32xf32>
    %95 = vector.broadcast %92 : vector<2x1x32xf32> to vector<2x2x32xf32>
    %96 = vector.broadcast %94 : vector<1x2x32xf32> to vector<2x2x32xf32>
    %97 = arith.mulf %95, %96 : vector<2x2x32xf32>
    %cst_71 = arith.constant dense<0.000000e+00> : vector<2x2xf32>
    %98 = vector.multi_reduction <add>, %97, %cst_71 [2] : vector<2x2x32xf32> to vector<2x2xf32>
    %cst_72 = arith.constant 0.000000e+00 : f32
    %99 = vector.broadcast %cst_72 : f32 to vector<2x2xf32>
    %100 = arith.maximumf %98, %99 : vector<2x2xf32>
    %101 = vector.shape_cast %100 : vector<2x2xf32> to vector<2x2x1xf32>
    %c0_73 = arith.constant 0 : index
    %c0_74 = arith.constant 0 : index
    %102 = vector.load %arg5[%c0_73, %c0_74] : memref<2x32xf32, #tpu.memory_space<vmem>>, vector<2x32xf32>
    %103 = vector.shape_cast %102 : vector<2x32xf32> to vector<1x2x32xf32>
    %104 = vector.broadcast %101 : vector<2x2x1xf32> to vector<2x2x32xf32>
    %105 = vector.broadcast %103 : vector<1x2x32xf32> to vector<2x2x32xf32>
    %106 = arith.mulf %104, %105 : vector<2x2x32xf32>
    %cst_75 = arith.constant dense<0.000000e+00> : vector<2x32xf32>
    %107 = vector.multi_reduction <add>, %106, %cst_75 [1] : vector<2x2x32xf32> to vector<2x32xf32>
    %108 = arith.negf %107 : vector<2x32xf32>
    %109 = math.exp %108 : vector<2x32xf32>
    %cst_76 = arith.constant 1.000000e+00 : f32
    %110 = vector.broadcast %cst_76 : f32 to vector<2x32xf32>
    %111 = arith.addf %110, %109 : vector<2x32xf32>
    %112 = arith.divf %110, %111 : vector<2x32xf32>
    %113 = vector.shape_cast %112 : vector<2x32xf32> to vector<2x1x32xf32>
    %114 = vector.broadcast %113 : vector<2x1x32xf32> to vector<2x256x32xf32>
    %115 = arith.mulf %88, %114 : vector<2x256x32xf32>
    %116 = vector.shape_cast %115 : vector<2x256x32xf32> to vector<2x16x16x32xf32>
    %c0_77 = arith.constant 0 : index
    %c1_78 = arith.constant 1 : index
    %c1_79 = arith.constant 1 : index
    %c0_80 = arith.constant 0 : index
    %117 = vector.load %arg9[%c0_77, %c1_78, %c1_79, %c0_80] : memref<2x18x18x32xf32, #tpu.memory_space<vmem>>, vector<2x16x16x32xf32>
    tpu.vector_store %arg9[%c0_77, %c1_78, %c1_79, %c0_80], %116 {strides = array<i32>} : memref<2x18x18x32xf32, #tpu.memory_space<vmem>>, vector<2x16x16x32xf32>,
    %cst_81 = arith.constant 0.000000e+00 : f32
    %118 = vector.broadcast %cst_81 : f32 to vector<512x32xf32>
    %c0_82 = arith.constant 0 : index
    %c0_83 = arith.constant 0 : index
    %c0_84 = arith.constant 0 : index
    %c0_85 = arith.constant 0 : index
    %119 = vector.load %arg9[%c0_82, %c0_83, %c0_84, %c0_85] : memref<2x18x18x32xf32, #tpu.memory_space<vmem>>, vector<2x16x16x32xf32>
    %120 = vector.shape_cast %119 : vector<2x16x16x32xf32> to vector<512x32xf32>
    %c0_86 = arith.constant 0 : index
    %c0_87 = arith.constant 0 : index
    %121 = vector.load %arg6[%c0_86, %c0_87] : memref<288x32xf32, #tpu.memory_space<vmem>>, vector<32x32xf32>
    %cst_88 = arith.constant dense<0.000000e+00> : vector<512x32xf32>
    %122 = tpu.matmul %120, %121, %cst_88 {dimension_numbers = #tpu.dot_dimension_numbers<[1], [0], [0], [1], [0, 0, 1, 1], [], []>} : vector<512x32xf32>, vector<32x32xf32>, vector<512x32xf32> -> vector<512x32xf32>
    %123 = arith.addf %118, %122 : vector<512x32xf32>
    %c0_89 = arith.constant 0 : index
    %c0_90 = arith.constant 0 : index
    %c1_91 = arith.constant 1 : index
    %c0_92 = arith.constant 0 : index
    %124 = vector.load %arg9[%c0_89, %c0_90, %c1_91, %c0_92] : memref<2x18x18x32xf32, #tpu.memory_space<vmem>>, vector<2x16x16x32xf32>
    %125 = vector.shape_cast %124 : vector<2x16x16x32xf32> to vector<512x32xf32>
    %c32_93 = arith.constant 32 : index
    %c0_94 = arith.constant 0 : index
    %126 = vector.load %arg6[%c32_93, %c0_94] : memref<288x32xf32, #tpu.memory_space<vmem>>, vector<32x32xf32>
    %cst_95 = arith.constant dense<0.000000e+00> : vector<512x32xf32>
    %127 = tpu.matmul %125, %126, %cst_95 {dimension_numbers = #tpu.dot_dimension_numbers<[1], [0], [0], [1], [0, 0, 1, 1], [], []>} : vector<512x32xf32>, vector<32x32xf32>, vector<512x32xf32> -> vector<512x32xf32>
    %128 = arith.addf %123, %127 : vector<512x32xf32>
    %c0_96 = arith.constant 0 : index
    %c0_97 = arith.constant 0 : index
    %c2_98 = arith.constant 2 : index
    %c0_99 = arith.constant 0 : index
    %129 = vector.load %arg9[%c0_96, %c0_97, %c2_98, %c0_99] : memref<2x18x18x32xf32, #tpu.memory_space<vmem>>, vector<2x16x16x32xf32>
    %130 = vector.shape_cast %129 : vector<2x16x16x32xf32> to vector<512x32xf32>
    %c64_100 = arith.constant 64 : index
    %c0_101 = arith.constant 0 : index
    %131 = vector.load %arg6[%c64_100, %c0_101] : memref<288x32xf32, #tpu.memory_space<vmem>>, vector<32x32xf32>
    %cst_102 = arith.constant dense<0.000000e+00> : vector<512x32xf32>
    %132 = tpu.matmul %130, %131, %cst_102 {dimension_numbers = #tpu.dot_dimension_numbers<[1], [0], [0], [1], [0, 0, 1, 1], [], []>} : vector<512x32xf32>, vector<32x32xf32>, vector<512x32xf32> -> vector<512x32xf32>
    %133 = arith.addf %128, %132 : vector<512x32xf32>
    %c0_103 = arith.constant 0 : index
    %c1_104 = arith.constant 1 : index
    %c0_105 = arith.constant 0 : index
    %c0_106 = arith.constant 0 : index
    %134 = vector.load %arg9[%c0_103, %c1_104, %c0_105, %c0_106] : memref<2x18x18x32xf32, #tpu.memory_space<vmem>>, vector<2x16x16x32xf32>
    %135 = vector.shape_cast %134 : vector<2x16x16x32xf32> to vector<512x32xf32>
    %c96_107 = arith.constant 96 : index
    %c0_108 = arith.constant 0 : index
    %136 = vector.load %arg6[%c96_107, %c0_108] : memref<288x32xf32, #tpu.memory_space<vmem>>, vector<32x32xf32>
    %cst_109 = arith.constant dense<0.000000e+00> : vector<512x32xf32>
    %137 = tpu.matmul %135, %136, %cst_109 {dimension_numbers = #tpu.dot_dimension_numbers<[1], [0], [0], [1], [0, 0, 1, 1], [], []>} : vector<512x32xf32>, vector<32x32xf32>, vector<512x32xf32> -> vector<512x32xf32>
    %138 = arith.addf %133, %137 : vector<512x32xf32>
    %c0_110 = arith.constant 0 : index
    %c1_111 = arith.constant 1 : index
    %c1_112 = arith.constant 1 : index
    %c0_113 = arith.constant 0 : index
    %139 = vector.load %arg9[%c0_110, %c1_111, %c1_112, %c0_113] : memref<2x18x18x32xf32, #tpu.memory_space<vmem>>, vector<2x16x16x32xf32>
    %140 = vector.shape_cast %139 : vector<2x16x16x32xf32> to vector<512x32xf32>
    %c128_114 = arith.constant 128 : index
    %c0_115 = arith.constant 0 : index
    %141 = vector.load %arg6[%c128_114, %c0_115] : memref<288x32xf32, #tpu.memory_space<vmem>>, vector<32x32xf32>
    %cst_116 = arith.constant dense<0.000000e+00> : vector<512x32xf32>
    %142 = tpu.matmul %140, %141, %cst_116 {dimension_numbers = #tpu.dot_dimension_numbers<[1], [0], [0], [1], [0, 0, 1, 1], [], []>} : vector<512x32xf32>, vector<32x32xf32>, vector<512x32xf32> -> vector<512x32xf32>
    %143 = arith.addf %138, %142 : vector<512x32xf32>
    %c0_117 = arith.constant 0 : index
    %c1_118 = arith.constant 1 : index
    %c2_119 = arith.constant 2 : index
    %c0_120 = arith.constant 0 : index
    %144 = vector.load %arg9[%c0_117, %c1_118, %c2_119, %c0_120] : memref<2x18x18x32xf32, #tpu.memory_space<vmem>>, vector<2x16x16x32xf32>
    %145 = vector.shape_cast %144 : vector<2x16x16x32xf32> to vector<512x32xf32>
    %c160_121 = arith.constant 160 : index
    %c0_122 = arith.constant 0 : index
    %146 = vector.load %arg6[%c160_121, %c0_122] : memref<288x32xf32, #tpu.memory_space<vmem>>, vector<32x32xf32>
    %cst_123 = arith.constant dense<0.000000e+00> : vector<512x32xf32>
    %147 = tpu.matmul %145, %146, %cst_123 {dimension_numbers = #tpu.dot_dimension_numbers<[1], [0], [0], [1], [0, 0, 1, 1], [], []>} : vector<512x32xf32>, vector<32x32xf32>, vector<512x32xf32> -> vector<512x32xf32>
    %148 = arith.addf %143, %147 : vector<512x32xf32>
    %c0_124 = arith.constant 0 : index
    %c2_125 = arith.constant 2 : index
    %c0_126 = arith.constant 0 : index
    %c0_127 = arith.constant 0 : index
    %149 = vector.load %arg9[%c0_124, %c2_125, %c0_126, %c0_127] : memref<2x18x18x32xf32, #tpu.memory_space<vmem>>, vector<2x16x16x32xf32>
    %150 = vector.shape_cast %149 : vector<2x16x16x32xf32> to vector<512x32xf32>
    %c192_128 = arith.constant 192 : index
    %c0_129 = arith.constant 0 : index
    %151 = vector.load %arg6[%c192_128, %c0_129] : memref<288x32xf32, #tpu.memory_space<vmem>>, vector<32x32xf32>
    %cst_130 = arith.constant dense<0.000000e+00> : vector<512x32xf32>
    %152 = tpu.matmul %150, %151, %cst_130 {dimension_numbers = #tpu.dot_dimension_numbers<[1], [0], [0], [1], [0, 0, 1, 1], [], []>} : vector<512x32xf32>, vector<32x32xf32>, vector<512x32xf32> -> vector<512x32xf32>
    %153 = arith.addf %148, %152 : vector<512x32xf32>
    %c0_131 = arith.constant 0 : index
    %c2_132 = arith.constant 2 : index
    %c1_133 = arith.constant 1 : index
    %c0_134 = arith.constant 0 : index
    %154 = vector.load %arg9[%c0_131, %c2_132, %c1_133, %c0_134] : memref<2x18x18x32xf32, #tpu.memory_space<vmem>>, vector<2x16x16x32xf32>
    %155 = vector.shape_cast %154 : vector<2x16x16x32xf32> to vector<512x32xf32>
    %c224_135 = arith.constant 224 : index
    %c0_136 = arith.constant 0 : index
    %156 = vector.load %arg6[%c224_135, %c0_136] : memref<288x32xf32, #tpu.memory_space<vmem>>, vector<32x32xf32>
    %cst_137 = arith.constant dense<0.000000e+00> : vector<512x32xf32>
    %157 = tpu.matmul %155, %156, %cst_137 {dimension_numbers = #tpu.dot_dimension_numbers<[1], [0], [0], [1], [0, 0, 1, 1], [], []>} : vector<512x32xf32>, vector<32x32xf32>, vector<512x32xf32> -> vector<512x32xf32>
    %158 = arith.addf %153, %157 : vector<512x32xf32>
    %c0_138 = arith.constant 0 : index
    %c2_139 = arith.constant 2 : index
    %c2_140 = arith.constant 2 : index
    %c0_141 = arith.constant 0 : index
    %159 = vector.load %arg9[%c0_138, %c2_139, %c2_140, %c0_141] : memref<2x18x18x32xf32, #tpu.memory_space<vmem>>, vector<2x16x16x32xf32>
    %160 = vector.shape_cast %159 : vector<2x16x16x32xf32> to vector<512x32xf32>
    %c256_142 = arith.constant 256 : index
    %c0_143 = arith.constant 0 : index
    %161 = vector.load %arg6[%c256_142, %c0_143] : memref<288x32xf32, #tpu.memory_space<vmem>>, vector<32x32xf32>
    %cst_144 = arith.constant dense<0.000000e+00> : vector<512x32xf32>
    %162 = tpu.matmul %160, %161, %cst_144 {dimension_numbers = #tpu.dot_dimension_numbers<[1], [0], [0], [1], [0, 0, 1, 1], [], []>} : vector<512x32xf32>, vector<32x32xf32>, vector<512x32xf32> -> vector<512x32xf32>
    %163 = arith.addf %158, %162 : vector<512x32xf32>
    %c0_145 = arith.constant 0 : index
    %c0_146 = arith.constant 0 : index
    %164 = vector.load %arg7[%c0_145, %c0_146] : memref<1x32xf32, #tpu.memory_space<vmem>>, vector<1x32xf32>
    %165 = vector.broadcast %164 : vector<1x32xf32> to vector<512x32xf32>
    %166 = arith.addf %163, %165 : vector<512x32xf32>
    %167 = vector.shape_cast %166 : vector<512x32xf32> to vector<2x16x16x32xf32>
    %168 = vector.extract_strided_slice %167 {offsets = [0, 0, 0, 0], sizes = [2, 16, 1, 32], strides = [1, 1, 1, 1]} : vector<2x16x16x32xf32> to vector<2x16x1x32xf32>
    %169 = vector.shape_cast %168 : vector<2x16x1x32xf32> to vector<2x16x32xf32>
    %170 = vector.extract_strided_slice %167 {offsets = [0, 0, 1, 0], sizes = [2, 16, 1, 32], strides = [1, 1, 1, 1]} : vector<2x16x16x32xf32> to vector<2x16x1x32xf32>
    %171 = vector.shape_cast %170 : vector<2x16x1x32xf32> to vector<2x16x32xf32>
    %172 = vector.extract_strided_slice %167 {offsets = [0, 0, 2, 0], sizes = [2, 16, 1, 32], strides = [1, 1, 1, 1]} : vector<2x16x16x32xf32> to vector<2x16x1x32xf32>
    %173 = vector.shape_cast %172 : vector<2x16x1x32xf32> to vector<2x16x32xf32>
    %174 = vector.extract_strided_slice %167 {offsets = [0, 0, 3, 0], sizes = [2, 16, 1, 32], strides = [1, 1, 1, 1]} : vector<2x16x16x32xf32> to vector<2x16x1x32xf32>
    %175 = vector.shape_cast %174 : vector<2x16x1x32xf32> to vector<2x16x32xf32>
    %176 = vector.extract_strided_slice %167 {offsets = [0, 0, 4, 0], sizes = [2, 16, 1, 32], strides = [1, 1, 1, 1]} : vector<2x16x16x32xf32> to vector<2x16x1x32xf32>
    %177 = vector.shape_cast %176 : vector<2x16x1x32xf32> to vector<2x16x32xf32>
    %178 = vector.extract_strided_slice %167 {offsets = [0, 0, 5, 0], sizes = [2, 16, 1, 32], strides = [1, 1, 1, 1]} : vector<2x16x16x32xf32> to vector<2x16x1x32xf32>
    %179 = vector.shape_cast %178 : vector<2x16x1x32xf32> to vector<2x16x32xf32>
    %180 = vector.extract_strided_slice %167 {offsets = [0, 0, 6, 0], sizes = [2, 16, 1, 32], strides = [1, 1, 1, 1]} : vector<2x16x16x32xf32> to vector<2x16x1x32xf32>
    %181 = vector.shape_cast %180 : vector<2x16x1x32xf32> to vector<2x16x32xf32>
    %182 = vector.extract_strided_slice %167 {offsets = [0, 0, 7, 0], sizes = [2, 16, 1, 32], strides = [1, 1, 1, 1]} : vector<2x16x16x32xf32> to vector<2x16x1x32xf32>
    %183 = vector.shape_cast %182 : vector<2x16x1x32xf32> to vector<2x16x32xf32>
    %184 = vector.extract_strided_slice %167 {offsets = [0, 0, 8, 0], sizes = [2, 16, 1, 32], strides = [1, 1, 1, 1]} : vector<2x16x16x32xf32> to vector<2x16x1x32xf32>
    %185 = vector.shape_cast %184 : vector<2x16x1x32xf32> to vector<2x16x32xf32>
    %186 = vector.extract_strided_slice %167 {offsets = [0, 0, 9, 0], sizes = [2, 16, 1, 32], strides = [1, 1, 1, 1]} : vector<2x16x16x32xf32> to vector<2x16x1x32xf32>
    %187 = vector.shape_cast %186 : vector<2x16x1x32xf32> to vector<2x16x32xf32>
    %188 = vector.extract_strided_slice %167 {offsets = [0, 0, 10, 0], sizes = [2, 16, 1, 32], strides = [1, 1, 1, 1]} : vector<2x16x16x32xf32> to vector<2x16x1x32xf32>
    %189 = vector.shape_cast %188 : vector<2x16x1x32xf32> to vector<2x16x32xf32>
    %190 = vector.extract_strided_slice %167 {offsets = [0, 0, 11, 0], sizes = [2, 16, 1, 32], strides = [1, 1, 1, 1]} : vector<2x16x16x32xf32> to vector<2x16x1x32xf32>
    %191 = vector.shape_cast %190 : vector<2x16x1x32xf32> to vector<2x16x32xf32>
    %192 = vector.extract_strided_slice %167 {offsets = [0, 0, 12, 0], sizes = [2, 16, 1, 32], strides = [1, 1, 1, 1]} : vector<2x16x16x32xf32> to vector<2x16x1x32xf32>
    %193 = vector.shape_cast %192 : vector<2x16x1x32xf32> to vector<2x16x32xf32>
    %194 = vector.extract_strided_slice %167 {offsets = [0, 0, 13, 0], sizes = [2, 16, 1, 32], strides = [1, 1, 1, 1]} : vector<2x16x16x32xf32> to vector<2x16x1x32xf32>
    %195 = vector.shape_cast %194 : vector<2x16x1x32xf32> to vector<2x16x32xf32>
    %196 = vector.extract_strided_slice %167 {offsets = [0, 0, 14, 0], sizes = [2, 16, 1, 32], strides = [1, 1, 1, 1]} : vector<2x16x16x32xf32> to vector<2x16x1x32xf32>
    %197 = vector.shape_cast %196 : vector<2x16x1x32xf32> to vector<2x16x32xf32>
    %198 = vector.extract_strided_slice %167 {offsets = [0, 0, 15, 0], sizes = [2, 16, 1, 32], strides = [1, 1, 1, 1]} : vector<2x16x16x32xf32> to vector<2x16x1x32xf32>
    %199 = vector.shape_cast %198 : vector<2x16x1x32xf32> to vector<2x16x32xf32>
    %200 = tpu.concatenate %169, %171, %173, %175, %177, %179, %181, %183, %185, %187, %189, %191, %193, %195, %197, %199 in 2 : vector<2x16x32xf32>, vector<2x16x32xf32>, vector<2x16x32xf32>, vector<2x16x32xf32>, vector<2x16x32xf32>, vector<2x16x32xf32>, vector<2x16x32xf32>, vector<2x16x32xf32>, vector<2x16x32xf32>, vector<2x16x32xf32>, vector<2x16x32xf32>, vector<2x16x32xf32>, vector<2x16x32xf32>, vector<2x16x32xf32>, vector<2x16x32xf32>, vector<2x16x32xf32> -> vector<2x16x512xf32>
    %c0_147 = arith.constant 0 : index
    %c0_148 = arith.constant 0 : index
    %c0_149 = arith.constant 0 : index
    %201 = vector.load %arg1[%c0_147, %c0_148, %c0_149] : memref<2x16x512xf32, #tpu.memory_space<vmem>>, vector<2x16x512xf32>
    %202 = arith.addf %201, %200 : vector<2x16x512xf32>
    %c0_150 = arith.constant 0 : index
    %c0_151 = arith.constant 0 : index
    %c0_152 = arith.constant 0 : index
    %203 = vector.load %arg8[%c0_150, %c0_151, %c0_152] : memref<2x16x512xf32, #tpu.memory_space<vmem>>, vector<2x16x512xf32>
    tpu.vector_store %arg8[%c0_150, %c0_151, %c0_152], %202 {strides = array<i32>} : memref<2x16x512xf32, #tpu.memory_space<vmem>>, vector<2x16x512xf32>,
    return
  }
  func.func @transform_0(%arg0: i32) -> (i32, i32, i32) {
    %c0_i32 = arith.constant 0 : i32
    %c0_i32_0 = arith.constant 0 : i32
    %c0_i32_1 = arith.constant 0 : i32
    return %arg0, %c0_i32, %c0_i32_0 : i32, i32, i32
  }
  func.func @transform_1(%arg0: i32) -> (i32, i32) {
    %c0_i32 = arith.constant 0 : i32
    %c0_i32_0 = arith.constant 0 : i32
    %c0_i32_1 = arith.constant 0 : i32
    return %c0_i32, %c0_i32_0 : i32, i32
  }
  func.func @transform_2(%arg0: i32) -> (i32, i32) {
    %c0_i32 = arith.constant 0 : i32
    %c0_i32_0 = arith.constant 0 : i32
    %c0_i32_1 = arith.constant 0 : i32
    return %c0_i32, %c0_i32_0 : i32, i32
  }
  func.func @transform_3(%arg0: i32) -> (i32, i32) {
    %c0_i32 = arith.constant 0 : i32
    %c0_i32_0 = arith.constant 0 : i32
    %c0_i32_1 = arith.constant 0 : i32
    return %c0_i32, %c0_i32_0 : i32, i32
  }
  func.func @transform_4(%arg0: i32) -> (i32, i32) {
    %c0_i32 = arith.constant 0 : i32
    %c0_i32_0 = arith.constant 0 : i32
    %c0_i32_1 = arith.constant 0 : i32
    return %c0_i32, %c0_i32_0 : i32, i32
  }
  func.func @transform_5(%arg0: i32) -> (i32, i32) {
    %c0_i32 = arith.constant 0 : i32
    %c0_i32_0 = arith.constant 0 : i32
    %c0_i32_1 = arith.constant 0 : i32
    return %c0_i32, %c0_i32_0 : i32, i32
  }
  func.func @transform_6(%arg0: i32) -> (i32, i32) {
    %c0_i32 = arith.constant 0 : i32
    %c0_i32_0 = arith.constant 0 : i32
    %c0_i32_1 = arith.constant 0 : i32
    return %c0_i32, %c0_i32_0 : i32, i32
  }
  func.func @transform_7(%arg0: i32) -> (i32, i32, i32) {
    %c0_i32 = arith.constant 0 : i32
    %c0_i32_0 = arith.constant 0 : i32
    %c0_i32_1 = arith.constant 0 : i32
    return %arg0, %c0_i32, %c0_i32_0 : i32, i32, i32
  }
}

</mosaic_0001>

<bundles_post_ra>
// kernel: tpu_custom_call.1
= control target key start
LH: loop header
LB: loop body
LE: loop exit
PB: predicated region body
PF: predicated region fallthrough
CT: control target
= control target key end

     0   :  { %12 = vsyncpa [#allocation4], 0  ;;  %s31081_s0 = inlined_call_operand.vmem [shape: f32[4,16,512], index: 0, kind: input, shape index: {}]   ;;  %s31082_s1 = inlined_call_operand.vmem [shape: f32[288,32], index: 1, kind: input, shape index: {}]   ;;  %s31083_s2 = inlined_call_operand.vmem [shape: f32[1,32], index: 2, kind: input, shape index: {}]   ;;  %s31084_s3 = inlined_call_operand.vmem [shape: f32[2,32], index: 3, kind: input, shape index: {}]   ;;  %s31085_s4 = inlined_call_operand.vmem [shape: f32[2,32], index: 4, kind: input, shape index: {}]   ;;  %s31086_s5 = inlined_call_operand.vmem [shape: f32[288,32], index: 5, kind: input, shape index: {}]   ;;  %s31087_s6 = inlined_call_operand.vmem [shape: f32[1,32], index: 6, kind: input, shape index: {}]   ;;  %s31088_s7 = inlined_call_operand.hbm [shape: f32[4,16,512], index: 7, kind: output, shape index: {}]  }
   0x1   :  { %14 = vsyncpa [#allocation4 + $0x1], 0  ;;  %s23453_s24 = smov 0   ;;  %s23455_s25 = smov 0  }
   0x2   :  { %s23457_s26 = smov 0   ;;  %s23459_s27 = smov 0  }
   0x3 LB: > { %s23474_s28 = sadd.s32 4294967295, %s23404_s27   ;;  %s17845_s29 = sadd.s32 4294967294, %s23404_s27   ;;  %s23404_s27 = sphi %s23459_s27, %s31881_s27   ;;  %s23400_s26 = sphi %s23457_s26, %s31880_s26   ;;  %s23396_s25 = sphi %s23455_s25, %s31879_s25   ;;  %s23392_s24 = sphi %s23453_s24, %s31878_s24  }
   0x4   : > { %s23478_s30 = sadd.s32 1, %s23404_s27   ;;  %s179_s8 = sadd.s32 1, %s23400_s26 }
   0x5   : > { %s176_s9 = ssub.s32 %s23404_s27, %s23478_s30  ;;  %p189_p0 = scmp.ne.s32.totalorder %s23400_s26, %s23396_s25 }
   0x6   : > { %p177_p1 = scmp.eq.s32.totalorder %s176_s9, 0  ;;  %p190_p2 = scmp.eq.s32.totalorder %s23474_s28, 1 }
   0x7   : > { %p195_p3 = scmp.ne.s32.totalorder %s23396_s25, %s23392_s24  ;;  %p196_p4 = scmp.eq.s32.totalorder %s17845_s29, 1 }
   0x8   : > { %s23489_s10 = scalar_select %p177_p1, %s23400_s26, %s179_s8  }
   0x9   : > { %p23491_p5 = por %p190_p2, %p189_p0  ;;  %p23495_p6 = por %p196_p4, %p195_p3 }
   0xa   : > { %p17848_p7 = scmp.ge.s32.totalorder %s23404_s27, 1  ;;  %p242_p8 = scmp.lt.s32.totalorder %s23404_s27, 3 }
   0xc   : > { %p243_p9 = pnand %p17848_p7, %p242_p8 }
   0xe   : > { %246 = sbr.rel (%p243_p9) target bundleno = 3836 (0xefc), region = 48 }
  0x15   : > { %s17850_s13 = sshll.u32 %s23474_s28, 1  ;;  %v417_v0 = vlaneseq  ;;  %v23406_v1 = vmov 1966171168   ;;  %s23407_s18 = smov 96   ;;  %vm283_vm0 = vcmask 261120   ;;  %v23574_v25 = vld [vmem:[%s31082_s1 + $0x20] sm:$0xff] }
  0x16   : > { %p276_p10 = scmp.lt.s32.totalorder %s17850_s13, 3  ;;  %v415_v2 = vunpack.c.l.s4 %v23406_v1  ;;  %s23408_s19 = smov 32   ;;  %v23579_v26 = vld [vmem:[%s31082_s1 + $0x28] sm:$0xff]  ;;  %v23410_v27 = vmov 0.0   ;;  %v3655_v31 = vld [vmem:[%s31082_s1 + $0x30] sm:$0xff]  ;;  %v3656_v32 = vld [vmem:[%s31082_s1 + $0x38] sm:$0xff] }
  0x17   : > { %v418_v3 = vshrl.u32 %v417_v0, 7  ;;  %s23409_s20 = smov 64   ;;  %288 = vst.msk [vmem:[#allocation2 + $0x18] sm:$0xff] %vm283_vm0, %v23410_v27  ;;  %289 = vst.msk [vmem:[#allocation2 + $0x20] sm:$0xff] %vm283_vm0, %v23410_v27  ;;  %v22114_v28 = vpack.c.bf16 %v23579_v26, %v23574_v25  ;;  %vm286_vm1 = vcmask 254976   ;;  %v22118_v33 = vpack.c.bf16 %v3656_v32, %v3655_v31  ;;  %s272_s8 = sand.u32 1, %s23396_s25  }
  0x18   : > { %s31883_s13 = smov (!%p276_p10, %s17850_s13), 3  ;;  %v416_v4 = vunpack.c.0.s8 %v415_v2  ;;  %284 = vst.msk [vmem:[#allocation2] sm:$0xff] %vm283_vm0, %v23410_v27  ;;  %285 = vst.msk [vmem:[#allocation2 + $0x8] sm:$0xff] %vm283_vm0, %v23410_v27  ;;  %vm3001_vm2 = vcmask 1040384   ;;  %vm3034_vm3 = vcmask 1041408   ;;  %vm3067_vm4 = vcmask 1042432  }
  0x19   : > { %s19015_s14 = sshll.u32 %s31883_s13, 6  ;;  %v23519_v9 = vsub.s32 0, %v418_v3  ;;  %291 = vst.msk [vmem:[#allocation2 + $0x30] sm:$0xff] %vm283_vm0, %v23410_v27  ;;  %292 = vst.msk [vmem:[#allocation2 + $0x38] sm:$0xff] %vm283_vm0, %v23410_v27  ;;  %22115 = vmatprep.subr.bf16.mxu0 %v22114_v28  ;;  %vm3100_vm5 = vcmask 1043456   ;;  %vm3133_vm6 = vcmask 1044480  }
  0x1a   : > { %v23502_v5 = vsub.s32 %v416_v4, %v418_v3  ;;  %s23507_s17 = scalar_lea.vmem %s31081_s0, %s19015_s14  ;;  %294 = vst.msk [vmem:[#allocation2 + $0x48] sm:$0xff] %vm283_vm0, %v23410_v27  ;;  %295 = vst.msk [vmem:[#allocation2 + $0x50] sm:$0xff] %vm283_vm0, %v23410_v27  ;;  %22117 = vmatpush3.bf16.msra.mxu0 %v22114_v28  ;;  %vm3166_vm7 = vcmask 1045504   ;;  %vm3199_vm8 = vcmask 1046528   ;;  %vm16576_vm9 = vcmask 1041409   ;;  %s17849_s9 = sshll.u32 %s272_s8, 7 }
  0x1b   : > { %v23510_v6 = vld [vmem:[%s23507_s17 + $0x10] sm:$0xff]  ;;  %v23513_v7 = vld [vmem:[%s23507_s17] sm:$0xff]  ;;  %v23531_v13 = vld [vmem:[%s23507_s17 + $0x8] sm:$0xff]  ;;  %297 = vst.msk [vmem:[#allocation2 + $0x60] sm:$0xff] %vm283_vm0, %v23410_v27  ;;  %22119 = vmatprep.subr.bf16.mxu0 %v22118_v33  ;;  %vm16579_vm10 = vcmask 1042434   ;;  %vm16582_vm11 = vcmask 1043459  }
  0x1c   : > { %v23517_v8 = vrot.slane %v23510_v6, %v23502_v5  ;;  %v420_v10 = vrot.slane %v23513_v7, %v23502_v5  ;;  %v23541_v16 = vrot.slane %v23531_v13, %v23502_v5  ;;  %v23553_v20 = vld [vmem:[%s23507_s17 + $0x18] sm:$0xff]  ;;  %298 = vst.msk [vmem:[#allocation2 + $0x68] sm:$0xff] %vm283_vm0, %v23410_v27  ;;  %300 = vst.msk [vmem:[#allocation2 + $0x78] sm:$0xff] %vm283_vm0, %v23410_v27  ;;  %vm16585_vm12 = vcmask 1044484   ;;  %s30687_s13 = scalar_lea.vmem [#allocation3], %s17849_s9  ;;  %s23411_s21 = smov [#allocation3]  }
  0x1d   : > { %v23557_v21 = vrot.slane %v23553_v20, %v23502_v5  ;;  %301 = vst.msk [vmem:[#allocation2 + $0x80] sm:$0xff] %vm283_vm0, %v23410_v27  ;;  %303 = vst.msk [vmem:[#allocation2 + $0x90] sm:$0xff] %vm283_vm0, %v23410_v27  ;;  %v413_v56 = vcombine.high %v23513_v7, %v23513_v7  ;;  %v845_v60 = vcombine.high %v23510_v6, %v23510_v6  ;;  %vm16588_vm13 = vcmask 1045509   ;;  %s23346_s22 = sshll.u32 %s23411_s21, 4  ;;  %s23347_s22 = int_to_ptr.vmem [resolvable:$false] %s23346_s22 }
  0x1e   : > { %v23525_v11 = vrot.slane %v23517_v8, %v23502_v5  ;;  %v23528_v12 = vrot.slane %v420_v10, %v23502_v5  ;;  %v428_v17 = vcombine.high %v420_v10, %v420_v10  ;;  %v23547_v18 = vrot.slane %v23541_v16, %v23502_v5  ;;  %304 = vst.msk [vmem:[#allocation2 + $0x98] sm:$0xff] %vm283_vm0, %v23410_v27  ;;  %s23348_s23 = scalar_lea.vmem %s23347_s22, 4096 }
  0x1f   : > { %v860_v24 = vcombine.high %v23517_v8, %v23517_v8  ;;  %306 = vst.msk [vmem:[#allocation2 + $0xa8] sm:$0xff] %vm283_vm0, %v23410_v27  ;;  %307 = vst.msk [vmem:[#allocation2 + $0xb0] sm:$0xff] %vm283_vm0, %v23410_v27  ;;  %v23733_v29 = vrot.slane %v23557_v21, %v23502_v5  ;;  %22121 = vmatpush3.bf16.msra.mxu0 %v22118_v33  ;;  %v3589_v36 = vld [vmem:[#allocation2 + $0x1] sm:$0xff]  ;;  %v660_v38 = vcombine.high %v23541_v16, %v23541_v16  ;;  %vm16591_vm14 = vcmask 1046534  }
  0x20   : > { %v2140_v14 = vrot.slane %v23525_v11, %v23519_v9  ;;  %v1276_v15 = vrot.slane %v23528_v12, %v23519_v9  ;;  %v23550_v19 = vrot.slane %v428_v17, %v23502_v5  ;;  %v23563_v22 = vrot.slane %v23547_v18, %v23519_v9  ;;  %309 = vst.msk [vmem:[#allocation2 + $0xc0] sm:$0xff] %vm283_vm0, %v23410_v27 }
  0x21   : > { %310 = vst.msk [vmem:[#allocation2 + $0xc8] sm:$0xff] %vm283_vm0, %v23410_v27  ;;  %312 = vst.msk [vmem:[#allocation2 + $0xd8] sm:$0xff] %vm283_vm0, %v23410_v27  ;;  %v23739_v30 = vrot.slane %v860_v24, %v23502_v5  ;;  %v23825_v34 = vrot.slane %v23733_v29, %v23519_v9  ;;  %20250 = vmatprep.mubr.msk.f32.mxu0 %vm283_vm0, %v3589_v36  ;;  %v682_v39 = vrot.slane %v660_v38, %v23502_v5  ;;  %vm16594_vm15 = vcmask 1047559  }
  0x22   : > { %2265 = vrot.lane.b32.xlu1 %v2140_v14, %s23407_s18  ;;  %1401 = vrot.lane.b32.xlu0 %v1276_v15, %s23407_s18  ;;  %v23567_v23 = vrot.slane %v23550_v19, %v23519_v9  ;;  %313 = vst.msk [vmem:[#allocation2 + $0xe0] sm:$0xff] %vm283_vm0, %v23410_v27  ;;  %315 = vst.msk [vmem:[#allocation2 + $0xf0] sm:$0xff] %vm283_vm0, %v23410_v27  ;;  %v23846_v40 = vcombine.high %v23528_v12, %v23528_v12 }
  0x23   : > { %316 = vst.msk [vmem:[#allocation2 + $0xf8] sm:$0xff] %vm283_vm0, %v23410_v27  ;;  %318 = vst.msk [vmem:[#allocation2 + $0x108] sm:$0xff] %vm283_vm0, %v23410_v27  ;;  %v2144_v35 = vrot.slane %v23739_v30, %v23519_v9  ;;  %v23852_v41 = vrot.slane %v682_v39, %v23519_v9  ;;  %v1092_v43 = vcombine.high %v23557_v21, %v23557_v21 }
  0x24   : > { %319 = vst.msk [vmem:[#allocation2 + $0x110] sm:$0xff] %vm283_vm0, %v23410_v27  ;;  %321 = vst.msk [vmem:[#allocation2 + $0x120] sm:$0xff] %vm283_vm0, %v23410_v27  ;;  %v1284_v42 = vrot.slane %v23846_v40, %v23519_v9  ;;  %v23864_v45 = vcombine.high %v23525_v11, %v23525_v11  ;;  %v690_v48 = vcombine.high %v23547_v18, %v23547_v18 }
  0x25   : > { %322 = vst.msk [vmem:[#allocation2 + $0x128] sm:$0xff] %vm283_vm0, %v23410_v27  ;;  %324 = vst.msk [vmem:[#allocation2 + $0x138] sm:$0xff] %vm283_vm0, %v23410_v27  ;;  %v1114_v44 = vrot.slane %v1092_v43, %v23502_v5  ;;  %v23887_v49 = vcombine.high %v23550_v19, %v23550_v19  ;;  %v1122_v52 = vcombine.high %v23733_v29, %v23733_v29 }
  0x26   : > { %1593 = vrot.lane.b32.xlu1 %v1276_v15, %s23408_s19  ;;  %1497 = vrot.lane.b32.xlu0 %v1276_v15, %s23409_s20  ;;  %325 = vst.msk [vmem:[#allocation2 + $0x140] sm:$0xff] %vm283_vm0, %v23410_v27  ;;  %327 = vst.msk [vmem:[#allocation2 + $0x150] sm:$0xff] %vm283_vm0, %v23410_v27  ;;  %v2148_v47 = vrot.slane %v23864_v45, %v23519_v9  ;;  %v23893_v50 = vrot.slane %v690_v48, %v23519_v9 }
  0x27   : > { %328 = vst.msk [vmem:[#allocation2 + $0x158] sm:$0xff] %vm283_vm0, %v23410_v27  ;;  %330 = vst.msk [vmem:[#allocation2 + $0x168] sm:$0xff] %vm283_vm0, %v23410_v27  ;;  %v23870_v46 = vrot.slane %v1114_v44, %v23519_v9  ;;  %v1288_v51 = vrot.slane %v23887_v49, %v23519_v9  ;;  %v23904_v53 = vcombine.high %v23739_v30, %v23739_v30 }
  0x28   : > { %331 = vst.msk [vmem:[#allocation2 + $0x170] sm:$0xff] %vm283_vm0, %v23410_v27  ;;  %333 = vst.msk [vmem:[#allocation2 + $0x180] sm:$0xff] %vm283_vm0, %v23410_v27  ;;  %v23910_v54 = vrot.slane %v1122_v52, %v23519_v9  ;;  %v427_v57 = vrot.slane %v413_v56, %v23502_v5  ;;  %v692_v58 = vcombine.high %v682_v39, %v682_v39 }
  0x29   : > { %334 = vst.msk [vmem:[#allocation2 + $0x188] sm:$0xff] %vm283_vm0, %v23410_v27  ;;  %336 = vst.msk [vmem:[#allocation2 + $0x198] sm:$0xff] %vm283_vm0, %v23410_v27  ;;  %v2152_v55 = vrot.slane %v23904_v53, %v23519_v9  ;;  %v859_v63 = vrot.slane %v845_v60, %v23502_v5  ;;  %v1124_v0 = vcombine.high %v1114_v44, %v1114_v44 }
  0x2a   : > { %2457 = vrot.lane.b32.xlu1 %v2140_v14, %s23408_s19  ;;  %2361 = vrot.lane.b32.xlu0 %v2140_v14, %s23409_s20  ;;  %337 = vst.msk [vmem:[#allocation2 + $0x1a0] sm:$0xff] %vm283_vm0, %v23410_v27  ;;  %339 = vst.msk [vmem:[#allocation2 + $0x1b0] sm:$0xff] %vm283_vm0, %v23410_v27  ;;  %v23927_v59 = vrot.slane %v427_v57, %v23502_v5  ;;  %v23935_v61 = vrot.slane %v692_v58, %v23519_v9 }
  0x2b   : > { %340 = vst.msk [vmem:[#allocation2 + $0x1b8] sm:$0xff] %vm283_vm0, %v23410_v27  ;;  %342 = vst.msk [vmem:[#allocation2 + $0x1c8] sm:$0xff] %vm283_vm0, %v23410_v27  ;;  %v23944_v1 = vrot.slane %v859_v63, %v23502_v5  ;;  %v23950_v2 = vrot.slane %v1124_v0, %v23519_v9  ;;  %v645_v4 = vcombine.high %v23531_v13, %v23531_v13 }
  0x2c   : > { %343 = vst.msk [vmem:[#allocation2 + $0x1d0] sm:$0xff] %vm283_vm0, %v23410_v27  ;;  %345 = vst.msk [vmem:[#allocation2 + $0x1e0] sm:$0xff] %vm283_vm0, %v23410_v27  ;;  %v1292_v62 = vrot.slane %v23927_v59, %v23519_v9  ;;  %v429_v7 = vcombine.high %v427_v57, %v427_v57  ;;  %v1077_v8 = vcombine.high %v23553_v20, %v23553_v20 }
  0x2d   : > { %346 = vst.msk [vmem:[#allocation2 + $0x1e8] sm:$0xff] %vm283_vm0, %v23410_v27  ;;  %348 = vst.msk [vmem:[#allocation2 + $0x1f8] sm:$0xff] %vm283_vm0, %v23410_v27  ;;  %v2156_v3 = vrot.slane %v23944_v1, %v23519_v9  ;;  %v659_v6 = vrot.slane %v645_v4, %v23502_v5  ;;  %v861_v17 = vcombine.high %v859_v63, %v859_v63 }
  0x2e   : > { %349 = vst.msk [vmem:[#allocation2 + $0x200] sm:$0xff] %vm283_vm0, %v23410_v27  ;;  %351 = vst.msk [vmem:[#allocation2 + $0x210] sm:$0xff] %vm283_vm0, %v23410_v27  ;;  %1849 = vrot.lane.b32.xlu1 %v23563_v22, %s23407_s18  ;;  %1403 = vrot.lane.b32.xlu0 %v23567_v23, %s23407_s18  ;;  %v23972_v13 = vrot.slane %v429_v7, %v23502_v5  ;;  %v1091_v14 = vrot.slane %v1077_v8, %v23502_v5 }
  0x2f   : > { %352 = vst.msk [vmem:[#allocation2 + $0x218] sm:$0xff] %vm283_vm0, %v23410_v27  ;;  %354 = vst.msk [vmem:[#allocation2 + $0x228] sm:$0xff] %vm283_vm0, %v23410_v27  ;;  %v23969_v10 = vrot.slane %v659_v6, %v23502_v5  ;;  %v23991_v20 = vrot.slane %v861_v17, %v23502_v5  ;;  %v661_v28 = vcombine.high %v659_v6, %v659_v6 }
  0x30   : > { %355 = vst.msk [vmem:[#allocation2 + $0x230] sm:$0xff] %vm283_vm0, %v23410_v27  ;;  %357 = vst.msk [vmem:[#allocation2 + $0x240] sm:$0xff] %vm283_vm0, %v23410_v27  ;;  %v1296_v16 = vrot.slane %v23972_v13, %v23519_v9  ;;  %v23988_v18 = vrot.slane %v1091_v14, %v23502_v5  ;;  %v24016_v33 = vcombine.high %v23927_v59, %v23927_v59 }
  0x31   : > { %358 = vst.msk [vmem:[#allocation2 + $0x248] sm:$0xff] %vm283_vm0, %v23410_v27  ;;  %360 = vst.msk [vmem:[#allocation2 + $0x258] sm:$0xff] %vm283_vm0, %v23410_v27  ;;  %v23980_v15 = vrot.slane %v23969_v10, %v23519_v9  ;;  %v24012_v32 = vrot.slane %v661_v28, %v23502_v5  ;;  %v1093_v39 = vcombine.high %v1091_v14, %v1091_v14 }
  0x32   : > { %361 = vst.msk [vmem:[#allocation2 + $0x260] sm:$0xff] %vm283_vm0, %v23410_v27  ;;  %363 = vst.msk [vmem:[#allocation2 + $0x270] sm:$0xff] %vm283_vm0, %v23410_v27  ;;  %1945 = vrot.lane.b32.xlu1 %v23563_v22, %s23409_s20  ;;  %1499 = vrot.lane.b32.xlu0 %v23567_v23, %s23409_s20  ;;  %v23998_v21 = vrot.slane %v23988_v18, %v23519_v9  ;;  %v1300_v38 = vrot.slane %v24016_v33, %v23519_v9 }
  0x33   : > { %364 = vst.msk [vmem:[#allocation2 + $0x278] sm:$0xff] %vm283_vm0, %v23410_v27  ;;  %366 = vst.msk [vmem:[#allocation2 + $0x288] sm:$0xff] %vm283_vm0, %v23410_v27  ;;  %v24036_v48 = vrot.slane %v1093_v39, %v23502_v5 }
  0x34   : > { %367 = vst.msk [vmem:[#allocation2 + $0x290] sm:$0xff] %vm283_vm0, %v23410_v27  ;;  %369 = vst.msk [vmem:[#allocation2 + $0x2a0] sm:$0xff] %vm283_vm0, %v23410_v27 }
  0x35   : > { %370 = vst.msk [vmem:[#allocation2 + $0x2a8] sm:$0xff] %vm283_vm0, %v23410_v27  ;;  %372 = vst.msk [vmem:[#allocation2 + $0x2b8] sm:$0xff] %vm283_vm0, %v23410_v27  ;;  %v24052_v57 = vrot.slane %v24036_v48, %v23519_v9 }
  0x36   : > { %373 = vst.msk [vmem:[#allocation2 + $0x2c0] sm:$0xff] %vm283_vm0, %v23410_v27  ;;  %375 = vst.msk [vmem:[#allocation2 + $0x2d0] sm:$0xff] %vm283_vm0, %v23410_v27  ;;  %2713 = vrot.lane.b32.xlu1 %v23825_v34, %s23407_s18  ;;  %2267 = vrot.lane.b32.xlu0 %v2144_v35, %s23407_s18 }
  0x37   : > { %376 = vst.msk [vmem:[#allocation2 + $0x2d8] sm:$0xff] %vm283_vm0, %v23410_v27  ;;  %378 = vst.msk [vmem:[#allocation2 + $0x2e8] sm:$0xff] %vm283_vm0, %v23410_v27 }
  0x38   : > { %379 = vst.msk [vmem:[#allocation2 + $0x2f0] sm:$0xff] %vm283_vm0, %v23410_v27  ;;  %381 = vst.msk [vmem:[#allocation2 + $0x300] sm:$0xff] %vm283_vm0, %v23410_v27 }
  0x39   : > { %382 = vst.msk [vmem:[#allocation2 + $0x308] sm:$0xff] %vm283_vm0, %v23410_v27  ;;  %384 = vst.msk [vmem:[#allocation2 + $0x318] sm:$0xff] %vm283_vm0, %v23410_v27 }
  0x3a   : > { %385 = vst.msk [vmem:[#allocation2 + $0x320] sm:$0xff] %vm283_vm0, %v23410_v27  ;;  %387 = vst.msk [vmem:[#allocation2 + $0x330] sm:$0xff] %vm283_vm0, %v23410_v27  ;;  %2041 = vrot.lane.b32.xlu1 %v23563_v22, %s23408_s19  ;;  %1595 = vrot.lane.b32.xlu0 %v23567_v23, %s23408_s19  ;;  %v2160_v23 = vrot.slane %v23991_v20, %v23519_v9 }
  0x3b   : > { %388 = vst.msk [vmem:[#allocation2 + $0x338] sm:$0xff] %vm283_vm0, %v23410_v27  ;;  %390 = vst.msk [vmem:[#allocation2 + $0x348] sm:$0xff] %vm283_vm0, %v23410_v27 }
  0x3c   : > { %391 = vst.msk [vmem:[#allocation2 + $0x350] sm:$0xff] %vm283_vm0, %v23410_v27 }
  0x3d   : > { %290 = vst.msk [vmem:[#allocation2 + $0x28] sm:$0x3] %vm286_vm1, %v23410_v27  ;;  %287 = vst.msk [vmem:[#allocation2 + $0x10] sm:$0x3] %vm286_vm1, %v23410_v27 }
  0x3e   : > { %293 = vst.msk [vmem:[#allocation2 + $0x40] sm:$0x3] %vm286_vm1, %v23410_v27  ;;  %296 = vst.msk [vmem:[#allocation2 + $0x58] sm:$0x3] %vm286_vm1, %v23410_v27  ;;  %2809 = vrot.lane.b32.xlu1 %v23825_v34, %s23409_s20  ;;  %2363 = vrot.lane.b32.xlu0 %v2144_v35, %s23409_s20 }
  0x3f   : > { %299 = vst.msk [vmem:[#allocation2 + $0x70] sm:$0x3] %vm286_vm1, %v23410_v27  ;;  %302 = vst.msk [vmem:[#allocation2 + $0x88] sm:$0x3] %vm286_vm1, %v23410_v27 }
  0x40   : > { %305 = vst.msk [vmem:[#allocation2 + $0xa0] sm:$0x3] %vm286_vm1, %v23410_v27  ;;  %308 = vst.msk [vmem:[#allocation2 + $0xb8] sm:$0x3] %vm286_vm1, %v23410_v27 }
  0x41   : > { %311 = vst.msk [vmem:[#allocation2 + $0xd0] sm:$0x3] %vm286_vm1, %v23410_v27  ;;  %314 = vst.msk [vmem:[#allocation2 + $0xe8] sm:$0x3] %vm286_vm1, %v23410_v27 }
  0x42   : > { %317 = vst.msk [vmem:[#allocation2 + $0x100] sm:$0x3] %vm286_vm1, %v23410_v27  ;;  %320 = vst.msk [vmem:[#allocation2 + $0x118] sm:$0x3] %vm286_vm1, %v23410_v27  ;;  %2905 = vrot.lane.b32.xlu1 %v23825_v34, %s23408_s19  ;;  %2459 = vrot.lane.b32.xlu0 %v2144_v35, %s23408_s19 }
  0x43   : > { %323 = vst.msk [vmem:[#allocation2 + $0x130] sm:$0x3] %vm286_vm1, %v23410_v27  ;;  %326 = vst.msk [vmem:[#allocation2 + $0x148] sm:$0x3] %vm286_vm1, %v23410_v27 }
  0x44   : > { %329 = vst.msk [vmem:[#allocation2 + $0x160] sm:$0x3] %vm286_vm1, %v23410_v27  ;;  %332 = vst.msk [vmem:[#allocation2 + $0x178] sm:$0x3] %vm286_vm1, %v23410_v27  ;;  %v3590_v37 = vld [vmem:[#allocation2 + $0x9] sm:$0xff] }
  0x45   : > { %335 = vst.msk [vmem:[#allocation2 + $0x190] sm:$0x3] %vm286_vm1, %v23410_v27  ;;  %338 = vst.msk [vmem:[#allocation2 + $0x1a8] sm:$0x3] %vm286_vm1, %v23410_v27  ;;  %20251 = vmatmul.mubr.msk.f32.vlgmr.msra.gmra.mrb[0].mxu0 %vm283_vm0, %v3590_v37  ;;  %v24025_v37 = vrot.slane %v24012_v32, %v23519_v9 }
  0x46   : > { %341 = vst.msk [vmem:[#allocation2 + $0x1c0] sm:$0x3] %vm286_vm1, %v23410_v27  ;;  %344 = vst.msk [vmem:[#allocation2 + $0x1d8] sm:$0x3] %vm286_vm1, %v23410_v27  ;;  %1851 = vrot.lane.b32.xlu1 %v23852_v41, %s23407_s18  ;;  %1405 = vrot.lane.b32.xlu0 %v1284_v42, %s23407_s18 }
  0x47   : > { %347 = vst.msk [vmem:[#allocation2 + $0x1f0] sm:$0x3] %vm286_vm1, %v23410_v27  ;;  %350 = vst.msk [vmem:[#allocation2 + $0x208] sm:$0x3] %vm286_vm1, %v23410_v27 }
  0x48   : > { %353 = vst.msk [vmem:[#allocation2 + $0x220] sm:$0x3] %vm286_vm1, %v23410_v27  ;;  %356 = vst.msk [vmem:[#allocation2 + $0x238] sm:$0x3] %vm286_vm1, %v23410_v27 }
  0x49   : > { %359 = vst.msk [vmem:[#allocation2 + $0x250] sm:$0x3] %vm286_vm1, %v23410_v27  ;;  %362 = vst.msk [vmem:[#allocation2 + $0x268] sm:$0x3] %vm286_vm1, %v23410_v27 }
  0x4a   : > { %365 = vst.msk [vmem:[#allocation2 + $0x280] sm:$0x3] %vm286_vm1, %v23410_v27  ;;  %368 = vst.msk [vmem:[#allocation2 + $0x298] sm:$0x3] %vm286_vm1, %v23410_v27  ;;  %1947 = vrot.lane.b32.xlu1 %v23852_v41, %s23409_s20  ;;  %1501 = vrot.lane.b32.xlu0 %v1284_v42, %s23409_s20 }
  0x4b   : > { %371 = vst.msk [vmem:[#allocation2 + $0x2b0] sm:$0x3] %vm286_vm1, %v23410_v27  ;;  %374 = vst.msk [vmem:[#allocation2 + $0x2c8] sm:$0x3] %vm286_vm1, %v23410_v27 }
  0x4c   : > { %377 = vst.msk [vmem:[#allocation2 + $0x2e0] sm:$0x3] %vm286_vm1, %v23410_v27  ;;  %380 = vst.msk [vmem:[#allocation2 + $0x2f8] sm:$0x3] %vm286_vm1, %v23410_v27 }
  0x4d   : > { %383 = vst.msk [vmem:[#allocation2 + $0x310] sm:$0x3] %vm286_vm1, %v23410_v27  ;;  %386 = vst.msk [vmem:[#allocation2 + $0x328] sm:$0x3] %vm286_vm1, %v23410_v27 }
  0x4e   : > { %389 = vst.msk [vmem:[#allocation2 + $0x340] sm:$0x3] %vm286_vm1, %v23410_v27  ;;  %392 = vst.msk [vmem:[#allocation2 + $0x358] sm:$0x3] %vm286_vm1, %v23410_v27  ;;  %2715 = vrot.lane.b32.xlu1 %v23870_v46, %s23407_s18  ;;  %2269 = vrot.lane.b32.xlu0 %v2148_v47, %s23407_s18 }
  0x52   : > { %2043 = vrot.lane.b32.xlu1 %v23852_v41, %s23408_s19  ;;  %1597 = vrot.lane.b32.xlu0 %v1284_v42, %s23408_s19 }
  0x56   : > { %2811 = vrot.lane.b32.xlu1 %v23870_v46, %s23409_s20  ;;  %2365 = vrot.lane.b32.xlu0 %v2148_v47, %s23409_s20 }
  0x5a   : > { %2907 = vrot.lane.b32.xlu1 %v23870_v46, %s23408_s19  ;;  %2461 = vrot.lane.b32.xlu0 %v2148_v47, %s23408_s19 }
  0x5e   : > { %1853 = vrot.lane.b32.xlu1 %v23893_v50, %s23407_s18  ;;  %1407 = vrot.lane.b32.xlu0 %v1288_v51, %s23407_s18 }
  0x62   : > { %1949 = vrot.lane.b32.xlu1 %v23893_v50, %s23409_s20  ;;  %1503 = vrot.lane.b32.xlu0 %v1288_v51, %s23409_s20 }
  0x66   : > { %2717 = vrot.lane.b32.xlu1 %v23910_v54, %s23407_s18  ;;  %2271 = vrot.lane.b32.xlu0 %v2152_v55, %s23407_s18 }
  0x6a   : > { %2045 = vrot.lane.b32.xlu1 %v23893_v50, %s23408_s19  ;;  %1599 = vrot.lane.b32.xlu0 %v1288_v51, %s23408_s19  ;;  %v24040_v51 = vcombine.high %v23944_v1, %v23944_v1 }
  0x6c   : > { %v2164_v58 = vrot.slane %v24040_v51, %v23519_v9 }
  0x6e   : > { %2813 = vrot.lane.b32.xlu1 %v23910_v54, %s23409_s20  ;;  %2367 = vrot.lane.b32.xlu0 %v2152_v55, %s23409_s20 }
  0x72   : > { %2909 = vrot.lane.b32.xlu1 %v23910_v54, %s23408_s19  ;;  %2463 = vrot.lane.b32.xlu0 %v2152_v55, %s23408_s19 }
  0x76   : > { %1855 = vrot.lane.b32.xlu1 %v23935_v61, %s23407_s18  ;;  %1409 = vrot.lane.b32.xlu0 %v1292_v62, %s23407_s18 }
  0x7a   : > { %1951 = vrot.lane.b32.xlu1 %v23935_v61, %s23409_s20  ;;  %1505 = vrot.lane.b32.xlu0 %v1292_v62, %s23409_s20 }
  0x7e   : > { %2719 = vrot.lane.b32.xlu1 %v23950_v2, %s23407_s18  ;;  %2273 = vrot.lane.b32.xlu0 %v2156_v3, %s23407_s18 }
  0x82   : > { %2047 = vrot.lane.b32.xlu1 %v23935_v61, %s23408_s19  ;;  %1601 = vrot.lane.b32.xlu0 %v1292_v62, %s23408_s19 }
  0x86   : > { %2815 = vrot.lane.b32.xlu1 %v23950_v2, %s23409_s20  ;;  %2369 = vrot.lane.b32.xlu0 %v2156_v3, %s23409_s20 }
  0x8a   : > { %2911 = vrot.lane.b32.xlu1 %v23950_v2, %s23408_s19  ;;  %2465 = vrot.lane.b32.xlu0 %v2156_v3, %s23408_s19 }
  0x8e   : > { %1857 = vrot.lane.b32.xlu1 %v23980_v15, %s23407_s18  ;;  %1411 = vrot.lane.b32.xlu0 %v1296_v16, %s23407_s18 }
  0x92   : > { %1953 = vrot.lane.b32.xlu1 %v23980_v15, %s23409_s20  ;;  %1507 = vrot.lane.b32.xlu0 %v1296_v16, %s23409_s20 }
  0x94   : > { %v2266_v24 = vpop.permute.xlu1 %2265  ;;  %v1402_v25 = vpop.permute.xlu0 %1401 }
  0x95   : > { %v3002_v42 = vsel %vm3001_vm2, %v23528_v12, %v1402_v25  ;;  %v3232_v60 = vsel %vm3001_vm2, %v23525_v11, %v2266_v24 }
  0x96   : > { %2721 = vrot.lane.b32.xlu1 %v23998_v21, %s23407_s18  ;;  %2275 = vrot.lane.b32.xlu0 %v2160_v23, %s23407_s18 }
  0x98   : > { %v1594_v26 = vpop.permute.xlu1 %1593  ;;  %v1498_v27 = vpop.permute.xlu0 %1497 }
  0x99   : > { %v3035_v43 = vsel %vm3034_vm3, %v3002_v42, %v1498_v27 }
  0x9a   : > { %2049 = vrot.lane.b32.xlu1 %v23980_v15, %s23408_s19  ;;  %1603 = vrot.lane.b32.xlu0 %v1296_v16, %s23408_s19  ;;  %v3068_v52 = vsel %vm3067_vm4, %v3035_v43, %v1594_v26  ;;  %v24084_v26 = vcombine.high %v23972_v13, %v23972_v13  ;;  %v1123_v43 = vcombine.high %v23988_v18, %v23988_v18 }
  0x9b   : > { %v3101_v56 = vsel %vm3100_vm5, %v3068_v52, %v23563_v22  ;;  %v24109_v52 = vcombine.high %v23991_v20, %v23991_v20 }
  0x9c   : > { %v2458_v29 = vpop.permute.xlu1 %2457  ;;  %v2362_v31 = vpop.permute.xlu0 %2361 }
  0x9d   : > { %v3264_v22 = vsel %vm3034_vm3, %v3232_v60, %v2362_v31 }
  0x9e   : > { %2817 = vrot.lane.b32.xlu1 %v23998_v21, %s23409_s20  ;;  %2371 = vrot.lane.b32.xlu0 %v2160_v23, %s23409_s20  ;;  %v3296_v6 = vsel %vm3067_vm4, %v3264_v22, %v2458_v29 }
  0x9f   : > { %v3328_v8 = vsel %vm3100_vm5, %v3296_v6, %v23825_v34  ;;  %v691_v34 = vcombine.high %v23969_v10, %v23969_v10  ;;  %v1304_v10 = vrot.slane %v24084_v26, %v23519_v9  ;;  %v24136_v6 = vld [vmem:[%s23507_s17 + $0x20] sm:$0xff] }
  0xa0   : > { %v1850_v35 = vpop.permute.xlu1 %1849  ;;  %v24018_v36 = vpop.permute.xlu0 %1403 }
  0xa1   : > { %v3134_v62 = vsel %vm3133_vm6, %v3101_v56, %v1850_v35  ;;  %v24091_v29 = vrot.slane %v691_v34, %v23519_v9  ;;  %v2168_v56 = vrot.slane %v24109_v52, %v23519_v9  ;;  %v24164_v34 = vld [vmem:[%s23507_s17 + $0x30] sm:$0xff] }
  0xa2   : > { %2913 = vrot.lane.b32.xlu1 %v23998_v21, %s23408_s19  ;;  %2467 = vrot.lane.b32.xlu0 %v2160_v23, %s23408_s19 }
  0xa4   : > { %v1946_v44 = vpop.permute.xlu1 %1945  ;;  %v1500_v47 = vpop.permute.xlu0 %1499 }
  0xa5   : > { %v3167_v63 = vsel %vm3166_vm7, %v3134_v62, %v1946_v44 }
  0xa6   : > { %1859 = vrot.lane.b32.xlu1 %v24025_v37, %s23407_s18  ;;  %1413 = vrot.lane.b32.xlu0 %v1300_v38, %s23407_s18 }
  0xa8   : > { %v2714_v12 = vpop.permute.xlu1 %2713  ;;  %v24043_v55 = vpop.permute.xlu0 %2267 }
  0xa9   : > { %v3360_v14 = vsel %vm3133_vm6, %v3328_v8, %v2714_v12  ;;  %v24118_v12 = vrot.slane %v1123_v43, %v23519_v9 }
  0xaa   : > { %1955 = vrot.lane.b32.xlu1 %v24025_v37, %s23409_s20  ;;  %1509 = vrot.lane.b32.xlu0 %v1300_v38, %s23409_s20 }
  0xac   : > { %v2042_v0 = vpop.permute.xlu1 %2041  ;;  %v1596_v3 = vpop.permute.xlu0 %1595 }
  0xad   : > { %v3200_v4 = vsel %vm3199_vm8, %v3167_v63, %v2042_v0 }
  0xae   : > { %3457 = vst.msk [vmem:[#allocation2 + $0x19] sm:$0xff] %vm283_vm0, %v3200_v4  ;;  %2723 = vrot.lane.b32.xlu1 %v24052_v57, %s23407_s18  ;;  %2277 = vrot.lane.b32.xlu0 %v2164_v58, %s23407_s18 }
  0xb0   : > { %v2810_v11 = vpop.permute.xlu1 %2809  ;;  %v2364_v7 = vpop.permute.xlu0 %2363 }
  0xb1   : > { %v3392_v16 = vsel %vm3166_vm7, %v3360_v14, %v2810_v11  ;;  %v24146_v11 = vrot.slane %v24136_v6, %v23502_v5 }
  0xb2   : > { %2051 = vrot.lane.b32.xlu1 %v24025_v37, %s23408_s19  ;;  %1605 = vrot.lane.b32.xlu0 %v1300_v38, %s23408_s19  ;;  %v3003_v38 = vsel %vm3001_vm2, %v23550_v19, %v24018_v36 }
  0xb3   : > { %v3036_v42 = vsel %vm3034_vm3, %v3003_v38, %v1500_v47 }
  0xb4   : > { %v2906_v17 = vpop.permute.xlu1 %2905  ;;  %v2460_v23 = vpop.permute.xlu0 %2459  ;;  %v3069_v44 = vsel %vm3067_vm4, %v3036_v42, %v1596_v3 }
  0xb5   : > { %v3424_v24 = vsel %vm3199_vm8, %v3392_v16, %v2906_v17  ;;  %v3591_v25 = vld [vmem:[#allocation2 + $0x19] sm:$0xff]  ;;  %v3102_v47 = vsel %vm3100_vm5, %v3069_v44, %v23852_v41  ;;  %v3233_v41 = vsel %vm3001_vm2, %v23739_v30, %v24043_v55  ;;  %v1125_v44 = vcombine.high %v24036_v48, %v24036_v48 }
  0xb6   : > { %3458 = vst.msk [vmem:[#allocation2 + $0x21] sm:$0xff] %vm283_vm0, %v3424_v24  ;;  %2819 = vrot.lane.b32.xlu1 %v24052_v57, %s23409_s20  ;;  %20253 = vmatprep.mubr.msk.f32.mxu0 %vm283_vm0, %v3591_v25  ;;  %v3265_v63 = vsel %vm3034_vm3, %v3233_v41, %v2364_v7 }
  0xb7   : > { %2373 = vrot.lane.b32.xlu0 %v2164_v58, %s23409_s20  ;;  %v3297_v0 = vsel %vm3067_vm4, %v3265_v63, %v2460_v23  ;;  %v24159_v23 = vrot.slane %v24146_v11, %v23502_v5  ;;  %v24200_v48 = vrot.slane %v1125_v44, %v23519_v9 }
  0xb8   : > { %v1852_v27 = vpop.permute.xlu1 %1851  ;;  %v24086_v28 = vpop.permute.xlu0 %1405  ;;  %v3329_v30 = vsel %vm3100_vm5, %v3297_v0, %v23870_v46  ;;  %v693_v46 = vcombine.high %v24012_v32, %v24012_v32  ;;  %v24218_v0 = vld [vmem:[%s23507_s17 + $0x28] sm:$0xff] }
  0xb9   : > { %v3135_v18 = vsel %vm3133_vm6, %v3102_v47, %v1852_v27  ;;  %v1308_v32 = vrot.slane %v24159_v23, %v23519_v9 }
  0xba   : > { %2915 = vrot.lane.b32.xlu1 %v24052_v57, %s23408_s19  ;;  %v24169_v27 = vrot.slane %v693_v46, %v23519_v9  ;;  %v24247_v46 = vld [vmem:[%s23507_s17 + $0x38] sm:$0xff] }
  0xbb   : > { %2469 = vrot.lane.b32.xlu0 %v2164_v58, %s23408_s19 }
  0xbc   : > { %v1948_v31 = vpop.permute.xlu1 %1947  ;;  %v1502_v35 = vpop.permute.xlu0 %1501 }
  0xbd   : > { %v3592_v39 = vld [vmem:[#allocation2 + $0x21] sm:$0xff]  ;;  %v3168_v58 = vsel %vm3166_vm7, %v3135_v18, %v1948_v31 }
  0xbe   : > { %1861 = vrot.lane.b32.xlu1 %v24091_v29, %s23407_s18  ;;  %20254 = vmatmul.mubr.msk.f32.gmra.mrb[2].mxu0 %vm283_vm0, %v3592_v39  ;;  %v3004_v39 = vsel %vm3001_vm2, %v23846_v40, %v24086_v28 }
  0xbf   : > { %1415 = vrot.lane.b32.xlu0 %v1304_v10, %s23407_s18  ;;  %v3037_v43 = vsel %vm3034_vm3, %v3004_v39, %v1502_v35  ;;  %v24259_v39 = vrot.slane %v24247_v46, %v23502_v5 }
  0xc0   : > { %v2716_v19 = vpop.permute.xlu1 %2715  ;;  %v24111_v36 = vpop.permute.xlu0 %2269 }
  0xc1   : > { %v3361_v55 = vsel %vm3133_vm6, %v3329_v30, %v2716_v19 }
  0xc2   : > { %1957 = vrot.lane.b32.xlu1 %v24091_v29, %s23409_s20 }
  0xc3   : > { %1511 = vrot.lane.b32.xlu0 %v1304_v10, %s23409_s20 }
  0xc4   : > { %v2044_v60 = vpop.permute.xlu1 %2043  ;;  %v1598_v62 = vpop.permute.xlu0 %1597 }
  0xc5   : > { %v3201_v22 = vsel %vm3199_vm8, %v3168_v58, %v2044_v60  ;;  %v3070_v19 = vsel %vm3067_vm4, %v3037_v43, %v1598_v62 }
  0xc6   : > { %3459 = vst.msk [vmem:[#allocation2 + $0x31] sm:$0xff] %vm283_vm0, %v3201_v22  ;;  %2725 = vrot.lane.b32.xlu1 %v24118_v12, %s23407_s18  ;;  %v3103_v35 = vsel %vm3100_vm5, %v3070_v19, %v23893_v50  ;;  %v3234_v50 = vsel %vm3001_vm2, %v23864_v45, %v24111_v36  ;;  %v24226_v36 = vrot.slane %v24218_v0, %v23502_v5 }
  0xc7   : > { %2279 = vrot.lane.b32.xlu0 %v2168_v56, %s23407_s18 }
  0xc8   : > { %v2812_v3 = vpop.permute.xlu1 %2811  ;;  %v2366_v4 = vpop.permute.xlu0 %2365 }
  0xc9   : > { %v3393_v7 = vsel %vm3166_vm7, %v3361_v55, %v2812_v3  ;;  %v3266_v22 = vsel %vm3034_vm3, %v3234_v50, %v2366_v4  ;;  %v477_v4 = vcombine.high %v24146_v11, %v24146_v11  ;;  %v24240_v11 = vrot.slane %v24226_v36, %v23502_v5 }
  0xca   : > { %2053 = vrot.lane.b32.xlu1 %v24091_v29, %s23408_s19 }
  0xcb   : > { %1607 = vrot.lane.b32.xlu0 %v1304_v10, %s23408_s19  ;;  %v24176_v10 = vrot.slane %v24164_v34, %v23502_v5 }
  0xcc   : > { %v2908_v8 = vpop.permute.xlu1 %2907  ;;  %v2462_v14 = vpop.permute.xlu0 %2461 }
  0xcd   : > { %v3425_v16 = vsel %vm3199_vm8, %v3393_v7, %v2908_v8  ;;  %v3593_v17 = vld [vmem:[#allocation2 + $0x31] sm:$0xff]  ;;  %v24191_v47 = vrot.slane %v24176_v10, %v23502_v5  ;;  %v3298_v63 = vsel %vm3067_vm4, %v3266_v22, %v2462_v14 }
  0xce   : > { %3460 = vst.msk [vmem:[#allocation2 + $0x39] sm:$0xff] %vm283_vm0, %v3425_v16  ;;  %2821 = vrot.lane.b32.xlu1 %v24118_v12, %s23409_s20  ;;  %20256 = vmatprep.mubr.msk.f32.mxu0 %vm283_vm0, %v3593_v17  ;;  %v3330_v45 = vsel %vm3100_vm5, %v3298_v63, %v23910_v54  ;;  %v24244_v17 = vrot.slane %v477_v4, %v23502_v5 }
  0xcf   : > { %2375 = vrot.lane.b32.xlu0 %v2168_v56, %s23409_s20 }
  0xd0   : > { %v1854_v24 = vpop.permute.xlu1 %1853  ;;  %v24161_v25 = vpop.permute.xlu0 %1407  ;;  %v1312_v43 = vrot.slane %v24244_v17, %v23519_v9 }
  0xd1   : > { %v3136_v18 = vsel %vm3133_vm6, %v3103_v35, %v1854_v24 }
  0xd2   : > { %2917 = vrot.lane.b32.xlu1 %v24118_v12, %s23408_s19 }
  0xd3   : > { %2471 = vrot.lane.b32.xlu0 %v2168_v56, %s23408_s19  ;;  %v2172_v56 = vrot.slane %v24191_v47, %v23519_v9 }
  0xd4   : > { %v1950_v31 = vpop.permute.xlu1 %1949  ;;  %v1504_v38 = vpop.permute.xlu0 %1503 }
  0xd5   : > { %v3594_v42 = vld [vmem:[#allocation2 + $0x39] sm:$0xff]  ;;  %v3169_v58 = vsel %vm3166_vm7, %v3136_v18, %v1950_v31  ;;  %v24255_v31 = vrot.slane %v24240_v11, %v23519_v9 }
  0xd6   : > { %1863 = vrot.lane.b32.xlu1 %v24169_v27, %s23407_s18  ;;  %20257 = vmatmul.mubr.msk.f32.gmra.mrb[4].mxu0 %vm283_vm0, %v3594_v42  ;;  %v909_v42 = vcombine.high %v24176_v10, %v24176_v10  ;;  %v24275_v10 = vrot.slane %v24259_v39, %v23502_v5 }
  0xd7   : > { %1417 = vrot.lane.b32.xlu0 %v1308_v32, %s23407_s18 }
  0xd8   : > { %v2718_v40 = vpop.permute.xlu1 %2717  ;;  %v24193_v28 = vpop.permute.xlu0 %2271 }
  0xd9   : > { %v3362_v55 = vsel %vm3133_vm6, %v3330_v45, %v2718_v40  ;;  %v3005_v40 = vsel %vm3001_vm2, %v23887_v49, %v24161_v25 }
  0xda   : > { %1959 = vrot.lane.b32.xlu1 %v24169_v27, %s23409_s20  ;;  %v3038_v18 = vsel %vm3034_vm3, %v3005_v40, %v1504_v38  ;;  %v1141_v40 = vcombine.high %v24259_v39, %v24259_v39 }
  0xdb   : > { %1513 = vrot.lane.b32.xlu0 %v1308_v32, %s23409_s20 }
  0xdc   : > { %v2046_v60 = vpop.permute.xlu1 %2045  ;;  %v1600_v62 = vpop.permute.xlu0 %1599  ;;  %v24348_v39 = vrot.slane %v1141_v40, %v23502_v5 }
  0xdd   : > { %v3202_v41 = vsel %vm3199_vm8, %v3169_v58, %v2046_v60  ;;  %v24280_v58 = vrot.slane %v909_v42, %v23502_v5  ;;  %v24290_v60 = vrot.slane %v24275_v10, %v23519_v9 }
  0xde   : > { %3461 = vst.msk [vmem:[#allocation2 + $0x49] sm:$0xff] %vm283_vm0, %v3202_v41  ;;  %2727 = vrot.lane.b32.xlu1 %v24200_v48, %s23407_s18 }
  0xdf   : > { %2281 = vrot.lane.b32.xlu0 %v2172_v56, %s23407_s18  ;;  %v2176_v50 = vrot.slane %v24280_v58, %v23519_v9 }
  0xe0   : > { %v2814_v3 = vpop.permute.xlu1 %2813  ;;  %v2368_v30 = vpop.permute.xlu0 %2367 }
  0xe1   : > { %v3394_v7 = vsel %vm3166_vm7, %v3362_v55, %v2814_v3 }
  0xe2   : > { %2055 = vrot.lane.b32.xlu1 %v24169_v27, %s23408_s19 }
  0xe3   : > { %1609 = vrot.lane.b32.xlu0 %v1308_v32, %s23408_s19 }
  0xe4   : > { %v2910_v8 = vpop.permute.xlu1 %2909  ;;  %v2464_v14 = vpop.permute.xlu0 %2463 }
  0xe5   : > { %v3426_v54 = vsel %vm3199_vm8, %v3394_v7, %v2910_v8  ;;  %v3595_v16 = vld [vmem:[#allocation2 + $0x49] sm:$0xff] }
  0xe6   : > { %3462 = vst.msk [vmem:[#allocation2 + $0x51] sm:$0xff] %vm283_vm0, %v3426_v54  ;;  %2823 = vrot.lane.b32.xlu1 %v24200_v48, %s23409_s20  ;;  %20259 = vmatprep.mubr.msk.f32.mxu0 %vm283_vm0, %v3595_v16 }
  0xe7   : > { %2377 = vrot.lane.b32.xlu0 %v2172_v56, %s23409_s20 }
  0xe8   : > { %v1856_v24 = vpop.permute.xlu1 %1855  ;;  %v24249_v32 = vpop.permute.xlu0 %1409 }
  0xea   : > { %2919 = vrot.lane.b32.xlu1 %v24200_v48, %s23408_s19 }
  0xeb   : > { %2473 = vrot.lane.b32.xlu0 %v2172_v56, %s23408_s19  ;;  %v3071_v56 = vsel %vm3067_vm4, %v3038_v18, %v1600_v62 }
  0xec   : > { %v1952_v44 = vpop.permute.xlu1 %1951  ;;  %v1506_v19 = vpop.permute.xlu0 %1505  ;;  %v3104_v38 = vsel %vm3100_vm5, %v3071_v56, %v23935_v61  ;;  %v3235_v61 = vsel %vm3001_vm2, %v23904_v53, %v24193_v28  ;;  %v709_v53 = vcombine.high %v24226_v36, %v24226_v36  ;;  %v24327_v36 = vcombine.high %v24159_v23, %v24159_v23 }
  0xed   : > { %v3596_v35 = vld [vmem:[#allocation2 + $0x51] sm:$0xff]  ;;  %v3137_v62 = vsel %vm3133_vm6, %v3104_v38, %v1856_v24  ;;  %v3267_v45 = vsel %vm3034_vm3, %v3235_v61, %v2368_v30 }
  0xee   : > { %1865 = vrot.lane.b32.xlu1 %v24255_v31, %s23407_s18  ;;  %20260 = vmatmul.mubr.msk.f32.gmra.mrb[6].mxu0 %vm283_vm0, %v3596_v35  ;;  %v3170_v41 = vsel %vm3166_vm7, %v3137_v62, %v1952_v44  ;;  %v3299_v4 = vsel %vm3067_vm4, %v3267_v45, %v2464_v14  ;;  %v1316_v35 = vrot.slane %v24327_v36, %v23519_v9 }
  0xef   : > { %1419 = vrot.lane.b32.xlu0 %v1312_v43, %s23407_s18  ;;  %v3331_v8 = vsel %vm3100_vm5, %v3299_v4, %v23950_v2  ;;  %v24322_v2 = vrot.slane %v709_v53, %v23502_v5 }
  0xf0   : > { %v2720_v49 = vpop.permute.xlu1 %2719  ;;  %v24282_v25 = vpop.permute.xlu0 %2273 }
  0xf1   : > { %v3363_v28 = vsel %vm3133_vm6, %v3331_v8, %v2720_v49  ;;  %v24333_v44 = vrot.slane %v24322_v2, %v23519_v9  ;;  %v3006_v49 = vsel %vm3001_vm2, %v23927_v59, %v24249_v32 }
  0xf2   : > { %1961 = vrot.lane.b32.xlu1 %v24255_v31, %s23409_s20  ;;  %v3039_v62 = vsel %vm3034_vm3, %v3006_v49, %v1506_v19 }
  0xf3   : > { %1515 = vrot.lane.b32.xlu0 %v1312_v43, %s23409_s20 }
  0xf4   : > { %v2048_v22 = vpop.permute.xlu1 %2047  ;;  %v1602_v63 = vpop.permute.xlu0 %1601 }
  0xf5   : > { %v3203_v3 = vsel %vm3199_vm8, %v3170_v41, %v2048_v22  ;;  %v24354_v41 = vcombine.high %v24191_v47, %v24191_v47  ;;  %v24364_v22 = vrot.slane %v24348_v39, %v23519_v9 }
  0xf6   : > { %3463 = vst.msk [vmem:[#allocation2 + $0x61] sm:$0xff] %vm283_vm0, %v3203_v3  ;;  %2729 = vrot.lane.b32.xlu1 %v24290_v60, %s23407_s18 }
  0xf7   : > { %2283 = vrot.lane.b32.xlu0 %v2176_v50, %s23407_s18  ;;  %v2180_v61 = vrot.slane %v24354_v41, %v23519_v9 }
  0xf8   : > { %v2816_v55 = vpop.permute.xlu1 %2815  ;;  %v2370_v7 = vpop.permute.xlu0 %2369 }
  0xf9   : > { %v3395_v30 = vsel %vm3166_vm7, %v3363_v28, %v2816_v55 }
  0xfa   : > { %2057 = vrot.lane.b32.xlu1 %v24255_v31, %s23408_s19 }
  0xfb   : > { %1611 = vrot.lane.b32.xlu0 %v1312_v43, %s23408_s19 }
  0xfc   : > { %v2912_v14 = vpop.permute.xlu1 %2911  ;;  %v2466_v54 = vpop.permute.xlu0 %2465 }
  0xfd   : > { %v3427_v16 = vsel %vm3199_vm8, %v3395_v30, %v2912_v14  ;;  %v3597_v24 = vld [vmem:[#allocation2 + $0x61] sm:$0xff] }
  0xfe   : > { %3464 = vst.msk [vmem:[#allocation2 + $0x69] sm:$0xff] %vm283_vm0, %v3427_v16  ;;  %2825 = vrot.lane.b32.xlu1 %v24290_v60, %s23409_s20  ;;  %20262 = vmatprep.mubr.msk.f32.mxu0 %vm283_vm0, %v3597_v24 }
  0xff   : > { %2379 = vrot.lane.b32.xlu0 %v2176_v50, %s23409_s20 }
 0x100   : > { %v1858_v42 = vpop.permute.xlu1 %1857  ;;  %v1412_v43 = vpop.permute.xlu0 %1411 }
 0x102   : > { %2921 = vrot.lane.b32.xlu1 %v24290_v60, %s23408_s19 }
 0x103   : > { %2475 = vrot.lane.b32.xlu0 %v2176_v50, %s23408_s19  ;;  %v3072_v50 = vsel %vm3067_vm4, %v3039_v62, %v1602_v63  ;;  %v3007_v62 = vsel %vm3001_vm2, %v23972_v13, %v1412_v43 }
 0x104   : > { %v1954_v18 = vpop.permute.xlu1 %1953  ;;  %v1508_v56 = vpop.permute.xlu0 %1507  ;;  %v3105_v19 = vsel %vm3100_vm5, %v3072_v50, %v23980_v15  ;;  %v3236_v15 = vsel %vm3001_vm2, %v23944_v1, %v24282_v25 }
 0x105   : > { %v3598_v38 = vld [vmem:[#allocation2 + $0x69] sm:$0xff]  ;;  %v3138_v63 = vsel %vm3133_vm6, %v3105_v19, %v1858_v42  ;;  %v3268_v8 = vsel %vm3034_vm3, %v3236_v15, %v2370_v7  ;;  %v24398_v42 = vcombine.high %v24244_v17, %v24244_v17  ;;  %v1171_v19 = vcombine.high %v24275_v10, %v24275_v10 }
 0x106   : > { %1867 = vrot.lane.b32.xlu1 %v24333_v44, %s23407_s18  ;;  %20263 = vmatmul.mubr.msk.f32.gmra.mrb[8].mxu0 %vm283_vm0, %v3598_v38  ;;  %v3171_v3 = vsel %vm3166_vm7, %v3138_v63, %v1954_v18  ;;  %v3300_v53 = vsel %vm3067_vm4, %v3268_v8, %v2466_v54 }
 0x107   : > { %1421 = vrot.lane.b32.xlu0 %v1316_v35, %s23407_s18  ;;  %v3332_v14 = vsel %vm3100_vm5, %v3300_v53, %v23998_v21  ;;  %v739_v21 = vcombine.high %v24240_v11, %v24240_v11  ;;  %v1320_v11 = vrot.slane %v24398_v42, %v23519_v9 }
 0x108   : > { %v2722_v59 = vpop.permute.xlu1 %2721  ;;  %v24356_v32 = vpop.permute.xlu0 %2275 }
 0x109   : > { %v3364_v1 = vsel %vm3133_vm6, %v3332_v14, %v2722_v59  ;;  %v24405_v18 = vrot.slane %v739_v21, %v23519_v9  ;;  %v3040_v59 = vsel %vm3034_vm3, %v3007_v62, %v1508_v56  ;;  %v894_v21 = vcombine.high %v24164_v34, %v24164_v34 }
 0x10a   : > { %1963 = vrot.lane.b32.xlu1 %v24333_v44, %s23409_s20 }
 0x10b   : > { %1517 = vrot.lane.b32.xlu0 %v1316_v35, %s23409_s20 }
 0x10c   : > { %v2050_v45 = vpop.permute.xlu1 %2049  ;;  %v1604_v4 = vpop.permute.xlu0 %1603 }
 0x10d   : > { %v3204_v55 = vsel %vm3199_vm8, %v3171_v3, %v2050_v45  ;;  %v3073_v63 = vsel %vm3067_vm4, %v3040_v59, %v1604_v4  ;;  %v24431_v3 = vrot.slane %v1171_v19, %v23519_v9 }
 0x10e   : > { %3465 = vst.msk [vmem:[#allocation2 + $0x79] sm:$0xff] %vm283_vm0, %v3204_v55  ;;  %2731 = vrot.lane.b32.xlu1 %v24364_v22, %s23407_s18  ;;  %v3106_v56 = vsel %vm3100_vm5, %v3073_v63, %v24025_v37  ;;  %v3237_v37 = vsel %vm3001_vm2, %v23991_v20, %v24356_v32 }
 0x10f   : > { %2285 = vrot.lane.b32.xlu0 %v2180_v61, %s23407_s18 }
 0x110   : > { %v2818_v28 = vpop.permute.xlu1 %2817  ;;  %v2372_v30 = vpop.permute.xlu0 %2371 }
 0x111   : > { %v3396_v25 = vsel %vm3166_vm7, %v3364_v1, %v2818_v28  ;;  %v3269_v53 = vsel %vm3034_vm3, %v3237_v37, %v2372_v30  ;;  %v462_v28 = vcombine.high %v24136_v6, %v24136_v6 }
 0x112   : > { %2059 = vrot.lane.b32.xlu1 %v24333_v44, %s23408_s19 }
 0x113   : > { %1613 = vrot.lane.b32.xlu0 %v1316_v35, %s23408_s19  ;;  %v24457_v30 = vrot.slane %v462_v28, %v23502_v5 }
 0x114   : > { %v2914_v7 = vpop.permute.xlu1 %2913  ;;  %v2468_v16 = vpop.permute.xlu0 %2467 }
 0x115   : > { %v3428_v54 = vsel %vm3199_vm8, %v3396_v25, %v2914_v7  ;;  %v3599_v24 = vld [vmem:[#allocation2 + $0x79] sm:$0xff]  ;;  %v3301_v14 = vsel %vm3067_vm4, %v3269_v53, %v2468_v16 }
 0x116   : > { %3466 = vst.msk [vmem:[#allocation2 + $0x81] sm:$0xff] %vm283_vm0, %v3428_v54  ;;  %2827 = vrot.lane.b32.xlu1 %v24364_v22, %s23409_s20  ;;  %20265 = vmatprep.mubr.msk.f32.mxu0 %vm283_vm0, %v3599_v24  ;;  %v3333_v20 = vsel %vm3100_vm5, %v3301_v14, %v24052_v57  ;;  %v741_v57 = vcombine.high %v24322_v2, %v24322_v2 }
 0x117   : > { %2381 = vrot.lane.b32.xlu0 %v2180_v61, %s23409_s20  ;;  %v24485_v2 = vrot.slane %v894_v21, %v23502_v5  ;;  %v694_v14 = vcombine.high %v24218_v0, %v24218_v0  ;;  %v478_v0 = vcombine.high %v24457_v30, %v24457_v30 }
 0x118   : > { %v1860_v40 = vpop.permute.xlu1 %1859  ;;  %v24400_v35 = vpop.permute.xlu0 %1413  ;;  %v24479_v62 = vrot.slane %v741_v57, %v23519_v9 }
 0x119   : > { %v3139_v10 = vsel %vm3133_vm6, %v3106_v56, %v1860_v40  ;;  %v24472_v40 = vrot.slane %v24457_v30, %v23502_v5  ;;  %v3008_v59 = vsel %vm3001_vm2, %v24016_v33, %v24400_v35  ;;  %v1173_v56 = vcombine.high %v24348_v39, %v24348_v39 }
 0x11a   : > { %2923 = vrot.lane.b32.xlu1 %v24364_v22, %s23408_s19  ;;  %v1126_v30 = vcombine.high %v24247_v46, %v24247_v46  ;;  %v24553_v57 = vrot.slane %v478_v0, %v23502_v5 }
 0x11b   : > { %2477 = vrot.lane.b32.xlu0 %v2180_v61, %s23408_s19  ;;  %v24422_v61 = vcombine.high %v24280_v58, %v24280_v58  ;;  %v1324_v34 = vrot.slane %v24472_v40, %v23519_v9 }
 0x11c   : > { %v1956_v49 = vpop.permute.xlu1 %1955  ;;  %v1510_v38 = vpop.permute.xlu0 %1509  ;;  %v1328_v46 = vrot.slane %v24553_v57, %v23519_v9 }
 0x11d   : > { %v3600_v50 = vld [vmem:[#allocation2 + $0x81] sm:$0xff]  ;;  %v2184_v45 = vrot.slane %v24422_v61, %v23519_v9  ;;  %v3172_v4 = vsel %vm3166_vm7, %v3139_v10, %v1956_v49 }
 0x11e   : > { %1869 = vrot.lane.b32.xlu1 %v24405_v18, %s23407_s18  ;;  %20266 = vmatmul.mubr.msk.f32.gmra.mrb[10].mxu0 %vm283_vm0, %v3600_v50 }
 0x11f   : > { %1423 = vrot.lane.b32.xlu0 %v1320_v11, %s23407_s18 }
 0x120   : > { %v2724_v13 = vpop.permute.xlu1 %2723  ;;  %v24424_v43 = vpop.permute.xlu0 %2277 }
 0x121   : > { %v3365_v32 = vsel %vm3133_vm6, %v3333_v20, %v2724_v13  ;;  %v3041_v13 = vsel %vm3034_vm3, %v3008_v59, %v1510_v38  ;;  %v910_v59 = vcombine.high %v24485_v2, %v24485_v2 }
 0x122   : > { %1965 = vrot.lane.b32.xlu1 %v24405_v18, %s23409_s20 }
 0x123   : > { %1519 = vrot.lane.b32.xlu0 %v1320_v11, %s23409_s20 }
 0x124   : > { %v2052_v15 = vpop.permute.xlu1 %2051  ;;  %v1606_v55 = vpop.permute.xlu0 %1605 }
 0x125   : > { %v3205_v8 = vsel %vm3199_vm8, %v3172_v4, %v2052_v15  ;;  %v3074_v10 = vsel %vm3067_vm4, %v3041_v13, %v1606_v55  ;;  %v24509_v4 = vrot.slane %v1173_v56, %v23519_v9 }
 0x126   : > { %3467 = vst.msk [vmem:[#allocation2 + $0x91] sm:$0xff] %vm283_vm0, %v3205_v8  ;;  %2733 = vrot.lane.b32.xlu1 %v24431_v3, %s23407_s18  ;;  %v3107_v38 = vsel %vm3100_vm5, %v3074_v10, %v24091_v29  ;;  %v3238_v29 = vsel %vm3001_vm2, %v24040_v51, %v24424_v43  ;;  %v24533_v43 = vrot.slane %v694_v14, %v23502_v5 }
 0x127   : > { %2287 = vrot.lane.b32.xlu0 %v2184_v45, %s23407_s18 }
 0x128   : > { %v2820_v1 = vpop.permute.xlu1 %2819 }
 0x129   : > { %v2374_v25 = vpop.permute.xlu0 %2373  ;;  %v3397_v6 = vsel %vm3166_vm7, %v3365_v32, %v2820_v1 }
 0x12a   : > { %2061 = vrot.lane.b32.xlu1 %v24405_v18, %s23408_s19  ;;  %v3270_v28 = vsel %vm3034_vm3, %v3238_v29, %v2374_v25 }
 0x12b   : > { %1615 = vrot.lane.b32.xlu0 %v1320_v11, %s23408_s19 }
 0x12c   : > { %v2916_v7 = vpop.permute.xlu1 %2915 }
 0x12d   : > { %v3429_v16 = vsel %vm3199_vm8, %v3397_v6, %v2916_v7  ;;  %v2470_v54 = vpop.permute.xlu0 %2469  ;;  %v3601_v24 = vld [vmem:[#allocation2 + $0x91] sm:$0xff] }
 0x12e   : > { %3468 = vst.msk [vmem:[#allocation2 + $0x99] sm:$0xff] %vm283_vm0, %v3429_v16  ;;  %2829 = vrot.lane.b32.xlu1 %v24431_v3, %s23409_s20  ;;  %20268 = vmatprep.mubr.msk.f32.mxu0 %vm283_vm0, %v3601_v24  ;;  %v3302_v1 = vsel %vm3067_vm4, %v3270_v28, %v2470_v54  ;;  %v24547_v24 = vrot.slane %v24533_v43, %v23502_v5 }
 0x12f   : > { %2383 = vrot.lane.b32.xlu0 %v2184_v45, %s23409_s20  ;;  %v3334_v51 = vsel %vm3100_vm5, %v3302_v1, %v24118_v12 }
 0x130   : > { %v1862_v11 = vpop.permute.xlu1 %1861 }
 0x131   : > { %v24474_v49 = vpop.permute.xlu0 %1415  ;;  %v3140_v39 = vsel %vm3133_vm6, %v3107_v38, %v1862_v11 }
 0x132   : > { %2925 = vrot.lane.b32.xlu1 %v24431_v3, %s23408_s19  ;;  %v3009_v13 = vsel %vm3001_vm2, %v24084_v26, %v24474_v49 }
 0x133   : > { %2479 = vrot.lane.b32.xlu0 %v2184_v45, %s23408_s19  ;;  %v24500_v45 = vrot.slane %v24485_v2, %v23502_v5 }
 0x134   : > { %v1958_v50 = vpop.permute.xlu1 %1957 }
 0x135   : > { %v1512_v19 = vpop.permute.xlu0 %1511  ;;  %v3602_v63 = vld [vmem:[#allocation2 + $0x99] sm:$0xff]  ;;  %v2188_v15 = vrot.slane %v24500_v45, %v23519_v9  ;;  %v3173_v55 = vsel %vm3166_vm7, %v3140_v39, %v1958_v50  ;;  %v24564_v50 = vrot.slane %v1126_v30, %v23502_v5  ;;  %v24585_v39 = vrot.slane %v910_v59, %v23502_v5 }
 0x136   : > { %1871 = vrot.lane.b32.xlu1 %v24479_v62, %s23407_s18  ;;  %20269 = vmatmul.mubr.msk.f32.gmra.mrb[12].mxu0 %vm283_vm0, %v3602_v63 }
 0x137   : > { %1425 = vrot.lane.b32.xlu0 %v1324_v34, %s23407_s18  ;;  %v24580_v38 = vrot.slane %v24564_v50, %v23502_v5 }
 0x138   : > { %v2726_v33 = vpop.permute.xlu1 %2725 }
 0x139   : > { %v24502_v35 = vpop.permute.xlu0 %2279  ;;  %v3366_v25 = vsel %vm3133_vm6, %v3334_v51, %v2726_v33  ;;  %v3042_v33 = vsel %vm3034_vm3, %v3009_v13, %v1512_v19 }
 0x13a   : > { %1967 = vrot.lane.b32.xlu1 %v24479_v62, %s23409_s20 }
 0x13b   : > { %1521 = vrot.lane.b32.xlu0 %v1324_v34, %s23409_s20 }
 0x13c   : > { %v2054_v37 = vpop.permute.xlu1 %2053 }
 0x13d   : > { %v3206_v8 = vsel %vm3199_vm8, %v3173_v55, %v2054_v37  ;;  %v1608_v53 = vpop.permute.xlu0 %1607  ;;  %v2192_v37 = vrot.slane %v24585_v39, %v23519_v9 }
 0x13e   : > { %3469 = vst.msk [vmem:[#allocation2 + $0xa9] sm:$0xff] %vm283_vm0, %v3206_v8  ;;  %2735 = vrot.lane.b32.xlu1 %v24509_v4, %s23407_s18  ;;  %v3075_v2 = vsel %vm3067_vm4, %v3042_v33, %v1608_v53 }
 0x13f   : > { %2289 = vrot.lane.b32.xlu0 %v2188_v15, %s23407_s18  ;;  %v3108_v19 = vsel %vm3100_vm5, %v3075_v2, %v24169_v27  ;;  %v3239_v27 = vsel %vm3001_vm2, %v24109_v52, %v24502_v35  ;;  %v710_v52 = vcombine.high %v24533_v43, %v24533_v43  ;;  %v24632_v43 = vcombine.high %v24472_v40, %v24472_v40 }
 0x140   : > { %v2822_v20 = vpop.permute.xlu1 %2821 }
 0x141   : > { %v2376_v32 = vpop.permute.xlu0 %2375  ;;  %v3398_v6 = vsel %vm3166_vm7, %v3366_v25, %v2822_v20 }
 0x142   : > { %2063 = vrot.lane.b32.xlu1 %v24479_v62, %s23408_s19  ;;  %v3271_v14 = vsel %vm3034_vm3, %v3239_v27, %v2376_v32 }
 0x143   : > { %1617 = vrot.lane.b32.xlu0 %v1324_v34, %s23408_s19  ;;  %v24561_v34 = vrot.slane %v24547_v24, %v23519_v9 }
 0x144   : > { %v2918_v7 = vpop.permute.xlu1 %2917 }
 0x145   : > { %v3430_v16 = vsel %vm3199_vm8, %v3398_v6, %v2918_v7  ;;  %v2472_v54 = vpop.permute.xlu0 %2471  ;;  %v3603_v12 = vld [vmem:[#allocation2 + $0xa9] sm:$0xff] }
 0x146   : > { %3470 = vst.msk [vmem:[#allocation2 + $0xb1] sm:$0xff] %vm283_vm0, %v3430_v16  ;;  %2831 = vrot.lane.b32.xlu1 %v24509_v4, %s23409_s20  ;;  %20271 = vmatprep.mubr.msk.f32.mxu0 %vm283_vm0, %v3603_v12  ;;  %v3303_v1 = vsel %vm3067_vm4, %v3271_v14, %v2472_v54 }
 0x147   : > { %2385 = vrot.lane.b32.xlu0 %v2188_v15, %s23409_s20  ;;  %v3335_v25 = vsel %vm3100_vm5, %v3303_v1, %v24200_v48  ;;  %v24627_v48 = vrot.slane %v710_v52, %v23502_v5 }
 0x148   : > { %v1864_v21 = vpop.permute.xlu1 %1863 }
 0x149   : > { %v24555_v11 = vpop.permute.xlu0 %1417  ;;  %v3141_v55 = vsel %vm3133_vm6, %v3108_v19, %v1864_v21  ;;  %v24638_v30 = vrot.slane %v24627_v48, %v23519_v9  ;;  %v1142_v21 = vcombine.high %v24564_v50, %v24564_v50 }
 0x14a   : > { %2927 = vrot.lane.b32.xlu1 %v24509_v4, %s23408_s19 }
 0x14b   : > { %2481 = vrot.lane.b32.xlu0 %v2188_v15, %s23408_s19  ;;  %v24595_v15 = vrot.slane %v24580_v38, %v23519_v9  ;;  %v24653_v50 = vrot.slane %v1142_v21, %v23502_v5 }
 0x14c   : > { %v1960_v63 = vpop.permute.xlu1 %1959 }
 0x14d   : > { %v1514_v56 = vpop.permute.xlu0 %1513  ;;  %v3604_v10 = vld [vmem:[#allocation2 + $0xb1] sm:$0xff]  ;;  %v3174_v29 = vsel %vm3166_vm7, %v3141_v55, %v1960_v63  ;;  %v3010_v63 = vsel %vm3001_vm2, %v24159_v23, %v24555_v11  ;;  %v24669_v19 = vrot.slane %v24653_v50, %v23519_v9 }
 0x14e   : > { %1873 = vrot.lane.b32.xlu1 %v24561_v34, %s23407_s18  ;;  %20272 = vmatmul.mubr.msk.f32.gmra.mrb[14].mxu0 %vm283_vm0, %v3604_v10  ;;  %v3043_v33 = vsel %vm3034_vm3, %v3010_v63, %v1514_v56 }
 0x14f   : > { %1427 = vrot.lane.b32.xlu0 %v1328_v46, %s23407_s18 }
 0x150   : > { %v2728_v26 = vpop.permute.xlu1 %2727 }
 0x151   : > { %v24587_v49 = vpop.permute.xlu0 %2281  ;;  %v3367_v35 = vsel %vm3133_vm6, %v3335_v25, %v2728_v26  ;;  %v24659_v26 = vcombine.high %v24500_v45, %v24500_v45 }
 0x152   : > { %1969 = vrot.lane.b32.xlu1 %v24561_v34, %s23409_s20 }
 0x153   : > { %1523 = vrot.lane.b32.xlu0 %v1328_v46, %s23409_s20 }
 0x154   : > { %v2056_v8 = vpop.permute.xlu1 %2055 }
 0x155   : > { %v3207_v53 = vsel %vm3199_vm8, %v3174_v29, %v2056_v8  ;;  %v1610_v28 = vpop.permute.xlu0 %1609 }
 0x156   : > { %3471 = vst.msk [vmem:[#allocation2 + $0xc1] sm:$0xff] %vm283_vm0, %v3207_v53  ;;  %2737 = vrot.lane.b32.xlu1 %v24595_v15, %s23407_s18  ;;  %v3076_v2 = vsel %vm3067_vm4, %v3043_v33, %v1610_v28  ;;  %v24731_v33 = vld [vmem:[%s23507_s17 + $0x50] sm:$0xff] }
 0x157   : > { %2291 = vrot.lane.b32.xlu0 %v2192_v37, %s23407_s18  ;;  %v3109_v56 = vsel %vm3100_vm5, %v3076_v2, %v24255_v31  ;;  %v3240_v31 = vsel %vm3001_vm2, %v24191_v47, %v24587_v49 }
 0x158   : > { %v2824_v20 = vpop.permute.xlu1 %2823 }
 0x159   : > { %v2378_v51 = vpop.permute.xlu0 %2377  ;;  %v3399_v32 = vsel %vm3166_vm7, %v3367_v35, %v2824_v20 }
 0x15a   : > { %2065 = vrot.lane.b32.xlu1 %v24561_v34, %s23408_s19  ;;  %v3272_v28 = vsel %vm3034_vm3, %v3240_v31, %v2378_v51 }
 0x15b   : > { %1619 = vrot.lane.b32.xlu0 %v1328_v46, %s23408_s19  ;;  %v1332_v46 = vrot.slane %v24632_v43, %v23519_v9 }
 0x15c   : > { %v2920_v0 = vpop.permute.xlu1 %2919 }
 0x15d   : > { %v3431_v6 = vsel %vm3199_vm8, %v3399_v32, %v2920_v0  ;;  %v2474_v7 = vpop.permute.xlu0 %2473  ;;  %v3605_v16 = vld [vmem:[#allocation2 + $0xc1] sm:$0xff] }
 0x15e   : > { %3472 = vst.msk [vmem:[#allocation2 + $0xc9] sm:$0xff] %vm283_vm0, %v3431_v6  ;;  %2833 = vrot.lane.b32.xlu1 %v24595_v15, %s23409_s20  ;;  %20274 = vmatprep.mubr.msk.f32.mxu0 %vm283_vm0, %v3605_v16  ;;  %v3304_v14 = vsel %vm3067_vm4, %v3272_v28, %v2474_v7  ;;  %v1172_v16 = vcombine.high %v24580_v38, %v24580_v38 }
 0x15f   : > { %2387 = vrot.lane.b32.xlu0 %v2192_v37, %s23409_s20  ;;  %v3336_v25 = vsel %vm3100_vm5, %v3304_v14, %v24290_v60  ;;  %v740_v60 = vcombine.high %v24547_v24, %v24547_v24 }
 0x160   : > { %v1866_v54 = vpop.permute.xlu1 %1865 }
 0x161   : > { %v1420_v12 = vpop.permute.xlu0 %1419  ;;  %v3142_v55 = vsel %vm3133_vm6, %v3109_v56, %v1866_v54  ;;  %v24706_v7 = vrot.slane %v740_v60, %v23519_v9  ;;  %v24712_v54 = vld [vmem:[%s23507_s17 + $0x40] sm:$0xff] }
 0x162   : > { %2929 = vrot.lane.b32.xlu1 %v24595_v15, %s23408_s19  ;;  %v3011_v21 = vsel %vm3001_vm2, %v24244_v17, %v1420_v12  ;;  %v24728_v17 = vrot.slane %v1172_v16, %v23519_v9 }
 0x163   : > { %2483 = vrot.lane.b32.xlu0 %v2192_v37, %s23408_s19  ;;  %v2196_v37 = vrot.slane %v24659_v26, %v23519_v9 }
 0x164   : > { %v1962_v59 = vpop.permute.xlu1 %1961 }
 0x165   : > { %v1516_v13 = vpop.permute.xlu0 %1515  ;;  %v3606_v10 = vld [vmem:[#allocation2 + $0xc9] sm:$0xff]  ;;  %v3175_v29 = vsel %vm3166_vm7, %v3142_v55, %v1962_v59  ;;  %v950_v55 = vrot.slane %v24731_v33, %v23502_v5 }
 0x166   : > { %1875 = vrot.lane.b32.xlu1 %v24638_v30, %s23407_s18  ;;  %20275 = vmatmul.mubr.msk.f32.gmra.mrb[16].mxu0 %vm283_vm0, %v3606_v10  ;;  %v3044_v63 = vsel %vm3034_vm3, %v3011_v21, %v1516_v13  ;;  %v518_v10 = vrot.slane %v24712_v54, %v23502_v5 }
 0x167   : > { %1429 = vrot.lane.b32.xlu0 %v1332_v46, %s23407_s18 }
 0x168   : > { %v2730_v23 = vpop.permute.xlu1 %2729 }
 0x169   : > { %v24661_v11 = vpop.permute.xlu0 %2283  ;;  %v3368_v47 = vsel %vm3133_vm6, %v3336_v25, %v2730_v23  ;;  %v24740_v23 = vrot.slane %v518_v10, %v23502_v5 }
 0x16a   : > { %1971 = vrot.lane.b32.xlu1 %v24638_v30, %s23409_s20 }
 0x16b   : > { %1525 = vrot.lane.b32.xlu0 %v1332_v46, %s23409_s20 }
 0x16c   : > { %v2058_v8 = vpop.permute.xlu1 %2057 }
 0x16d   : > { %v3208_v27 = vsel %vm3199_vm8, %v3175_v29, %v2058_v8  ;;  %v1612_v53 = vpop.permute.xlu0 %1611 }
 0x16e   : > { %3473 = vst.msk [vmem:[#allocation2 + $0xd9] sm:$0xff] %vm283_vm0, %v3208_v27  ;;  %2739 = vrot.lane.b32.xlu1 %v24669_v19, %s23407_s18  ;;  %v3077_v38 = vsel %vm3067_vm4, %v3044_v63, %v1612_v53  ;;  %v1340_v53 = vrot.slane %v24740_v23, %v23519_v9 }
 0x16f   : > { %2293 = vrot.lane.b32.xlu0 %v2196_v37, %s23407_s18  ;;  %v3110_v2 = vsel %vm3100_vm5, %v3077_v38, %v24333_v44  ;;  %v3241_v44 = vsel %vm3001_vm2, %v24280_v58, %v24661_v11  ;;  %v24762_v58 = vrot.slane %v950_v55, %v23502_v5  ;;  %v24765_v11 = vld [vmem:[%s23507_s17 + $0x48] sm:$0xff] }
 0x170   : > { %v2826_v1 = vpop.permute.xlu1 %2825  ;;  %v24772_v25 = vrot.slane %v24765_v11, %v23502_v5 }
 0x171   : > { %v2380_v20 = vpop.permute.xlu0 %2379  ;;  %v3400_v49 = vsel %vm3166_vm7, %v3368_v47, %v2826_v1 }
 0x172   : > { %2067 = vrot.lane.b32.xlu1 %v24638_v30, %s23408_s19  ;;  %v3273_v27 = vsel %vm3034_vm3, %v3241_v44, %v2380_v20 }
 0x173   : > { %1621 = vrot.lane.b32.xlu0 %v1332_v46, %s23408_s19 }
 0x174   : > { %v2922_v51 = vpop.permute.xlu1 %2921 }
 0x175   : > { %v3432_v52 = vsel %vm3199_vm8, %v3400_v49, %v2922_v51  ;;  %v2476_v35 = vpop.permute.xlu0 %2475  ;;  %v3607_v32 = vld [vmem:[#allocation2 + $0xd9] sm:$0xff]  ;;  %v2204_v49 = vrot.slane %v24762_v58, %v23519_v9  ;;  %v526_v51 = vcombine.high %v518_v10, %v518_v10 }
 0x176   : > { %3474 = vst.msk [vmem:[#allocation2 + $0xe1] sm:$0xff] %vm283_vm0, %v3432_v52  ;;  %2835 = vrot.lane.b32.xlu1 %v24669_v19, %s23409_s20  ;;  %20277 = vmatprep.mubr.msk.f32.mxu0 %vm283_vm0, %v3607_v32  ;;  %v3305_v28 = vsel %vm3067_vm4, %v3273_v27, %v2476_v35 }
 0x177   : > { %2389 = vrot.lane.b32.xlu0 %v2196_v37, %s23409_s20  ;;  %v3337_v20 = vsel %vm3100_vm5, %v3305_v28, %v24364_v22  ;;  %v24789_v16 = vrot.slane %v526_v51, %v23502_v5 }
 0x178   : > { %v1868_v0 = vpop.permute.xlu1 %1867 }
 0x179   : > { %v24701_v6 = vpop.permute.xlu0 %1421  ;;  %v3143_v56 = vsel %vm3133_vm6, %v3110_v2, %v1868_v0  ;;  %v24785_v0 = vrot.slane %v24772_v25, %v23502_v5  ;;  %v1344_v38 = vrot.slane %v24789_v16, %v23519_v9 }
 0x17a   : > { %2931 = vrot.lane.b32.xlu1 %v24669_v19, %s23408_s19 }
 0x17b   : > { %2485 = vrot.lane.b32.xlu0 %v2196_v37, %s23408_s19  ;;  %v24799_v63 = vrot.slane %v24785_v0, %v23519_v9 }
 0x17c   : > { %v1964_v24 = vpop.permute.xlu1 %1963 }
 0x17d   : > { %v24716_v46 = vpop.permute.xlu0 %1517  ;;  %v3608_v59 = vld [vmem:[#allocation2 + $0xe1] sm:$0xff]  ;;  %v3176_v37 = vsel %vm3166_vm7, %v3143_v56, %v1964_v24  ;;  %v24792_v24 = vld [vmem:[%s23507_s17 + $0x58] sm:$0xff]  ;;  %v3012_v56 = vsel %vm3001_vm2, %v24327_v36, %v24701_v6 }
 0x17e   : > { %1973 = vrot.lane.b32.xlu1 %v24706_v7, %s23409_s20  ;;  %20278 = vmatmul.mubr.msk.f32.gmra.mrb[18].mxu0 %vm283_vm0, %v3608_v59  ;;  %v24803_v10 = vrot.slane %v24792_v24, %v23502_v5  ;;  %v3045_v44 = vsel %vm3034_vm3, %v3012_v56, %v24716_v46 }
 0x17f   : > { %1877 = vrot.lane.b32.xlu0 %v24706_v7, %s23407_s18 }
 0x180   : > { %v2732_v12 = vpop.permute.xlu1 %2731 }
 0x181   : > { %v24733_v13 = vpop.permute.xlu0 %2285  ;;  %v3369_v47 = vsel %vm3133_vm6, %v3337_v20, %v2732_v12  ;;  %v958_v12 = vcombine.high %v950_v55, %v950_v55 }
 0x182   : > { %2069 = vrot.lane.b32.xlu1 %v24706_v7, %s23408_s19 }
 0x183   : > { %2741 = vrot.lane.b32.xlu0 %v24728_v17, %s23407_s18  ;;  %v24823_v36 = vrot.slane %v958_v12, %v23502_v5 }
 0x184   : > { %v2060_v29 = vpop.permute.xlu1 %2059 }
 0x185   : > { %v3209_v8 = vsel %vm3199_vm8, %v3176_v37, %v2060_v29  ;;  %v1614_v31 = vpop.permute.xlu0 %1613  ;;  %v2208_v28 = vrot.slane %v24823_v36, %v23519_v9 }
 0x186   : > { %3475 = vst.msk [vmem:[#allocation2 + $0xf1] sm:$0xff] %vm283_vm0, %v3209_v8  ;;  %2933 = vrot.lane.b32.xlu1 %v24728_v17, %s23408_s19  ;;  %v24818_v8 = vrot.slane %v24803_v10, %v23502_v5  ;;  %v3078_v55 = vsel %vm3067_vm4, %v3045_v44, %v1614_v31  ;;  %v1190_v44 = vcombine.high %v24803_v10, %v24803_v10 }
 0x187   : > { %2837 = vrot.lane.b32.xlu0 %v24728_v17, %s23409_s20  ;;  %v3111_v46 = vsel %vm3100_vm5, %v3078_v55, %v24405_v18  ;;  %v3242_v18 = vsel %vm3001_vm2, %v24354_v41, %v24733_v13  ;;  %v758_v41 = vcombine.high %v24772_v25, %v24772_v25  ;;  %v24870_v25 = vcombine.high %v24740_v23, %v24740_v23 }
 0x188   : > { %v2828_v14 = vpop.permute.xlu1 %2827  ;;  %v24891_v10 = vrot.slane %v1190_v44, %v23502_v5 }
 0x189   : > { %v2382_v1 = vpop.permute.xlu0 %2381  ;;  %v3401_v52 = vsel %vm3166_vm7, %v3369_v47, %v2828_v14  ;;  %v1348_v55 = vrot.slane %v24870_v25, %v23519_v9 }
 0x18a   : > { %1529 = vrot.lane.b32.xlu1 %v1340_v53, %s23409_s20  ;;  %v3274_v51 = vsel %vm3034_vm3, %v3242_v18, %v2382_v1  ;;  %v24897_v18 = vcombine.high %v24762_v58, %v24762_v58 }
 0x18b   : > { %1433 = vrot.lane.b32.xlu0 %v1340_v53, %s23407_s18 }
 0x18c   : > { %v2924_v35 = vpop.permute.xlu1 %2923 }
 0x18d   : > { %v3433_v22 = vsel %vm3199_vm8, %v3401_v52, %v2924_v35  ;;  %v2478_v32 = vpop.permute.xlu0 %2477  ;;  %v3609_v60 = vld [vmem:[#allocation2 + $0xf1] sm:$0xff] }
 0x18e   : > { %3476 = vst.msk [vmem:[#allocation2 + $0xf9] sm:$0xff] %vm283_vm0, %v3433_v22  ;;  %1625 = vrot.lane.b32.xlu1 %v1340_v53, %s23408_s19  ;;  %20280 = vmatprep.mubr.msk.f32.mxu0 %vm283_vm0, %v3609_v60  ;;  %v24833_v53 = vrot.slane %v24818_v8, %v23519_v9  ;;  %v3306_v52 = vsel %vm3067_vm4, %v3274_v51, %v2478_v32 }
 0x18f   : > { %2297 = vrot.lane.b32.xlu0 %v2204_v49, %s23407_s18  ;;  %v3338_v60 = vsel %vm3100_vm5, %v3306_v52, %v24431_v3  ;;  %v24865_v3 = vrot.slane %v758_v41, %v23502_v5  ;;  %v2212_v51 = vrot.slane %v24897_v18, %v23519_v9 }
 0x190   : > { %v1870_v21 = vpop.permute.xlu1 %1869 }
 0x191   : > { %v24794_v59 = vpop.permute.xlu0 %1423  ;;  %v3144_v31 = vsel %vm3133_vm6, %v3111_v46, %v1870_v21 }
 0x192   : > { %2489 = vrot.lane.b32.xlu1 %v2204_v49, %s23408_s19  ;;  %v3013_v46 = vsel %vm3001_vm2, %v24398_v42, %v24794_v59 }
 0x193   : > { %2393 = vrot.lane.b32.xlu0 %v2204_v49, %s23409_s20 }
 0x194   : > { %v1966_v2 = vpop.permute.xlu1 %1965 }
 0x195   : > { %v1520_v37 = vpop.permute.xlu0 %1519  ;;  %v3610_v29 = vld [vmem:[#allocation2 + $0xf9] sm:$0xff]  ;;  %v3177_v14 = vsel %vm3166_vm7, %v3144_v31, %v1966_v2 }
 0x196   : > { %1881 = vrot.lane.b32.xlu1 %v24799_v63, %s23407_s18  ;;  %20281 = vmatmul.mubr.msk.f32.gmra.mrb[20].mxu0 %vm283_vm0, %v3610_v29  ;;  %v24876_v29 = vrot.slane %v24865_v3, %v23519_v9 }
 0x197   : > { %1435 = vrot.lane.b32.xlu0 %v1344_v38, %s23407_s18 }
 0x198   : > { %v2734_v6 = vpop.permute.xlu1 %2733 }
 0x199   : > { %v24825_v27 = vpop.permute.xlu0 %2287  ;;  %v3370_v13 = vsel %vm3133_vm6, %v3338_v60, %v2734_v6 }
 0x19a   : > { %1977 = vrot.lane.b32.xlu1 %v24799_v63, %s23409_s20 }
 0x19b   : > { %1531 = vrot.lane.b32.xlu0 %v1344_v38, %s23409_s20 }
 0x19c   : > { %v2062_v20 = vpop.permute.xlu1 %2061 }
 0x19d   : > { %v3210_v47 = vsel %vm3199_vm8, %v3177_v14, %v2062_v20  ;;  %v1616_v49 = vpop.permute.xlu0 %1615  ;;  %v3046_v20 = vsel %vm3034_vm3, %v3013_v46, %v1520_v37 }
 0x19e   : > { %3477 = vst.msk [vmem:[#allocation2 + $0x109] sm:$0xff] %vm283_vm0, %v3210_v47  ;;  %2745 = vrot.lane.b32.xlu1 %v24833_v53, %s23407_s18  ;;  %v24905_v47 = vrot.slane %v24891_v10, %v23519_v9 }
 0x19f   : > { %2299 = vrot.lane.b32.xlu0 %v2208_v28, %s23407_s18 }
 0x1a0   : > { %v2830_v35 = vpop.permute.xlu1 %2829 }
 0x1a1   : > { %v2384_v22 = vpop.permute.xlu0 %2383  ;;  %v3402_v1 = vsel %vm3166_vm7, %v3370_v13, %v2830_v35 }
 0x1a2   : > { %2073 = vrot.lane.b32.xlu1 %v24799_v63, %s23408_s19 }
 0x1a3   : > { %1627 = vrot.lane.b32.xlu0 %v1344_v38, %s23408_s19 }
 0x1a4   : > { %v2926_v32 = vpop.permute.xlu1 %2925 }
 0x1a5   : > { %v3434_v21 = vsel %vm3199_vm8, %v3402_v1, %v2926_v32  ;;  %v2480_v12 = vpop.permute.xlu0 %2479  ;;  %v3611_v2 = vld [vmem:[#allocation2 + $0x109] sm:$0xff] }
 0x1a6   : > { %3478 = vst.msk [vmem:[#allocation2 + $0x111] sm:$0xff] %vm283_vm0, %v3434_v21  ;;  %2841 = vrot.lane.b32.xlu1 %v24833_v53, %s23409_s20  ;;  %20283 = vmatprep.mubr.msk.f32.mxu0 %vm283_vm0, %v3611_v2 }
 0x1a7   : > { %2395 = vrot.lane.b32.xlu0 %v2208_v28, %s23409_s20 }
 0x1a8   : > { %v1872_v38 = vpop.permute.xlu1 %1871 }
 0x1a9   : > { %v1426_v56 = vpop.permute.xlu0 %1425 }
 0x1aa   : > { %2937 = vrot.lane.b32.xlu1 %v24833_v53, %s23408_s19 }
 0x1ab   : > { %2491 = vrot.lane.b32.xlu0 %v2208_v28, %s23408_s19  ;;  %v3079_v28 = vsel %vm3067_vm4, %v3046_v20, %v1616_v49 }
 0x1ac   : > { %v1968_v6 = vpop.permute.xlu1 %1967  ;;  %v3112_v37 = vsel %vm3100_vm5, %v3079_v28, %v24479_v62  ;;  %v3243_v62 = vsel %vm3001_vm2, %v24422_v61, %v24825_v27  ;;  %v3014_v28 = vsel %vm3001_vm2, %v24472_v40, %v1426_v56 }
 0x1ad   : > { %v1522_v31 = vpop.permute.xlu0 %1521  ;;  %v3612_v14 = vld [vmem:[#allocation2 + $0x111] sm:$0xff]  ;;  %v3145_v49 = vsel %vm3133_vm6, %v3112_v37, %v1872_v38  ;;  %v3275_v13 = vsel %vm3034_vm3, %v3243_v62, %v2384_v22 }
 0x1ae   : > { %1883 = vrot.lane.b32.xlu1 %v24876_v29, %s23407_s18  ;;  %20284 = vmatmul.mubr.msk.f32.gmra.mrb[22].mxu0 %vm283_vm0, %v3612_v14  ;;  %v3178_v52 = vsel %vm3166_vm7, %v3145_v49, %v1968_v6  ;;  %v3307_v1 = vsel %vm3067_vm4, %v3275_v13, %v2480_v12  ;;  %v3047_v49 = vsel %vm3034_vm3, %v3014_v28, %v1522_v31 }
 0x1af   : > { %1437 = vrot.lane.b32.xlu0 %v1348_v55, %s23407_s18  ;;  %v3339_v2 = vsel %vm3100_vm5, %v3307_v1, %v24509_v4  ;;  %v788_v4 = vcombine.high %v24785_v0, %v24785_v0 }
 0x1b0   : > { %v2736_v42 = vpop.permute.xlu1 %2735 }
 0x1b1   : > { %v2290_v59 = vpop.permute.xlu0 %2289  ;;  %v3371_v61 = vsel %vm3133_vm6, %v3339_v2, %v2736_v42  ;;  %v24946_v14 = vrot.slane %v788_v4, %v23519_v9 }
 0x1b2   : > { %1979 = vrot.lane.b32.xlu1 %v24876_v29, %s23409_s20  ;;  %v3244_v1 = vsel %vm3001_vm2, %v24500_v45, %v2290_v59 }
 0x1b3   : > { %1533 = vrot.lane.b32.xlu0 %v1348_v55, %s23409_s20 }
 0x1b4   : > { %v2064_v35 = vpop.permute.xlu1 %2063 }
 0x1b5   : > { %v3211_v60 = vsel %vm3199_vm8, %v3178_v52, %v2064_v35  ;;  %v1618_v41 = vpop.permute.xlu0 %1617  ;;  %v1220_v52 = vcombine.high %v24818_v8, %v24818_v8  ;;  %v24963_v35 = vcombine.high %v24823_v36, %v24823_v36 }
 0x1b6   : > { %3479 = vst.msk [vmem:[#allocation2 + $0x121] sm:$0xff] %vm283_vm0, %v3211_v60  ;;  %2747 = vrot.lane.b32.xlu1 %v24905_v47, %s23407_s18 }
 0x1b7   : > { %2301 = vrot.lane.b32.xlu0 %v2212_v51, %s23407_s18  ;;  %v24972_v62 = vrot.slane %v1220_v52, %v23519_v9  ;;  %v2216_v60 = vrot.slane %v24963_v35, %v23519_v9 }
 0x1b8   : > { %v2832_v32 = vpop.permute.xlu1 %2831 }
 0x1b9   : > { %v2386_v21 = vpop.permute.xlu0 %2385  ;;  %v3403_v27 = vsel %vm3166_vm7, %v3371_v61, %v2832_v32 }
 0x1ba   : > { %2075 = vrot.lane.b32.xlu1 %v24876_v29, %s23408_s19  ;;  %v3276_v2 = vsel %vm3034_vm3, %v3244_v1, %v2386_v21 }
 0x1bb   : > { %1629 = vrot.lane.b32.xlu0 %v1348_v55, %s23408_s19  ;;  %v24939_v55 = vcombine.high %v24789_v16, %v24789_v16 }
 0x1bc   : > { %v2928_v22 = vpop.permute.xlu1 %2927 }
 0x1bd   : > { %v3435_v38 = vsel %vm3199_vm8, %v3403_v27, %v2928_v22  ;;  %v2482_v12 = vpop.permute.xlu0 %2481  ;;  %v3613_v44 = vld [vmem:[#allocation2 + $0x121] sm:$0xff]  ;;  %v1352_v0 = vrot.slane %v24939_v55, %v23519_v9  ;;  %v511_v27 = vcombine.high %v24712_v54, %v24712_v54 }
 0x1be   : > { %3480 = vst.msk [vmem:[#allocation2 + $0x129] sm:$0xff] %vm283_vm0, %v3435_v38  ;;  %2843 = vrot.lane.b32.xlu1 %v24905_v47, %s23409_s20  ;;  %20286 = vmatprep.mubr.msk.f32.mxu0 %vm283_vm0, %v3613_v44  ;;  %v3308_v61 = vsel %vm3067_vm4, %v3276_v2, %v2482_v12 }
 0x1bf   : > { %2397 = vrot.lane.b32.xlu0 %v2212_v51, %s23409_s20  ;;  %v3340_v45 = vsel %vm3100_vm5, %v3308_v61, %v24595_v15  ;;  %v24997_v21 = vrot.slane %v511_v27, %v23502_v5  ;;  %v790_v15 = vcombine.high %v24865_v3, %v24865_v3 }
 0x1c0   : > { %v1874_v6 = vpop.permute.xlu1 %1873 }
 0x1c1   : > { %v24941_v46 = vpop.permute.xlu0 %1427 }
 0x1c2   : > { %2939 = vrot.lane.b32.xlu1 %v24905_v47, %s23408_s19 }
 0x1c3   : > { %2493 = vrot.lane.b32.xlu0 %v2212_v51, %s23408_s19  ;;  %v3080_v51 = vsel %vm3067_vm4, %v3047_v49, %v1618_v41  ;;  %v25017_v49 = vrot.slane %v790_v15, %v23519_v9 }
 0x1c4   : > { %v1970_v20 = vpop.permute.xlu1 %1969  ;;  %v3113_v31 = vsel %vm3100_vm5, %v3080_v51, %v24561_v34 }
 0x1c5   : > { %v1524_v42 = vpop.permute.xlu0 %1523  ;;  %v3614_v37 = vld [vmem:[#allocation2 + $0x129] sm:$0xff]  ;;  %v3146_v8 = vsel %vm3133_vm6, %v3113_v31, %v1874_v6 }
 0x1c6   : > { %1885 = vrot.lane.b32.xlu1 %v24946_v14, %s23407_s18  ;;  %20287 = vmatmul.mubr.msk.f32.gmra.mrb[24].mxu0 %vm283_vm0, %v3614_v37  ;;  %v3179_v41 = vsel %vm3166_vm7, %v3146_v8, %v1970_v20  ;;  %v943_v20 = vcombine.high %v24731_v33, %v24731_v33  ;;  %v3015_v33 = vsel %vm3001_vm2, %v24553_v57, %v24941_v46 }
 0x1c7   : > { %1439 = vrot.lane.b32.xlu0 %v1352_v0, %s23407_s18  ;;  %v3048_v8 = vsel %vm3034_vm3, %v3015_v33, %v1524_v42 }
 0x1c8   : > { %v2738_v40 = vpop.permute.xlu1 %2737  ;;  %v25023_v52 = vrot.slane %v943_v20, %v23502_v5 }
 0x1c9   : > { %v24965_v56 = vpop.permute.xlu0 %2291  ;;  %v3372_v59 = vsel %vm3133_vm6, %v3340_v45, %v2738_v40 }
 0x1ca   : > { %1981 = vrot.lane.b32.xlu1 %v24946_v14, %s23409_s20 }
 0x1cb   : > { %1535 = vrot.lane.b32.xlu0 %v1352_v0, %s23409_s20 }
 0x1cc   : > { %v2066_v13 = vpop.permute.xlu1 %2065 }
 0x1cd   : > { %v3212_v34 = vsel %vm3199_vm8, %v3179_v41, %v2066_v13  ;;  %v1620_v32 = vpop.permute.xlu0 %1619  ;;  %v25038_v13 = vrot.slane %v25023_v52, %v23502_v5 }
 0x1ce   : > { %3481 = vst.msk [vmem:[#allocation2 + $0x139] sm:$0xff] %vm283_vm0, %v3212_v34  ;;  %2749 = vrot.lane.b32.xlu1 %v24972_v62, %s23407_s18  ;;  %v3081_v41 = vsel %vm3067_vm4, %v3048_v8, %v1620_v32 }
 0x1cf   : > { %2303 = vrot.lane.b32.xlu0 %v2216_v60, %s23407_s18  ;;  %v3114_v42 = vsel %vm3100_vm5, %v3081_v41, %v24638_v30  ;;  %v2220_v32 = vrot.slane %v25038_v13, %v23519_v9  ;;  %v3245_v30 = vsel %vm3001_vm2, %v24585_v39, %v24965_v56 }
 0x1d0   : > { %v2834_v22 = vpop.permute.xlu1 %2833 }
 0x1d1   : > { %v2388_v38 = vpop.permute.xlu0 %2387  ;;  %v3404_v12 = vsel %vm3166_vm7, %v3372_v59, %v2834_v22  ;;  %v743_v59 = vcombine.high %v24765_v11, %v24765_v11  ;;  %v527_v11 = vcombine.high %v24997_v21, %v24997_v21 }
 0x1d2   : > { %2077 = vrot.lane.b32.xlu1 %v24946_v14, %s23408_s19  ;;  %v3277_v45 = vsel %vm3034_vm3, %v3245_v30, %v2388_v38 }
 0x1d3   : > { %1631 = vrot.lane.b32.xlu0 %v1352_v0, %s23408_s19  ;;  %v25010_v0 = vrot.slane %v24997_v21, %v23502_v5  ;;  %v25069_v38 = vrot.slane %v743_v59, %v23502_v5  ;;  %v1175_v21 = vcombine.high %v24792_v24, %v24792_v24 }
 0x1d4   : > { %v2930_v44 = vpop.permute.xlu1 %2929 }
 0x1d5   : > { %v3436_v54 = vsel %vm3199_vm8, %v3404_v12, %v2930_v44  ;;  %v2484_v4 = vpop.permute.xlu0 %2483  ;;  %v3615_v6 = vld [vmem:[#allocation2 + $0x139] sm:$0xff]  ;;  %v1356_v3 = vrot.slane %v25010_v0, %v23519_v9  ;;  %v25105_v24 = vrot.slane %v1175_v21, %v23502_v5 }
 0x1d6   : > { %3482 = vst.msk [vmem:[#allocation2 + $0x141] sm:$0xff] %vm283_vm0, %v3436_v54  ;;  %2845 = vrot.lane.b32.xlu1 %v24972_v62, %s23409_s20  ;;  %20289 = vmatprep.mubr.msk.f32.mxu0 %vm283_vm0, %v3615_v6  ;;  %v3309_v12 = vsel %vm3067_vm4, %v3277_v45, %v2484_v4  ;;  %v3622_v21 = vld [vmem:[#allocation2 + $0x1b9] sm:$0xff] }
 0x1d7   : > { %2399 = vrot.lane.b32.xlu0 %v2216_v60, %s23409_s20  ;;  %v3341_v56 = vsel %vm3100_vm5, %v3309_v12, %v24669_v19 }
 0x1d8   : > { %v1876_v28 = vpop.permute.xlu1 %1875 }
 0x1d9   : > { %v1430_v37 = vpop.permute.xlu0 %1429 }
 0x1da   : > { %2941 = vrot.lane.b32.xlu1 %v24972_v62, %s23408_s19  ;;  %v3016_v4 = vsel %vm3001_vm2, %v24632_v43, %v1430_v37  ;;  %v25087_v43 = vrot.slane %v25069_v38, %v23502_v5  ;;  %v25093_v37 = vrot.slane %v527_v11, %v23502_v5 }
 0x1db   : > { %2495 = vrot.lane.b32.xlu0 %v2216_v60, %s23408_s19  ;;  %v1222_v60 = vcombine.high %v24891_v10, %v24891_v10  ;;  %v3147_v10 = vsel %vm3133_vm6, %v3114_v42, %v1876_v28  ;;  %v959_v42 = vcombine.high %v25023_v52, %v25023_v52 }
 0x1dc   : > { %v1972_v51 = vpop.permute.xlu1 %1971  ;;  %v25102_v41 = vrot.slane %v25087_v43, %v23519_v9 }
 0x1dd   : > { %v1526_v40 = vpop.permute.xlu0 %1525  ;;  %v3616_v31 = vld [vmem:[#allocation2 + $0x141] sm:$0xff]  ;;  %v25045_v34 = vrot.slane %v1222_v60, %v23519_v9  ;;  %v3180_v2 = vsel %vm3166_vm7, %v3147_v10, %v1972_v51  ;;  %v25128_v52 = vrot.slane %v959_v42, %v23502_v5 }
 0x1de   : > { %1887 = vrot.lane.b32.xlu1 %v25017_v49, %s23407_s18  ;;  %20290 = vmatmul.mubr.msk.f32.gmra.mrb[26].mxu0 %vm283_vm0, %v3616_v31  ;;  %v3049_v19 = vsel %vm3034_vm3, %v3016_v4, %v1526_v40 }
 0x1df   : > { %1441 = vrot.lane.b32.xlu0 %v1356_v3, %s23407_s18 }
 0x1e0   : > { %v2740_v46 = vpop.permute.xlu1 %2739 }
 0x1e1   : > { %v2294_v1 = vpop.permute.xlu0 %2293  ;;  %v3373_v6 = vsel %vm3133_vm6, %v3341_v56, %v2740_v46 }
 0x1e2   : > { %1983 = vrot.lane.b32.xlu1 %v25017_v49, %s23409_s20  ;;  %v3246_v46 = vsel %vm3001_vm2, %v24659_v26, %v2294_v1  ;;  %v25124_v26 = vrot.slane %v25105_v24, %v23502_v5 }
 0x1e3   : > { %1537 = vrot.lane.b32.xlu0 %v1356_v3, %s23409_s20 }
 0x1e4   : > { %v2068_v61 = vpop.permute.xlu1 %2067 }
 0x1e5   : > { %v3213_v27 = vsel %vm3199_vm8, %v3180_v2, %v2068_v61  ;;  %v1622_v22 = vpop.permute.xlu0 %1621 }
 0x1e6   : > { %3483 = vst.msk [vmem:[#allocation2 + $0x151] sm:$0xff] %vm283_vm0, %v3213_v27  ;;  %2751 = vrot.lane.b32.xlu1 %v25045_v34, %s23407_s18  ;;  %v3082_v31 = vsel %vm3067_vm4, %v3049_v19, %v1622_v22  ;;  %v759_v19 = vcombine.high %v25069_v38, %v25069_v38  ;;  %v25164_v38 = vcombine.high %v25010_v0, %v25010_v0 }
 0x1e7   : > { %2305 = vrot.lane.b32.xlu0 %v2220_v32, %s23407_s18  ;;  %v3115_v40 = vsel %vm3100_vm5, %v3082_v31, %v24706_v7  ;;  %v1360_v7 = vrot.slane %v25093_v37, %v23519_v9 }
 0x1e8   : > { %v2836_v44 = vpop.permute.xlu1 %2835  ;;  %v1364_v42 = vrot.slane %v25164_v38, %v23519_v9 }
 0x1e9   : > { %v2390_v54 = vpop.permute.xlu0 %2389  ;;  %v3405_v15 = vsel %vm3166_vm7, %v3373_v6, %v2836_v44 }
 0x1ea   : > { %2079 = vrot.lane.b32.xlu1 %v25017_v49, %s23408_s19  ;;  %v3278_v10 = vsel %vm3034_vm3, %v3246_v46, %v2390_v54  ;;  %v25138_v54 = vrot.slane %v25124_v26, %v23519_v9  ;;  %v1191_v46 = vcombine.high %v25105_v24, %v25105_v24 }
 0x1eb   : > { %1633 = vrot.lane.b32.xlu0 %v1356_v3, %s23408_s19 }
 0x1ec   : > { %v2932_v20 = vpop.permute.xlu1 %2931 }
 0x1ed   : > { %v3437_v28 = vsel %vm3199_vm8, %v3405_v15, %v2932_v20  ;;  %v2486_v51 = vpop.permute.xlu0 %2485  ;;  %v3617_v33 = vld [vmem:[#allocation2 + $0x151] sm:$0xff] }
 0x1ee   : > { %3484 = vst.msk [vmem:[#allocation2 + $0x159] sm:$0xff] %vm283_vm0, %v3437_v28  ;;  %2847 = vrot.lane.b32.xlu1 %v25045_v34, %s23409_s20  ;;  %20292 = vmatprep.mubr.msk.f32.mxu0 %vm283_vm0, %v3617_v33  ;;  %v3310_v30 = vsel %vm3067_vm4, %v3278_v10, %v2486_v51  ;;  %v3621_v28 = vld [vmem:[#allocation2 + $0x1b1] sm:$0xff] }
 0x1ef   : > { %2401 = vrot.lane.b32.xlu0 %v2220_v32, %s23409_s20  ;;  %v3342_v1 = vsel %vm3100_vm5, %v3310_v30, %v24728_v17  ;;  %v2224_v17 = vrot.slane %v25128_v52, %v23519_v9  ;;  %v25184_v30 = vrot.slane %v1191_v46, %v23502_v5 }
 0x1f0   : > { %v1974_v3 = vpop.permute.xlu1 %1973 }
 0x1f1   : > { %v1878_v8 = vpop.permute.xlu0 %1877 }
 0x1f2   : > { %v3148_v60 = vsel %vm3133_vm6, %v3115_v40, %v1878_v8  ;;  %2943 = vrot.lane.b32.xlu1 %v25045_v34, %s23408_s19 }
 0x1f3   : > { %2497 = vrot.lane.b32.xlu0 %v2220_v32, %s23408_s19  ;;  %v3181_v61 = vsel %vm3166_vm7, %v3148_v60, %v1974_v3  ;;  %v25159_v3 = vrot.slane %v759_v19, %v23502_v5 }
 0x1f4   : > { %v2070_v2 = vpop.permute.xlu1 %2069 }
 0x1f5   : > { %v3214_v27 = vsel %vm3199_vm8, %v3181_v61, %v2070_v2  ;;  %v2742_v22 = vpop.permute.xlu0 %2741  ;;  %v3618_v45 = vld [vmem:[#allocation2 + $0x159] sm:$0xff]  ;;  %v25171_v60 = vrot.slane %v25159_v3, %v23519_v9 }
 0x1f6   : > { %3485 = vst.msk [vmem:[#allocation2 + $0x169] sm:$0xff] %vm283_vm0, %v3214_v27  ;;  %1889 = vrot.lane.b32.xlu1 %v25102_v41, %s23407_s18  ;;  %20293 = vmatmul.mubr.msk.f32.gmra.mrb[28].mxu0 %vm283_vm0, %v3618_v45  ;;  %v3374_v59 = vsel %vm3133_vm6, %v3342_v1, %v2742_v22  ;;  %v25198_v1 = vrot.slane %v25184_v30, %v23519_v9 }
 0x1f7   : > { %1443 = vrot.lane.b32.xlu0 %v1360_v7, %s23407_s18 }
 0x1f8   : > { %v2934_v32 = vpop.permute.xlu1 %2933 }
 0x1f9   : > { %v2838_v12 = vpop.permute.xlu0 %2837 }
 0x1fa   : > { %v3406_v44 = vsel %vm3166_vm7, %v3374_v59, %v2838_v12  ;;  %1985 = vrot.lane.b32.xlu1 %v25102_v41, %s23409_s20 }
 0x1fb   : > { %v3438_v56 = vsel %vm3199_vm8, %v3406_v44, %v2934_v32  ;;  %1539 = vrot.lane.b32.xlu0 %v1360_v7, %s23409_s20 }
 0x1fc   : > { %3486 = vst.msk [vmem:[#allocation2 + $0x171] sm:$0xff] %vm283_vm0, %v3438_v56  ;;  %v1530_v6 = vpop.permute.xlu1 %1529 }
 0x1fd   : > { %v1434_v11 = vpop.permute.xlu0 %1433  ;;  %v3619_v4 = vld [vmem:[#allocation2 + $0x169] sm:$0xff] }
 0x1fe   : > { %2753 = vrot.lane.b32.xlu1 %v25138_v54, %s23407_s18  ;;  %20295 = vmatprep.mubr.msk.f32.mxu0 %vm283_vm0, %v3619_v4 }
 0x1ff   : > { %2307 = vrot.lane.b32.xlu0 %v2224_v17, %s23407_s18 }
 0x200   : > { %v1626_v15 = vpop.permute.xlu1 %1625 }
 0x201   : > { %v2298_v20 = vpop.permute.xlu0 %2297 }
 0x202   : > { %2081 = vrot.lane.b32.xlu1 %v25102_v41, %s23408_s19  ;;  %v3248_v32 = vsel %vm3001_vm2, %v24762_v58, %v2298_v20 }
 0x203   : > { %1635 = vrot.lane.b32.xlu0 %v1360_v7, %s23408_s19  ;;  %v3620_v51 = vld [vmem:[#allocation2 + $0x171] sm:$0xff]  ;;  %v3018_v7 = vsel %vm3001_vm2, %v24740_v23, %v1434_v11  ;;  %v25190_v23 = vcombine.high %v25038_v13, %v25038_v13 }
 0x204   : > { %20296 = vmatmul.mubr.msk.f32.gmra.mrb[30].mxu0 %vm283_vm0, %v3620_v51  ;;  %v2490_v33 = vpop.permute.xlu1 %2489  ;;  %v3051_v61 = vsel %vm3034_vm3, %v3018_v7, %v1530_v6 }
 0x205   : > { %v2394_v31 = vpop.permute.xlu0 %2393  ;;  %20298 = vmatprep.mubr.msk.f32.mxu0 %vm283_vm0, %v3621_v28  ;;  %v3084_v24 = vsel %vm3067_vm4, %v3051_v61, %v1626_v15  ;;  %v2228_v12 = vrot.slane %v25190_v23, %v23519_v9 }
 0x206   : > { %2849 = vrot.lane.b32.xlu1 %v25138_v54, %s23409_s20  ;;  %v3117_v45 = vsel %vm3100_vm5, %v3084_v24, %v24799_v63  ;;  %v3280_v44 = vsel %vm3034_vm3, %v3248_v32, %v2394_v31 }
 0x207   : > { %2403 = vrot.lane.b32.xlu0 %v2224_v17, %s23409_s20  ;;  %v3312_v58 = vsel %vm3067_vm4, %v3280_v44, %v2490_v33 }
 0x208   : > { %v1882_v40 = vpop.permute.xlu1 %1881  ;;  %20299 = vmatmul.mubr.msk.f32.gmra.mrb[32].mxu0 %vm283_vm0, %v3622_v21  ;;  %v3344_v15 = vsel %vm3100_vm5, %v3312_v58, %v24833_v53  ;;  %v789_v53 = vcombine.high %v25087_v43, %v25087_v43  ;;  %v25231_v21 = vcombine.high %v25093_v37, %v25093_v37 }
 0x209   : > { %v1436_v8 = vpop.permute.xlu0 %1435  ;;  %v3150_v59 = vsel %vm3133_vm6, %v3117_v45, %v1882_v40  ;;  %v1221_v45 = vcombine.high %v25124_v26, %v25124_v26 }
 0x20a   : > { %2945 = vrot.lane.b32.xlu1 %v25138_v54, %s23408_s19  ;;  %v25238_v7 = vrot.slane %v789_v53, %v23519_v9  ;;  %v1368_v43 = vrot.slane %v25231_v21, %v23519_v9 }
 0x20b   : > { %2499 = vrot.lane.b32.xlu0 %v2224_v17, %s23408_s19  ;;  %v25264_v26 = vrot.slane %v1221_v45, %v23519_v9 }
 0x20c   : > { %v1978_v10 = vpop.permute.xlu1 %1977 }
 0x20d   : > { %v1532_v2 = vpop.permute.xlu0 %1531  ;;  %v3183_v63 = vsel %vm3166_vm7, %v3150_v59, %v1978_v10  ;;  %v3019_v10 = vsel %vm3001_vm2, %v24789_v16, %v1436_v8  ;;  %v25255_v59 = vcombine.high %v25128_v52, %v25128_v52 }
 0x20e   : > { %1891 = vrot.lane.b32.xlu1 %v25171_v60, %s23407_s18 }
 0x20f   : > { %1445 = vrot.lane.b32.xlu0 %v1364_v42, %s23407_s18  ;;  %v2232_v44 = vrot.slane %v25255_v59, %v23519_v9 }
 0x210   : > { %v2746_v27 = vpop.permute.xlu1 %2745 }
 0x211   : > { %v2300_v22 = vpop.permute.xlu0 %2299  ;;  %v3376_v20 = vsel %vm3133_vm6, %v3344_v15, %v2746_v27  ;;  %v3052_v27 = vsel %vm3034_vm3, %v3019_v10, %v1532_v2 }
 0x212   : > { %1987 = vrot.lane.b32.xlu1 %v25171_v60, %s23409_s20 }
 0x213   : > { %1541 = vrot.lane.b32.xlu0 %v1364_v42, %s23409_s20 }
 0x214   : > { %v2074_v56 = vpop.permute.xlu1 %2073 }
 0x215   : > { %v3216_v17 = vsel %vm3199_vm8, %v3183_v63, %v2074_v56  ;;  %v1628_v6 = vpop.permute.xlu0 %1627 }
 0x216   : > { %3489 = vst.msk [vmem:[#allocation2 + $0x1c9] sm:$0xff] %vm283_vm0, %v3216_v17  ;;  %2755 = vrot.lane.b32.xlu1 %v25198_v1, %s23407_s18  ;;  %v3085_v32 = vsel %vm3067_vm4, %v3052_v27, %v1628_v6 }
 0x217   : > { %2309 = vrot.lane.b32.xlu0 %v2228_v12, %s23407_s18  ;;  %v3118_v2 = vsel %vm3100_vm5, %v3085_v32, %v24876_v29  ;;  %v3249_v29 = vsel %vm3001_vm2, %v24823_v36, %v2300_v22 }
 0x218   : > { %v2842_v11 = vpop.permute.xlu1 %2841 }
 0x219   : > { %v2396_v4 = vpop.permute.xlu0 %2395  ;;  %v3408_v19 = vsel %vm3166_vm7, %v3376_v20, %v2842_v11  ;;  %v25281_v20 = vld [vmem:[%s23507_s17 + $0x60] sm:$0xff] }
 0x21a   : > { %2083 = vrot.lane.b32.xlu1 %v25171_v60, %s23408_s19  ;;  %v3281_v58 = vsel %vm3034_vm3, %v3249_v29, %v2396_v4  ;;  %v25291_v4 = vrot.slane %v25281_v20, %v23502_v5 }
 0x21b   : > { %1637 = vrot.lane.b32.xlu0 %v1364_v42, %s23408_s19 }
 0x21c   : > { %v2938_v28 = vpop.permute.xlu1 %2937 }
 0x21d   : > { %v3440_v51 = vsel %vm3199_vm8, %v3408_v19, %v2938_v28  ;;  %v2492_v33 = vpop.permute.xlu0 %2491  ;;  %v3623_v31 = vld [vmem:[#allocation2 + $0x1c9] sm:$0xff] }
 0x21e   : > { %3490 = vst.msk [vmem:[#allocation2 + $0x1d1] sm:$0xff] %vm283_vm0, %v3440_v51  ;;  %2851 = vrot.lane.b32.xlu1 %v25198_v1, %s23409_s20  ;;  %20301 = vmatprep.mubr.msk.f32.mxu0 %vm283_vm0, %v3623_v31  ;;  %v3313_v11 = vsel %vm3067_vm4, %v3281_v58, %v2492_v33 }
 0x21f   : > { %2405 = vrot.lane.b32.xlu0 %v2228_v12, %s23409_s20  ;;  %v3345_v36 = vsel %vm3100_vm5, %v3313_v11, %v24905_v47  ;;  %v791_v47 = vcombine.high %v25159_v3, %v25159_v3 }
 0x220   : > { %v1884_v40 = vpop.permute.xlu1 %1883 }
 0x221   : > { %v25233_v46 = vpop.permute.xlu0 %1437 }
 0x222   : > { %2947 = vrot.lane.b32.xlu1 %v25198_v1, %s23408_s19  ;;  %v3020_v32 = vsel %vm3001_vm2, %v24870_v25, %v25233_v46 }
 0x223   : > { %2501 = vrot.lane.b32.xlu0 %v2228_v12, %s23408_s19  ;;  %v3151_v12 = vsel %vm3133_vm6, %v3118_v2, %v1884_v40  ;;  %v25304_v40 = vrot.slane %v25291_v4, %v23502_v5 }
 0x224   : > { %v1980_v42 = vpop.permute.xlu1 %1979 }
 0x225   : > { %v1534_v61 = vpop.permute.xlu0 %1533  ;;  %v3624_v24 = vld [vmem:[#allocation2 + $0x1d1] sm:$0xff]  ;;  %v3184_v63 = vsel %vm3166_vm7, %v3151_v12, %v1980_v42  ;;  %v1372_v3 = vrot.slane %v25304_v40, %v23519_v9 }
 0x226   : > { %1893 = vrot.lane.b32.xlu1 %v25238_v7, %s23407_s18  ;;  %20302 = vmatmul.mubr.msk.f32.gmra.mrb[34].mxu0 %vm283_vm0, %v3624_v24  ;;  %v25307_v42 = vld [vmem:[%s23507_s17 + $0x70] sm:$0xff]  ;;  %v25314_v24 = vrot.slane %v791_v47, %v23519_v9  ;;  %v3053_v12 = vsel %vm3034_vm3, %v3020_v32, %v1534_v61  ;;  %v25392_v32 = vld [vmem:[%s23507_s17 + $0x78] sm:$0xff] }
 0x227   : > { %1447 = vrot.lane.b32.xlu0 %v1368_v43, %s23407_s18  ;;  %v25321_v27 = vrot.slane %v25307_v42, %v23502_v5 }
 0x228   : > { %v2748_v16 = vpop.permute.xlu1 %2747 }
 0x229   : > { %v25257_v8 = vpop.permute.xlu0 %2301  ;;  %v3377_v22 = vsel %vm3133_vm6, %v3345_v36, %v2748_v16 }
 0x22a   : > { %1989 = vrot.lane.b32.xlu1 %v25238_v7, %s23409_s20 }
 0x22b   : > { %1543 = vrot.lane.b32.xlu0 %v1368_v43, %s23409_s20 }
 0x22c   : > { %v2076_v56 = vpop.permute.xlu1 %2075 }
 0x22d   : > { %v3217_v17 = vsel %vm3199_vm8, %v3184_v63, %v2076_v56  ;;  %v1630_v6 = vpop.permute.xlu0 %1629  ;;  %v25336_v56 = vrot.slane %v25321_v27, %v23502_v5 }
 0x22e   : > { %3491 = vst.msk [vmem:[#allocation2 + $0x1e1] sm:$0xff] %vm283_vm0, %v3217_v17  ;;  %2757 = vrot.lane.b32.xlu1 %v25264_v26, %s23407_s18  ;;  %v3086_v63 = vsel %vm3067_vm4, %v3053_v12, %v1630_v6 }
 0x22f   : > { %2311 = vrot.lane.b32.xlu0 %v2232_v44, %s23407_s18  ;;  %v3119_v61 = vsel %vm3100_vm5, %v3086_v63, %v24946_v14  ;;  %v2236_v17 = vrot.slane %v25336_v56, %v23519_v9  ;;  %v3250_v14 = vsel %vm3001_vm2, %v24897_v18, %v25257_v8  ;;  %v25404_v63 = vrot.slane %v25392_v32, %v23502_v5 }
 0x230   : > { %v2844_v15 = vpop.permute.xlu1 %2843 }
 0x231   : > { %v2398_v19 = vpop.permute.xlu0 %2397  ;;  %v3409_v28 = vsel %vm3166_vm7, %v3377_v22, %v2844_v15 }
 0x232   : > { %2085 = vrot.lane.b32.xlu1 %v25238_v7, %s23408_s19  ;;  %v3282_v36 = vsel %vm3034_vm3, %v3250_v14, %v2398_v19 }
 0x233   : > { %1639 = vrot.lane.b32.xlu0 %v1368_v43, %s23408_s19 }
 0x234   : > { %v2940_v51 = vpop.permute.xlu1 %2939 }
 0x235   : > { %v3441_v33 = vsel %vm3199_vm8, %v3409_v28, %v2940_v51  ;;  %v2494_v31 = vpop.permute.xlu0 %2493  ;;  %v3625_v53 = vld [vmem:[#allocation2 + $0x1e1] sm:$0xff] }
 0x236   : > { %3492 = vst.msk [vmem:[#allocation2 + $0x1e9] sm:$0xff] %vm283_vm0, %v3441_v33  ;;  %2853 = vrot.lane.b32.xlu1 %v25264_v26, %s23409_s20  ;;  %20304 = vmatprep.mubr.msk.f32.mxu0 %vm283_vm0, %v3625_v53  ;;  %v3314_v22 = vsel %vm3067_vm4, %v3282_v36, %v2494_v31  ;;  %v25363_v28 = vld [vmem:[%s23507_s17 + $0x68] sm:$0xff]  ;;  %v575_v31 = vcombine.high %v25291_v4, %v25291_v4 }
 0x237   : > { %2407 = vrot.lane.b32.xlu0 %v2232_v44, %s23409_s20  ;;  %v3346_v18 = vsel %vm3100_vm5, %v3314_v22, %v24972_v62  ;;  %v25371_v8 = vrot.slane %v25363_v28, %v23502_v5 }
 0x238   : > { %v1886_v43 = vpop.permute.xlu1 %1885  ;;  %v25389_v4 = vrot.slane %v575_v31, %v23502_v5 }
 0x239   : > { %v25309_v10 = vpop.permute.xlu0 %1439  ;;  %v3152_v29 = vsel %vm3133_vm6, %v3119_v61, %v1886_v43  ;;  %v1007_v61 = vcombine.high %v25321_v27, %v25321_v27 }
 0x23a   : > { %2949 = vrot.lane.b32.xlu1 %v25264_v26, %s23408_s19 }
 0x23b   : > { %2503 = vrot.lane.b32.xlu0 %v2232_v44, %s23408_s19  ;;  %v1223_v44 = vcombine.high %v25184_v30, %v25184_v30  ;;  %v25425_v36 = vrot.slane %v1007_v61, %v23502_v5 }
 0x23c   : > { %v1982_v45 = vpop.permute.xlu1 %1981 }
 0x23d   : > { %v1536_v16 = vpop.permute.xlu0 %1535  ;;  %v3626_v2 = vld [vmem:[#allocation2 + $0x1e9] sm:$0xff]  ;;  %v25345_v30 = vrot.slane %v1223_v44, %v23519_v9  ;;  %v3185_v6 = vsel %vm3166_vm7, %v3152_v29, %v1982_v45 }
 0x23e   : > { %1895 = vrot.lane.b32.xlu1 %v25314_v24, %s23407_s18  ;;  %20305 = vmatmul.mubr.msk.f32.gmra.mrb[36].mxu0 %vm283_vm0, %v3626_v2 }
 0x23f   : > { %1449 = vrot.lane.b32.xlu0 %v1372_v3, %s23407_s18 }
 0x240   : > { %v2750_v25 = vpop.permute.xlu1 %2749 }
 0x241   : > { %v25338_v46 = vpop.permute.xlu0 %2303  ;;  %v3378_v19 = vsel %vm3133_vm6, %v3346_v18, %v2750_v25  ;;  %v1376_v25 = vrot.slane %v25389_v4, %v23519_v9 }
 0x242   : > { %1991 = vrot.lane.b32.xlu1 %v25314_v24, %s23409_s20 }
 0x243   : > { %1545 = vrot.lane.b32.xlu0 %v1372_v3, %s23409_s20 }
 0x244   : > { %v2078_v58 = vpop.permute.xlu1 %2077 }
 0x245   : > { %v3218_v11 = vsel %vm3199_vm8, %v3185_v6, %v2078_v58  ;;  %v1632_v15 = vpop.permute.xlu0 %1631  ;;  %v3021_v6 = vsel %vm3001_vm2, %v24939_v55, %v25309_v10 }
 0x246   : > { %3493 = vst.msk [vmem:[#allocation2 + $0x1f9] sm:$0xff] %vm283_vm0, %v3218_v11  ;;  %2759 = vrot.lane.b32.xlu1 %v25345_v30, %s23407_s18  ;;  %v3054_v11 = vsel %vm3034_vm3, %v3021_v6, %v1536_v16 }
 0x247   : > { %2313 = vrot.lane.b32.xlu0 %v2236_v17, %s23407_s18  ;;  %v3087_v27 = vsel %vm3067_vm4, %v3054_v11, %v1632_v15 }
 0x248   : > { %v2846_v51 = vpop.permute.xlu1 %2845  ;;  %v3120_v16 = vsel %vm3100_vm5, %v3087_v27, %v25017_v49  ;;  %v3251_v49 = vsel %vm3001_vm2, %v24963_v35, %v25338_v46  ;;  %v807_v35 = vcombine.high %v25371_v8, %v25371_v8 }
 0x249   : > { %v2400_v33 = vpop.permute.xlu0 %2399  ;;  %v3410_v53 = vsel %vm3166_vm7, %v3378_v19, %v2846_v51  ;;  %v2240_v51 = vrot.slane %v25425_v36, %v23519_v9 }
 0x24a   : > { %2087 = vrot.lane.b32.xlu1 %v25314_v24, %s23408_s19 }
 0x24b   : > { %1641 = vrot.lane.b32.xlu0 %v1372_v3, %s23408_s19  ;;  %v25385_v3 = vrot.slane %v25371_v8, %v23502_v5  ;;  %v25472_v8 = vcombine.high %v25304_v40, %v25304_v40 }
 0x24c   : > { %v2942_v47 = vpop.permute.xlu1 %2941 }
 0x24d   : > { %v3442_v62 = vsel %vm3199_vm8, %v3410_v53, %v2942_v47  ;;  %v2496_v43 = vpop.permute.xlu0 %2495  ;;  %v3627_v45 = vld [vmem:[#allocation2 + $0x1f9] sm:$0xff]  ;;  %v25400_v44 = vrot.slane %v25385_v3, %v23519_v9  ;;  %v3283_v47 = vsel %vm3034_vm3, %v3251_v49, %v2400_v33 }
 0x24e   : > { %3494 = vst.msk [vmem:[#allocation2 + $0x201] sm:$0xff] %vm283_vm0, %v3442_v62  ;;  %2855 = vrot.lane.b32.xlu1 %v25345_v30, %s23409_s20  ;;  %20307 = vmatprep.mubr.msk.f32.mxu0 %vm283_vm0, %v3627_v45  ;;  %v3315_v62 = vsel %vm3067_vm4, %v3283_v47, %v2496_v43 }
 0x24f   : > { %2409 = vrot.lane.b32.xlu0 %v2236_v17, %s23409_s20  ;;  %v3347_v61 = vsel %vm3100_vm5, %v3315_v62, %v25045_v34  ;;  %v25467_v34 = vrot.slane %v807_v35, %v23502_v5 }
 0x250   : > { %v1888_v2 = vpop.permute.xlu1 %1887 }
 0x251   : > { %v25394_v12 = vpop.permute.xlu0 %1441  ;;  %v3153_v15 = vsel %vm3133_vm6, %v3120_v16, %v1888_v2  ;;  %v25480_v27 = vrot.slane %v25467_v34, %v23519_v9  ;;  %v1380_v16 = vrot.slane %v25472_v8, %v23519_v9 }
 0x252   : > { %2951 = vrot.lane.b32.xlu1 %v25345_v30, %s23408_s19 }
 0x253   : > { %2505 = vrot.lane.b32.xlu0 %v2236_v17, %s23408_s19  ;;  %v25420_v17 = vrot.slane %v25404_v63, %v23502_v5 }
 0x254   : > { %v1984_v29 = vpop.permute.xlu1 %1983 }
 0x255   : > { %v1538_v58 = vpop.permute.xlu0 %1537  ;;  %v3628_v14 = vld [vmem:[#allocation2 + $0x201] sm:$0xff]  ;;  %v25435_v22 = vrot.slane %v25420_v17, %v23519_v9  ;;  %v3186_v18 = vsel %vm3166_vm7, %v3153_v15, %v1984_v29 }
 0x256   : > { %1897 = vrot.lane.b32.xlu1 %v25400_v44, %s23407_s18  ;;  %20308 = vmatmul.mubr.msk.f32.gmra.mrb[38].mxu0 %vm283_vm0, %v3628_v14 }
 0x257   : > { %1451 = vrot.lane.b32.xlu0 %v1376_v25, %s23407_s18 }
 0x258   : > { %v2752_v55 = vpop.permute.xlu1 %2751 }
 0x259   : > { %v25427_v10 = vpop.permute.xlu0 %2305  ;;  %v3379_v46 = vsel %vm3133_vm6, %v3347_v61, %v2752_v55  ;;  %v1239_v55 = vcombine.high %v25404_v63, %v25404_v63 }
 0x25a   : > { %1993 = vrot.lane.b32.xlu1 %v25400_v44, %s23409_s20 }
 0x25b   : > { %1547 = vrot.lane.b32.xlu0 %v1376_v25, %s23409_s20  ;;  %v25495_v63 = vrot.slane %v1239_v55, %v23502_v5 }
 0x25c   : > { %v2080_v19 = vpop.permute.xlu1 %2079 }
 0x25d   : > { %v3219_v31 = vsel %vm3199_vm8, %v3186_v18, %v2080_v19  ;;  %v1634_v53 = vpop.permute.xlu0 %1633  ;;  %v3022_v18 = vsel %vm3001_vm2, %v25010_v0, %v25394_v12  ;;  %v3586_v0 = vld [vmem:[%s31082_s1 + $0x8] sm:$0xff] }
 0x25e   : > { %3495 = vst.msk [vmem:[#allocation2 + $0x211] sm:$0xff] %vm283_vm0, %v3219_v31  ;;  %2761 = vrot.lane.b32.xlu1 %v25435_v22, %s23407_s18  ;;  %v3055_v31 = vsel %vm3034_vm3, %v3022_v18, %v1538_v58  ;;  %v25507_v58 = vcombine.high %v25336_v56, %v25336_v56 }
 0x25f   : > { %2315 = vrot.lane.b32.xlu0 %v2240_v51, %s23407_s18  ;;  %v3088_v12 = vsel %vm3067_vm4, %v3055_v31, %v1634_v53  ;;  %v25517_v53 = vrot.slane %v25495_v63, %v23519_v9 }
 0x260   : > { %v2848_v45 = vpop.permute.xlu1 %2847  ;;  %v3121_v61 = vsel %vm3100_vm5, %v3088_v12, %v25102_v41  ;;  %v3252_v41 = vsel %vm3001_vm2, %v25038_v13, %v25427_v10 }
 0x261   : > { %v2402_v2 = vpop.permute.xlu0 %2401  ;;  %v3411_v33 = vsel %vm3166_vm7, %v3379_v46, %v2848_v45  ;;  %v2244_v46 = vrot.slane %v25507_v58, %v23519_v9 }
 0x262   : > { %2089 = vrot.lane.b32.xlu1 %v25400_v44, %s23408_s19  ;;  %v3284_v55 = vsel %vm3034_vm3, %v3252_v41, %v2402_v2 }
 0x263   : > { %1643 = vrot.lane.b32.xlu0 %v1376_v25, %s23408_s19 }
 0x264   : > { %v2944_v43 = vpop.permute.xlu1 %2943 }
 0x265   : > { %v3443_v29 = vsel %vm3199_vm8, %v3411_v33, %v2944_v43  ;;  %v2498_v6 = vpop.permute.xlu0 %2497  ;;  %v3629_v14 = vld [vmem:[#allocation2 + $0x211] sm:$0xff] }
 0x266   : > { %3496 = vst.msk [vmem:[#allocation2 + $0x219] sm:$0xff] %vm283_vm0, %v3443_v29  ;;  %2857 = vrot.lane.b32.xlu1 %v25435_v22, %s23409_s20  ;;  %20310 = vmatprep.mubr.msk.f32.mxu0 %vm283_vm0, %v3629_v14 }
 0x267   : > { %2411 = vrot.lane.b32.xlu0 %v2240_v51, %s23409_s20 }
 0x268   : > { %v1890_v25 = vpop.permute.xlu1 %1889 }
 0x269   : > { %v25474_v11 = vpop.permute.xlu0 %1443  ;;  %v3154_v35 = vsel %vm3133_vm6, %v3121_v61, %v1890_v25  ;;  %v3316_v25 = vsel %vm3067_vm4, %v3284_v55, %v2498_v6 }
 0x26a   : > { %2953 = vrot.lane.b32.xlu1 %v25435_v22, %s23408_s19  ;;  %v3023_v61 = vsel %vm3001_vm2, %v25093_v37, %v25474_v11 }
 0x26b   : > { %2507 = vrot.lane.b32.xlu0 %v2240_v51, %s23408_s19  ;;  %v3585_v51 = vld [vmem:[%s31082_s1] sm:$0xff] }
 0x26c   : > { %v1986_v15 = vpop.permute.xlu1 %1985  ;;  %v22122_v47 = vpack.c.bf16 %v3586_v0, %v3585_v51 }
 0x26d   : > { %v1540_v19 = vpop.permute.xlu0 %1539  ;;  %v3630_v49 = vld [vmem:[#allocation2 + $0x219] sm:$0xff]  ;;  %v3187_v33 = vsel %vm3166_vm7, %v3154_v35, %v1986_v15 }
 0x26e   : > { %1899 = vrot.lane.b32.xlu1 %v25480_v27, %s23407_s18  ;;  %20311 = vmatmul.mubr.msk.f32.gmra.mrb[40].mxu0 %vm283_vm0, %v3630_v49  ;;  %v3348_v49 = vsel %vm3100_vm5, %v3316_v25, %v25138_v54  ;;  %v837_v54 = vcombine.high %v25385_v3, %v25385_v3 }
 0x26f   : > { %1453 = vrot.lane.b32.xlu0 %v1380_v16, %s23407_s18  ;;  %22123 = vmatprep.subr.bf16.mxu0 %v22122_v47 }
 0x270   : > { %v2754_v62 = vpop.permute.xlu1 %2753  ;;  %22125 = vmatpush3.bf16.msra.mxu0 %v22122_v47  ;;  %v25558_v47 = vrot.slane %v837_v54, %v23519_v9 }
 0x271   : > { %v25509_v45 = vpop.permute.xlu0 %2307  ;;  %v3380_v13 = vsel %vm3133_vm6, %v3348_v49, %v2754_v62 }
 0x272   : > { %1995 = vrot.lane.b32.xlu1 %v25480_v27, %s23409_s20 }
 0x273   : > { %1549 = vrot.lane.b32.xlu0 %v1380_v16, %s23409_s20 }
 0x274   : > { %v2082_v43 = vpop.permute.xlu1 %2081 }
 0x275   : > { %v3220_v29 = vsel %vm3199_vm8, %v3187_v33, %v2082_v43  ;;  %v1636_v14 = vpop.permute.xlu0 %1635  ;;  %v3056_v43 = vsel %vm3034_vm3, %v3023_v61, %v1540_v19 }
 0x276   : > { %3497 = vst.msk [vmem:[#allocation2 + $0x229] sm:$0xff] %vm283_vm0, %v3220_v29  ;;  %2763 = vrot.lane.b32.xlu1 %v25517_v53, %s23407_s18  ;;  %v3089_v41 = vsel %vm3067_vm4, %v3056_v43, %v1636_v14  ;;  %v25576_v29 = vcombine.high %v25425_v36, %v25425_v36 }
 0x277   : > { %2317 = vrot.lane.b32.xlu0 %v2244_v46, %s23407_s18  ;;  %v3122_v19 = vsel %vm3100_vm5, %v3089_v41, %v25171_v60  ;;  %v3253_v60 = vsel %vm3001_vm2, %v25128_v52, %v25509_v45 }
 0x278   : > { %v2850_v15 = vpop.permute.xlu1 %2849  ;;  %v2248_v14 = vrot.slane %v25576_v29, %v23519_v9 }
 0x279   : > { %v2404_v18 = vpop.permute.xlu0 %2403  ;;  %v3412_v10 = vsel %vm3166_vm7, %v3380_v13, %v2850_v15 }
 0x27a   : > { %2091 = vrot.lane.b32.xlu1 %v25480_v27, %s23408_s19 }
 0x27b   : > { %1645 = vrot.lane.b32.xlu0 %v1380_v16, %s23408_s19  ;;  %v25551_v16 = vcombine.high %v25389_v4, %v25389_v4 }
 0x27c   : > { %v2946_v2 = vpop.permute.xlu1 %2945 }
 0x27d   : > { %v3444_v31 = vsel %vm3199_vm8, %v3412_v10, %v2946_v2  ;;  %v2500_v6 = vpop.permute.xlu0 %2499  ;;  %v3631_v51 = vld [vmem:[#allocation2 + $0x229] sm:$0xff]  ;;  %v1384_v3 = vrot.slane %v25551_v16, %v23519_v9  ;;  %v3285_v10 = vsel %vm3034_vm3, %v3253_v60, %v2404_v18 }
 0x27e   : > { %3498 = vst.msk [vmem:[#allocation2 + $0x231] sm:$0xff] %vm283_vm0, %v3444_v31  ;;  %2859 = vrot.lane.b32.xlu1 %v25517_v53, %s23409_s20  ;;  %20313 = vmatprep.mubr.msk.f32.mxu0 %vm283_vm0, %v3631_v51  ;;  %v3317_v2 = vsel %vm3067_vm4, %v3285_v10, %v2500_v6  ;;  %v560_v31 = vcombine.high %v25281_v20, %v25281_v20 }
 0x27f   : > { %2413 = vrot.lane.b32.xlu0 %v2244_v46, %s23409_s20  ;;  %v3349_v52 = vsel %vm3100_vm5, %v3317_v2, %v25198_v1  ;;  %v839_v1 = vcombine.high %v25467_v34, %v25467_v34 }
 0x280   : > { %v1892_v0 = vpop.permute.xlu1 %1891  ;;  %v25611_v18 = vrot.slane %v560_v31, %v23502_v5 }
 0x281   : > { %v25553_v12 = vpop.permute.xlu0 %1445  ;;  %v25633_v41 = vrot.slane %v839_v1, %v23519_v9 }
 0x282   : > { %2955 = vrot.lane.b32.xlu1 %v25517_v53, %s23408_s19 }
 0x283   : > { %2509 = vrot.lane.b32.xlu0 %v2244_v46, %s23408_s19  ;;  %v1269_v46 = vcombine.high %v25420_v17, %v25420_v17  ;;  %v3155_v17 = vsel %vm3133_vm6, %v3122_v19, %v1892_v0 }
 0x284   : > { %v1988_v62 = vpop.permute.xlu1 %1987 }
 0x285   : > { %v1542_v35 = vpop.permute.xlu0 %1541  ;;  %v3632_v33 = vld [vmem:[#allocation2 + $0x231] sm:$0xff]  ;;  %v25585_v55 = vrot.slane %v1269_v46, %v23519_v9  ;;  %v3188_v25 = vsel %vm3166_vm7, %v3155_v17, %v1988_v62 }
 0x286   : > { %1901 = vrot.lane.b32.xlu1 %v25558_v47, %s23407_s18  ;;  %20314 = vmatmul.mubr.msk.f32.gmra.mrb[42].mxu0 %vm283_vm0, %v3632_v33  ;;  %v992_v33 = vcombine.high %v25307_v42, %v25307_v42  ;;  %v3024_v42 = vsel %vm3001_vm2, %v25164_v38, %v25553_v12 }
 0x287   : > { %1455 = vrot.lane.b32.xlu0 %v1384_v3, %s23407_s18 }
 0x288   : > { %v2756_v37 = vpop.permute.xlu1 %2755 }
 0x289   : > { %v25578_v11 = vpop.permute.xlu0 %2309  ;;  %v3381_v45 = vsel %vm3133_vm6, %v3349_v52, %v2756_v37  ;;  %v25639_v37 = vrot.slane %v992_v33, %v23502_v5 }
 0x28a   : > { %1997 = vrot.lane.b32.xlu1 %v25558_v47, %s23409_s20 }
 0x28b   : > { %1551 = vrot.lane.b32.xlu0 %v1384_v3, %s23409_s20  ;;  %v25656_v38 = vrot.slane %v25639_v37, %v23502_v5 }
 0x28c   : > { %v2084_v15 = vpop.permute.xlu1 %2083 }
 0x28d   : > { %v3221_v49 = vsel %vm3199_vm8, %v3188_v25, %v2084_v15  ;;  %v1638_v13 = vpop.permute.xlu0 %1637  ;;  %v3057_v15 = vsel %vm3034_vm3, %v3024_v42, %v1542_v35  ;;  %v3588_v42 = vld [vmem:[%s31082_s1 + $0x18] sm:$0xff] }
 0x28e   : > { %3499 = vst.msk [vmem:[#allocation2 + $0x241] sm:$0xff] %vm283_vm0, %v3221_v49  ;;  %2765 = vrot.lane.b32.xlu1 %v25585_v55, %s23407_s18  ;;  %v3090_v60 = vsel %vm3067_vm4, %v3057_v15, %v1638_v13  ;;  %v2252_v13 = vrot.slane %v25656_v38, %v23519_v9 }
 0x28f   : > { %2319 = vrot.lane.b32.xlu0 %v2248_v14, %s23407_s18  ;;  %v3123_v35 = vsel %vm3100_vm5, %v3090_v60, %v25238_v7  ;;  %v3254_v7 = vsel %vm3001_vm2, %v25190_v23, %v25578_v11 }
 0x290   : > { %v2852_v51 = vpop.permute.xlu1 %2851 }
 0x291   : > { %v2406_v54 = vpop.permute.xlu0 %2405  ;;  %v3413_v6 = vsel %vm3166_vm7, %v3381_v45, %v2852_v51 }
 0x292   : > { %2093 = vrot.lane.b32.xlu1 %v25558_v47, %s23408_s19  ;;  %v3286_v45 = vsel %vm3034_vm3, %v3254_v7, %v2406_v54 }
 0x293   : > { %1647 = vrot.lane.b32.xlu0 %v1384_v3, %s23408_s19  ;;  %v25624_v3 = vrot.slane %v25611_v18, %v23502_v5 }
 0x294   : > { %v2948_v0 = vpop.permute.xlu1 %2947 }
 0x295   : > { %v3445_v20 = vsel %vm3199_vm8, %v3413_v6, %v2948_v0  ;;  %v2502_v62 = vpop.permute.xlu0 %2501  ;;  %v3633_v61 = vld [vmem:[#allocation2 + $0x241] sm:$0xff]  ;;  %v1388_v34 = vrot.slane %v25624_v3, %v23519_v9  ;;  %v792_v6 = vcombine.high %v25363_v28, %v25363_v28  ;;  %v576_v28 = vcombine.high %v25611_v18, %v25611_v18 }
 0x296   : > { %3500 = vst.msk [vmem:[#allocation2 + $0x249] sm:$0xff] %vm283_vm0, %v3445_v20  ;;  %2861 = vrot.lane.b32.xlu1 %v25585_v55, %s23409_s20  ;;  %20316 = vmatprep.mubr.msk.f32.mxu0 %vm283_vm0, %v3633_v61  ;;  %v3318_v0 = vsel %vm3067_vm4, %v3286_v45, %v2502_v62  ;;  %v1224_v18 = vcombine.high %v25392_v32, %v25392_v32 }
 0x297   : > { %2415 = vrot.lane.b32.xlu0 %v2248_v14, %s23409_s20  ;;  %v3350_v23 = vsel %vm3100_vm5, %v3318_v0, %v25264_v26  ;;  %v25689_v11 = vrot.slane %v792_v6, %v23502_v5 }
 0x298   : > { %v1894_v43 = vpop.permute.xlu1 %1893 }
 0x299   : > { %v25628_v46 = vpop.permute.xlu0 %1447 }
 0x29a   : > { %2957 = vrot.lane.b32.xlu1 %v25585_v55, %s23408_s19 }
 0x29b   : > { %2511 = vrot.lane.b32.xlu0 %v2248_v14, %s23408_s19  ;;  %v1271_v14 = vcombine.high %v25495_v63, %v25495_v63  ;;  %v3156_v63 = vsel %vm3133_vm6, %v3123_v35, %v1894_v43 }
 0x29c   : > { %v1990_v19 = vpop.permute.xlu1 %1989 }
 0x29d   : > { %v25644_v17 = vpop.permute.xlu0 %1543  ;;  %v3634_v25 = vld [vmem:[#allocation2 + $0x249] sm:$0xff]  ;;  %v25665_v10 = vrot.slane %v1271_v14, %v23519_v9  ;;  %v3189_v2 = vsel %vm3166_vm7, %v3156_v63, %v1990_v19  ;;  %v1008_v63 = vcombine.high %v25639_v37, %v25639_v37 }
 0x29e   : > { %1903 = vrot.lane.b32.xlu1 %v25633_v41, %s23407_s18  ;;  %20317 = vmatmul.mubr.msk.f32.gmra.mrb[44].mxu0 %vm283_vm0, %v3634_v25  ;;  %v3587_v19 = vld [vmem:[%s31082_s1 + $0x10] sm:$0xff]  ;;  %v25715_v25 = vrot.slane %v576_v28, %v23502_v5 }
 0x29f   : > { %1457 = vrot.lane.b32.xlu0 %v1388_v34, %s23407_s18  ;;  %v22126_v15 = vpack.c.bf16 %v3588_v42, %v3587_v19 }
 0x2a0   : > { %v2758_v12 = vpop.permute.xlu1 %2757  ;;  %v1392_v35 = vrot.slane %v25715_v25, %v23519_v9 }
 0x2a1   : > { %v25658_v49 = vpop.permute.xlu0 %2311  ;;  %v3382_v54 = vsel %vm3133_vm6, %v3350_v23, %v2758_v12  ;;  %22127 = vmatprep.subr.bf16.mxu0 %v22126_v15  ;;  %v25726_v12 = vrot.slane %v1224_v18, %v23502_v5 }
 0x2a2   : > { %1999 = vrot.lane.b32.xlu1 %v25633_v41, %s23409_s20  ;;  %22129 = vmatpush3.bf16.msra.mxu0 %v22126_v15 }
 0x2a3   : > { %1553 = vrot.lane.b32.xlu0 %v1388_v34, %s23409_s20 }
 0x2a4   : > { %v2086_v31 = vpop.permute.xlu1 %2085 }
 0x2a5   : > { %v3222_v51 = vsel %vm3199_vm8, %v3189_v2, %v2086_v31  ;;  %v1640_v52 = vpop.permute.xlu0 %1639  ;;  %v3025_v31 = vsel %vm3001_vm2, %v25231_v21, %v25628_v46  ;;  %v25748_v21 = vrot.slane %v1008_v63, %v23502_v5 }
 0x2a6   : > { %3501 = vst.msk [vmem:[#allocation2 + $0x259] sm:$0xff] %vm283_vm0, %v3222_v51  ;;  %2767 = vrot.lane.b32.xlu1 %v25665_v10, %s23407_s18  ;;  %v3058_v45 = vsel %vm3034_vm3, %v3025_v31, %v25644_v17  ;;  %v1240_v31 = vcombine.high %v25726_v12, %v25726_v12 }
 0x2a7   : > { %2321 = vrot.lane.b32.xlu0 %v2252_v13, %s23407_s18  ;;  %v3091_v37 = vsel %vm3067_vm4, %v3058_v45, %v1640_v52 }
 0x2a8   : > { %v2854_v20 = vpop.permute.xlu1 %2853  ;;  %v3124_v17 = vsel %vm3100_vm5, %v3091_v37, %v25314_v24  ;;  %v3255_v24 = vsel %vm3001_vm2, %v25255_v59, %v25658_v49  ;;  %v808_v59 = vcombine.high %v25689_v11, %v25689_v11 }
 0x2a9   : > { %v2408_v61 = vpop.permute.xlu0 %2407  ;;  %v3414_v62 = vsel %vm3166_vm7, %v3382_v54, %v2854_v20  ;;  %v2256_v20 = vrot.slane %v25748_v21, %v23519_v9 }
 0x2aa   : > { %2095 = vrot.lane.b32.xlu1 %v25633_v41, %s23408_s19 }
 0x2ab   : > { %1649 = vrot.lane.b32.xlu0 %v1388_v34, %s23408_s19  ;;  %v25703_v34 = vrot.slane %v25689_v11, %v23502_v5  ;;  %v25795_v11 = vcombine.high %v25624_v3, %v25624_v3 }
 0x2ac   : > { %v2950_v1 = vpop.permute.xlu1 %2949 }
 0x2ad   : > { %v3446_v33 = vsel %vm3199_vm8, %v3414_v62, %v2950_v1  ;;  %v2504_v43 = vpop.permute.xlu0 %2503  ;;  %v3635_v26 = vld [vmem:[#allocation2 + $0x259] sm:$0xff]  ;;  %v25723_v32 = vrot.slane %v25703_v34, %v23519_v9  ;;  %v3287_v1 = vsel %vm3034_vm3, %v3255_v24, %v2408_v61 }
 0x2ae   : > { %3502 = vst.msk [vmem:[#allocation2 + $0x261] sm:$0xff] %vm283_vm0, %v3446_v33  ;;  %2863 = vrot.lane.b32.xlu1 %v25665_v10, %s23409_s20  ;;  %20319 = vmatprep.mubr.msk.f32.mxu0 %vm283_vm0, %v3635_v26  ;;  %v3319_v33 = vsel %vm3067_vm4, %v3287_v1, %v2504_v43 }
 0x2af   : > { %2417 = vrot.lane.b32.xlu0 %v2252_v13, %s23409_s20  ;;  %v3351_v19 = vsel %vm3100_vm5, %v3319_v33, %v25345_v30  ;;  %v25790_v30 = vrot.slane %v808_v59, %v23502_v5 }
 0x2b0   : > { %v1896_v14 = vpop.permute.xlu1 %1895 }
 0x2b1   : > { %v25717_v60 = vpop.permute.xlu0 %1449  ;;  %v3157_v52 = vsel %vm3133_vm6, %v3124_v17, %v1896_v14 }
 0x2b2   : > { %2959 = vrot.lane.b32.xlu1 %v25665_v10, %s23408_s19  ;;  %v3026_v37 = vsel %vm3001_vm2, %v25304_v40, %v25717_v60 }
 0x2b3   : > { %2513 = vrot.lane.b32.xlu0 %v2252_v13, %s23408_s19  ;;  %v25743_v13 = vrot.slane %v25726_v12, %v23502_v5  ;;  %v25816_v12 = vrot.slane %v1240_v31, %v23502_v5 }
 0x2b4   : > { %v1992_v2 = vpop.permute.xlu1 %1991 }
 0x2b5   : > { %v1546_v7 = vpop.permute.xlu0 %1545  ;;  %v3636_v51 = vld [vmem:[#allocation2 + $0x261] sm:$0xff]  ;;  %v25758_v0 = vrot.slane %v25743_v13, %v23519_v9  ;;  %v3190_v23 = vsel %vm3166_vm7, %v3157_v52, %v1992_v2  ;;  %v25801_v2 = vrot.slane %v25790_v30, %v23519_v9  ;;  %v25830_v5 = vrot.slane %v25816_v12, %v23519_v9 }
 0x2b6   : > { %1905 = vrot.lane.b32.xlu1 %v25723_v32, %s23407_s18  ;;  %20320 = vmatmul.mubr.msk.f32.gmra.mrb[46].mxu0 %vm283_vm0, %v3636_v51  ;;  %v1396_v51 = vrot.slane %v25795_v11, %v23519_v9  ;;  %v3059_v52 = vsel %vm3034_vm3, %v3026_v37, %v1546_v7 }
 0x2b7   : > { %1459 = vrot.lane.b32.xlu0 %v1392_v35, %s23407_s18 }
 0x2b8   : > { %v2760_v46 = vpop.permute.xlu1 %2759 }
 0x2b9   : > { %v25750_v6 = vpop.permute.xlu0 %2313  ;;  %v3383_v49 = vsel %vm3133_vm6, %v3351_v19, %v2760_v46 }
 0x2ba   : > { %2001 = vrot.lane.b32.xlu1 %v25723_v32, %s23409_s20 }
 0x2bb   : > { %1555 = vrot.lane.b32.xlu0 %v1392_v35, %s23409_s20 }
 0x2bc   : > { %v2088_v54 = vpop.permute.xlu1 %2087 }
 0x2bd   : > { %v3223_v28 = vsel %vm3199_vm8, %v3190_v23, %v2088_v54  ;;  %v1642_v62 = vpop.permute.xlu0 %1641  ;;  %v25822_v23 = vcombine.high %v25656_v38, %v25656_v38 }
 0x2be   : > { %3503 = vst.msk [vmem:[#allocation2 + $0x271] sm:$0xff] %vm283_vm0, %v3223_v28  ;;  %2769 = vrot.lane.b32.xlu1 %v25758_v0, %s23407_s18 }
 0x2bf   : > { %2323 = vrot.lane.b32.xlu0 %v2256_v20, %s23407_s18  ;;  %v2260_v24 = vrot.slane %v25822_v23, %v23519_v9 }
 0x2c0   : > { %v2856_v26 = vpop.permute.xlu1 %2855 }
 0x2c1   : > { %v2410_v18 = vpop.permute.xlu0 %2409  ;;  %v3415_v61 = vsel %vm3166_vm7, %v3383_v49, %v2856_v26 }
 0x2c2   : > { %2097 = vrot.lane.b32.xlu1 %v25723_v32, %s23408_s19 }
 0x2c3   : > { %1651 = vrot.lane.b32.xlu0 %v1392_v35, %s23408_s19 }
 0x2c4   : > { %v2952_v43 = vpop.permute.xlu1 %2951 }
 0x2c5   : > { %v3447_v42 = vsel %vm3199_vm8, %v3415_v61, %v2952_v43  ;;  %v2506_v15 = vpop.permute.xlu0 %2505  ;;  %v3637_v14 = vld [vmem:[#allocation2 + $0x271] sm:$0xff] }
 0x2c6   : > { %3504 = vst.msk [vmem:[#allocation2 + $0x279] sm:$0xff] %vm283_vm0, %v3447_v42  ;;  %2865 = vrot.lane.b32.xlu1 %v25758_v0, %s23409_s20  ;;  %20322 = vmatprep.mubr.msk.f32.mxu0 %vm283_vm0, %v3637_v14 }
 0x2c7   : > { %2419 = vrot.lane.b32.xlu0 %v2256_v20, %s23409_s20 }
 0x2c8   : > { %v1898_v35 = vpop.permute.xlu1 %1897 }
 0x2c9   : > { %v1452_v63 = vpop.permute.xlu0 %1451 }
 0x2ca   : > { %2961 = vrot.lane.b32.xlu1 %v25758_v0, %s23408_s19  ;;  %v3027_v37 = vsel %vm3001_vm2, %v25389_v4, %v1452_v63 }
 0x2cb   : > { %2515 = vrot.lane.b32.xlu0 %v2256_v20, %s23408_s19  ;;  %v3092_v20 = vsel %vm3067_vm4, %v3059_v52, %v1642_v62 }
 0x2cc   : > { %v1994_v45 = vpop.permute.xlu1 %1993  ;;  %v3125_v7 = vsel %vm3100_vm5, %v3092_v20, %v25400_v44  ;;  %v3256_v44 = vsel %vm3001_vm2, %v25336_v56, %v25750_v6 }
 0x2cd   : > { %v1548_v46 = vpop.permute.xlu0 %1547  ;;  %v3638_v17 = vld [vmem:[#allocation2 + $0x279] sm:$0xff]  ;;  %v3158_v54 = vsel %vm3133_vm6, %v3125_v7, %v1898_v35  ;;  %v3288_v26 = vsel %vm3034_vm3, %v3256_v44, %v2410_v18  ;;  %v4876_v44 = vld [vmem:[%s31082_s1 + $0x48] sm:$0xff] }
 0x2ce   : > { %1907 = vrot.lane.b32.xlu1 %v25801_v2, %s23407_s18  ;;  %20323 = vmatmul.mubr.msk.f32.gmra.mrb[48].mxu0 %vm283_vm0, %v3638_v17  ;;  %v3191_v28 = vsel %vm3166_vm7, %v3158_v54, %v1994_v45  ;;  %v3320_v19 = vsel %vm3067_vm4, %v3288_v26, %v2506_v15  ;;  %v3060_v52 = vsel %vm3034_vm3, %v3027_v37, %v1548_v46 }
 0x2cf   : > { %1461 = vrot.lane.b32.xlu0 %v1396_v51, %s23407_s18  ;;  %v3352_v61 = vsel %vm3100_vm5, %v3320_v19, %v25435_v22  ;;  %v838_v22 = vcombine.high %v25703_v34, %v25703_v34 }
 0x2d0   : > { %v2762_v40 = vpop.permute.xlu1 %2761 }
 0x2d1   : > { %v2316_v60 = vpop.permute.xlu0 %2315  ;;  %v3384_v56 = vsel %vm3133_vm6, %v3352_v61, %v2762_v40  ;;  %v25865_v31 = vrot.slane %v838_v22, %v23519_v9 }
 0x2d2   : > { %2003 = vrot.lane.b32.xlu1 %v25801_v2, %s23409_s20 }
 0x2d3   : > { %1557 = vrot.lane.b32.xlu0 %v1396_v51, %s23409_s20 }
 0x2d4   : > { %v2090_v62 = vpop.permute.xlu1 %2089 }
 0x2d5   : > { %v3224_v1 = vsel %vm3199_vm8, %v3191_v28, %v2090_v62  ;;  %v1644_v33 = vpop.permute.xlu0 %1643 }
 0x2d6   : > { %3505 = vst.msk [vmem:[#allocation2 + $0x289] sm:$0xff] %vm283_vm0, %v3224_v1  ;;  %2771 = vrot.lane.b32.xlu1 %v25830_v5, %s23407_s18  ;;  %v3093_v20 = vsel %vm3067_vm4, %v3060_v52, %v1644_v33 }
 0x2d7   : > { %2325 = vrot.lane.b32.xlu0 %v2260_v24, %s23407_s18  ;;  %v3126_v4 = vsel %vm3100_vm5, %v3093_v20, %v25480_v27  ;;  %v4875_v27 = vld [vmem:[%s31082_s1 + $0x40] sm:$0xff] }
 0x2d8   : > { %v2858_v59 = vpop.permute.xlu1 %2857  ;;  %v25903_v33 = vpack.c.bf16 %v4876_v44, %v4875_v27 }
 0x2d9   : > { %v2412_v49 = vpop.permute.xlu0 %2411  ;;  %v3416_v6 = vsel %vm3166_vm7, %v3384_v56, %v2858_v59 }
 0x2da   : > { %2099 = vrot.lane.b32.xlu1 %v25801_v2, %s23408_s19  ;;  %22131 = vmatprep.subr.bf16.mxu0 %v25903_v33 }
 0x2db   : > { %1653 = vrot.lane.b32.xlu0 %v1396_v51, %s23408_s19  ;;  %v1270_v51 = vcombine.high %v25743_v13, %v25743_v13 }
 0x2dc   : > { %v2954_v18 = vpop.permute.xlu1 %2953 }
 0x2dd   : > { %v3448_v43 = vsel %vm3199_vm8, %v3416_v6, %v2954_v18  ;;  %v2508_v42 = vpop.permute.xlu0 %2507  ;;  %v3639_v15 = vld [vmem:[#allocation2 + $0x289] sm:$0xff]  ;;  %v25880_v13 = vrot.slane %v1270_v51, %v23519_v9 }
 0x2de   : > { %3506 = vst.msk [vmem:[#allocation2 + $0x291] sm:$0xff] %vm283_vm0, %v3448_v43  ;;  %2867 = vrot.lane.b32.xlu1 %v25830_v5, %s23409_s20  ;;  %20325 = vmatprep.mubr.msk.f32.mxu0 %vm283_vm0, %v3639_v15 }
 0x2df   : > { %2421 = vrot.lane.b32.xlu0 %v2260_v24, %s23409_s20 }
 0x2e0   : > { %v1900_v14 = vpop.permute.xlu1 %1899 }
 0x2e1   : > { %v1454_v35 = vpop.permute.xlu0 %1453  ;;  %v3159_v63 = vsel %vm3133_vm6, %v3126_v4, %v1900_v14 }
 0x2e2   : > { %2963 = vrot.lane.b32.xlu1 %v25830_v5, %s23408_s19  ;;  %v3028_v22 = vsel %vm3001_vm2, %v25472_v8, %v1454_v35 }
 0x2e3   : > { %2517 = vrot.lane.b32.xlu0 %v2260_v24, %s23408_s19  ;;  %v3257_v24 = vsel %vm3001_vm2, %v25425_v36, %v2316_v60 }
 0x2e4   : > { %v1996_v45 = vpop.permute.xlu1 %1995  ;;  %v3289_v1 = vsel %vm3034_vm3, %v3257_v24, %v2412_v49 }
 0x2e5   : > { %v1550_v34 = vpop.permute.xlu0 %1549  ;;  %v3640_v17 = vld [vmem:[#allocation2 + $0x291] sm:$0xff]  ;;  %v3192_v46 = vsel %vm3166_vm7, %v3159_v63, %v1996_v45  ;;  %v3321_v36 = vsel %vm3067_vm4, %v3289_v1, %v2508_v42 }
 0x2e6   : > { %2005 = vrot.lane.b32.xlu1 %v25865_v31, %s23409_s20  ;;  %20326 = vmatmul.mubr.msk.f32.gmra.mrb[50].mxu0 %vm283_vm0, %v3640_v17  ;;  %v3353_v19 = vsel %vm3100_vm5, %v3321_v36, %v25517_v53  ;;  %v3061_v51 = vsel %vm3034_vm3, %v3028_v22, %v1550_v34 }
 0x2e7   : > { %1909 = vrot.lane.b32.xlu0 %v25865_v31, %s23407_s18 }
 0x2e8   : > { %v2764_v40 = vpop.permute.xlu1 %2763 }
 0x2e9   : > { %v2318_v7 = vpop.permute.xlu0 %2317  ;;  %v3385_v59 = vsel %vm3133_vm6, %v3353_v19, %v2764_v40 }
 0x2ea   : > { %2101 = vrot.lane.b32.xlu1 %v25865_v31, %s23408_s19  ;;  %v3258_v8 = vsel %vm3001_vm2, %v25507_v58, %v2318_v7 }
 0x2eb   : > { %2773 = vrot.lane.b32.xlu0 %v25880_v13, %s23407_s18 }
 0x2ec   : > { %v2092_v54 = vpop.permute.xlu1 %2091 }
 0x2ed   : > { %v3225_v28 = vsel %vm3199_vm8, %v3192_v46, %v2092_v54  ;;  %v1646_v62 = vpop.permute.xlu0 %1645 }
 0x2ee   : > { %3507 = vst.msk [vmem:[#allocation2 + $0x2a1] sm:$0xff] %vm283_vm0, %v3225_v28  ;;  %2965 = vrot.lane.b32.xlu1 %v25880_v13, %s23408_s19  ;;  %v3094_v45 = vsel %vm3067_vm4, %v3061_v51, %v1646_v62 }
 0x2ef   : > { %2869 = vrot.lane.b32.xlu0 %v25880_v13, %s23409_s20  ;;  %v3127_v52 = vsel %vm3100_vm5, %v3094_v45, %v25558_v47 }
 0x2f0   : > { %v2860_v60 = vpop.permute.xlu1 %2859 }
 0x2f1   : > { %v2414_v26 = vpop.permute.xlu0 %2413  ;;  %v3417_v49 = vsel %vm3166_vm7, %v3385_v59, %v2860_v60 }
 0x2f2   : > { %v3290_v63 = vsel %vm3034_vm3, %v3258_v8, %v2414_v26 }
 0x2f4   : > { %v2956_v61 = vpop.permute.xlu1 %2955 }
 0x2f5   : > { %v3449_v56 = vsel %vm3199_vm8, %v3417_v49, %v2956_v61  ;;  %v2510_v6 = vpop.permute.xlu0 %2509  ;;  %v3641_v18 = vld [vmem:[#allocation2 + $0x2a1] sm:$0xff] }
 0x2f6   : > { %3508 = vst.msk [vmem:[#allocation2 + $0x2a9] sm:$0xff] %vm283_vm0, %v3449_v56  ;;  %20328 = vmatprep.mubr.msk.f32.mxu0 %vm283_vm0, %v3641_v18  ;;  %v3322_v46 = vsel %vm3067_vm4, %v3290_v63, %v2510_v6 }
 0x2f7   : > { %v3354_v47 = vsel %vm3100_vm5, %v3322_v46, %v25585_v55 }
 0x2f8   : > { %v1902_v43 = vpop.permute.xlu1 %1901 }
 0x2f9   : > { %v1456_v42 = vpop.permute.xlu0 %1455  ;;  %v3160_v20 = vsel %vm3133_vm6, %v3127_v52, %v1902_v43 }
 0x2fa   : > { %v3029_v26 = vsel %vm3001_vm2, %v25551_v16, %v1456_v42 }
 0x2fc   : > { %v1998_v15 = vpop.permute.xlu1 %1997 }
 0x2fd   : > { %v1552_v53 = vpop.permute.xlu0 %1551  ;;  %v3642_v14 = vld [vmem:[#allocation2 + $0x2a9] sm:$0xff]  ;;  %v3193_v40 = vsel %vm3166_vm7, %v3160_v20, %v1998_v15 }
 0x2fe   : > { %20329 = vmatmul.mubr.msk.f32.gmra.mrb[52].mxu0 %vm283_vm0, %v3642_v14  ;;  %v3062_v59 = vsel %vm3034_vm3, %v3029_v26, %v1552_v53 }
 0x300   : > { %v2766_v37 = vpop.permute.xlu1 %2765 }
 0x301   : > { %v2320_v17 = vpop.permute.xlu0 %2319  ;;  %v3386_v28 = vsel %vm3133_vm6, %v3354_v47, %v2766_v37 }
 0x302   : > { %v3259_v16 = vsel %vm3001_vm2, %v25576_v29, %v2320_v17 }
 0x304   : > { %v2094_v4 = vpop.permute.xlu1 %2093 }
 0x305   : > { %v3226_v35 = vsel %vm3199_vm8, %v3193_v40, %v2094_v4  ;;  %v1648_v34 = vpop.permute.xlu0 %1647 }
 0x306   : > { %3509 = vst.msk [vmem:[#allocation2 + $0x2b9] sm:$0xff] %vm283_vm0, %v3226_v35  ;;  %v3095_v49 = vsel %vm3067_vm4, %v3062_v59, %v1648_v34 }
 0x307   : > { %v3128_v6 = vsel %vm3100_vm5, %v3095_v49, %v25633_v41 }
 0x308   : > { %v2862_v54 = vpop.permute.xlu1 %2861 }
 0x309   : > { %v2416_v24 = vpop.permute.xlu0 %2415  ;;  %v3418_v62 = vsel %vm3166_vm7, %v3386_v28, %v2862_v54 }
 0x30a   : > { %v3291_v53 = vsel %vm3034_vm3, %v3259_v16, %v2416_v24 }
 0x30c   : > { %v2958_v27 = vpop.permute.xlu1 %2957 }
 0x30d   : > { %v3450_v58 = vsel %vm3199_vm8, %v3418_v62, %v2958_v27  ;;  %v2512_v7 = vpop.permute.xlu0 %2511  ;;  %v3643_v44 = vld [vmem:[#allocation2 + $0x2b9] sm:$0xff] }
 0x30e   : > { %3510 = vst.msk [vmem:[#allocation2 + $0x2c1] sm:$0xff] %vm283_vm0, %v3450_v58  ;;  %20331 = vmatprep.mubr.msk.f32.mxu0 %vm283_vm0, %v3643_v44  ;;  %v3323_v14 = vsel %vm3067_vm4, %v3291_v53, %v2512_v7 }
 0x30f   : > { %v3355_v41 = vsel %vm3100_vm5, %v3323_v14, %v25665_v10 }
 0x310   : > { %v1904_v1 = vpop.permute.xlu1 %1903 }
 0x311   : > { %v1458_v36 = vpop.permute.xlu0 %1457  ;;  %v3161_v18 = vsel %vm3133_vm6, %v3128_v6, %v1904_v1 }
 0x312   : > { %v3030_v34 = vsel %vm3001_vm2, %v25624_v3, %v1458_v36 }
 0x314   : > { %v2000_v60 = vpop.permute.xlu1 %1999 }
 0x315   : > { %v1554_v55 = vpop.permute.xlu0 %1553  ;;  %v3644_v19 = vld [vmem:[#allocation2 + $0x2c1] sm:$0xff]  ;;  %v3194_v43 = vsel %vm3166_vm7, %v3161_v18, %v2000_v60 }
 0x316   : > { %20332 = vmatmul.mubr.msk.f32.gmra.mrb[54].mxu0 %vm283_vm0, %v3644_v19  ;;  %v3063_v46 = vsel %vm3034_vm3, %v3030_v34, %v1554_v55 }
 0x318   : > { %v2768_v61 = vpop.permute.xlu1 %2767 }
 0x319   : > { %v2322_v56 = vpop.permute.xlu0 %2321  ;;  %v3387_v37 = vsel %vm3133_vm6, %v3355_v41, %v2768_v61 }
 0x31a   : > { %v3260_v3 = vsel %vm3001_vm2, %v25656_v38, %v2322_v56 }
 0x31c   : > { %v2096_v15 = vpop.permute.xlu1 %2095 }
 0x31d   : > { %v3227_v42 = vsel %vm3199_vm8, %v3194_v43, %v2096_v15  ;;  %v1650_v22 = vpop.permute.xlu0 %1649 }
 0x31e   : > { %3511 = vst.msk [vmem:[#allocation2 + $0x2d1] sm:$0xff] %vm283_vm0, %v3227_v42  ;;  %v3096_v54 = vsel %vm3067_vm4, %v3063_v46, %v1650_v22 }
 0x31f   : > { %v3129_v28 = vsel %vm3100_vm5, %v3096_v54, %v25723_v32 }
 0x320   : > { %v2864_v51 = vpop.permute.xlu1 %2863 }
 0x321   : > { %v2418_v45 = vpop.permute.xlu0 %2417  ;;  %v3419_v52 = vsel %vm3166_vm7, %v3387_v37, %v2864_v51 }
 0x322   : > { %v3292_v1 = vsel %vm3034_vm3, %v3260_v3, %v2418_v45 }
 0x324   : > { %v2960_v20 = vpop.permute.xlu1 %2959 }
 0x325   : > { %v3451_v29 = vsel %vm3199_vm8, %v3419_v52, %v2960_v20  ;;  %v2514_v17 = vpop.permute.xlu0 %2513  ;;  %v3645_v40 = vld [vmem:[#allocation2 + $0x2d1] sm:$0xff] }
 0x326   : > { %3512 = vst.msk [vmem:[#allocation2 + $0x2d9] sm:$0xff] %vm283_vm0, %v3451_v29  ;;  %20334 = vmatprep.mubr.msk.f32.mxu0 %vm283_vm0, %v3645_v40  ;;  %v3324_v36 = vsel %vm3067_vm4, %v3292_v1, %v2514_v17 }
 0x327   : > { %v3356_v32 = vsel %vm3100_vm5, %v3324_v36, %v25758_v0 }
 0x328   : > { %v1906_v4 = vpop.permute.xlu1 %1905 }
 0x329   : > { %v1460_v8 = vpop.permute.xlu0 %1459  ;;  %v3162_v62 = vsel %vm3133_vm6, %v3129_v28, %v1906_v4 }
 0x32a   : > { %v3031_v43 = vsel %vm3001_vm2, %v25715_v25, %v1460_v8 }
 0x32c   : > { %v2002_v35 = vpop.permute.xlu1 %2001 }
 0x32d   : > { %v1556_v10 = vpop.permute.xlu0 %1555  ;;  %v3646_v63 = vld [vmem:[#allocation2 + $0x2d9] sm:$0xff]  ;;  %v3195_v27 = vsel %vm3166_vm7, %v3162_v62, %v2002_v35 }
 0x32e   : > { %20335 = vmatmul.mubr.msk.f32.gmra.mrb[56].mxu0 %vm283_vm0, %v3646_v63  ;;  %v3064_v16 = vsel %vm3034_vm3, %v3031_v43, %v1556_v10  ;;  %v5585_v43 = vld [vmem:[%s31082_s1 + $0x68] sm:$0xff] }
 0x330   : > { %v2770_v24 = vpop.permute.xlu1 %2769 }
 0x331   : > { %v2324_v47 = vpop.permute.xlu0 %2323  ;;  %v3388_v55 = vsel %vm3133_vm6, %v3356_v32, %v2770_v24 }
 0x332   : > { %v3261_v37 = vsel %vm3001_vm2, %v25748_v21, %v2324_v47 }
 0x334   : > { %v2098_v58 = vpop.permute.xlu1 %2097 }
 0x335   : > { %v3228_v7 = vsel %vm3199_vm8, %v3195_v27, %v2098_v58  ;;  %v1652_v44 = vpop.permute.xlu0 %1651 }
 0x336   : > { %3513 = vst.msk [vmem:[#allocation2 + $0x2e9] sm:$0xff] %vm283_vm0, %v3228_v7  ;;  %v3097_v42 = vsel %vm3067_vm4, %v3064_v16, %v1652_v44  ;;  %v26048_v16 = vld [vmem:[#allocation2 + $0x20] sm:$0xff] }
 0x337   : > { %v3130_v14 = vsel %vm3100_vm5, %v3097_v42, %v25801_v2  ;;  %v26052_v42 = vld [vmem:[#allocation2 + $0x30] sm:$0xff] }
 0x338   : > { %v2866_v60 = vpop.permute.xlu1 %2865 }
 0x339   : > { %v2420_v26 = vpop.permute.xlu0 %2419  ;;  %v3420_v19 = vsel %vm3166_vm7, %v3388_v55, %v2866_v60 }
 0x33a   : > { %v3293_v29 = vsel %vm3034_vm3, %v3261_v37, %v2420_v26  ;;  %v26085_v37 = vld [vmem:[#allocation2 + $0x90] sm:$0xff] }
 0x33c   : > { %v2962_v59 = vpop.permute.xlu1 %2961 }
 0x33d   : > { %v3452_v38 = vsel %vm3199_vm8, %v3420_v19, %v2962_v59  ;;  %v2516_v49 = vpop.permute.xlu0 %2515  ;;  %v3647_v61 = vld [vmem:[#allocation2 + $0x2e9] sm:$0xff] }
 0x33e   : > { %3514 = vst.msk [vmem:[#allocation2 + $0x2f1] sm:$0xff] %vm283_vm0, %v3452_v38  ;;  %20337 = vmatprep.mubr.msk.f32.mxu0 %vm283_vm0, %v3647_v61  ;;  %v3325_v17 = vsel %vm3067_vm4, %v3293_v29, %v2516_v49  ;;  %v3521_v38 = vld [vmem:[#allocation2] sm:$0xff]  ;;  %v4877_v61 = vld [vmem:[%s31082_s1 + $0x50] sm:$0xff]  ;;  %v26097_v29 = vcombine.high %v24553_v57, %v24553_v57 }
 0x33f   : > { %v3357_v2 = vsel %vm3100_vm5, %v3325_v17, %v25830_v5 }
 0x340   : > { %v1908_v56 = vpop.permute.xlu1 %1907  ;;  %v1336_v17 = vrot.slane %v26097_v29, %v23519_v9 }
 0x341   : > { %v1462_v6 = vpop.permute.xlu0 %1461  ;;  %v3163_v51 = vsel %vm3133_vm6, %v3130_v14, %v1908_v56  ;;  %v3522_v56 = vld [vmem:[#allocation2 + $0x8] sm:$0xff]  ;;  %v26069_v14 = vld [vmem:[#allocation2 + $0x60] sm:$0xff] }
 0x342   : > { %v3032_v35 = vsel %vm3001_vm2, %v25795_v11, %v1462_v6  ;;  %1431 = vrot.lane.b32.xlu0 %v1336_v17, %s23407_s18  ;;  %1527 = vrot.lane.b32.xlu1 %v1336_v17, %s23409_s20 }
 0x344   : > { %v2004_v18 = vpop.permute.xlu1 %2003 }
 0x345   : > { %v1558_v0 = vpop.permute.xlu0 %1557  ;;  %v3648_v15 = vld [vmem:[#allocation2 + $0x2f1] sm:$0xff]  ;;  %v3196_v45 = vsel %vm3166_vm7, %v3163_v51, %v2004_v18  ;;  %v5584_v18 = vld [vmem:[%s31082_s1 + $0x60] sm:$0xff]  ;;  %v26073_v51 = vld [vmem:[#allocation2 + $0x68] sm:$0xff] }
 0x346   : > { %20338 = vmatmul.mubr.msk.f32.gmra.mrb[58].mxu0 %vm283_vm0, %v3648_v15  ;;  %v3065_v63 = vsel %vm3034_vm3, %v3032_v35, %v1558_v0  ;;  %v26041_v0 = vld [vmem:[#allocation2 + $0x18] sm:$0xff]  ;;  %v26046_v15 = vpack.c.bf16 %v5585_v43, %v5584_v18  ;;  %1623 = vrot.lane.b32.xlu1 %v1336_v17, %s23408_s19  ;;  %v26269_v18 = vld [vmem:[#allocation2 + $0x270] sm:$0xff]  ;;  %v26276_v43 = vcombine.high %v25748_v21, %v25748_v21 }
 0x347   : > { %v26123_v35 = vld [vmem:[#allocation2 + $0xd8] sm:$0xff]  ;;  %31394 = vst [vmem:[#allocation6_spill] sm:$0xff] %v26269_v18  ;;  %v26291_v21 = vld [vmem:[#allocation2 + $0x290] sm:$0xff] }
 0x348   : > { %v2772_v22 = vpop.permute.xlu1 %2771  ;;  %v2264_v17 = vrot.slane %v26276_v43, %v23519_v9  ;;  %31397 = vst [vmem:[#allocation9_spill] sm:$0xff] %v26291_v21 }
 0x349   : > { %v2326_v53 = vpop.permute.xlu0 %2325  ;;  %v3389_v8 = vsel %vm3133_vm6, %v3357_v2, %v2772_v22  ;;  %v26061_v22 = vld [vmem:[#allocation2 + $0x48] sm:$0xff]  ;;  %v26112_v2 = vcombine.high %v24585_v39, %v24585_v39  ;;  %v26129_v39 = vld [vmem:[#allocation2 + $0xe0] sm:$0xff] }
 0x34a   : > { %v3262_v27 = vsel %vm3001_vm2, %v25822_v23, %v2326_v53  ;;  %v26065_v53 = vld [vmem:[#allocation2 + $0x50] sm:$0xff] }
 0x34b   : > { %v2200_v57 = vrot.slane %v26112_v2, %v23519_v9 }
 0x34c   : > { %v2100_v41 = vpop.permute.xlu1 %2099 }
 0x34d   : > { %v3229_v52 = vsel %vm3199_vm8, %v3196_v45, %v2100_v41  ;;  %v1654_v20 = vpop.permute.xlu0 %1653  ;;  %v26077_v45 = vld [vmem:[#allocation2 + $0x78] sm:$0xff]  ;;  %v26081_v41 = vld [vmem:[#allocation2 + $0x80] sm:$0xff]  ;;  %2295 = vrot.lane.b32.xlu0 %v2200_v57, %s23407_s18  ;;  %2487 = vrot.lane.b32.xlu1 %v2200_v57, %s23408_s19 }
 0x34e   : > { %3515 = vst.msk [vmem:[#allocation2 + $0x301] sm:$0xff] %vm283_vm0, %v3229_v52  ;;  %v3098_v47 = vsel %vm3067_vm4, %v3065_v63, %v1654_v20  ;;  %v26089_v52 = vld [vmem:[#allocation2 + $0x98] sm:$0xff]  ;;  %v26093_v20 = vld [vmem:[#allocation2 + $0xa8] sm:$0xff] }
 0x34f   : > { %v3131_v28 = vsel %vm3100_vm5, %v3098_v47, %v25865_v31  ;;  %v26161_v47 = vld [vmem:[#allocation2 + $0x110] sm:$0xff] }
 0x350   : > { %v2868_v40 = vpop.permute.xlu1 %2867 }
 0x351   : > { %v2422_v4 = vpop.permute.xlu0 %2421  ;;  %v3421_v34 = vsel %vm3166_vm7, %v3389_v8, %v2868_v40  ;;  %v26103_v40 = vld [vmem:[#allocation2 + $0xb0] sm:$0xff]  ;;  %v26119_v8 = vld [vmem:[#allocation2 + $0xc8] sm:$0xff]  ;;  %2391 = vrot.lane.b32.xlu0 %v2200_v57, %s23409_s20 }
 0x352   : > { %v3294_v58 = vsel %vm3034_vm3, %v3262_v27, %v2422_v4  ;;  %v26107_v4 = vld [vmem:[#allocation2 + $0xc0] sm:$0xff]  ;;  %v26193_v27 = vld [vmem:[#allocation2 + $0x158] sm:$0xff]  ;;  %v26285_v57 = vld [vmem:[#allocation2 + $0x288] sm:$0xff] }
 0x353   : > { %31396 = vst [vmem:[#allocation8_spill] sm:$0xff] %v26285_v57 }
 0x354   : > { %v2964_v10 = vpop.permute.xlu1 %2963 }
 0x355   : > { %v3453_v46 = vsel %vm3199_vm8, %v3421_v34, %v2964_v10  ;;  %v2518_v54 = vpop.permute.xlu0 %2517  ;;  %v3649_v24 = vld [vmem:[#allocation2 + $0x301] sm:$0xff]  ;;  %v26133_v34 = vld [vmem:[#allocation2 + $0xf0] sm:$0xff]  ;;  %v742_v10 = vcombine.high %v24627_v48, %v24627_v48  ;;  %v1174_v48 = vcombine.high %v24653_v50, %v24653_v50 }
 0x356   : > { %3516 = vst.msk [vmem:[#allocation2 + $0x309] sm:$0xff] %vm283_vm0, %v3453_v46  ;;  %20340 = vmatprep.mubr.msk.f32.mxu0 %vm283_vm0, %v3649_v24  ;;  %v3326_v44 = vsel %vm3067_vm4, %v3294_v58, %v2518_v54  ;;  %v26144_v46 = vld [vmem:[#allocation2 + $0xf8] sm:$0xff]  ;;  %v26148_v54 = vld [vmem:[#allocation2 + $0x108] sm:$0xff] }
 0x357   : > { %v3358_v31 = vsel %vm3100_vm5, %v3326_v44, %v25880_v13  ;;  %v4878_v13 = vld [vmem:[%s31082_s1 + $0x58] sm:$0xff]  ;;  %v26142_v63 = vrot.slane %v742_v10, %v23519_v9  ;;  %v26159_v24 = vrot.slane %v1174_v48, %v23519_v9  ;;  %v26173_v50 = vld [vmem:[#allocation2 + $0x128] sm:$0xff]  ;;  %v26295_v10 = vld [vmem:[#allocation2 + $0x2a0] sm:$0xff]  ;;  %v840_v48 = vcombine.high %v25790_v30, %v25790_v30 }
 0x358   : > { %v2006_v5 = vpop.permute.xlu1 %2005  ;;  %v22134_v6 = vpack.c.bf16 %v4878_v13, %v4877_v61  ;;  %v26197_v58 = vld [vmem:[#allocation2 + $0x168] sm:$0xff]  ;;  %v3554_v44 = vld [vmem:[#allocation2 + $0x1b8] sm:$0xff]  ;;  %v26261_v13 = vcombine.high %v25715_v25, %v25715_v25  ;;  %31398 = vst [vmem:[#allocation10_spill] sm:$0xff] %v26295_v10  ;;  %v1272_v30 = vcombine.high %v25816_v12, %v25816_v12 }
 0x359   : > { %v1910_v11 = vpop.permute.xlu0 %1909  ;;  %1879 = vrot.lane.b32.xlu0 %v26142_v63, %s23407_s18  ;;  %1975 = vrot.lane.b32.xlu1 %v26142_v63, %s23409_s20  ;;  %v26255_v61 = vld [vmem:[#allocation2 + $0x258] sm:$0xff] }
 0x35a   : > { %v3164_v62 = vsel %vm3133_vm6, %v3131_v28, %v1910_v11  ;;  %v26177_v28 = vld [vmem:[#allocation2 + $0x138] sm:$0xff]  ;;  %v26185_v11 = vld [vmem:[#allocation2 + $0x140] sm:$0xff] }
 0x35b   : > { %v3197_v7 = vsel %vm3166_vm7, %v3164_v62, %v2006_v5  ;;  %v26165_v5 = vld [vmem:[#allocation2 + $0x120] sm:$0xff]  ;;  %v26189_v62 = vld [vmem:[#allocation2 + $0x150] sm:$0xff]  ;;  %v26279_v25 = vld [vmem:[#allocation2 + $0x278] sm:$0xff] }
 0x35c   : > { %v2102_v3 = vpop.permute.xlu1 %2101  ;;  %31395 = vst [vmem:[#allocation7_spill] sm:$0xff] %v26279_v25  ;;  %v26335_v12 = vld [vmem:[#allocation2 + $0x2d8] sm:$0xff] }
 0x35d   : > { %v3230_v1 = vsel %vm3199_vm8, %v3197_v7, %v2102_v3  ;;  %v2774_v36 = vpop.permute.xlu0 %2773  ;;  %v3650_v60 = vld [vmem:[#allocation2 + $0x309] sm:$0xff]  ;;  %2743 = vrot.lane.b32.xlu0 %v26159_v24, %s23407_s18  ;;  %2071 = vrot.lane.b32.xlu1 %v26142_v63, %s23408_s19  ;;  %31403 = vst [vmem:[#allocation15_spill] sm:$0xff] %v26335_v12 }
 0x35e   : > { %3517 = vst.msk [vmem:[#allocation2 + $0x319] sm:$0xff] %vm283_vm0, %v3230_v1  ;;  %20341 = vmatmul.mubr.msk.f32.gmra.mrb[60].mxu0 %vm283_vm0, %v3650_v60  ;;  %v3390_v23 = vsel %vm3133_vm6, %v3358_v31, %v2774_v36  ;;  %v3553_v3 = vld [vmem:[#allocation2 + $0x1b0] sm:$0xff]  ;;  %v26207_v1 = vld [vmem:[#allocation2 + $0x1c8] sm:$0xff]  ;;  %v26215_v60 = vld [vmem:[#allocation2 + $0x1e0] sm:$0xff] }
 0x35f   : > { %v26201_v7 = vld [vmem:[#allocation2 + $0x170] sm:$0xff]  ;;  %v26219_v31 = vld [vmem:[#allocation2 + $0x1e8] sm:$0xff] }
 0x360   : > { %v2966_v26 = vpop.permute.xlu1 %2965  ;;  %v26211_v36 = vld [vmem:[#allocation2 + $0x1d0] sm:$0xff] }
 0x361   : > { %v2870_v32 = vpop.permute.xlu0 %2869  ;;  %2839 = vrot.lane.b32.xlu0 %v26159_v24, %s23409_s20  ;;  %2935 = vrot.lane.b32.xlu1 %v26159_v24, %s23408_s19 }
 0x362   : > { %v3422_v55 = vsel %vm3166_vm7, %v3390_v23, %v2870_v32  ;;  %v26227_v23 = vld [vmem:[#allocation2 + $0x200] sm:$0xff]  ;;  %v26231_v32 = vld [vmem:[#allocation2 + $0x210] sm:$0xff] }
 0x363   : > { %v3454_v19 = vsel %vm3199_vm8, %v3422_v55, %v2966_v26  ;;  %v26223_v26 = vld [vmem:[#allocation2 + $0x1f8] sm:$0xff] }
 0x364   : > { %3518 = vst.msk [vmem:[#allocation2 + $0x321] sm:$0xff] %vm283_vm0, %v3454_v19  ;;  %v26235_v55 = vld [vmem:[#allocation2 + $0x218] sm:$0xff]  ;;  %v26239_v19 = vld [vmem:[#allocation2 + $0x228] sm:$0xff] }
 0x365   : > { %v3651_v59 = vld [vmem:[#allocation2 + $0x319] sm:$0xff] }
 0x366   : > { %20343 = vmatprep.mubr.msk.f32.mxu0 %vm283_vm0, %v3651_v59  ;;  %v26243_v59 = vld [vmem:[#allocation2 + $0x230] sm:$0xff] }
 0x36b   : > { %v3652_v49 = vld [vmem:[#allocation2 + $0x321] sm:$0xff] }
 0x36c   : > { %20344 = vmatmul.mubr.msk.f32.gmra.mrb[62].mxu0 %vm283_vm0, %v3652_v49  ;;  %v26251_v49 = vld [vmem:[#allocation2 + $0x248] sm:$0xff] }
 0x36d   : > { %20354 = vmatprep.mubr.msk.f32.mxu0 %vm283_vm0, %v3521_v38  ;;  %v26247_v38 = vld [vmem:[#allocation2 + $0x240] sm:$0xff] }
 0x370   : > { %20355 = vmatmul.mubr.msk.f32.vlgmr.msra.gmra.mrb[0].mxu0 %vm283_vm0, %v3522_v56  ;;  %v26263_v56 = vld [vmem:[#allocation2 + $0x260] sm:$0xff] }
 0x371   : > { %22133 = vmatpush3.bf16.msra.mxu0 %v25903_v33  ;;  %20357 = vmatprep.mubr.msk.f32.mxu0 %vm283_vm0, %v26041_v0  ;;  %v26057_v33 = vld [vmem:[#allocation2 + $0x38] sm:$0xff] }
 0x372   : > { %22135 = vmatprep.subr.bf16.mxu0 %v22134_v6 }
 0x374   : > { %20358 = vmatmul.mubr.msk.f32.gmra.mrb[2].mxu0 %vm283_vm0, %v26048_v16 }
 0x375   : > { %20360 = vmatprep.mubr.msk.f32.mxu0 %vm283_vm0, %v26052_v42  ;;  %22137 = vmatpush3.bf16.msra.mxu0 %v22134_v6  ;;  %v1400_v6 = vrot.slane %v26261_v13, %v23519_v9 }
 0x376   : > { %22139 = vmatprep.subr.bf16.mxu0 %v26046_v15 }
 0x377   : > { %1463 = vrot.lane.b32.xlu0 %v1400_v6, %s23407_s18  ;;  %1559 = vrot.lane.b32.xlu1 %v1400_v6, %s23409_s20 }
 0x378   : > { %20361 = vmatmul.mubr.msk.f32.gmra.mrb[4].mxu0 %vm283_vm0, %v26057_v33 }
 0x379   : > { %20363 = vmatprep.mubr.msk.f32.mxu0 %vm283_vm0, %v26061_v22 }
 0x37b   : > { %2327 = vrot.lane.b32.xlu0 %v2264_v17, %s23407_s18  ;;  %1655 = vrot.lane.b32.xlu1 %v1400_v6, %s23408_s19  ;;  %v26310_v6 = vld [vmem:[#allocation2 + $0x2b8] sm:$0xff] }
 0x37c   : > { %20364 = vmatmul.mubr.msk.f32.gmra.mrb[6].mxu0 %vm283_vm0, %v26065_v53  ;;  %31400 = vst [vmem:[#allocation12_spill] sm:$0xff] %v26310_v6 }
 0x37d   : > { %20366 = vmatprep.mubr.msk.f32.mxu0 %vm283_vm0, %v26069_v14 }
 0x37f   : > { %2423 = vrot.lane.b32.xlu0 %v2264_v17, %s23409_s20  ;;  %2519 = vrot.lane.b32.xlu1 %v2264_v17, %s23408_s19  ;;  %v26320_v17 = vld [vmem:[#allocation2 + $0x2c0] sm:$0xff] }
 0x380   : > { %20367 = vmatmul.mubr.msk.f32.gmra.mrb[8].mxu0 %vm283_vm0, %v26073_v51  ;;  %31401 = vst [vmem:[#allocation13_spill] sm:$0xff] %v26320_v17 }
 0x381   : > { %20369 = vmatprep.mubr.msk.f32.mxu0 %vm283_vm0, %v26077_v45 }
 0x384   : > { %20370 = vmatmul.mubr.msk.f32.gmra.mrb[10].mxu0 %vm283_vm0, %v26081_v41 }
 0x385   : > { %20372 = vmatprep.mubr.msk.f32.mxu0 %vm283_vm0, %v26085_v37 }
 0x388   : > { %20373 = vmatmul.mubr.msk.f32.gmra.mrb[12].mxu0 %vm283_vm0, %v26089_v52 }
 0x389   : > { %20375 = vmatprep.mubr.msk.f32.mxu0 %vm283_vm0, %v26093_v20 }
 0x38c   : > { %20376 = vmatmul.mubr.msk.f32.gmra.mrb[14].mxu0 %vm283_vm0, %v26103_v40 }
 0x38d   : > { %20378 = vmatprep.mubr.msk.f32.mxu0 %vm283_vm0, %v26107_v4 }
 0x390   : > { %20379 = vmatmul.mubr.msk.f32.gmra.mrb[16].mxu0 %vm283_vm0, %v26119_v8 }
 0x391   : > { %20381 = vmatprep.mubr.msk.f32.mxu0 %vm283_vm0, %v26123_v35 }
 0x394   : > { %20382 = vmatmul.mubr.msk.f32.gmra.mrb[18].mxu0 %vm283_vm0, %v26129_v39 }
 0x395   : > { %20384 = vmatprep.mubr.msk.f32.mxu0 %vm283_vm0, %v26133_v34 }
 0x398   : > { %20385 = vmatmul.mubr.msk.f32.gmra.mrb[20].mxu0 %vm283_vm0, %v26144_v46 }
 0x399   : > { %20387 = vmatprep.mubr.msk.f32.mxu0 %vm283_vm0, %v26148_v54 }
 0x39c   : > { %20388 = vmatmul.mubr.msk.f32.gmra.mrb[22].mxu0 %vm283_vm0, %v26161_v47 }
 0x39d   : > { %20390 = vmatprep.mubr.msk.f32.mxu0 %vm283_vm0, %v26165_v5 }
 0x3a0   : > { %20391 = vmatmul.mubr.msk.f32.gmra.mrb[24].mxu0 %vm283_vm0, %v26173_v50 }
 0x3a1   : > { %20393 = vmatprep.mubr.msk.f32.mxu0 %vm283_vm0, %v26177_v28 }
 0x3a4   : > { %20394 = vmatmul.mubr.msk.f32.gmra.mrb[26].mxu0 %vm283_vm0, %v26185_v11 }
 0x3a5   : > { %20396 = vmatprep.mubr.msk.f32.mxu0 %vm283_vm0, %v26189_v62 }
 0x3a8   : > { %20397 = vmatmul.mubr.msk.f32.gmra.mrb[28].mxu0 %vm283_vm0, %v26193_v27 }
 0x3a9   : > { %20399 = vmatprep.mubr.msk.f32.mxu0 %vm283_vm0, %v26197_v58 }
 0x3ac   : > { %20400 = vmatmul.mubr.msk.f32.gmra.mrb[30].mxu0 %vm283_vm0, %v26201_v7 }
 0x3ad   : > { %20402 = vmatprep.mubr.msk.f32.mxu0 %vm283_vm0, %v3553_v3  ;;  %v26303_v3 = vld [vmem:[#allocation2 + $0x2a8] sm:$0xff] }
 0x3ae   : > { %31399 = vst [vmem:[#allocation11_spill] sm:$0xff] %v26303_v3 }
 0x3b0   : > { %20403 = vmatmul.mubr.msk.f32.gmra.mrb[32].mxu0 %vm283_vm0, %v3554_v44  ;;  %v26306_v44 = vrot.slane %v840_v48, %v23519_v9  ;;  %v26323_v48 = vrot.slane %v1272_v30, %v23519_v9  ;;  %v26339_v9 = vld [vmem:[#allocation2 + $0x2e8] sm:$0xff]  ;;  %v26347_v30 = vld [vmem:[#allocation2 + $0x2f0] sm:$0xff] }
 0x3b1   : > { %20405 = vmatprep.mubr.msk.f32.mxu0 %vm283_vm0, %v26207_v1  ;;  %31404 = vst [vmem:[#allocation16_spill] sm:$0xff] %v26339_v9  ;;  %31405 = vst [vmem:[#allocation17_spill] sm:$0xff] %v26347_v30 }
 0x3b2   : > { %1911 = vrot.lane.b32.xlu0 %v26306_v44, %s23407_s18  ;;  %2007 = vrot.lane.b32.xlu1 %v26306_v44, %s23409_s20 }
 0x3b4   : > { %20406 = vmatmul.mubr.msk.f32.gmra.mrb[34].mxu0 %vm283_vm0, %v26211_v36 }
 0x3b5   : > { %20408 = vmatprep.mubr.msk.f32.mxu0 %vm283_vm0, %v26215_v60 }
 0x3b6   : > { %2775 = vrot.lane.b32.xlu0 %v26323_v48, %s23407_s18  ;;  %2103 = vrot.lane.b32.xlu1 %v26306_v44, %s23408_s19 }
 0x3b8   : > { %20409 = vmatmul.mubr.msk.f32.gmra.mrb[36].mxu0 %vm283_vm0, %v26219_v31 }
 0x3b9   : > { %20411 = vmatprep.mubr.msk.f32.mxu0 %vm283_vm0, %v26223_v26 }
 0x3ba   : > { %2871 = vrot.lane.b32.xlu0 %v26323_v48, %s23409_s20  ;;  %2967 = vrot.lane.b32.xlu1 %v26323_v48, %s23408_s19 }
 0x3bc   : > { %20412 = vmatmul.mubr.msk.f32.gmra.mrb[38].mxu0 %vm283_vm0, %v26227_v23 }
 0x3bd   : > { %20414 = vmatprep.mubr.msk.f32.mxu0 %vm283_vm0, %v26231_v32 }
 0x3c0   : > { %20415 = vmatmul.mubr.msk.f32.gmra.mrb[40].mxu0 %vm283_vm0, %v26235_v55 }
 0x3c1   : > { %20417 = vmatprep.mubr.msk.f32.mxu0 %vm283_vm0, %v26239_v19 }
 0x3c4   : > { %20418 = vmatmul.mubr.msk.f32.gmra.mrb[42].mxu0 %vm283_vm0, %v26243_v59 }
 0x3c5   : > { %20420 = vmatprep.mubr.msk.f32.mxu0 %vm283_vm0, %v26247_v38 }
 0x3c8   : > { %20421 = vmatmul.mubr.msk.f32.gmra.mrb[44].mxu0 %vm283_vm0, %v26251_v49 }
 0x3c9   : > { %20423 = vmatprep.mubr.msk.f32.mxu0 %vm283_vm0, %v26255_v61 }
 0x3cc   : > { %20424 = vmatmul.mubr.msk.f32.gmra.mrb[46].mxu0 %vm283_vm0, %v26263_v56 }
 0x3cd   : > { %20426 = vmatprep.mubr.msk.f32.mxu0 %vm283_vm0, %v26269_v18 }
 0x3d0   : > { %20427 = vmatmul.mubr.msk.f32.gmra.mrb[48].mxu0 %vm283_vm0, %v26279_v25  ;;  %v26428_v25 = vld [vmem:[#allocation2 + $0x92] sm:$0xff] }
 0x3d1   : > { %20429 = vmatprep.mubr.msk.f32.mxu0 %vm283_vm0, %v26285_v57  ;;  %v26381_v57 = vld [vmem:[#allocation2 + $0x1a] sm:$0xff]  ;;  %31419 = vst [vmem:[#allocation31_spill] sm:$0xff] %v26428_v25 }
 0x3d2   : > { %31410 = vst [vmem:[#allocation22_spill] sm:$0xff] %v26381_v57 }
 0x3d4   : > { %20430 = vmatmul.mubr.msk.f32.gmra.mrb[50].mxu0 %vm283_vm0, %v26291_v21  ;;  %v6294_v21 = vld [vmem:[%s31082_s1 + $0x88] sm:$0xff] }
 0x3d5   : > { %20432 = vmatprep.mubr.msk.f32.mxu0 %vm283_vm0, %v26295_v10 }
 0x3d8   : > { %20433 = vmatmul.mubr.msk.f32.gmra.mrb[52].mxu0 %vm283_vm0, %v26303_v3  ;;  %v26327_v3 = vld [vmem:[#allocation2 + $0x2d0] sm:$0xff] }
 0x3d9   : > { %20435 = vmatprep.mubr.msk.f32.mxu0 %vm283_vm0, %v26310_v6  ;;  %31402 = vst [vmem:[#allocation14_spill] sm:$0xff] %v26327_v3  ;;  %v26363_v6 = vld [vmem:[#allocation2 + $0x320] sm:$0xff] }
 0x3da   : > { %31409 = vst [vmem:[#allocation21_spill] sm:$0xff] %v26363_v6 }
 0x3dc   : > { %20436 = vmatmul.mubr.msk.f32.gmra.mrb[54].mxu0 %vm283_vm0, %v26320_v17  ;;  %v4811_v17 = vld [vmem:[#allocation2 + $0x2] sm:$0xff] }
 0x3dd   : > { %20438 = vmatprep.mubr.msk.f32.mxu0 %vm283_vm0, %v26327_v3  ;;  %v26351_v3 = vld [vmem:[#allocation2 + $0x300] sm:$0xff] }
 0x3de   : > { %31406 = vst [vmem:[#allocation18_spill] sm:$0xff] %v26351_v3 }
 0x3e0   : > { %20439 = vmatmul.mubr.msk.f32.gmra.mrb[56].mxu0 %vm283_vm0, %v26335_v12  ;;  %v26355_v12 = vld [vmem:[#allocation2 + $0x308] sm:$0xff] }
 0x3e1   : > { %20441 = vmatprep.mubr.msk.f32.mxu0 %vm283_vm0, %v26339_v9  ;;  %31407 = vst [vmem:[#allocation19_spill] sm:$0xff] %v26355_v12  ;;  %v26359_v9 = vld [vmem:[#allocation2 + $0x318] sm:$0xff] }
 0x3e2   : > { %31408 = vst [vmem:[#allocation20_spill] sm:$0xff] %v26359_v9 }
 0x3e4   : > { %20442 = vmatmul.mubr.msk.f32.gmra.mrb[58].mxu0 %vm283_vm0, %v26347_v30  ;;  %v5586_v30 = vld [vmem:[%s31082_s1 + $0x70] sm:$0xff] }
 0x3e5   : > { %20444 = vmatprep.mubr.msk.f32.mxu0 %vm283_vm0, %v26351_v3  ;;  %v5587_v3 = vld [vmem:[%s31082_s1 + $0x78] sm:$0xff] }
 0x3e6   : > { %v22142_v10 = vpack.c.bf16 %v5587_v3, %v5586_v30  ;;  %v26388_v3 = vld [vmem:[#allocation2 + $0x22] sm:$0xff]  ;;  %v26392_v30 = vld [vmem:[#allocation2 + $0x32] sm:$0xff] }
 0x3e7   : > { %31411 = vst [vmem:[#allocation23_spill] sm:$0xff] %v26388_v3  ;;  %31412 = vst [vmem:[#allocation24_spill] sm:$0xff] %v26392_v30 }
 0x3e8   : > { %20445 = vmatmul.mubr.msk.f32.gmra.mrb[60].mxu0 %vm283_vm0, %v26355_v12  ;;  %v4812_v12 = vld [vmem:[#allocation2 + $0xa] sm:$0xff] }
 0x3e9   : > { %20447 = vmatprep.mubr.msk.f32.mxu0 %vm283_vm0, %v26359_v9  ;;  %v6293_v9 = vld [vmem:[%s31082_s1 + $0x80] sm:$0xff] }
 0x3ec   : > { %20448 = vmatmul.mubr.msk.f32.gmra.mrb[62].mxu0 %vm283_vm0, %v26363_v6 }
 0x3ed   : > { %20458 = vmatprep.mubr.msk.f32.mxu0 %vm283_vm0, %v4811_v17  ;;  %v26386_v17 = vpack.c.bf16 %v6294_v21, %v6293_v9  ;;  %v26401_v21 = vld [vmem:[#allocation2 + $0x4a] sm:$0xff]  ;;  %v26409_v9 = vld [vmem:[#allocation2 + $0x62] sm:$0xff] }
 0x3ee   : > { %31414 = vst [vmem:[#allocation26_spill] sm:$0xff] %v26401_v21  ;;  %31416 = vst [vmem:[#allocation28_spill] sm:$0xff] %v26409_v9 }
 0x3f0   : > { %20459 = vmatmul.mubr.msk.f32.vlgmr.msra.gmra.mrb[0].mxu0 %vm283_vm0, %v4812_v12  ;;  %v26405_v12 = vld [vmem:[#allocation2 + $0x52] sm:$0xff] }
 0x3f1   : > { %22141 = vmatpush3.bf16.msra.mxu0 %v26046_v15  ;;  %20461 = vmatprep.mubr.msk.f32.mxu0 %vm283_vm0, %v26381_v57  ;;  %v26397_v15 = vld [vmem:[#allocation2 + $0x3a] sm:$0xff]  ;;  %31415 = vst [vmem:[#allocation27_spill] sm:$0xff] %v26405_v12  ;;  %v26423_v57 = vld [vmem:[#allocation2 + $0x82] sm:$0xff] }
 0x3f2   : > { %22143 = vmatprep.subr.bf16.mxu0 %v22142_v10  ;;  %31413 = vst [vmem:[#allocation25_spill] sm:$0xff] %v26397_v15 }
 0x3f4   : > { %20462 = vmatmul.mubr.msk.f32.gmra.mrb[2].mxu0 %vm283_vm0, %v26388_v3  ;;  %v1528_v3 = vpop.permute.xlu1 %1527 }
 0x3f5   : > { %20464 = vmatprep.mubr.msk.f32.mxu0 %vm283_vm0, %v26392_v30  ;;  %22145 = vmatpush3.bf16.msra.mxu0 %v22142_v10  ;;  %v1432_v10 = vpop.permute.xlu0 %1431  ;;  %v26413_v30 = vld [vmem:[#allocation2 + $0x6a] sm:$0xff] }
 0x3f6   : > { %22147 = vmatprep.subr.bf16.mxu0 %v26386_v17  ;;  %31417 = vst [vmem:[#allocation29_spill] sm:$0xff] %v26413_v30 }
 0x3f8   : > { %20465 = vmatmul.mubr.msk.f32.gmra.mrb[4].mxu0 %vm283_vm0, %v26397_v15  ;;  %v26417_v15 = vld [vmem:[#allocation2 + $0x7a] sm:$0xff]  ;;  %v1624_v6 = vpop.permute.xlu1 %1623 }
 0x3f9   : > { %20467 = vmatprep.mubr.msk.f32.mxu0 %vm283_vm0, %v26401_v21  ;;  %31418 = vst [vmem:[#allocation30_spill] sm:$0xff] %v26417_v15  ;;  %v3017_v21 = vsel %vm3001_vm2, %v26097_v29, %v1432_v10 }
 0x3fc   : > { %20468 = vmatmul.mubr.msk.f32.gmra.mrb[6].mxu0 %vm283_vm0, %v26405_v12  ;;  %v2296_v12 = vpop.permute.xlu0 %2295 }
 0x3fd   : > { %20470 = vmatprep.mubr.msk.f32.mxu0 %vm283_vm0, %v26409_v9  ;;  %v3050_v9 = vsel %vm3034_vm3, %v3017_v21, %v1528_v3  ;;  %v2488_v3 = vpop.permute.xlu1 %2487  ;;  %v26440_v21 = vld [vmem:[#allocation2 + $0xaa] sm:$0xff] }
 0x3fe   : > { %v3083_v29 = vsel %vm3067_vm4, %v3050_v9, %v1624_v6  ;;  %31420 = vst [vmem:[#allocation32_spill] sm:$0xff] %v26440_v21  ;;  %v26447_v9 = vld [vmem:[#allocation2 + $0xb2] sm:$0xff] }
 0x3ff   : > { %31421 = vst [vmem:[#allocation33_spill] sm:$0xff] %v26447_v9 }
 0x400   : > { %20471 = vmatmul.mubr.msk.f32.gmra.mrb[8].mxu0 %vm283_vm0, %v26413_v30  ;;  %v3247_v30 = vsel %vm3001_vm2, %v26112_v2, %v2296_v12  ;;  %v2392_v10 = vpop.permute.xlu0 %2391  ;;  %v3116_v2 = vsel %vm3100_vm5, %v3083_v29, %v26142_v63  ;;  %v26459_v29 = vld [vmem:[#allocation2 + $0xca] sm:$0xff] }
 0x401   : > { %20473 = vmatprep.mubr.msk.f32.mxu0 %vm283_vm0, %v26417_v15  ;;  %v26435_v15 = vld [vmem:[#allocation2 + $0x9a] sm:$0xff]  ;;  %v3279_v18 = vsel %vm3034_vm3, %v3247_v30, %v2392_v10  ;;  %v1976_v30 = vpop.permute.xlu1 %1975  ;;  %v26452_v10 = vld [vmem:[#allocation2 + $0xc2] sm:$0xff]  ;;  %31422 = vst [vmem:[#allocation34_spill] sm:$0xff] %v26459_v29 }
 0x402   : > { %v3311_v12 = vsel %vm3067_vm4, %v3279_v18, %v2488_v3 }
 0x403   : > { %v3343_v63 = vsel %vm3100_vm5, %v3311_v12, %v26159_v24  ;;  %v26470_v24 = vld [vmem:[#allocation2 + $0xe2] sm:$0xff] }
 0x404   : > { %20474 = vmatmul.mubr.msk.f32.gmra.mrb[10].mxu0 %vm283_vm0, %v26423_v57  ;;  %v1880_v6 = vpop.permute.xlu0 %1879 }
 0x405   : > { %20476 = vmatprep.mubr.msk.f32.mxu0 %vm283_vm0, %v26428_v25  ;;  %v3149_v25 = vsel %vm3133_vm6, %v3116_v2, %v1880_v6  ;;  %v2072_v3 = vpop.permute.xlu1 %2071  ;;  %v26463_v2 = vld [vmem:[#allocation2 + $0xda] sm:$0xff] }
 0x408   : > { %20477 = vmatmul.mubr.msk.f32.gmra.mrb[12].mxu0 %vm283_vm0, %v26435_v15  ;;  %v2744_v18 = vpop.permute.xlu0 %2743 }
 0x409   : > { %20479 = vmatprep.mubr.msk.f32.mxu0 %vm283_vm0, %v26440_v21  ;;  %v3182_v21 = vsel %vm3166_vm7, %v3149_v25, %v1976_v30  ;;  %v3375_v6 = vsel %vm3133_vm6, %v3343_v63, %v2744_v18  ;;  %v2936_v30 = vpop.permute.xlu1 %2935  ;;  %v26489_v18 = vld [vmem:[#allocation2 + $0x112] sm:$0xff] }
 0x40a   : > { %31426 = vst [vmem:[#allocation38_spill] sm:$0xff] %v26489_v18 }
 0x40c   : > { %20480 = vmatmul.mubr.msk.f32.gmra.mrb[14].mxu0 %vm283_vm0, %v26447_v9  ;;  %v3215_v9 = vsel %vm3199_vm8, %v3182_v21, %v2072_v3  ;;  %v2840_v25 = vpop.permute.xlu0 %2839  ;;  %v26481_v21 = vld [vmem:[#allocation2 + $0xfa] sm:$0xff]  ;;  %v26493_v3 = vld [vmem:[#allocation2 + $0x122] sm:$0xff] }
 0x40d   : > { %20482 = vmatprep.mubr.msk.f32.mxu0 %vm283_vm0, %v26452_v10  ;;  %3487 = vst.msk [vmem:[#allocation2 + $0x181] sm:$0xff] %vm283_vm0, %v3215_v9  ;;  %v3407_v12 = vsel %vm3166_vm7, %v3375_v6, %v2840_v25  ;;  %31424 = vst [vmem:[#allocation36_spill] sm:$0xff] %v26481_v21  ;;  %v26485_v9 = vld [vmem:[#allocation2 + $0x10a] sm:$0xff]  ;;  %v26501_v25 = vld [vmem:[#allocation2 + $0x13a] sm:$0xff] }
 0x40e   : > { %v3439_v63 = vsel %vm3199_vm8, %v3407_v12, %v2936_v30  ;;  %31425 = vst [vmem:[#allocation37_spill] sm:$0xff] %v26485_v9  ;;  %31427 = vst [vmem:[#allocation39_spill] sm:$0xff] %v26493_v3  ;;  %v26497_v6 = vld [vmem:[#allocation2 + $0x12a] sm:$0xff]  ;;  %v26505_v12 = vld [vmem:[#allocation2 + $0x142] sm:$0xff] }
 0x40f   : > { %3488 = vst.msk [vmem:[#allocation2 + $0x189] sm:$0xff] %vm283_vm0, %v3439_v63  ;;  %31428 = vst [vmem:[#allocation40_spill] sm:$0xff] %v26497_v6  ;;  %v26509_v30 = vld [vmem:[#allocation2 + $0x152] sm:$0xff]  ;;  %v26513_v63 = vld [vmem:[#allocation2 + $0x15a] sm:$0xff] }
 0x410   : > { %20483 = vmatmul.mubr.msk.f32.gmra.mrb[16].mxu0 %vm283_vm0, %v26459_v29  ;;  %v26475_v29 = vld [vmem:[#allocation2 + $0xf2] sm:$0xff]  ;;  %31429 = vst [vmem:[#allocation41_spill] sm:$0xff] %v26501_v25  ;;  %31430 = vst [vmem:[#allocation42_spill] sm:$0xff] %v26505_v12 }
 0x411   : > { %20485 = vmatprep.mubr.msk.f32.mxu0 %vm283_vm0, %v26463_v2  ;;  %31423 = vst [vmem:[#allocation35_spill] sm:$0xff] %v26475_v29  ;;  %31431 = vst [vmem:[#allocation43_spill] sm:$0xff] %v26509_v30 }
 0x412   : > { %31432 = vst [vmem:[#allocation44_spill] sm:$0xff] %v26513_v63 }
 0x414   : > { %20486 = vmatmul.mubr.msk.f32.gmra.mrb[18].mxu0 %vm283_vm0, %v26470_v24 }
 0x415   : > { %20488 = vmatprep.mubr.msk.f32.mxu0 %vm283_vm0, %v26475_v29 }
 0x418   : > { %20489 = vmatmul.mubr.msk.f32.gmra.mrb[20].mxu0 %vm283_vm0, %v26481_v21  ;;  %v26570_v21 = vld [vmem:[#allocation2 + $0x242] sm:$0xff] }
 0x419   : > { %20491 = vmatprep.mubr.msk.f32.mxu0 %vm283_vm0, %v26485_v9  ;;  %31445 = vst [vmem:[#allocation57_spill] sm:$0xff] %v26570_v21 }
 0x41c   : > { %20492 = vmatmul.mubr.msk.f32.gmra.mrb[22].mxu0 %vm283_vm0, %v26489_v18  ;;  %v1560_v18 = vpop.permute.xlu1 %1559 }
 0x41d   : > { %20494 = vmatprep.mubr.msk.f32.mxu0 %vm283_vm0, %v26493_v3  ;;  %v26521_v3 = vld [vmem:[#allocation2 + $0x172] sm:$0xff] }
 0x41e   : > { %31434 = vst [vmem:[#allocation46_spill] sm:$0xff] %v26521_v3 }
 0x420   : > { %20495 = vmatmul.mubr.msk.f32.gmra.mrb[24].mxu0 %vm283_vm0, %v26497_v6  ;;  %v26517_v6 = vld [vmem:[#allocation2 + $0x16a] sm:$0xff] }
 0x421   : > { %20497 = vmatprep.mubr.msk.f32.mxu0 %vm283_vm0, %v26501_v25  ;;  %31433 = vst [vmem:[#allocation45_spill] sm:$0xff] %v26517_v6  ;;  %v4843_v25 = vld [vmem:[#allocation2 + $0x1b2] sm:$0xff] }
 0x424   : > { %20498 = vmatmul.mubr.msk.f32.gmra.mrb[26].mxu0 %vm283_vm0, %v26505_v12  ;;  %v4844_v12 = vld [vmem:[#allocation2 + $0x1ba] sm:$0xff] }
 0x425   : > { %20500 = vmatprep.mubr.msk.f32.mxu0 %vm283_vm0, %v26509_v30  ;;  %v26527_v30 = vld [vmem:[#allocation2 + $0x1ca] sm:$0xff] }
 0x426   : > { %31435 = vst [vmem:[#allocation47_spill] sm:$0xff] %v26527_v30 }
 0x428   : > { %20501 = vmatmul.mubr.msk.f32.gmra.mrb[28].mxu0 %vm283_vm0, %v26513_v63  ;;  %v26531_v63 = vld [vmem:[#allocation2 + $0x1d2] sm:$0xff] }
 0x429   : > { %20503 = vmatprep.mubr.msk.f32.mxu0 %vm283_vm0, %v26517_v6  ;;  %31436 = vst [vmem:[#allocation48_spill] sm:$0xff] %v26531_v63  ;;  %v26535_v6 = vld [vmem:[#allocation2 + $0x1e2] sm:$0xff] }
 0x42a   : > { %31437 = vst [vmem:[#allocation49_spill] sm:$0xff] %v26535_v6 }
 0x42c   : > { %20504 = vmatmul.mubr.msk.f32.gmra.mrb[30].mxu0 %vm283_vm0, %v26521_v3  ;;  %v26539_v3 = vld [vmem:[#allocation2 + $0x1ea] sm:$0xff] }
 0x42d   : > { %20506 = vmatprep.mubr.msk.f32.mxu0 %vm283_vm0, %v4843_v25  ;;  %31438 = vst [vmem:[#allocation50_spill] sm:$0xff] %v26539_v3  ;;  %v26543_v25 = vld [vmem:[#allocation2 + $0x1fa] sm:$0xff] }
 0x42e   : > { %31439 = vst [vmem:[#allocation51_spill] sm:$0xff] %v26543_v25 }
 0x430   : > { %20507 = vmatmul.mubr.msk.f32.gmra.mrb[32].mxu0 %vm283_vm0, %v4844_v12  ;;  %v26547_v12 = vld [vmem:[#allocation2 + $0x202] sm:$0xff] }
 0x431   : > { %20509 = vmatprep.mubr.msk.f32.mxu0 %vm283_vm0, %v26527_v30  ;;  %31440 = vst [vmem:[#allocation52_spill] sm:$0xff] %v26547_v12  ;;  %v1464_v30 = vpop.permute.xlu0 %1463 }
 0x434   : > { %20510 = vmatmul.mubr.msk.f32.gmra.mrb[34].mxu0 %vm283_vm0, %v26531_v63  ;;  %v26551_v63 = vld [vmem:[#allocation2 + $0x212] sm:$0xff] }
 0x435   : > { %20512 = vmatprep.mubr.msk.f32.mxu0 %vm283_vm0, %v26535_v6  ;;  %31441 = vst [vmem:[#allocation53_spill] sm:$0xff] %v26551_v63  ;;  %v26555_v6 = vld [vmem:[#allocation2 + $0x21a] sm:$0xff] }
 0x436   : > { %31442 = vst [vmem:[#allocation54_spill] sm:$0xff] %v26555_v6 }
 0x438   : > { %20513 = vmatmul.mubr.msk.f32.gmra.mrb[36].mxu0 %vm283_vm0, %v26539_v3  ;;  %v26559_v3 = vld [vmem:[#allocation2 + $0x22a] sm:$0xff] }
 0x439   : > { %20515 = vmatprep.mubr.msk.f32.mxu0 %vm283_vm0, %v26543_v25  ;;  %31443 = vst [vmem:[#allocation55_spill] sm:$0xff] %v26559_v3  ;;  %v3033_v25 = vsel %vm3001_vm2, %v26261_v13, %v1464_v30 }
 0x43a   : > { %v3066_v9 = vsel %vm3034_vm3, %v3033_v25, %v1560_v18  ;;  %v26581_v18 = vld [vmem:[#allocation2 + $0x25a] sm:$0xff] }
 0x43c   : > { %20516 = vmatmul.mubr.msk.f32.gmra.mrb[38].mxu0 %vm283_vm0, %v26547_v12  ;;  %v26565_v12 = vld [vmem:[#allocation2 + $0x232] sm:$0xff] }
 0x43d   : > { %20518 = vmatprep.mubr.msk.f32.mxu0 %vm283_vm0, %v26551_v63  ;;  %31444 = vst [vmem:[#allocation56_spill] sm:$0xff] %v26565_v12  ;;  %v2328_v63 = vpop.permute.xlu0 %2327 }
 0x43e   : > { %v3263_v13 = vsel %vm3001_vm2, %v26276_v43, %v2328_v63  ;;  %v26588_v43 = vld [vmem:[#allocation2 + $0x262] sm:$0xff]  ;;  %v26593_v63 = vld [vmem:[#allocation2 + $0x272] sm:$0xff]  ;;  %vm17679_vm2 = vcmask 785408  }
 0x43f   : > { %31447 = vst [vmem:[#allocation59_spill] sm:$0xff] %v26588_v43 }
 0x440   : > { %20519 = vmatmul.mubr.msk.f32.gmra.mrb[40].mxu0 %vm283_vm0, %v26555_v6  ;;  %v1656_v6 = vpop.permute.xlu1 %1655 }
 0x441   : > { %20521 = vmatprep.mubr.msk.f32.mxu0 %vm283_vm0, %v26559_v3  ;;  %v3099_v30 = vsel %vm3067_vm4, %v3066_v9, %v1656_v6  ;;  %v26577_v3 = vld [vmem:[#allocation2 + $0x24a] sm:$0xff]  ;;  %v2424_v29 = vpop.permute.xlu0 %2423 }
 0x442   : > { %31446 = vst [vmem:[#allocation58_spill] sm:$0xff] %v26577_v3  ;;  %v3295_v25 = vsel %vm3034_vm3, %v3263_v13, %v2424_v29 }
 0x444   : > { %20522 = vmatmul.mubr.msk.f32.gmra.mrb[42].mxu0 %vm283_vm0, %v26565_v12  ;;  %v2520_v12 = vpop.permute.xlu1 %2519 }
 0x445   : > { %20524 = vmatprep.mubr.msk.f32.mxu0 %vm283_vm0, %v26570_v21  ;;  %v3132_v21 = vsel %vm3100_vm5, %v3099_v30, %v26306_v44  ;;  %v3327_v9 = vsel %vm3067_vm4, %v3295_v25, %v2520_v12  ;;  %v1912_v6 = vpop.permute.xlu0 %1911  ;;  %v26601_v30 = vld [vmem:[#allocation2 + $0x27a] sm:$0xff]  ;;  %v26605_v25 = vld [vmem:[#allocation2 + $0x28a] sm:$0xff] }
 0x446   : > { %v3359_v44 = vsel %vm3100_vm5, %v3327_v9, %v26323_v48  ;;  %31448 = vst [vmem:[#allocation60_spill] sm:$0xff] %v26601_v30  ;;  %v26616_v9 = vld [vmem:[#allocation2 + $0x2a2] sm:$0xff] }
 0x448   : > { %20525 = vmatmul.mubr.msk.f32.gmra.mrb[44].mxu0 %vm283_vm0, %v26577_v3  ;;  %v3165_v3 = vsel %vm3133_vm6, %v3132_v21, %v1912_v6  ;;  %v2008_v29 = vpop.permute.xlu1 %2007 }
 0x449   : > { %20527 = vmatprep.mubr.msk.f32.mxu0 %vm283_vm0, %v26581_v18  ;;  %v3198_v13 = vsel %vm3166_vm7, %v3165_v3, %v2008_v29  ;;  %v2776_v12 = vpop.permute.xlu0 %2775  ;;  %v26612_v3 = vld [vmem:[#allocation2 + $0x292] sm:$0xff] }
 0x44a   : > { %v3391_v21 = vsel %vm3133_vm6, %v3359_v44, %v2776_v12  ;;  %v26631_v12 = vld [vmem:[#allocation2 + $0x2c2] sm:$0xff] }
 0x44c   : > { %20528 = vmatmul.mubr.msk.f32.gmra.mrb[46].mxu0 %vm283_vm0, %v26588_v43  ;;  %v2104_v43 = vpop.permute.xlu1 %2103 }
 0x44d   : > { %20530 = vmatprep.mubr.msk.f32.mxu0 %vm283_vm0, %v26593_v63  ;;  %v3231_v6 = vsel %vm3199_vm8, %v3198_v13, %v2104_v43  ;;  %v2872_v48 = vpop.permute.xlu0 %2871  ;;  %v26623_v43 = vld [vmem:[#allocation2 + $0x2aa] sm:$0xff]  ;;  %v26627_v13 = vld [vmem:[#allocation2 + $0x2ba] sm:$0xff] }
 0x44e   : > { %3519 = vst.msk [vmem:[#allocation2 + $0x331] sm:$0xff] %vm283_vm0, %v3231_v6  ;;  %v3423_v29 = vsel %vm3166_vm7, %v3391_v21, %v2872_v48  ;;  %v26635_v21 = vld [vmem:[#allocation2 + $0x2d2] sm:$0xff]  ;;  %v26643_v6 = vld [vmem:[#allocation2 + $0x2ea] sm:$0xff] }
 0x44f   : > { %31449 = vst [vmem:[#allocation61_spill] sm:$0xff] %v26635_v21  ;;  %31451 = vst [vmem:[#allocation63_spill] sm:$0xff] %v26643_v6  ;;  %v26647_v48 = vld [vmem:[#allocation2 + $0x2f2] sm:$0xff] }
 0x450   : > { %20531 = vmatmul.mubr.msk.f32.gmra.mrb[48].mxu0 %vm283_vm0, %v26601_v30  ;;  %v2968_v30 = vpop.permute.xlu1 %2967  ;;  %31452 = vst [vmem:[#allocation64_spill] sm:$0xff] %v26647_v48 }
 0x451   : > { %20533 = vmatprep.mubr.msk.f32.mxu0 %vm283_vm0, %v26605_v25  ;;  %v3455_v44 = vsel %vm3199_vm8, %v3423_v29, %v2968_v30  ;;  %v26639_v30 = vld [vmem:[#allocation2 + $0x2da] sm:$0xff]  ;;  %v26651_v29 = vld [vmem:[#allocation2 + $0x302] sm:$0xff] }
 0x452   : > { %3520 = vst.msk [vmem:[#allocation2 + $0x339] sm:$0xff] %vm283_vm0, %v3455_v44  ;;  %31450 = vst [vmem:[#allocation62_spill] sm:$0xff] %v26639_v30  ;;  %v26655_v44 = vld [vmem:[#allocation2 + $0x30a] sm:$0xff] }
 0x453   : > { %31453 = vst [vmem:[#allocation65_spill] sm:$0xff] %v26651_v29  ;;  %31454 = vst [vmem:[#allocation66_spill] sm:$0xff] %v26655_v44 }
 0x454   : > { %20534 = vmatmul.mubr.msk.f32.gmra.mrb[50].mxu0 %vm283_vm0, %v26612_v3 }
 0x455   : > { %20536 = vmatprep.mubr.msk.f32.mxu0 %vm283_vm0, %v26616_v9 }
 0x458   : > { %20537 = vmatmul.mubr.msk.f32.gmra.mrb[52].mxu0 %vm283_vm0, %v26623_v43 }
 0x459   : > { %20539 = vmatprep.mubr.msk.f32.mxu0 %vm283_vm0, %v26627_v13 }
 0x45c   : > { %20540 = vmatmul.mubr.msk.f32.gmra.mrb[54].mxu0 %vm283_vm0, %v26631_v12 }
 0x45d   : > { %20542 = vmatprep.mubr.msk.f32.mxu0 %vm283_vm0, %v26635_v21  ;;  %v7003_v21 = vld [vmem:[%s31082_s1 + $0xa8] sm:$0xff] }
 0x460   : > { %20543 = vmatmul.mubr.msk.f32.gmra.mrb[56].mxu0 %vm283_vm0, %v26639_v30  ;;  %v26659_v30 = vld [vmem:[#allocation2 + $0x31a] sm:$0xff] }
 0x461   : > { %20545 = vmatprep.mubr.msk.f32.mxu0 %vm283_vm0, %v26643_v6  ;;  %31455 = vst [vmem:[#allocation67_spill] sm:$0xff] %v26659_v30  ;;  %v26663_v6 = vld [vmem:[#allocation2 + $0x322] sm:$0xff] }
 0x462   : > { %31456 = vst [vmem:[#allocation68_spill] sm:$0xff] %v26663_v6 }
 0x464   : > { %20546 = vmatmul.mubr.msk.f32.gmra.mrb[58].mxu0 %vm283_vm0, %v26647_v48  ;;  %v6295_v48 = vld [vmem:[%s31082_s1 + $0x90] sm:$0xff] }
 0x465   : > { %20548 = vmatprep.mubr.msk.f32.mxu0 %vm283_vm0, %v26651_v29  ;;  %v6296_v29 = vld [vmem:[%s31082_s1 + $0x98] sm:$0xff] }
 0x468   : > { %20549 = vmatmul.mubr.msk.f32.gmra.mrb[60].mxu0 %vm283_vm0, %v26655_v44  ;;  %v22150_v44 = vpack.c.bf16 %v6296_v29, %v6295_v48  ;;  %v26917_v48 = vld [vmem:[#allocation2 + $0x121] sm:$0xff]  ;;  %v26921_v29 = vld [vmem:[#allocation2 + $0x129] sm:$0xff] }
 0x469   : > { %20551 = vmatprep.mubr.msk.f32.mxu0 %vm283_vm0, %v26659_v30  ;;  %v7002_v30 = vld [vmem:[%s31082_s1 + $0xa0] sm:$0xff] }
 0x46c   : > { %20552 = vmatmul.mubr.msk.f32.gmra.mrb[62].mxu0 %vm283_vm0, %v26663_v6  ;;  %v26686_v6 = vpack.c.bf16 %v7003_v21, %v7002_v30  ;;  %v26905_v21 = vld [vmem:[#allocation2 + $0xf9] sm:$0xff]  ;;  %v26909_v30 = vld [vmem:[#allocation2 + $0x109] sm:$0xff] }
 0x46d   : > { %20562 = vmatprep.mubr.msk.f32.mxu0 %vm283_vm0, %v26041_v0  ;;  %v26743_v0 = vld [vmem:[#allocation2 + $0x180] sm:$0xff] }
 0x470   : > { %20563 = vmatmul.mubr.msk.f32.vlgmr.msra.gmra.mrb[0].mxu0 %vm283_vm0, %v26048_v16  ;;  %v26747_v16 = vld [vmem:[#allocation2 + $0x188] sm:$0xff] }
 0x471   : > { %22149 = vmatpush3.bf16.msra.mxu0 %v26386_v17  ;;  %20565 = vmatprep.mubr.msk.f32.mxu0 %vm283_vm0, %v26052_v42  ;;  %v31457_v42 = vld [vmem:[#allocation6_spill] sm:$0xff]  ;;  %v26901_v17 = vld [vmem:[#allocation2 + $0xf1] sm:$0xff] }
 0x472   : > { %22151 = vmatprep.subr.bf16.mxu0 %v22150_v44 }
 0x474   : > { %20566 = vmatmul.mubr.msk.f32.gmra.mrb[2].mxu0 %vm283_vm0, %v26057_v33  ;;  %v31458_v33 = vld [vmem:[#allocation7_spill] sm:$0xff] }
 0x475   : > { %20568 = vmatprep.mubr.msk.f32.mxu0 %vm283_vm0, %v26061_v22  ;;  %22153 = vmatpush3.bf16.msra.mxu0 %v22150_v44  ;;  %v31459_v22 = vld [vmem:[#allocation8_spill] sm:$0xff]  ;;  %v26925_v44 = vld [vmem:[#allocation2 + $0x139] sm:$0xff] }
 0x476   : > { %22155 = vmatprep.subr.bf16.mxu0 %v26686_v6 }
 0x478   : > { %20569 = vmatmul.mubr.msk.f32.gmra.mrb[4].mxu0 %vm283_vm0, %v26065_v53  ;;  %v31460_v53 = vld [vmem:[#allocation9_spill] sm:$0xff] }
 0x479   : > { %20571 = vmatprep.mubr.msk.f32.mxu0 %vm283_vm0, %v26069_v14  ;;  %v31461_v14 = vld [vmem:[#allocation10_spill] sm:$0xff] }
 0x47c   : > { %20572 = vmatmul.mubr.msk.f32.gmra.mrb[6].mxu0 %vm283_vm0, %v26073_v51  ;;  %v31462_v51 = vld [vmem:[#allocation11_spill] sm:$0xff] }
 0x47d   : > { %20574 = vmatprep.mubr.msk.f32.mxu0 %vm283_vm0, %v26077_v45  ;;  %v31463_v45 = vld [vmem:[#allocation12_spill] sm:$0xff] }
 0x480   : > { %20575 = vmatmul.mubr.msk.f32.gmra.mrb[8].mxu0 %vm283_vm0, %v26081_v41  ;;  %v31464_v41 = vld [vmem:[#allocation13_spill] sm:$0xff] }
 0x481   : > { %20577 = vmatprep.mubr.msk.f32.mxu0 %vm283_vm0, %v26085_v37  ;;  %v31465_v37 = vld [vmem:[#allocation14_spill] sm:$0xff] }
 0x484   : > { %20578 = vmatmul.mubr.msk.f32.gmra.mrb[10].mxu0 %vm283_vm0, %v26089_v52  ;;  %v31466_v52 = vld [vmem:[#allocation15_spill] sm:$0xff] }
 0x485   : > { %20580 = vmatprep.mubr.msk.f32.mxu0 %vm283_vm0, %v26093_v20  ;;  %v31467_v20 = vld [vmem:[#allocation16_spill] sm:$0xff] }
 0x488   : > { %20581 = vmatmul.mubr.msk.f32.gmra.mrb[12].mxu0 %vm283_vm0, %v26103_v40  ;;  %v31468_v40 = vld [vmem:[#allocation17_spill] sm:$0xff] }
 0x489   : > { %20583 = vmatprep.mubr.msk.f32.mxu0 %vm283_vm0, %v26107_v4  ;;  %v31469_v4 = vld [vmem:[#allocation18_spill] sm:$0xff] }
 0x48c   : > { %20584 = vmatmul.mubr.msk.f32.gmra.mrb[14].mxu0 %vm283_vm0, %v26119_v8  ;;  %v31470_v8 = vld [vmem:[#allocation19_spill] sm:$0xff] }
 0x48d   : > { %20586 = vmatprep.mubr.msk.f32.mxu0 %vm283_vm0, %v26123_v35  ;;  %v31471_v35 = vld [vmem:[#allocation20_spill] sm:$0xff] }
 0x490   : > { %20587 = vmatmul.mubr.msk.f32.gmra.mrb[16].mxu0 %vm283_vm0, %v26129_v39  ;;  %v31472_v39 = vld [vmem:[#allocation21_spill] sm:$0xff] }
 0x491   : > { %20589 = vmatprep.mubr.msk.f32.mxu0 %vm283_vm0, %v26133_v34  ;;  %v26811_v34 = vld [vmem:[#allocation2 + $0x330] sm:$0xff] }
 0x494   : > { %20590 = vmatmul.mubr.msk.f32.gmra.mrb[18].mxu0 %vm283_vm0, %v26144_v46  ;;  %v26815_v46 = vld [vmem:[#allocation2 + $0x338] sm:$0xff] }
 0x495   : > { %20592 = vmatprep.mubr.msk.f32.mxu0 %vm283_vm0, %v26148_v54  ;;  %v7004_v54 = vld [vmem:[%s31082_s1 + $0xb0] sm:$0xff] }
 0x498   : > { %20593 = vmatmul.mubr.msk.f32.gmra.mrb[20].mxu0 %vm283_vm0, %v26161_v47  ;;  %v7005_v47 = vld [vmem:[%s31082_s1 + $0xb8] sm:$0xff] }
 0x499   : > { %20595 = vmatprep.mubr.msk.f32.mxu0 %vm283_vm0, %v26165_v5  ;;  %v6229_v5 = vld [vmem:[#allocation2 + $0x19] sm:$0xff] }
 0x49c   : > { %20596 = vmatmul.mubr.msk.f32.gmra.mrb[22].mxu0 %vm283_vm0, %v26173_v50  ;;  %v22158_v50 = vpack.c.bf16 %v7005_v47, %v7004_v54  ;;  %v26987_v54 = vld [vmem:[#allocation2 + $0x231] sm:$0xff]  ;;  %v26991_v47 = vld [vmem:[#allocation2 + $0x241] sm:$0xff] }
 0x49d   : > { %20598 = vmatprep.mubr.msk.f32.mxu0 %vm283_vm0, %v26177_v28  ;;  %v6230_v28 = vld [vmem:[#allocation2 + $0x21] sm:$0xff]  ;;  %31473 = vst [vmem:[#allocation6_spill] sm:$0xff] %v26987_v54  ;;  %31474 = vst [vmem:[#allocation7_spill] sm:$0xff] %v26991_v47 }
 0x4a0   : > { %20599 = vmatmul.mubr.msk.f32.gmra.mrb[24].mxu0 %vm283_vm0, %v26185_v11  ;;  %v7712_v11 = vld [vmem:[%s31082_s1 + $0xc0] sm:$0xff] }
 0x4a1   : > { %20601 = vmatprep.mubr.msk.f32.mxu0 %vm283_vm0, %v26189_v62  ;;  %v7713_v62 = vld [vmem:[%s31082_s1 + $0xc8] sm:$0xff] }
 0x4a4   : > { %20602 = vmatmul.mubr.msk.f32.gmra.mrb[26].mxu0 %vm283_vm0, %v26193_v27  ;;  %v26833_v27 = vld [vmem:[#allocation2 + $0x31] sm:$0xff] }
 0x4a5   : > { %20604 = vmatprep.mubr.msk.f32.mxu0 %vm283_vm0, %v26197_v58  ;;  %v26838_v58 = vpack.c.bf16 %v7713_v62, %v7712_v11  ;;  %v27007_v11 = vld [vmem:[#allocation2 + $0x271] sm:$0xff]  ;;  %v27011_v62 = vld [vmem:[#allocation2 + $0x279] sm:$0xff] }
 0x4a6   : > { %31478 = vst [vmem:[#allocation11_spill] sm:$0xff] %v27007_v11  ;;  %31479 = vst [vmem:[#allocation12_spill] sm:$0xff] %v27011_v62 }
 0x4a8   : > { %20605 = vmatmul.mubr.msk.f32.gmra.mrb[28].mxu0 %vm283_vm0, %v26201_v7  ;;  %v26840_v7 = vld [vmem:[#allocation2 + $0x39] sm:$0xff] }
 0x4a9   : > { %20607 = vmatprep.mubr.msk.f32.mxu0 %vm283_vm0, %v26743_v0 }
 0x4ac   : > { %20608 = vmatmul.mubr.msk.f32.gmra.mrb[30].mxu0 %vm283_vm0, %v26747_v16 }
 0x4ad   : > { %20610 = vmatprep.mubr.msk.f32.mxu0 %vm283_vm0, %v26207_v1  ;;  %v26844_v1 = vld [vmem:[#allocation2 + $0x49] sm:$0xff] }
 0x4b0   : > { %20611 = vmatmul.mubr.msk.f32.gmra.mrb[32].mxu0 %vm283_vm0, %v26211_v36  ;;  %v26849_v36 = vld [vmem:[#allocation2 + $0x51] sm:$0xff] }
 0x4b1   : > { %20613 = vmatprep.mubr.msk.f32.mxu0 %vm283_vm0, %v26215_v60  ;;  %v26853_v60 = vld [vmem:[#allocation2 + $0x61] sm:$0xff] }
 0x4b4   : > { %20614 = vmatmul.mubr.msk.f32.gmra.mrb[34].mxu0 %vm283_vm0, %v26219_v31  ;;  %v26857_v31 = vld [vmem:[#allocation2 + $0x69] sm:$0xff] }
 0x4b5   : > { %20616 = vmatprep.mubr.msk.f32.mxu0 %vm283_vm0, %v26223_v26  ;;  %v26861_v26 = vld [vmem:[#allocation2 + $0x79] sm:$0xff] }
 0x4b8   : > { %20617 = vmatmul.mubr.msk.f32.gmra.mrb[36].mxu0 %vm283_vm0, %v26227_v23  ;;  %v26865_v23 = vld [vmem:[#allocation2 + $0x81] sm:$0xff] }
 0x4b9   : > { %20619 = vmatprep.mubr.msk.f32.mxu0 %vm283_vm0, %v26231_v32  ;;  %v26869_v32 = vld [vmem:[#allocation2 + $0x91] sm:$0xff] }
 0x4bc   : > { %20620 = vmatmul.mubr.msk.f32.gmra.mrb[38].mxu0 %vm283_vm0, %v26235_v55  ;;  %v26873_v55 = vld [vmem:[#allocation2 + $0x99] sm:$0xff] }
 0x4bd   : > { %20622 = vmatprep.mubr.msk.f32.mxu0 %vm283_vm0, %v26239_v19  ;;  %v26877_v19 = vld [vmem:[#allocation2 + $0xa9] sm:$0xff] }
 0x4c0   : > { %20623 = vmatmul.mubr.msk.f32.gmra.mrb[40].mxu0 %vm283_vm0, %v26243_v59  ;;  %v26881_v59 = vld [vmem:[#allocation2 + $0xb1] sm:$0xff] }
 0x4c1   : > { %20625 = vmatprep.mubr.msk.f32.mxu0 %vm283_vm0, %v26247_v38  ;;  %v26885_v38 = vld [vmem:[#allocation2 + $0xc1] sm:$0xff] }
 0x4c4   : > { %20626 = vmatmul.mubr.msk.f32.gmra.mrb[42].mxu0 %vm283_vm0, %v26251_v49  ;;  %v26889_v49 = vld [vmem:[#allocation2 + $0xc9] sm:$0xff] }
 0x4c5   : > { %20628 = vmatprep.mubr.msk.f32.mxu0 %vm283_vm0, %v26255_v61  ;;  %v26893_v61 = vld [vmem:[#allocation2 + $0xd9] sm:$0xff] }
 0x4c8   : > { %20629 = vmatmul.mubr.msk.f32.gmra.mrb[44].mxu0 %vm283_vm0, %v26263_v56  ;;  %v26897_v56 = vld [vmem:[#allocation2 + $0xe1] sm:$0xff] }
 0x4c9   : > { %20631 = vmatprep.mubr.msk.f32.mxu0 %vm283_vm0, %v31457_v42  ;;  %v26929_v42 = vld [vmem:[#allocation2 + $0x141] sm:$0xff] }
 0x4cc   : > { %20632 = vmatmul.mubr.msk.f32.gmra.mrb[46].mxu0 %vm283_vm0, %v31458_v33  ;;  %v26933_v33 = vld [vmem:[#allocation2 + $0x151] sm:$0xff] }
 0x4cd   : > { %20634 = vmatprep.mubr.msk.f32.mxu0 %vm283_vm0, %v31459_v22  ;;  %v26937_v22 = vld [vmem:[#allocation2 + $0x159] sm:$0xff] }
 0x4d0   : > { %20635 = vmatmul.mubr.msk.f32.gmra.mrb[48].mxu0 %vm283_vm0, %v31460_v53  ;;  %v26941_v53 = vld [vmem:[#allocation2 + $0x169] sm:$0xff] }
 0x4d1   : > { %20637 = vmatprep.mubr.msk.f32.mxu0 %vm283_vm0, %v31461_v14  ;;  %v26945_v14 = vld [vmem:[#allocation2 + $0x171] sm:$0xff] }
 0x4d4   : > { %20638 = vmatmul.mubr.msk.f32.gmra.mrb[50].mxu0 %vm283_vm0, %v31462_v51  ;;  %v26949_v51 = vld [vmem:[#allocation2 + $0x181] sm:$0xff] }
 0x4d5   : > { %20640 = vmatprep.mubr.msk.f32.mxu0 %vm283_vm0, %v31463_v45  ;;  %v26953_v45 = vld [vmem:[#allocation2 + $0x189] sm:$0xff] }
 0x4d8   : > { %20641 = vmatmul.mubr.msk.f32.gmra.mrb[52].mxu0 %vm283_vm0, %v31464_v41  ;;  %v6261_v41 = vld [vmem:[#allocation2 + $0x1c9] sm:$0xff] }
 0x4d9   : > { %20643 = vmatprep.mubr.msk.f32.mxu0 %vm283_vm0, %v31465_v37  ;;  %v6262_v37 = vld [vmem:[#allocation2 + $0x1d1] sm:$0xff] }
 0x4dc   : > { %20644 = vmatmul.mubr.msk.f32.gmra.mrb[54].mxu0 %vm283_vm0, %v31466_v52  ;;  %v26959_v52 = vld [vmem:[#allocation2 + $0x1e1] sm:$0xff] }
 0x4dd   : > { %20646 = vmatprep.mubr.msk.f32.mxu0 %vm283_vm0, %v31467_v20  ;;  %v26963_v20 = vld [vmem:[#allocation2 + $0x1e9] sm:$0xff] }
 0x4e0   : > { %20647 = vmatmul.mubr.msk.f32.gmra.mrb[56].mxu0 %vm283_vm0, %v31468_v40  ;;  %v26967_v40 = vld [vmem:[#allocation2 + $0x1f9] sm:$0xff] }
 0x4e1   : > { %20649 = vmatprep.mubr.msk.f32.mxu0 %vm283_vm0, %v31469_v4  ;;  %v26971_v4 = vld [vmem:[#allocation2 + $0x201] sm:$0xff] }
 0x4e4   : > { %20650 = vmatmul.mubr.msk.f32.gmra.mrb[58].mxu0 %vm283_vm0, %v31470_v8  ;;  %v26975_v8 = vld [vmem:[#allocation2 + $0x211] sm:$0xff] }
 0x4e5   : > { %20652 = vmatprep.mubr.msk.f32.mxu0 %vm283_vm0, %v31471_v35  ;;  %v26979_v35 = vld [vmem:[#allocation2 + $0x219] sm:$0xff] }
 0x4e8   : > { %20653 = vmatmul.mubr.msk.f32.gmra.mrb[60].mxu0 %vm283_vm0, %v31472_v39  ;;  %v26983_v39 = vld [vmem:[#allocation2 + $0x229] sm:$0xff] }
 0x4e9   : > { %20655 = vmatprep.mubr.msk.f32.mxu0 %vm283_vm0, %v26811_v34 }
 0x4ec   : > { %20656 = vmatmul.mubr.msk.f32.gmra.mrb[62].mxu0 %vm283_vm0, %v26815_v46 }
 0x4ed   : > { %20666 = vmatprep.mubr.msk.f32.mxu0 %vm283_vm0, %v6229_v5  ;;  %v26995_v5 = vld [vmem:[#allocation2 + $0x249] sm:$0xff] }
 0x4ee   : > { %31475 = vst [vmem:[#allocation8_spill] sm:$0xff] %v26995_v5 }
 0x4f0   : > { %20667 = vmatmul.mubr.msk.f32.vlgmr.msra.gmra.mrb[0].mxu0 %vm283_vm0, %v6230_v28  ;;  %v27003_v28 = vld [vmem:[#allocation2 + $0x261] sm:$0xff] }
 0x4f1   : > { %22157 = vmatpush3.bf16.msra.mxu0 %v26686_v6  ;;  %20669 = vmatprep.mubr.msk.f32.mxu0 %vm283_vm0, %v26833_v27  ;;  %v26913_v6 = vld [vmem:[#allocation2 + $0x111] sm:$0xff]  ;;  %31477 = vst [vmem:[#allocation10_spill] sm:$0xff] %v27003_v28 }
 0x4f2   : > { %22159 = vmatprep.subr.bf16.mxu0 %v22158_v50 }
 0x4f4   : > { %20670 = vmatmul.mubr.msk.f32.gmra.mrb[2].mxu0 %vm283_vm0, %v26840_v7 }
 0x4f5   : > { %20672 = vmatprep.mubr.msk.f32.mxu0 %vm283_vm0, %v26844_v1  ;;  %22161 = vmatpush3.bf16.msra.mxu0 %v22158_v50  ;;  %v26999_v50 = vld [vmem:[#allocation2 + $0x259] sm:$0xff] }
 0x4f6   : > { %22163 = vmatprep.subr.bf16.mxu0 %v26838_v58  ;;  %31476 = vst [vmem:[#allocation9_spill] sm:$0xff] %v26999_v50 }
 0x4f8   : > { %20673 = vmatmul.mubr.msk.f32.gmra.mrb[4].mxu0 %vm283_vm0, %v26849_v36 }
 0x4f9   : > { %20675 = vmatprep.mubr.msk.f32.mxu0 %vm283_vm0, %v26853_v60 }
 0x4fc   : > { %20676 = vmatmul.mubr.msk.f32.gmra.mrb[6].mxu0 %vm283_vm0, %v26857_v31 }
 0x4fd   : > { %20678 = vmatprep.mubr.msk.f32.mxu0 %vm283_vm0, %v26861_v26 }
 0x500   : > { %20679 = vmatmul.mubr.msk.f32.gmra.mrb[8].mxu0 %vm283_vm0, %v26865_v23 }
 0x501   : > { %20681 = vmatprep.mubr.msk.f32.mxu0 %vm283_vm0, %v26869_v32 }
 0x504   : > { %20682 = vmatmul.mubr.msk.f32.gmra.mrb[10].mxu0 %vm283_vm0, %v26873_v55 }
 0x505   : > { %20684 = vmatprep.mubr.msk.f32.mxu0 %vm283_vm0, %v26877_v19 }
 0x508   : > { %20685 = vmatmul.mubr.msk.f32.gmra.mrb[12].mxu0 %vm283_vm0, %v26881_v59 }
 0x509   : > { %20687 = vmatprep.mubr.msk.f32.mxu0 %vm283_vm0, %v26885_v38 }
 0x50c   : > { %20688 = vmatmul.mubr.msk.f32.gmra.mrb[14].mxu0 %vm283_vm0, %v26889_v49 }
 0x50d   : > { %20690 = vmatprep.mubr.msk.f32.mxu0 %vm283_vm0, %v26893_v61 }
 0x510   : > { %20691 = vmatmul.mubr.msk.f32.gmra.mrb[16].mxu0 %vm283_vm0, %v26897_v56 }
 0x511   : > { %20693 = vmatprep.mubr.msk.f32.mxu0 %vm283_vm0, %v26901_v17 }
 0x514   : > { %20694 = vmatmul.mubr.msk.f32.gmra.mrb[18].mxu0 %vm283_vm0, %v26905_v21 }
 0x515   : > { %20696 = vmatprep.mubr.msk.f32.mxu0 %vm283_vm0, %v26909_v30 }
 0x518   : > { %20697 = vmatmul.mubr.msk.f32.gmra.mrb[20].mxu0 %vm283_vm0, %v26913_v6 }
 0x519   : > { %20699 = vmatprep.mubr.msk.f32.mxu0 %vm283_vm0, %v26917_v48 }
 0x51c   : > { %20700 = vmatmul.mubr.msk.f32.gmra.mrb[22].mxu0 %vm283_vm0, %v26921_v29 }
 0x51d   : > { %20702 = vmatprep.mubr.msk.f32.mxu0 %vm283_vm0, %v26925_v44 }
 0x520   : > { %20703 = vmatmul.mubr.msk.f32.gmra.mrb[24].mxu0 %vm283_vm0, %v26929_v42 }
 0x521   : > { %20705 = vmatprep.mubr.msk.f32.mxu0 %vm283_vm0, %v26933_v33 }
 0x524   : > { %20706 = vmatmul.mubr.msk.f32.gmra.mrb[26].mxu0 %vm283_vm0, %v26937_v22 }
 0x525   : > { %20708 = vmatprep.mubr.msk.f32.mxu0 %vm283_vm0, %v26941_v53 }
 0x528   : > { %20709 = vmatmul.mubr.msk.f32.gmra.mrb[28].mxu0 %vm283_vm0, %v26945_v14 }
 0x529   : > { %20711 = vmatprep.mubr.msk.f32.mxu0 %vm283_vm0, %v26949_v51 }
 0x52c   : > { %20712 = vmatmul.mubr.msk.f32.gmra.mrb[30].mxu0 %vm283_vm0, %v26953_v45 }
 0x52d   : > { %20714 = vmatprep.mubr.msk.f32.mxu0 %vm283_vm0, %v6261_v41  ;;  %v27015_v41 = vld [vmem:[#allocation2 + $0x289] sm:$0xff] }
 0x52e   : > { %31480 = vst [vmem:[#allocation13_spill] sm:$0xff] %v27015_v41 }
 0x530   : > { %20715 = vmatmul.mubr.msk.f32.gmra.mrb[32].mxu0 %vm283_vm0, %v6262_v37  ;;  %v27019_v37 = vld [vmem:[#allocation2 + $0x291] sm:$0xff] }
 0x531   : > { %20717 = vmatprep.mubr.msk.f32.mxu0 %vm283_vm0, %v26959_v52  ;;  %31481 = vst [vmem:[#allocation14_spill] sm:$0xff] %v27019_v37 }
 0x534   : > { %20718 = vmatmul.mubr.msk.f32.gmra.mrb[34].mxu0 %vm283_vm0, %v26963_v20 }
 0x535   : > { %20720 = vmatprep.mubr.msk.f32.mxu0 %vm283_vm0, %v26967_v40 }
 0x538   : > { %20721 = vmatmul.mubr.msk.f32.gmra.mrb[36].mxu0 %vm283_vm0, %v26971_v4 }
 0x539   : > { %20723 = vmatprep.mubr.msk.f32.mxu0 %vm283_vm0, %v26975_v8 }
 0x53c   : > { %20724 = vmatmul.mubr.msk.f32.gmra.mrb[38].mxu0 %vm283_vm0, %v26979_v35 }
 0x53d   : > { %20726 = vmatprep.mubr.msk.f32.mxu0 %vm283_vm0, %v26983_v39 }
 0x540   : > { %20727 = vmatmul.mubr.msk.f32.gmra.mrb[40].mxu0 %vm283_vm0, %v26987_v54  ;;  %v31498_v54 = vld [vmem:[#allocation24_spill] sm:$0xff] }
 0x541   : > { %20729 = vmatprep.mubr.msk.f32.mxu0 %vm283_vm0, %v26991_v47  ;;  %v31497_v47 = vld [vmem:[#allocation23_spill] sm:$0xff] }
 0x544   : > { %20730 = vmatmul.mubr.msk.f32.gmra.mrb[42].mxu0 %vm283_vm0, %v26995_v5  ;;  %v8422_v5 = vld [vmem:[%s31082_s1 + $0xe8] sm:$0xff] }
 0x545   : > { %20732 = vmatprep.mubr.msk.f32.mxu0 %vm283_vm0, %v26999_v50  ;;  %v31496_v50 = vld [vmem:[#allocation22_spill] sm:$0xff] }
 0x548   : > { %20733 = vmatmul.mubr.msk.f32.gmra.mrb[44].mxu0 %vm283_vm0, %v27003_v28  ;;  %v27023_v28 = vld [vmem:[#allocation2 + $0x2a1] sm:$0xff] }
 0x549   : > { %20735 = vmatprep.mubr.msk.f32.mxu0 %vm283_vm0, %v27007_v11  ;;  %31482 = vst [vmem:[#allocation15_spill] sm:$0xff] %v27023_v28  ;;  %v27027_v11 = vld [vmem:[#allocation2 + $0x2a9] sm:$0xff] }
 0x54a   : > { %31483 = vst [vmem:[#allocation16_spill] sm:$0xff] %v27027_v11 }
 0x54c   : > { %20736 = vmatmul.mubr.msk.f32.gmra.mrb[46].mxu0 %vm283_vm0, %v27011_v62  ;;  %v27031_v62 = vld [vmem:[#allocation2 + $0x2b9] sm:$0xff] }
 0x54d   : > { %20738 = vmatprep.mubr.msk.f32.mxu0 %vm283_vm0, %v27015_v41  ;;  %31484 = vst [vmem:[#allocation17_spill] sm:$0xff] %v27031_v62  ;;  %v27035_v41 = vld [vmem:[#allocation2 + $0x2c1] sm:$0xff] }
 0x54e   : > { %31485 = vst [vmem:[#allocation18_spill] sm:$0xff] %v27035_v41 }
 0x550   : > { %20739 = vmatmul.mubr.msk.f32.gmra.mrb[48].mxu0 %vm283_vm0, %v27019_v37  ;;  %v27039_v37 = vld [vmem:[#allocation2 + $0x2d1] sm:$0xff] }
 0x551   : > { %20741 = vmatprep.mubr.msk.f32.mxu0 %vm283_vm0, %v27023_v28  ;;  %31486 = vst [vmem:[#allocation19_spill] sm:$0xff] %v27039_v37  ;;  %v27043_v28 = vld [vmem:[#allocation2 + $0x2d9] sm:$0xff] }
 0x552   : > { %31487 = vst [vmem:[#allocation20_spill] sm:$0xff] %v27043_v28 }
 0x554   : > { %20742 = vmatmul.mubr.msk.f32.gmra.mrb[50].mxu0 %vm283_vm0, %v27027_v11  ;;  %v27047_v11 = vld [vmem:[#allocation2 + $0x2e9] sm:$0xff] }
 0x555   : > { %20744 = vmatprep.mubr.msk.f32.mxu0 %vm283_vm0, %v27031_v62  ;;  %31488 = vst [vmem:[#allocation21_spill] sm:$0xff] %v27047_v11  ;;  %v27051_v62 = vld [vmem:[#allocation2 + $0x2f1] sm:$0xff] }
 0x556   : > { %31489 = vst [vmem:[#allocation69_spill] sm:$0xff] %v27051_v62 }
 0x558   : > { %20745 = vmatmul.mubr.msk.f32.gmra.mrb[52].mxu0 %vm283_vm0, %v27035_v41  ;;  %v27055_v41 = vld [vmem:[#allocation2 + $0x301] sm:$0xff] }
 0x559   : > { %20747 = vmatprep.mubr.msk.f32.mxu0 %vm283_vm0, %v27039_v37  ;;  %31490 = vst [vmem:[#allocation70_spill] sm:$0xff] %v27055_v41  ;;  %v27059_v37 = vld [vmem:[#allocation2 + $0x309] sm:$0xff] }
 0x55a   : > { %31491 = vst [vmem:[#allocation71_spill] sm:$0xff] %v27059_v37 }
 0x55c   : > { %20748 = vmatmul.mubr.msk.f32.gmra.mrb[54].mxu0 %vm283_vm0, %v27043_v28  ;;  %v27063_v28 = vld [vmem:[#allocation2 + $0x319] sm:$0xff] }
 0x55d   : > { %20750 = vmatprep.mubr.msk.f32.mxu0 %vm283_vm0, %v27047_v11  ;;  %31492 = vst [vmem:[#allocation72_spill] sm:$0xff] %v27063_v28  ;;  %v27067_v11 = vld [vmem:[#allocation2 + $0x321] sm:$0xff] }
 0x55e   : > { %31493 = vst [vmem:[#allocation73_spill] sm:$0xff] %v27067_v11 }
 0x560   : > { %20751 = vmatmul.mubr.msk.f32.gmra.mrb[56].mxu0 %vm283_vm0, %v27051_v62  ;;  %v27071_v62 = vld [vmem:[#allocation2 + $0x331] sm:$0xff] }
 0x561   : > { %20753 = vmatprep.mubr.msk.f32.mxu0 %vm283_vm0, %v27055_v41  ;;  %31494 = vst [vmem:[#allocation74_spill] sm:$0xff] %v27071_v62  ;;  %v27075_v41 = vld [vmem:[#allocation2 + $0x339] sm:$0xff] }
 0x562   : > { %31495 = vst [vmem:[#allocation75_spill] sm:$0xff] %v27075_v41 }
 0x564   : > { %20754 = vmatmul.mubr.msk.f32.gmra.mrb[58].mxu0 %vm283_vm0, %v27059_v37  ;;  %v7714_v37 = vld [vmem:[%s31082_s1 + $0xd0] sm:$0xff] }
 0x565   : > { %20756 = vmatprep.mubr.msk.f32.mxu0 %vm283_vm0, %v27063_v28  ;;  %v7715_v28 = vld [vmem:[%s31082_s1 + $0xd8] sm:$0xff] }
 0x568   : > { %20757 = vmatmul.mubr.msk.f32.gmra.mrb[60].mxu0 %vm283_vm0, %v27067_v11  ;;  %v22166_v11 = vpack.c.bf16 %v7715_v28, %v7714_v37  ;;  %v31500_v28 = vld [vmem:[#allocation26_spill] sm:$0xff]  ;;  %v31501_v37 = vld [vmem:[#allocation27_spill] sm:$0xff] }
 0x569   : > { %20759 = vmatprep.mubr.msk.f32.mxu0 %vm283_vm0, %v27071_v62  ;;  %v8421_v62 = vld [vmem:[%s31082_s1 + $0xe0] sm:$0xff] }
 0x56c   : > { %20760 = vmatmul.mubr.msk.f32.gmra.mrb[62].mxu0 %vm283_vm0, %v27075_v41  ;;  %v27098_v41 = vpack.c.bf16 %v8422_v5, %v8421_v62  ;;  %v31505_v5 = vld [vmem:[#allocation31_spill] sm:$0xff]  ;;  %v31507_v62 = vld [vmem:[#allocation33_spill] sm:$0xff] }
 0x56d   : > { %20770 = vmatprep.mubr.msk.f32.mxu0 %vm283_vm0, %v31496_v50  ;;  %v31499_v50 = vld [vmem:[#allocation25_spill] sm:$0xff] }
 0x570   : > { %20771 = vmatmul.mubr.msk.f32.vlgmr.msra.gmra.mrb[0].mxu0 %vm283_vm0, %v31497_v47  ;;  %v31502_v47 = vld [vmem:[#allocation28_spill] sm:$0xff] }
 0x571   : > { %22165 = vmatpush3.bf16.msra.mxu0 %v26838_v58  ;;  %20773 = vmatprep.mubr.msk.f32.mxu0 %vm283_vm0, %v31498_v54  ;;  %v31503_v58 = vld [vmem:[#allocation29_spill] sm:$0xff]  ;;  %v31504_v54 = vld [vmem:[#allocation30_spill] sm:$0xff] }
 0x572   : > { %22167 = vmatprep.subr.bf16.mxu0 %v22166_v11 }
 0x574   : > { %20774 = vmatmul.mubr.msk.f32.gmra.mrb[2].mxu0 %vm283_vm0, %v31499_v50  ;;  %v31508_v50 = vld [vmem:[#allocation34_spill] sm:$0xff] }
 0x575   : > { %20776 = vmatprep.mubr.msk.f32.mxu0 %vm283_vm0, %v31500_v28  ;;  %22169 = vmatpush3.bf16.msra.mxu0 %v22166_v11  ;;  %v31506_v11 = vld [vmem:[#allocation32_spill] sm:$0xff]  ;;  %v31511_v28 = vld [vmem:[#allocation37_spill] sm:$0xff] }
 0x576   : > { %22171 = vmatprep.subr.bf16.mxu0 %v27098_v41 }
 0x578   : > { %20777 = vmatmul.mubr.msk.f32.gmra.mrb[4].mxu0 %vm283_vm0, %v31501_v37  ;;  %v31512_v37 = vld [vmem:[#allocation38_spill] sm:$0xff] }
 0x579   : > { %20779 = vmatprep.mubr.msk.f32.mxu0 %vm283_vm0, %v31502_v47  ;;  %v31514_v47 = vld [vmem:[#allocation40_spill] sm:$0xff] }
 0x57c   : > { %20780 = vmatmul.mubr.msk.f32.gmra.mrb[6].mxu0 %vm283_vm0, %v31503_v58  ;;  %v31517_v58 = vld [vmem:[#allocation43_spill] sm:$0xff] }
 0x57d   : > { %20782 = vmatprep.mubr.msk.f32.mxu0 %vm283_vm0, %v31504_v54  ;;  %v31518_v54 = vld [vmem:[#allocation44_spill] sm:$0xff] }
 0x580   : > { %20783 = vmatmul.mubr.msk.f32.gmra.mrb[8].mxu0 %vm283_vm0, %v26423_v57  ;;  %v31509_v57 = vld [vmem:[#allocation35_spill] sm:$0xff] }
 0x581   : > { %20785 = vmatprep.mubr.msk.f32.mxu0 %vm283_vm0, %v31505_v5  ;;  %v31519_v5 = vld [vmem:[#allocation45_spill] sm:$0xff] }
 0x584   : > { %20786 = vmatmul.mubr.msk.f32.gmra.mrb[10].mxu0 %vm283_vm0, %v26435_v15  ;;  %v31510_v15 = vld [vmem:[#allocation36_spill] sm:$0xff] }
 0x585   : > { %20788 = vmatprep.mubr.msk.f32.mxu0 %vm283_vm0, %v31506_v11  ;;  %v31520_v11 = vld [vmem:[#allocation46_spill] sm:$0xff] }
 0x588   : > { %20789 = vmatmul.mubr.msk.f32.gmra.mrb[12].mxu0 %vm283_vm0, %v31507_v62  ;;  %v27155_v62 = vld [vmem:[#allocation2 + $0x182] sm:$0xff] }
 0x589   : > { %20791 = vmatprep.mubr.msk.f32.mxu0 %vm283_vm0, %v26452_v10  ;;  %v31513_v10 = vld [vmem:[#allocation39_spill] sm:$0xff] }
 0x58c   : > { %20792 = vmatmul.mubr.msk.f32.gmra.mrb[14].mxu0 %vm283_vm0, %v31508_v50  ;;  %v27159_v50 = vld [vmem:[#allocation2 + $0x18a] sm:$0xff] }
 0x58d   : > { %20794 = vmatprep.mubr.msk.f32.mxu0 %vm283_vm0, %v26463_v2  ;;  %v31515_v2 = vld [vmem:[#allocation41_spill] sm:$0xff] }
 0x590   : > { %20795 = vmatmul.mubr.msk.f32.gmra.mrb[16].mxu0 %vm283_vm0, %v26470_v24  ;;  %v31516_v24 = vld [vmem:[#allocation42_spill] sm:$0xff] }
 0x591   : > { %20797 = vmatprep.mubr.msk.f32.mxu0 %vm283_vm0, %v31509_v57  ;;  %v31521_v57 = vld [vmem:[#allocation47_spill] sm:$0xff] }
 0x594   : > { %20798 = vmatmul.mubr.msk.f32.gmra.mrb[18].mxu0 %vm283_vm0, %v31510_v15  ;;  %v31522_v15 = vld [vmem:[#allocation48_spill] sm:$0xff] }
 0x595   : > { %20800 = vmatprep.mubr.msk.f32.mxu0 %vm283_vm0, %v31511_v28  ;;  %v31523_v28 = vld [vmem:[#allocation49_spill] sm:$0xff] }
 0x598   : > { %20801 = vmatmul.mubr.msk.f32.gmra.mrb[20].mxu0 %vm283_vm0, %v31512_v37  ;;  %v31524_v37 = vld [vmem:[#allocation50_spill] sm:$0xff] }
 0x599   : > { %20803 = vmatprep.mubr.msk.f32.mxu0 %vm283_vm0, %v31513_v10  ;;  %v31525_v10 = vld [vmem:[#allocation51_spill] sm:$0xff] }
 0x59c   : > { %20804 = vmatmul.mubr.msk.f32.gmra.mrb[22].mxu0 %vm283_vm0, %v31514_v47  ;;  %v31526_v47 = vld [vmem:[#allocation52_spill] sm:$0xff] }
 0x59d   : > { %20806 = vmatprep.mubr.msk.f32.mxu0 %vm283_vm0, %v31515_v2  ;;  %v31527_v2 = vld [vmem:[#allocation53_spill] sm:$0xff] }
 0x5a0   : > { %20807 = vmatmul.mubr.msk.f32.gmra.mrb[24].mxu0 %vm283_vm0, %v31516_v24  ;;  %v31528_v24 = vld [vmem:[#allocation54_spill] sm:$0xff] }
 0x5a1   : > { %20809 = vmatprep.mubr.msk.f32.mxu0 %vm283_vm0, %v31517_v58  ;;  %v31529_v58 = vld [vmem:[#allocation55_spill] sm:$0xff] }
 0x5a4   : > { %20810 = vmatmul.mubr.msk.f32.gmra.mrb[26].mxu0 %vm283_vm0, %v31518_v54  ;;  %v31530_v54 = vld [vmem:[#allocation56_spill] sm:$0xff] }
 0x5a5   : > { %20812 = vmatprep.mubr.msk.f32.mxu0 %vm283_vm0, %v31519_v5  ;;  %v31531_v5 = vld [vmem:[#allocation57_spill] sm:$0xff] }
 0x5a8   : > { %20813 = vmatmul.mubr.msk.f32.gmra.mrb[28].mxu0 %vm283_vm0, %v31520_v11  ;;  %v31532_v11 = vld [vmem:[#allocation58_spill] sm:$0xff] }
 0x5a9   : > { %20815 = vmatprep.mubr.msk.f32.mxu0 %vm283_vm0, %v27155_v62 }
 0x5ac   : > { %20816 = vmatmul.mubr.msk.f32.gmra.mrb[30].mxu0 %vm283_vm0, %v27159_v50 }
 0x5ad   : > { %20818 = vmatprep.mubr.msk.f32.mxu0 %vm283_vm0, %v31521_v57  ;;  %v31533_v57 = vld [vmem:[#allocation59_spill] sm:$0xff] }
 0x5b0   : > { %20819 = vmatmul.mubr.msk.f32.gmra.mrb[32].mxu0 %vm283_vm0, %v31522_v15  ;;  %v31534_v15 = vld [vmem:[#allocation60_spill] sm:$0xff] }
 0x5b1   : > { %20821 = vmatprep.mubr.msk.f32.mxu0 %vm283_vm0, %v31523_v28  ;;  %v27223_v28 = vld [vmem:[#allocation2 + $0x332] sm:$0xff] }
 0x5b4   : > { %20822 = vmatmul.mubr.msk.f32.gmra.mrb[34].mxu0 %vm283_vm0, %v31524_v37  ;;  %v27227_v37 = vld [vmem:[#allocation2 + $0x33a] sm:$0xff] }
 0x5b5   : > { %20824 = vmatprep.mubr.msk.f32.mxu0 %vm283_vm0, %v31525_v10  ;;  %v8423_v10 = vld [vmem:[%s31082_s1 + $0xf0] sm:$0xff] }
 0x5b8   : > { %20825 = vmatmul.mubr.msk.f32.gmra.mrb[36].mxu0 %vm283_vm0, %v31526_v47  ;;  %v8424_v47 = vld [vmem:[%s31082_s1 + $0xf8] sm:$0xff] }
 0x5b9   : > { %20827 = vmatprep.mubr.msk.f32.mxu0 %vm283_vm0, %v31527_v2  ;;  %v7648_v2 = vld [vmem:[#allocation2 + $0x30] sm:$0xff] }
 0x5bc   : > { %20828 = vmatmul.mubr.msk.f32.gmra.mrb[38].mxu0 %vm283_vm0, %v31528_v24  ;;  %v22174_v24 = vpack.c.bf16 %v8424_v47, %v8423_v10  ;;  %v7661_v10 = vld [vmem:[#allocation2 + $0xc8] sm:$0xff]  ;;  %v7662_v47 = vld [vmem:[#allocation2 + $0xd8] sm:$0xff] }
 0x5bd   : > { %20830 = vmatprep.mubr.msk.f32.mxu0 %vm283_vm0, %v31529_v58  ;;  %v7649_v58 = vld [vmem:[#allocation2 + $0x38] sm:$0xff] }
 0x5c0   : > { %20831 = vmatmul.mubr.msk.f32.gmra.mrb[40].mxu0 %vm283_vm0, %v31530_v54  ;;  %v9130_v54 = vld [vmem:[%s31082_s1 + $0x100] sm:$0xff] }
 0x5c1   : > { %20833 = vmatprep.mubr.msk.f32.mxu0 %vm283_vm0, %v31531_v5  ;;  %v9131_v5 = vld [vmem:[%s31082_s1 + $0x108] sm:$0xff] }
 0x5c4   : > { %20834 = vmatmul.mubr.msk.f32.gmra.mrb[42].mxu0 %vm283_vm0, %v31532_v11  ;;  %v7650_v11 = vld [vmem:[#allocation2 + $0x48] sm:$0xff] }
 0x5c5   : > { %20836 = vmatprep.mubr.msk.f32.mxu0 %vm283_vm0, %v26581_v18  ;;  %v31535_v18 = vld [vmem:[#allocation61_spill] sm:$0xff] }
 0x5c8   : > { %20837 = vmatmul.mubr.msk.f32.gmra.mrb[44].mxu0 %vm283_vm0, %v31533_v57  ;;  %v27247_v57 = vpack.c.bf16 %v9131_v5, %v9130_v54  ;;  %v7666_v54 = vld [vmem:[#allocation2 + $0x108] sm:$0xff]  ;;  %v7667_v5 = vld [vmem:[#allocation2 + $0x110] sm:$0xff] }
 0x5c9   : > { %20839 = vmatprep.mubr.msk.f32.mxu0 %vm283_vm0, %v26593_v63  ;;  %v31536_v63 = vld [vmem:[#allocation62_spill] sm:$0xff] }
 0x5cc   : > { %20840 = vmatmul.mubr.msk.f32.gmra.mrb[46].mxu0 %vm283_vm0, %v31534_v15  ;;  %v7651_v15 = vld [vmem:[#allocation2 + $0x50] sm:$0xff] }
 0x5cd   : > { %20842 = vmatprep.mubr.msk.f32.mxu0 %vm283_vm0, %v26605_v25  ;;  %v31537_v25 = vld [vmem:[#allocation63_spill] sm:$0xff] }
 0x5d0   : > { %20843 = vmatmul.mubr.msk.f32.gmra.mrb[48].mxu0 %vm283_vm0, %v26612_v3  ;;  %v31538_v3 = vld [vmem:[#allocation64_spill] sm:$0xff] }
 0x5d1   : > { %20845 = vmatprep.mubr.msk.f32.mxu0 %vm283_vm0, %v26616_v9  ;;  %v31539_v9 = vld [vmem:[#allocation65_spill] sm:$0xff] }
 0x5d4   : > { %20846 = vmatmul.mubr.msk.f32.gmra.mrb[50].mxu0 %vm283_vm0, %v26623_v43  ;;  %v31540_v43 = vld [vmem:[#allocation66_spill] sm:$0xff] }
 0x5d5   : > { %20848 = vmatprep.mubr.msk.f32.mxu0 %vm283_vm0, %v26627_v13  ;;  %v31541_v13 = vld [vmem:[#allocation67_spill] sm:$0xff] }
 0x5d8   : > { %20849 = vmatmul.mubr.msk.f32.gmra.mrb[52].mxu0 %vm283_vm0, %v26631_v12  ;;  %v31542_v12 = vld [vmem:[#allocation68_spill] sm:$0xff] }
 0x5d9   : > { %20851 = vmatprep.mubr.msk.f32.mxu0 %vm283_vm0, %v31535_v18  ;;  %v7652_v18 = vld [vmem:[#allocation2 + $0x60] sm:$0xff] }
 0x5dc   : > { %20852 = vmatmul.mubr.msk.f32.gmra.mrb[54].mxu0 %vm283_vm0, %v31536_v63  ;;  %v7653_v63 = vld [vmem:[#allocation2 + $0x68] sm:$0xff] }
 0x5dd   : > { %20854 = vmatprep.mubr.msk.f32.mxu0 %vm283_vm0, %v31537_v25  ;;  %v7654_v25 = vld [vmem:[#allocation2 + $0x78] sm:$0xff] }
 0x5e0   : > { %20855 = vmatmul.mubr.msk.f32.gmra.mrb[56].mxu0 %vm283_vm0, %v31538_v3  ;;  %v7656_v3 = vld [vmem:[#allocation2 + $0x90] sm:$0xff] }
 0x5e1   : > { %20857 = vmatprep.mubr.msk.f32.mxu0 %vm283_vm0, %v31539_v9  ;;  %v7657_v9 = vld [vmem:[#allocation2 + $0x98] sm:$0xff] }
 0x5e4   : > { %20858 = vmatmul.mubr.msk.f32.gmra.mrb[58].mxu0 %vm283_vm0, %v31540_v43  ;;  %v7658_v43 = vld [vmem:[#allocation2 + $0xa8] sm:$0xff] }
 0x5e5   : > { %20860 = vmatprep.mubr.msk.f32.mxu0 %vm283_vm0, %v31541_v13  ;;  %v7659_v13 = vld [vmem:[#allocation2 + $0xb0] sm:$0xff] }
 0x5e8   : > { %20861 = vmatmul.mubr.msk.f32.gmra.mrb[60].mxu0 %vm283_vm0, %v31542_v12  ;;  %v7660_v12 = vld [vmem:[#allocation2 + $0xc0] sm:$0xff] }
 0x5e9   : > { %20863 = vmatprep.mubr.msk.f32.mxu0 %vm283_vm0, %v27223_v28 }
 0x5ec   : > { %20864 = vmatmul.mubr.msk.f32.gmra.mrb[62].mxu0 %vm283_vm0, %v27227_v37 }
 0x5ed   : > { %20874 = vmatprep.mubr.msk.f32.mxu0 %vm283_vm0, %v7648_v2  ;;  %v7663_v2 = vld [vmem:[#allocation2 + $0xe0] sm:$0xff] }
 0x5f0   : > { %20875 = vmatmul.mubr.msk.f32.vlgmr.msra.gmra.mrb[0].mxu0 %vm283_vm0, %v7649_v58  ;;  %v7665_v58 = vld [vmem:[#allocation2 + $0xf8] sm:$0xff] }
 0x5f1   : > { %22173 = vmatpush3.bf16.msra.mxu0 %v27098_v41  ;;  %20877 = vmatprep.mubr.msk.f32.mxu0 %vm283_vm0, %v7650_v11  ;;  %v7655_v41 = vld [vmem:[#allocation2 + $0x80] sm:$0xff] }
 0x5f2   : > { %22175 = vmatprep.subr.bf16.mxu0 %v22174_v24  ;;  %v7668_v11 = vld [vmem:[#allocation2 + $0x120] sm:$0xff] }
 0x5f4   : > { %20878 = vmatmul.mubr.msk.f32.gmra.mrb[2].mxu0 %vm283_vm0, %v7651_v15  ;;  %v7669_v15 = vld [vmem:[#allocation2 + $0x128] sm:$0xff] }
 0x5f5   : > { %20880 = vmatprep.mubr.msk.f32.mxu0 %vm283_vm0, %v7652_v18  ;;  %22177 = vmatpush3.bf16.msra.mxu0 %v22174_v24  ;;  %v7664_v24 = vld [vmem:[#allocation2 + $0xf0] sm:$0xff]  ;;  %v7670_v18 = vld [vmem:[#allocation2 + $0x138] sm:$0xff] }
 0x5f6   : > { %22179 = vmatprep.subr.bf16.mxu0 %v27247_v57 }
 0x5f8   : > { %20881 = vmatmul.mubr.msk.f32.gmra.mrb[4].mxu0 %vm283_vm0, %v7653_v63  ;;  %v7671_v63 = vld [vmem:[#allocation2 + $0x140] sm:$0xff] }
 0x5f9   : > { %20883 = vmatprep.mubr.msk.f32.mxu0 %vm283_vm0, %v7654_v25  ;;  %v7672_v25 = vld [vmem:[#allocation2 + $0x150] sm:$0xff] }
 0x5fc   : > { %20884 = vmatmul.mubr.msk.f32.gmra.mrb[6].mxu0 %vm283_vm0, %v7655_v41  ;;  %v7673_v41 = vld [vmem:[#allocation2 + $0x158] sm:$0xff] }
 0x5fd   : > { %20886 = vmatprep.mubr.msk.f32.mxu0 %vm283_vm0, %v7656_v3  ;;  %v7674_v3 = vld [vmem:[#allocation2 + $0x168] sm:$0xff] }
 0x600   : > { %20887 = vmatmul.mubr.msk.f32.gmra.mrb[8].mxu0 %vm283_vm0, %v7657_v9  ;;  %v7675_v9 = vld [vmem:[#allocation2 + $0x170] sm:$0xff] }
 0x601   : > { %20889 = vmatprep.mubr.msk.f32.mxu0 %vm283_vm0, %v7658_v43  ;;  %v7678_v43 = vld [vmem:[#allocation2 + $0x198] sm:$0xff] }
 0x604   : > { %20890 = vmatmul.mubr.msk.f32.gmra.mrb[10].mxu0 %vm283_vm0, %v7659_v13  ;;  %v7679_v13 = vld [vmem:[#allocation2 + $0x1a0] sm:$0xff] }
 0x605   : > { %20892 = vmatprep.mubr.msk.f32.mxu0 %vm283_vm0, %v7660_v12  ;;  %v7680_v12 = vld [vmem:[#allocation2 + $0x1e0] sm:$0xff] }
 0x608   : > { %20893 = vmatmul.mubr.msk.f32.gmra.mrb[12].mxu0 %vm283_vm0, %v7661_v10  ;;  %v7681_v10 = vld [vmem:[#allocation2 + $0x1e8] sm:$0xff] }
 0x609   : > { %20895 = vmatprep.mubr.msk.f32.mxu0 %vm283_vm0, %v7662_v47  ;;  %v7682_v47 = vld [vmem:[#allocation2 + $0x1f8] sm:$0xff] }
 0x60c   : > { %20896 = vmatmul.mubr.msk.f32.gmra.mrb[14].mxu0 %vm283_vm0, %v7663_v2  ;;  %v7683_v2 = vld [vmem:[#allocation2 + $0x200] sm:$0xff] }
 0x60d   : > { %20898 = vmatprep.mubr.msk.f32.mxu0 %vm283_vm0, %v7664_v24  ;;  %v7686_v24 = vld [vmem:[#allocation2 + $0x228] sm:$0xff] }
 0x610   : > { %20899 = vmatmul.mubr.msk.f32.gmra.mrb[16].mxu0 %vm283_vm0, %v7665_v58  ;;  %v7687_v58 = vld [vmem:[#allocation2 + $0x230] sm:$0xff] }
 0x611   : > { %20901 = vmatprep.mubr.msk.f32.mxu0 %vm283_vm0, %v7666_v54  ;;  %v7688_v54 = vld [vmem:[#allocation2 + $0x240] sm:$0xff] }
 0x614   : > { %20902 = vmatmul.mubr.msk.f32.gmra.mrb[18].mxu0 %vm283_vm0, %v7667_v5  ;;  %v7689_v5 = vld [vmem:[#allocation2 + $0x248] sm:$0xff] }
 0x615   : > { %20904 = vmatprep.mubr.msk.f32.mxu0 %vm283_vm0, %v7668_v11  ;;  %v7690_v11 = vld [vmem:[#allocation2 + $0x258] sm:$0xff] }
 0x618   : > { %20905 = vmatmul.mubr.msk.f32.gmra.mrb[20].mxu0 %vm283_vm0, %v7669_v15  ;;  %v7691_v15 = vld [vmem:[#allocation2 + $0x260] sm:$0xff] }
 0x619   : > { %20907 = vmatprep.mubr.msk.f32.mxu0 %vm283_vm0, %v7670_v18  ;;  %v7692_v18 = vld [vmem:[#allocation2 + $0x270] sm:$0xff] }
 0x61c   : > { %20908 = vmatmul.mubr.msk.f32.gmra.mrb[22].mxu0 %vm283_vm0, %v7671_v63  ;;  %v7693_v63 = vld [vmem:[#allocation2 + $0x278] sm:$0xff] }
 0x61d   : > { %20910 = vmatprep.mubr.msk.f32.mxu0 %vm283_vm0, %v7672_v25  ;;  %v7694_v25 = vld [vmem:[#allocation2 + $0x288] sm:$0xff] }
 0x620   : > { %20911 = vmatmul.mubr.msk.f32.gmra.mrb[24].mxu0 %vm283_vm0, %v7673_v41  ;;  %v7695_v41 = vld [vmem:[#allocation2 + $0x290] sm:$0xff] }
 0x621   : > { %20913 = vmatprep.mubr.msk.f32.mxu0 %vm283_vm0, %v7674_v3  ;;  %v7696_v3 = vld [vmem:[#allocation2 + $0x2a0] sm:$0xff] }
 0x624   : > { %20914 = vmatmul.mubr.msk.f32.gmra.mrb[26].mxu0 %vm283_vm0, %v7675_v9  ;;  %v7697_v9 = vld [vmem:[#allocation2 + $0x2a8] sm:$0xff] }
 0x625   : > { %20916 = vmatprep.mubr.msk.f32.mxu0 %vm283_vm0, %v26743_v0  ;;  %v7684_v0 = vld [vmem:[#allocation2 + $0x210] sm:$0xff] }
 0x628   : > { %20917 = vmatmul.mubr.msk.f32.gmra.mrb[28].mxu0 %vm283_vm0, %v26747_v16  ;;  %v7685_v16 = vld [vmem:[#allocation2 + $0x218] sm:$0xff] }
 0x629   : > { %20919 = vmatprep.mubr.msk.f32.mxu0 %vm283_vm0, %v7678_v43  ;;  %v7698_v43 = vld [vmem:[#allocation2 + $0x2b8] sm:$0xff] }
 0x62c   : > { %20920 = vmatmul.mubr.msk.f32.gmra.mrb[30].mxu0 %vm283_vm0, %v7679_v13  ;;  %v7699_v13 = vld [vmem:[#allocation2 + $0x2c0] sm:$0xff] }
 0x62d   : > { %20922 = vmatprep.mubr.msk.f32.mxu0 %vm283_vm0, %v7680_v12  ;;  %v7700_v12 = vld [vmem:[#allocation2 + $0x2d0] sm:$0xff] }
 0x630   : > { %20923 = vmatmul.mubr.msk.f32.gmra.mrb[32].mxu0 %vm283_vm0, %v7681_v10  ;;  %v7701_v10 = vld [vmem:[#allocation2 + $0x2d8] sm:$0xff] }
 0x631   : > { %20925 = vmatprep.mubr.msk.f32.mxu0 %vm283_vm0, %v7682_v47  ;;  %v7702_v47 = vld [vmem:[#allocation2 + $0x2e8] sm:$0xff] }
 0x634   : > { %20926 = vmatmul.mubr.msk.f32.gmra.mrb[34].mxu0 %vm283_vm0, %v7683_v2  ;;  %v7703_v2 = vld [vmem:[#allocation2 + $0x2f0] sm:$0xff] }
 0x635   : > { %20928 = vmatprep.mubr.msk.f32.mxu0 %vm283_vm0, %v7684_v0  ;;  %v7704_v0 = vld [vmem:[#allocation2 + $0x300] sm:$0xff] }
 0x638   : > { %20929 = vmatmul.mubr.msk.f32.gmra.mrb[36].mxu0 %vm283_vm0, %v7685_v16  ;;  %v7705_v16 = vld [vmem:[#allocation2 + $0x308] sm:$0xff] }
 0x639   : > { %20931 = vmatprep.mubr.msk.f32.mxu0 %vm283_vm0, %v7686_v24  ;;  %v7706_v24 = vld [vmem:[#allocation2 + $0x318] sm:$0xff] }
 0x63c   : > { %20932 = vmatmul.mubr.msk.f32.gmra.mrb[38].mxu0 %vm283_vm0, %v7687_v58  ;;  %v7707_v58 = vld [vmem:[#allocation2 + $0x320] sm:$0xff] }
 0x63d   : > { %20934 = vmatprep.mubr.msk.f32.mxu0 %vm283_vm0, %v7688_v54  ;;  %v7710_v54 = vld [vmem:[#allocation2 + $0x348] sm:$0xff] }
 0x640   : > { %20935 = vmatmul.mubr.msk.f32.gmra.mrb[40].mxu0 %vm283_vm0, %v7689_v5  ;;  %v7711_v5 = vld [vmem:[#allocation2 + $0x350] sm:$0xff] }
 0x641   : > { %20937 = vmatprep.mubr.msk.f32.mxu0 %vm283_vm0, %v7690_v11  ;;  %v9132_v11 = vld [vmem:[%s31082_s1 + $0x110] sm:$0xff] }
 0x644   : > { %20938 = vmatmul.mubr.msk.f32.gmra.mrb[42].mxu0 %vm283_vm0, %v7691_v15  ;;  %v9133_v15 = vld [vmem:[%s31082_s1 + $0x118] sm:$0xff] }
 0x645   : > { %20940 = vmatprep.mubr.msk.f32.mxu0 %vm283_vm0, %v7692_v18  ;;  %v9078_v18 = vld [vmem:[#allocation2 + $0xc2] sm:$0xff] }
 0x648   : > { %20941 = vmatmul.mubr.msk.f32.gmra.mrb[44].mxu0 %vm283_vm0, %v7693_v63  ;;  %v9079_v63 = vld [vmem:[#allocation2 + $0xca] sm:$0xff] }
 0x649   : > { %20943 = vmatprep.mubr.msk.f32.mxu0 %vm283_vm0, %v7694_v25  ;;  %v9080_v25 = vld [vmem:[#allocation2 + $0xda] sm:$0xff] }
 0x64c   : > { %20944 = vmatmul.mubr.msk.f32.gmra.mrb[46].mxu0 %vm283_vm0, %v7695_v41  ;;  %v9081_v41 = vld [vmem:[#allocation2 + $0xe2] sm:$0xff] }
 0x64d   : > { %20946 = vmatprep.mubr.msk.f32.mxu0 %vm283_vm0, %v7696_v3  ;;  %v9082_v3 = vld [vmem:[#allocation2 + $0xf2] sm:$0xff] }
 0x650   : > { %20947 = vmatmul.mubr.msk.f32.gmra.mrb[48].mxu0 %vm283_vm0, %v7697_v9  ;;  %v9083_v9 = vld [vmem:[#allocation2 + $0xfa] sm:$0xff] }
 0x651   : > { %20949 = vmatprep.mubr.msk.f32.mxu0 %vm283_vm0, %v7698_v43  ;;  %v9084_v43 = vld [vmem:[#allocation2 + $0x10a] sm:$0xff] }
 0x654   : > { %20950 = vmatmul.mubr.msk.f32.gmra.mrb[50].mxu0 %vm283_vm0, %v7699_v13  ;;  %v9085_v13 = vld [vmem:[#allocation2 + $0x112] sm:$0xff] }
 0x655   : > { %20952 = vmatprep.mubr.msk.f32.mxu0 %vm283_vm0, %v7700_v12  ;;  %v9086_v12 = vld [vmem:[#allocation2 + $0x122] sm:$0xff] }
 0x658   : > { %20953 = vmatmul.mubr.msk.f32.gmra.mrb[52].mxu0 %vm283_vm0, %v7701_v10  ;;  %v9087_v10 = vld [vmem:[#allocation2 + $0x12a] sm:$0xff] }
 0x659   : > { %20955 = vmatprep.mubr.msk.f32.mxu0 %vm283_vm0, %v7702_v47  ;;  %v9088_v47 = vld [vmem:[#allocation2 + $0x13a] sm:$0xff] }
 0x65c   : > { %20956 = vmatmul.mubr.msk.f32.gmra.mrb[54].mxu0 %vm283_vm0, %v7703_v2  ;;  %v9089_v2 = vld [vmem:[#allocation2 + $0x142] sm:$0xff] }
 0x65d   : > { %20958 = vmatprep.mubr.msk.f32.mxu0 %vm283_vm0, %v7704_v0  ;;  %v9090_v0 = vld [vmem:[#allocation2 + $0x152] sm:$0xff] }
 0x660   : > { %20959 = vmatmul.mubr.msk.f32.gmra.mrb[56].mxu0 %vm283_vm0, %v7705_v16  ;;  %v9091_v16 = vld [vmem:[#allocation2 + $0x15a] sm:$0xff] }
 0x661   : > { %20961 = vmatprep.mubr.msk.f32.mxu0 %vm283_vm0, %v7706_v24  ;;  %v9092_v24 = vld [vmem:[#allocation2 + $0x16a] sm:$0xff] }
 0x664   : > { %20962 = vmatmul.mubr.msk.f32.gmra.mrb[58].mxu0 %vm283_vm0, %v7707_v58  ;;  %v9093_v58 = vld [vmem:[#allocation2 + $0x172] sm:$0xff] }
 0x665   : > { %20964 = vmatprep.mubr.msk.f32.mxu0 %vm283_vm0, %v26811_v34  ;;  %v22182_v34 = vpack.c.bf16 %v9133_v15, %v9132_v11  ;;  %v9098_v11 = vld [vmem:[#allocation2 + $0x1e2] sm:$0xff]  ;;  %v9099_v15 = vld [vmem:[#allocation2 + $0x1ea] sm:$0xff] }
 0x668   : > { %20965 = vmatmul.mubr.msk.f32.gmra.mrb[60].mxu0 %vm283_vm0, %v26815_v46  ;;  %v8387_v46 = vld [vmem:[#allocation2 + $0x199] sm:$0xff] }
 0x669   : > { %20967 = vmatprep.mubr.msk.f32.mxu0 %vm283_vm0, %v7710_v54  ;;  %v9096_v54 = vld [vmem:[#allocation2 + $0x19a] sm:$0xff] }
 0x66c   : > { %20968 = vmatmul.mubr.msk.f32.gmra.mrb[62].mxu0 %vm283_vm0, %v7711_v5  ;;  %v9097_v5 = vld [vmem:[#allocation2 + $0x1a2] sm:$0xff] }
 0x66d   : > { %20978 = vmatprep.mubr.msk.f32.mxu0 %vm283_vm0, %v26833_v27  ;;  %v8388_v27 = vld [vmem:[#allocation2 + $0x1a1] sm:$0xff] }
 0x670   : > { %20979 = vmatmul.mubr.msk.f32.vlgmr.msra.gmra.mrb[0].mxu0 %vm283_vm0, %v26840_v7  ;;  %v31543_v7 = vld [vmem:[#allocation6_spill] sm:$0xff] }
 0x671   : > { %22181 = vmatpush3.bf16.msra.mxu0 %v27247_v57  ;;  %20981 = vmatprep.mubr.msk.f32.mxu0 %vm283_vm0, %v26844_v1  ;;  %v31544_v1 = vld [vmem:[#allocation7_spill] sm:$0xff]  ;;  %v9077_v57 = vld [vmem:[#allocation2 + $0xb2] sm:$0xff] }
 0x672   : > { %22183 = vmatprep.subr.bf16.mxu0 %v22182_v34 }
 0x674   : > { %20982 = vmatmul.mubr.msk.f32.gmra.mrb[2].mxu0 %vm283_vm0, %v26849_v36  ;;  %v31545_v36 = vld [vmem:[#allocation8_spill] sm:$0xff] }
 0x675   : > { %20984 = vmatprep.mubr.msk.f32.mxu0 %vm283_vm0, %v26853_v60  ;;  %22185 = vmatpush3.bf16.msra.mxu0 %v22182_v34  ;;  %v31546_v60 = vld [vmem:[#allocation9_spill] sm:$0xff] }
 0x676   : > { %v9100_v34 = vld [vmem:[#allocation2 + $0x1fa] sm:$0xff] }
 0x678   : > { %20985 = vmatmul.mubr.msk.f32.gmra.mrb[4].mxu0 %vm283_vm0, %v26857_v31  ;;  %v31547_v31 = vld [vmem:[#allocation10_spill] sm:$0xff] }
 0x679   : > { %20987 = vmatprep.mubr.msk.f32.mxu0 %vm283_vm0, %v26861_v26  ;;  %v31548_v26 = vld [vmem:[#allocation11_spill] sm:$0xff] }
 0x67c   : > { %20988 = vmatmul.mubr.msk.f32.gmra.mrb[6].mxu0 %vm283_vm0, %v26865_v23  ;;  %v31549_v23 = vld [vmem:[#allocation12_spill] sm:$0xff] }
 0x67d   : > { %20990 = vmatprep.mubr.msk.f32.mxu0 %vm283_vm0, %v26869_v32  ;;  %v31550_v32 = vld [vmem:[#allocation13_spill] sm:$0xff] }
 0x680   : > { %20991 = vmatmul.mubr.msk.f32.gmra.mrb[8].mxu0 %vm283_vm0, %v26873_v55  ;;  %v31551_v55 = vld [vmem:[#allocation14_spill] sm:$0xff] }
 0x681   : > { %20993 = vmatprep.mubr.msk.f32.mxu0 %vm283_vm0, %v26877_v19  ;;  %v31552_v19 = vld [vmem:[#allocation15_spill] sm:$0xff] }
 0x684   : > { %20994 = vmatmul.mubr.msk.f32.gmra.mrb[10].mxu0 %vm283_vm0, %v26881_v59  ;;  %v31553_v59 = vld [vmem:[#allocation16_spill] sm:$0xff] }
 0x685   : > { %20996 = vmatprep.mubr.msk.f32.mxu0 %vm283_vm0, %v26885_v38  ;;  %v31554_v38 = vld [vmem:[#allocation17_spill] sm:$0xff] }
 0x688   : > { %20997 = vmatmul.mubr.msk.f32.gmra.mrb[12].mxu0 %vm283_vm0, %v26889_v49  ;;  %v31555_v49 = vld [vmem:[#allocation18_spill] sm:$0xff] }
 0x689   : > { %20999 = vmatprep.mubr.msk.f32.mxu0 %vm283_vm0, %v26893_v61  ;;  %v31556_v61 = vld [vmem:[#allocation19_spill] sm:$0xff] }
 0x68c   : > { %21000 = vmatmul.mubr.msk.f32.gmra.mrb[14].mxu0 %vm283_vm0, %v26897_v56  ;;  %v31557_v56 = vld [vmem:[#allocation20_spill] sm:$0xff] }
 0x68d   : > { %21002 = vmatprep.mubr.msk.f32.mxu0 %vm283_vm0, %v26901_v17  ;;  %v31558_v17 = vld [vmem:[#allocation21_spill] sm:$0xff] }
 0x690   : > { %21003 = vmatmul.mubr.msk.f32.gmra.mrb[16].mxu0 %vm283_vm0, %v26905_v21  ;;  %v31559_v21 = vld [vmem:[#allocation69_spill] sm:$0xff] }
 0x691   : > { %21005 = vmatprep.mubr.msk.f32.mxu0 %vm283_vm0, %v26909_v30  ;;  %v31560_v30 = vld [vmem:[#allocation70_spill] sm:$0xff] }
 0x694   : > { %21006 = vmatmul.mubr.msk.f32.gmra.mrb[18].mxu0 %vm283_vm0, %v26913_v6  ;;  %v31561_v6 = vld [vmem:[#allocation71_spill] sm:$0xff] }
 0x695   : > { %21008 = vmatprep.mubr.msk.f32.mxu0 %vm283_vm0, %v26917_v48  ;;  %v31562_v48 = vld [vmem:[#allocation72_spill] sm:$0xff] }
 0x698   : > { %21009 = vmatmul.mubr.msk.f32.gmra.mrb[20].mxu0 %vm283_vm0, %v26921_v29  ;;  %v31563_v29 = vld [vmem:[#allocation73_spill] sm:$0xff] }
 0x699   : > { %21011 = vmatprep.mubr.msk.f32.mxu0 %vm283_vm0, %v26925_v44  ;;  %v31564_v44 = vld [vmem:[#allocation74_spill] sm:$0xff] }
 0x69c   : > { %21012 = vmatmul.mubr.msk.f32.gmra.mrb[22].mxu0 %vm283_vm0, %v26929_v42  ;;  %v8419_v42 = vld [vmem:[#allocation2 + $0x349] sm:$0xff] }
 0x69d   : > { %21014 = vmatprep.mubr.msk.f32.mxu0 %vm283_vm0, %v26933_v33  ;;  %v31565_v33 = vld [vmem:[#allocation75_spill] sm:$0xff] }
 0x6a0   : > { %21015 = vmatmul.mubr.msk.f32.gmra.mrb[24].mxu0 %vm283_vm0, %v26937_v22  ;;  %v8420_v22 = vld [vmem:[#allocation2 + $0x351] sm:$0xff] }
 0x6a1   : > { %21017 = vmatprep.mubr.msk.f32.mxu0 %vm283_vm0, %v26941_v53  ;;  %v9066_v53 = vld [vmem:[#allocation2 + $0x32] sm:$0xff] }
 0x6a4   : > { %21018 = vmatmul.mubr.msk.f32.gmra.mrb[26].mxu0 %vm283_vm0, %v26945_v14  ;;  %v9067_v14 = vld [vmem:[#allocation2 + $0x3a] sm:$0xff] }
 0x6a5   : > { %21020 = vmatprep.mubr.msk.f32.mxu0 %vm283_vm0, %v26949_v51  ;;  %v9068_v51 = vld [vmem:[#allocation2 + $0x4a] sm:$0xff] }
 0x6a8   : > { %21021 = vmatmul.mubr.msk.f32.gmra.mrb[28].mxu0 %vm283_vm0, %v26953_v45  ;;  %v9069_v45 = vld [vmem:[#allocation2 + $0x52] sm:$0xff] }
 0x6a9   : > { %21023 = vmatprep.mubr.msk.f32.mxu0 %vm283_vm0, %v8387_v46  ;;  %v9101_v46 = vld [vmem:[#allocation2 + $0x202] sm:$0xff] }
 0x6ac   : > { %21024 = vmatmul.mubr.msk.f32.gmra.mrb[30].mxu0 %vm283_vm0, %v8388_v27  ;;  %v9104_v27 = vld [vmem:[#allocation2 + $0x22a] sm:$0xff] }
 0x6ad   : > { %21026 = vmatprep.mubr.msk.f32.mxu0 %vm283_vm0, %v26959_v52  ;;  %v9070_v52 = vld [vmem:[#allocation2 + $0x62] sm:$0xff] }
 0x6b0   : > { %21027 = vmatmul.mubr.msk.f32.gmra.mrb[32].mxu0 %vm283_vm0, %v26963_v20  ;;  %v9071_v20 = vld [vmem:[#allocation2 + $0x6a] sm:$0xff] }
 0x6b1   : > { %21029 = vmatprep.mubr.msk.f32.mxu0 %vm283_vm0, %v26967_v40  ;;  %v9072_v40 = vld [vmem:[#allocation2 + $0x7a] sm:$0xff] }
 0x6b4   : > { %21030 = vmatmul.mubr.msk.f32.gmra.mrb[34].mxu0 %vm283_vm0, %v26971_v4  ;;  %v9073_v4 = vld [vmem:[#allocation2 + $0x82] sm:$0xff] }
 0x6b5   : > { %21032 = vmatprep.mubr.msk.f32.mxu0 %vm283_vm0, %v26975_v8  ;;  %v9074_v8 = vld [vmem:[#allocation2 + $0x92] sm:$0xff] }
 0x6b8   : > { %21033 = vmatmul.mubr.msk.f32.gmra.mrb[36].mxu0 %vm283_vm0, %v26979_v35  ;;  %v9075_v35 = vld [vmem:[#allocation2 + $0x9a] sm:$0xff] }
 0x6b9   : > { %21035 = vmatprep.mubr.msk.f32.mxu0 %vm283_vm0, %v26983_v39  ;;  %v9076_v39 = vld [vmem:[#allocation2 + $0xaa] sm:$0xff] }
 0x6bc   : > { %21036 = vmatmul.mubr.msk.f32.gmra.mrb[38].mxu0 %vm283_vm0, %v31543_v7  ;;  %v9105_v7 = vld [vmem:[#allocation2 + $0x232] sm:$0xff] }
 0x6bd   : > { %21038 = vmatprep.mubr.msk.f32.mxu0 %vm283_vm0, %v31544_v1  ;;  %v9106_v1 = vld [vmem:[#allocation2 + $0x242] sm:$0xff] }
 0x6c0   : > { %21039 = vmatmul.mubr.msk.f32.gmra.mrb[40].mxu0 %vm283_vm0, %v31545_v36  ;;  %v9107_v36 = vld [vmem:[#allocation2 + $0x24a] sm:$0xff] }
 0x6c1   : > { %21041 = vmatprep.mubr.msk.f32.mxu0 %vm283_vm0, %v31546_v60  ;;  %v9108_v60 = vld [vmem:[#allocation2 + $0x25a] sm:$0xff] }
 0x6c4   : > { %21042 = vmatmul.mubr.msk.f32.gmra.mrb[42].mxu0 %vm283_vm0, %v31547_v31  ;;  %v9109_v31 = vld [vmem:[#allocation2 + $0x262] sm:$0xff] }
 0x6c5   : > { %21044 = vmatprep.mubr.msk.f32.mxu0 %vm283_vm0, %v31548_v26  ;;  %v9110_v26 = vld [vmem:[#allocation2 + $0x272] sm:$0xff] }
 0x6c8   : > { %21045 = vmatmul.mubr.msk.f32.gmra.mrb[44].mxu0 %vm283_vm0, %v31549_v23  ;;  %v9111_v23 = vld [vmem:[#allocation2 + $0x27a] sm:$0xff] }
 0x6c9   : > { %21047 = vmatprep.mubr.msk.f32.mxu0 %vm283_vm0, %v31550_v32  ;;  %v9112_v32 = vld [vmem:[#allocation2 + $0x28a] sm:$0xff] }
 0x6cc   : > { %21048 = vmatmul.mubr.msk.f32.gmra.mrb[46].mxu0 %vm283_vm0, %v31551_v55  ;;  %v9113_v55 = vld [vmem:[#allocation2 + $0x292] sm:$0xff] }
 0x6cd   : > { %21050 = vmatprep.mubr.msk.f32.mxu0 %vm283_vm0, %v31552_v19  ;;  %v9114_v19 = vld [vmem:[#allocation2 + $0x2a2] sm:$0xff] }
 0x6d0   : > { %21051 = vmatmul.mubr.msk.f32.gmra.mrb[48].mxu0 %vm283_vm0, %v31553_v59  ;;  %v9115_v59 = vld [vmem:[#allocation2 + $0x2aa] sm:$0xff] }
 0x6d1   : > { %21053 = vmatprep.mubr.msk.f32.mxu0 %vm283_vm0, %v31554_v38  ;;  %v9116_v38 = vld [vmem:[#allocation2 + $0x2ba] sm:$0xff] }
 0x6d4   : > { %21054 = vmatmul.mubr.msk.f32.gmra.mrb[50].mxu0 %vm283_vm0, %v31555_v49  ;;  %v9117_v49 = vld [vmem:[#allocation2 + $0x2c2] sm:$0xff] }
 0x6d5   : > { %21056 = vmatprep.mubr.msk.f32.mxu0 %vm283_vm0, %v31556_v61  ;;  %v9118_v61 = vld [vmem:[#allocation2 + $0x2d2] sm:$0xff] }
 0x6d8   : > { %21057 = vmatmul.mubr.msk.f32.gmra.mrb[52].mxu0 %vm283_vm0, %v31557_v56  ;;  %v9119_v56 = vld [vmem:[#allocation2 + $0x2da] sm:$0xff] }
 0x6d9   : > { %21059 = vmatprep.mubr.msk.f32.mxu0 %vm283_vm0, %v31558_v17  ;;  %v9120_v17 = vld [vmem:[#allocation2 + $0x2ea] sm:$0xff] }
 0x6dc   : > { %21060 = vmatmul.mubr.msk.f32.gmra.mrb[54].mxu0 %vm283_vm0, %v31559_v21  ;;  %v9121_v21 = vld [vmem:[#allocation2 + $0x2f2] sm:$0xff] }
 0x6dd   : > { %21062 = vmatprep.mubr.msk.f32.mxu0 %vm283_vm0, %v31560_v30  ;;  %v9122_v30 = vld [vmem:[#allocation2 + $0x302] sm:$0xff] }
 0x6e0   : > { %21063 = vmatmul.mubr.msk.f32.gmra.mrb[56].mxu0 %vm283_vm0, %v31561_v6  ;;  %v9123_v6 = vld [vmem:[#allocation2 + $0x30a] sm:$0xff] }
 0x6e1   : > { %21065 = vmatprep.mubr.msk.f32.mxu0 %vm283_vm0, %v31562_v48  ;;  %v9124_v48 = vld [vmem:[#allocation2 + $0x31a] sm:$0xff] }
 0x6e4   : > { %21066 = vmatmul.mubr.msk.f32.gmra.mrb[58].mxu0 %vm283_vm0, %v31563_v29  ;;  %v9125_v29 = vld [vmem:[#allocation2 + $0x322] sm:$0xff] }
 0x6e5   : > { %21068 = vmatprep.mubr.msk.f32.mxu0 %vm283_vm0, %v31564_v44  ;;  %v9128_v44 = vld [vmem:[#allocation2 + $0x34a] sm:$0xff] }
 0x6e8   : > { %21069 = vmatmul.mubr.msk.f32.gmra.mrb[60].mxu0 %vm283_vm0, %v31565_v33  ;;  %v27517_v33 = vld [vmem:[%s31083_s2] ss:$0 sm:$0xff] }
 0x6e9   : > { %21071 = vmatprep.mubr.msk.f32.mxu0 %vm283_vm0, %v8419_v42  ;;  %v9129_v42 = vld [vmem:[#allocation2 + $0x352] sm:$0xff] }
 0x6ec   : > { %21072 = vmatmul.mubr.msk.f32.gmra.mrb[62].mxu0 %vm283_vm0, %v8420_v22 }
 0x6ed   : > { %21082 = vmatprep.mubr.msk.f32.mxu0 %vm283_vm0, %v9066_v53 }
 0x6f0   : > { %21083 = vmatmul.mubr.msk.f32.vlgmr.msra.gmra.mrb[0].mxu0 %vm283_vm0, %v9067_v14 }
 0x6f1   : > { %21085 = vmatprep.mubr.msk.f32.mxu0 %vm283_vm0, %v9068_v51 }
 0x6f4   : > { %21086 = vmatmul.mubr.msk.f32.gmra.mrb[2].mxu0 %vm283_vm0, %v9069_v45 }
 0x6f5   : > { %21088 = vmatprep.mubr.msk.f32.mxu0 %vm283_vm0, %v9070_v52 }
 0x6f8   : > { %21089 = vmatmul.mubr.msk.f32.gmra.mrb[4].mxu0 %vm283_vm0, %v9071_v20 }
 0x6f9   : > { %21091 = vmatprep.mubr.msk.f32.mxu0 %vm283_vm0, %v9072_v40 }
 0x6fc   : > { %21092 = vmatmul.mubr.msk.f32.gmra.mrb[6].mxu0 %vm283_vm0, %v9073_v4 }
 0x6fd   : > { %21094 = vmatprep.mubr.msk.f32.mxu0 %vm283_vm0, %v9074_v8 }
 0x700   : > { %21095 = vmatmul.mubr.msk.f32.gmra.mrb[8].mxu0 %vm283_vm0, %v9075_v35 }
 0x701   : > { %21097 = vmatprep.mubr.msk.f32.mxu0 %vm283_vm0, %v9076_v39 }
 0x704   : > { %21098 = vmatmul.mubr.msk.f32.gmra.mrb[10].mxu0 %vm283_vm0, %v9077_v57 }
 0x705   : > { %21100 = vmatprep.mubr.msk.f32.mxu0 %vm283_vm0, %v9078_v18 }
 0x708   : > { %21101 = vmatmul.mubr.msk.f32.gmra.mrb[12].mxu0 %vm283_vm0, %v9079_v63 }
 0x709   : > { %21103 = vmatprep.mubr.msk.f32.mxu0 %vm283_vm0, %v9080_v25 }
 0x70c   : > { %21104 = vmatmul.mubr.msk.f32.gmra.mrb[14].mxu0 %vm283_vm0, %v9081_v41 }
 0x70d   : > { %21106 = vmatprep.mubr.msk.f32.mxu0 %vm283_vm0, %v9082_v3 }
 0x710   : > { %21107 = vmatmul.mubr.msk.f32.gmra.mrb[16].mxu0 %vm283_vm0, %v9083_v9 }
 0x711   : > { %21109 = vmatprep.mubr.msk.f32.mxu0 %vm283_vm0, %v9084_v43 }
 0x714   : > { %21110 = vmatmul.mubr.msk.f32.gmra.mrb[18].mxu0 %vm283_vm0, %v9085_v13 }
 0x715   : > { %21112 = vmatprep.mubr.msk.f32.mxu0 %vm283_vm0, %v9086_v12 }
 0x718   : > { %21113 = vmatmul.mubr.msk.f32.gmra.mrb[20].mxu0 %vm283_vm0, %v9087_v10 }
 0x719   : > { %21115 = vmatprep.mubr.msk.f32.mxu0 %vm283_vm0, %v9088_v47 }
 0x71c   : > { %21116 = vmatmul.mubr.msk.f32.gmra.mrb[22].mxu0 %vm283_vm0, %v9089_v2 }
 0x71d   : > { %21118 = vmatprep.mubr.msk.f32.mxu0 %vm283_vm0, %v9090_v0 }
 0x720   : > { %21119 = vmatmul.mubr.msk.f32.gmra.mrb[24].mxu0 %vm283_vm0, %v9091_v16 }
 0x721   : > { %21121 = vmatprep.mubr.msk.f32.mxu0 %vm283_vm0, %v9092_v24 }
 0x724   : > { %21122 = vmatmul.mubr.msk.f32.gmra.mrb[26].mxu0 %vm283_vm0, %v9093_v58 }
 0x725   : > { %21124 = vmatprep.mubr.msk.f32.mxu0 %vm283_vm0, %v27155_v62  ;;  %v9102_v62 = vld [vmem:[#allocation2 + $0x212] sm:$0xff] }
 0x728   : > { %21125 = vmatmul.mubr.msk.f32.gmra.mrb[28].mxu0 %vm283_vm0, %v27159_v50  ;;  %v9103_v50 = vld [vmem:[#allocation2 + $0x21a] sm:$0xff] }
 0x729   : > { %21127 = vmatprep.mubr.msk.f32.mxu0 %vm283_vm0, %v9096_v54 }
 0x72c   : > { %21128 = vmatmul.mubr.msk.f32.gmra.mrb[30].mxu0 %vm283_vm0, %v9097_v5 }
 0x72d   : > { %21130 = vmatprep.mubr.msk.f32.mxu0 %vm283_vm0, %v9098_v11 }
 0x730   : > { %21131 = vmatmul.mubr.msk.f32.gmra.mrb[32].mxu0 %vm283_vm0, %v9099_v15 }
 0x731   : > { %21133 = vmatprep.mubr.msk.f32.mxu0 %vm283_vm0, %v9100_v34 }
 0x734   : > { %21134 = vmatmul.mubr.msk.f32.gmra.mrb[34].mxu0 %vm283_vm0, %v9101_v46 }
 0x735   : > { %21136 = vmatprep.mubr.msk.f32.mxu0 %vm283_vm0, %v9102_v62 }
 0x738   : > { %21137 = vmatmul.mubr.msk.f32.gmra.mrb[36].mxu0 %vm283_vm0, %v9103_v50 }
 0x739   : > { %21139 = vmatprep.mubr.msk.f32.mxu0 %vm283_vm0, %v9104_v27 }
 0x73c   : > { %21140 = vmatmul.mubr.msk.f32.gmra.mrb[38].mxu0 %vm283_vm0, %v9105_v7 }
 0x73d   : > { %21142 = vmatprep.mubr.msk.f32.mxu0 %vm283_vm0, %v9106_v1 }
 0x740   : > { %21143 = vmatmul.mubr.msk.f32.gmra.mrb[40].mxu0 %vm283_vm0, %v9107_v36 }
 0x741   : > { %21145 = vmatprep.mubr.msk.f32.mxu0 %vm283_vm0, %v9108_v60 }
 0x744   : > { %21146 = vmatmul.mubr.msk.f32.gmra.mrb[42].mxu0 %vm283_vm0, %v9109_v31 }
 0x745   : > { %21148 = vmatprep.mubr.msk.f32.mxu0 %vm283_vm0, %v9110_v26 }
 0x748   : > { %21149 = vmatmul.mubr.msk.f32.gmra.mrb[44].mxu0 %vm283_vm0, %v9111_v23 }
 0x749   : > { %21151 = vmatprep.mubr.msk.f32.mxu0 %vm283_vm0, %v9112_v32 }
 0x74c   : > { %21152 = vmatmul.mubr.msk.f32.gmra.mrb[46].mxu0 %vm283_vm0, %v9113_v55 }
 0x74d   : > { %21154 = vmatprep.mubr.msk.f32.mxu0 %vm283_vm0, %v9114_v19 }
 0x750   : > { %21155 = vmatmul.mubr.msk.f32.gmra.mrb[48].mxu0 %vm283_vm0, %v9115_v59 }
 0x751   : > { %21157 = vmatprep.mubr.msk.f32.mxu0 %vm283_vm0, %v9116_v38 }
 0x754   : > { %21158 = vmatmul.mubr.msk.f32.gmra.mrb[50].mxu0 %vm283_vm0, %v9117_v49 }
 0x755   : > { %21160 = vmatprep.mubr.msk.f32.mxu0 %vm283_vm0, %v9118_v61 }
 0x758   : > { %21161 = vmatmul.mubr.msk.f32.gmra.mrb[52].mxu0 %vm283_vm0, %v9119_v56 }
 0x759   : > { %21163 = vmatprep.mubr.msk.f32.mxu0 %vm283_vm0, %v9120_v17 }
 0x75c   : > { %21164 = vmatmul.mubr.msk.f32.gmra.mrb[54].mxu0 %vm283_vm0, %v9121_v21 }
 0x75d   : > { %21166 = vmatprep.mubr.msk.f32.mxu0 %vm283_vm0, %v9122_v30 }
 0x760   : > { %21167 = vmatmul.mubr.msk.f32.gmra.mrb[56].mxu0 %vm283_vm0, %v9123_v6 }
 0x761   : > { %21169 = vmatprep.mubr.msk.f32.mxu0 %vm283_vm0, %v9124_v48 }
 0x764   : > { %21170 = vmatmul.mubr.msk.f32.gmra.mrb[58].mxu0 %vm283_vm0, %v9125_v29 }
 0x765   : > { %21172 = vmatprep.mubr.msk.f32.mxu0 %vm283_vm0, %v27223_v28 }
 0x768   : > { %21173 = vmatmul.mubr.msk.f32.gmra.mrb[60].mxu0 %vm283_vm0, %v27227_v37 }
 0x769   : > { %21175 = vmatprep.mubr.msk.f32.mxu0 %vm283_vm0, %v9128_v44 }
 0x76c   : > { %21176 = vmatmul.mubr.msk.f32.gmra.mrb[62].mxu0 %vm283_vm0, %v9129_v42 }
 0x7c3   : > { %v21084_v22 = vpop.f32.mrb[0].mxu0 }
 0x7c4   : > { %v27520_v53 = vadd.f32 %v21084_v22, %v27517_v33  ;;  %v9392_v14 = vpop.f32.mrb[1].mxu0 }
 0x7c5   : > { %v27523_v28 = vadd.f32 %v27517_v33, %v9392_v14 }
 0x7c6   : > { %v31217_v37 = vmax.f32 %v27520_v53, 0.0 }
 0x7c7   : > { %v31220_v51 = vmax.f32 %v27523_v28, 0.0  ;;  %v21087_v45 = vpop.f32.mrb[2].mxu0 }
 0x7c8   : > { %v27528_v52 = vadd.f32 %v21087_v45, %v27517_v33  ;;  %v9402_v20 = vpop.f32.mrb[3].mxu0  ;;  %v9911_v40 = vsel %vm283_vm0, %v31217_v37, 0.0 }
 0x7c9   : > { %v9910_v4 = vsel %vm283_vm0, %v31220_v51, 0.0  ;;  %v27537_v8 = vadd.f32 %v27517_v33, %v9402_v20 }
 0x7ca   : > { %v31213_v35 = vmax.f32 %v27528_v52, 0.0  ;;  %v9912_v18 = vadd.f32 %v9911_v40, %v9910_v4 }
 0x7cb   : > { %v31216_v39 = vmax.f32 %v27537_v8, 0.0  ;;  %v21090_v57 = vpop.f32.mrb[4].mxu0 }
 0x7cc   : > { %v27542_v63 = vadd.f32 %v21090_v57, %v27517_v33  ;;  %v9412_v25 = vpop.f32.mrb[5].mxu0  ;;  %v9915_v43 = vsel %vm283_vm0, %v31213_v35, 0.0 }
 0x7cd   : > { %v9913_v41 = vsel %vm283_vm0, %v31216_v39, 0.0  ;;  %v27548_v3 = vadd.f32 %v27517_v33, %v9412_v25 }
 0x7ce   : > { %v9914_v9 = vadd.f32 %v9913_v41, %v9912_v18  ;;  %v31209_v13 = vmax.f32 %v27542_v63, 0.0 }
 0x7cf   : > { %v31210_v12 = vmax.f32 %v27548_v3, 0.0  ;;  %v21093_v10 = vpop.f32.mrb[6].mxu0 }
 0x7d0   : > { %v9916_v47 = vadd.f32 %v9915_v43, %v9914_v9  ;;  %v27556_v2 = vadd.f32 %v21093_v10, %v27517_v33  ;;  %v9422_v0 = vpop.f32.mrb[7].mxu0  ;;  %v9919_v54 = vsel %vm283_vm0, %v31209_v13, 0.0 }
 0x7d1   : > { %v9917_v16 = vsel %vm283_vm0, %v31210_v12, 0.0  ;;  %v27562_v24 = vadd.f32 %v27517_v33, %v9422_v0 }
 0x7d2   : > { %v9918_v58 = vadd.f32 %v9917_v16, %v9916_v47  ;;  %v31205_v5 = vmax.f32 %v27556_v2, 0.0 }
 0x7d3   : > { %v31207_v11 = vmax.f32 %v27562_v24, 0.0  ;;  %v21096_v15 = vpop.f32.mrb[8].mxu0 }
 0x7d4   : > { %v9920_v34 = vadd.f32 %v9919_v54, %v9918_v58  ;;  %v27570_v46 = vadd.f32 %v21096_v15, %v27517_v33  ;;  %v9432_v62 = vpop.f32.mrb[9].mxu0  ;;  %v9923_v1 = vsel %vm283_vm0, %v31205_v5, 0.0 }
 0x7d5   : > { %v9921_v50 = vsel %vm283_vm0, %v31207_v11, 0.0  ;;  %v27576_v27 = vadd.f32 %v27517_v33, %v9432_v62 }
 0x7d6   : > { %v9922_v7 = vadd.f32 %v9921_v50, %v9920_v34  ;;  %v31201_v36 = vmax.f32 %v27570_v46, 0.0 }
 0x7d7   : > { %v31202_v60 = vmax.f32 %v27576_v27, 0.0  ;;  %v21099_v31 = vpop.f32.mrb[10].mxu0 }
 0x7d8   : > { %v9924_v26 = vadd.f32 %v9923_v1, %v9922_v7  ;;  %v27584_v23 = vadd.f32 %v21099_v31, %v27517_v33  ;;  %v9442_v32 = vpop.f32.mrb[11].mxu0  ;;  %v9927_v38 = vsel %vm283_vm0, %v31201_v36, 0.0 }
 0x7d9   : > { %v9925_v55 = vsel %vm283_vm0, %v31202_v60, 0.0  ;;  %v27590_v19 = vadd.f32 %v27517_v33, %v9442_v32 }
 0x7da   : > { %v9926_v59 = vadd.f32 %v9925_v55, %v9924_v26  ;;  %v31197_v49 = vmax.f32 %v27584_v23, 0.0 }
 0x7db   : > { %v31198_v61 = vmax.f32 %v27590_v19, 0.0  ;;  %v21102_v56 = vpop.f32.mrb[12].mxu0 }
 0x7dc   : > { %v9928_v17 = vadd.f32 %v9927_v38, %v9926_v59  ;;  %v27598_v21 = vadd.f32 %v21102_v56, %v27517_v33  ;;  %v9452_v30 = vpop.f32.mrb[13].mxu0  ;;  %v9931_v44 = vsel %vm283_vm0, %v31197_v49, 0.0 }
 0x7dd   : > { %v9929_v6 = vsel %vm283_vm0, %v31198_v61, 0.0  ;;  %v27604_v48 = vadd.f32 %v27517_v33, %v9452_v30 }
 0x7de   : > { %v9930_v29 = vadd.f32 %v9929_v6, %v9928_v17  ;;  %v31193_v42 = vmax.f32 %v27598_v21, 0.0 }
 0x7df   : > { %v31196_v22 = vmax.f32 %v27604_v48, 0.0  ;;  %v21105_v14 = vpop.f32.mrb[14].mxu0 }
 0x7e0   : > { %v9932_v45 = vadd.f32 %v9931_v44, %v9930_v29  ;;  %v27612_v20 = vadd.f32 %v21105_v14, %v27517_v33  ;;  %v9462_v40 = vpop.f32.mrb[15].mxu0  ;;  %v9935_v25 = vsel %vm283_vm0, %v31193_v42, 0.0 }
 0x7e1   : > { %v9933_v4 = vsel %vm283_vm0, %v31196_v22, 0.0  ;;  %v27618_v57 = vadd.f32 %v27517_v33, %v9462_v40 }
 0x7e2   : > { %v9934_v18 = vadd.f32 %v9933_v4, %v9932_v45  ;;  %v31191_v41 = vmax.f32 %v27612_v20, 0.0 }
 0x7e3   : > { %v31192_v9 = vmax.f32 %v27618_v57, 0.0  ;;  %v21108_v43 = vpop.f32.mrb[16].mxu0 }
 0x7e4   : > { %v9936_v10 = vadd.f32 %v9935_v25, %v9934_v18  ;;  %v27626_v47 = vadd.f32 %v21108_v43, %v27517_v33  ;;  %v9472_v0 = vpop.f32.mrb[17].mxu0  ;;  %v9939_v15 = vsel %vm283_vm0, %v31191_v41, 0.0 }
 0x7e5   : > { %v9937_v16 = vsel %vm283_vm0, %v31192_v9, 0.0  ;;  %v27632_v58 = vadd.f32 %v27517_v33, %v9472_v0 }
 0x7e6   : > { %v9938_v54 = vadd.f32 %v9937_v16, %v9936_v10  ;;  %v31187_v34 = vmax.f32 %v27626_v47, 0.0 }
 0x7e7   : > { %v31188_v62 = vmax.f32 %v27632_v58, 0.0  ;;  %v21111_v50 = vpop.f32.mrb[18].mxu0 }
 0x7e8   : > { %v9940_v7 = vadd.f32 %v9939_v15, %v9938_v54  ;;  %v27640_v1 = vadd.f32 %v21111_v50, %v27517_v33  ;;  %v9482_v31 = vpop.f32.mrb[19].mxu0  ;;  %v9943_v59 = vsel %vm283_vm0, %v31187_v34, 0.0 }
 0x7e9   : > { %v9941_v26 = vsel %vm283_vm0, %v31188_v62, 0.0  ;;  %v27646_v32 = vadd.f32 %v27517_v33, %v9482_v31 }
 0x7ea   : > { %v9942_v55 = vadd.f32 %v9941_v26, %v9940_v7  ;;  %v31183_v38 = vmax.f32 %v27640_v1, 0.0 }
 0x7eb   : > { %v31184_v56 = vmax.f32 %v27646_v32, 0.0  ;;  %v21114_v17 = vpop.f32.mrb[20].mxu0 }
 0x7ec   : > { %v9944_v30 = vadd.f32 %v9943_v59, %v9942_v55  ;;  %v27654_v6 = vadd.f32 %v21114_v17, %v27517_v33  ;;  %v9492_v29 = vpop.f32.mrb[21].mxu0  ;;  %v9947_v40 = vsel %vm283_vm0, %v31183_v38, 0.0 }
 0x7ed   : > { %v9945_v44 = vsel %vm283_vm0, %v31184_v56, 0.0  ;;  %v27660_v14 = vadd.f32 %v27517_v33, %v9492_v29 }
 0x7ee   : > { %v9946_v45 = vadd.f32 %v9945_v44, %v9944_v30  ;;  %v31179_v4 = vmax.f32 %v27654_v6, 0.0 }
 0x7ef   : > { %v31180_v18 = vmax.f32 %v27660_v14, 0.0  ;;  %v21117_v25 = vpop.f32.mrb[22].mxu0 }
 0x7f0   : > { %v9948_v43 = vadd.f32 %v9947_v40, %v9946_v45  ;;  %v27668_v10 = vadd.f32 %v21117_v25, %v27517_v33  ;;  %v9502_v0 = vpop.f32.mrb[23].mxu0  ;;  %v9951_v50 = vsel %vm283_vm0, %v31179_v4, 0.0 }
 0x7f1   : > { %v9949_v16 = vsel %vm283_vm0, %v31180_v18, 0.0  ;;  %v27674_v54 = vadd.f32 %v27517_v33, %v9502_v0 }
 0x7f2   : > { %v9950_v15 = vadd.f32 %v9949_v16, %v9948_v43  ;;  %v31175_v7 = vmax.f32 %v27668_v10, 0.0 }
 0x7f3   : > { %v31176_v31 = vmax.f32 %v27674_v54, 0.0  ;;  %v21120_v26 = vpop.f32.mrb[24].mxu0 }
 0x7f4   : > { %v9952_v55 = vadd.f32 %v9951_v50, %v9950_v15  ;;  %v27682_v59 = vadd.f32 %v21120_v26, %v27517_v33  ;;  %v9512_v17 = vpop.f32.mrb[25].mxu0  ;;  %v9955_v45 = vsel %vm283_vm0, %v31175_v7, 0.0 }
 0x7f5   : > { %v9953_v30 = vsel %vm283_vm0, %v31176_v31, 0.0  ;;  %v27688_v29 = vadd.f32 %v27517_v33, %v9512_v17 }
 0x7f6   : > { %v9954_v44 = vadd.f32 %v9953_v30, %v9952_v55  ;;  %v31177_v40 = vmax.f32 %v27682_v59, 0.0 }
 0x7f7   : > { %v31178_v25 = vmax.f32 %v27688_v29, 0.0  ;;  %v21123_v43 = vpop.f32.mrb[26].mxu0 }
 0x7f8   : > { %v9956_v0 = vadd.f32 %v9955_v45, %v9954_v44  ;;  %v27696_v16 = vadd.f32 %v21123_v43, %v27517_v33  ;;  %v9522_v15 = vpop.f32.mrb[27].mxu0  ;;  %v9959_v17 = vsel %vm283_vm0, %v31177_v40, 0.0 }
 0x7f9   : > { %v9957_v50 = vsel %vm283_vm0, %v31178_v25, 0.0  ;;  %v27702_v26 = vadd.f32 %v27517_v33, %v9522_v15 }
 0x7fa   : > { %v9958_v55 = vadd.f32 %v9957_v50, %v9956_v0  ;;  %v31181_v30 = vmax.f32 %v27696_v16, 0.0 }
 0x7fb   : > { %v31182_v44 = vmax.f32 %v27702_v26, 0.0  ;;  %v21126_v45 = vpop.f32.mrb[28].mxu0 }
 0x7fc   : > { %v9960_v43 = vadd.f32 %v9959_v17, %v9958_v55  ;;  %v27710_v7 = vadd.f32 %v21126_v45, %v27517_v33  ;;  %v9532_v31 = vpop.f32.mrb[29].mxu0  ;;  %v9963_v40 = vsel %vm283_vm0, %v31181_v30, 0.0 }
 0x7fd   : > { %v9961_v15 = vsel %vm283_vm0, %v31182_v44, 0.0  ;;  %v27716_v0 = vadd.f32 %v27517_v33, %v9532_v31 }
 0x7fe   : > { %v9962_v50 = vadd.f32 %v9961_v15, %v9960_v43  ;;  %v31185_v25 = vmax.f32 %v27710_v7, 0.0 }
 0x7ff   : > { %v31186_v55 = vmax.f32 %v27716_v0, 0.0  ;;  %v21129_v17 = vpop.f32.mrb[30].mxu0 }
 0x800   : > { %v9964_v45 = vadd.f32 %v9963_v40, %v9962_v50  ;;  %v27724_v4 = vadd.f32 %v21129_v17, %v27517_v33  ;;  %v9542_v18 = vpop.f32.mrb[31].mxu0  ;;  %v9967_v30 = vsel %vm283_vm0, %v31185_v25, 0.0 }
 0x801   : > { %v9965_v31 = vsel %vm283_vm0, %v31186_v55, 0.0  ;;  %v27730_v43 = vadd.f32 %v27517_v33, %v9542_v18 }
 0x802   : > { %v9966_v15 = vadd.f32 %v9965_v31, %v9964_v45  ;;  %v31189_v44 = vmax.f32 %v27724_v4, 0.0 }
 0x803   : > { %v31190_v40 = vmax.f32 %v27730_v43, 0.0  ;;  %v21132_v50 = vpop.f32.mrb[32].mxu0 }
 0x804   : > { %v9968_v17 = vadd.f32 %v9967_v30, %v9966_v15  ;;  %v27738_v38 = vadd.f32 %v21132_v50, %v27517_v33  ;;  %v9552_v56 = vpop.f32.mrb[33].mxu0  ;;  %v9971_v55 = vsel %vm283_vm0, %v31189_v44, 0.0 }
 0x805   : > { %v9969_v18 = vsel %vm283_vm0, %v31190_v40, 0.0  ;;  %v27744_v45 = vadd.f32 %v27517_v33, %v9552_v56 }
 0x806   : > { %v9970_v31 = vadd.f32 %v9969_v18, %v9968_v17  ;;  %v31194_v25 = vmax.f32 %v27738_v38, 0.0 }
 0x807   : > { %v31195_v30 = vmax.f32 %v27744_v45, 0.0  ;;  %v21135_v15 = vpop.f32.mrb[34].mxu0 }
 0x808   : > { %v9972_v50 = vadd.f32 %v9971_v55, %v9970_v31  ;;  %v27752_v34 = vadd.f32 %v21135_v15, %v27517_v33  ;;  %v9562_v62 = vpop.f32.mrb[35].mxu0  ;;  %v9980_v56 = vsel %vm283_vm0, %v31194_v25, 0.0 }
 0x809   : > { %v9979_v17 = vsel %vm283_vm0, %v31195_v30, 0.0  ;;  %v27761_v18 = vadd.f32 %v27517_v33, %v9562_v62 }
 0x80a   : > { %v9973_v44 = vrot.slane %v9972_v50, 4  ;;  %v31200_v40 = vmax.f32 %v27752_v34, 0.0  ;;  %v9981_v41 = vadd.f32 %v9980_v56, %v9979_v17 }
 0x80b   : > { %v31199_v55 = vmax.f32 %v27761_v18, 0.0  ;;  %v21138_v31 = vpop.f32.mrb[36].mxu0 }
 0x80c   : > { %v9974_v15 = vadd.f32 %v9973_v44, %v9972_v50  ;;  %v27766_v9 = vadd.f32 %v21138_v31, %v27517_v33  ;;  %v9572_v42 = vpop.f32.mrb[37].mxu0  ;;  %v9984_v49 = vsel %vm283_vm0, %v31200_v40, 0.0 }
 0x80d   : > { %v9982_v25 = vsel %vm283_vm0, %v31199_v55, 0.0  ;;  %v27772_v30 = vadd.f32 %v27517_v33, %v9572_v42 }
 0x80e   : > { %v9975_v62 = vrot.slane %v9974_v15, 2  ;;  %v9983_v22 = vadd.f32 %v9982_v25, %v9981_v41  ;;  %v31204_v44 = vmax.f32 %v27766_v9, 0.0 }
 0x80f   : > { %v31203_v50 = vmax.f32 %v27772_v30, 0.0  ;;  %v21141_v56 = vpop.f32.mrb[38].mxu0 }
 0x810   : > { %v9985_v17 = vadd.f32 %v9984_v49, %v9983_v22  ;;  %v27780_v31 = vadd.f32 %v21141_v56, %v27517_v33  ;;  %v9582_v61 = vpop.f32.mrb[39].mxu0  ;;  %v9976_v55 = vadd.f32 %v9975_v62, %v9974_v15  ;;  %v9988_v36 = vsel %vm283_vm0, %v31204_v44, 0.0 }
 0x811   : > { %v9986_v42 = vsel %vm283_vm0, %v31203_v50, 0.0  ;;  %v27786_v41 = vadd.f32 %v27517_v33, %v9582_v61 }
 0x812   : > { %v9987_v25 = vadd.f32 %v9986_v42, %v9985_v17  ;;  %v9977_v40 = vrot.slane %v9976_v55, 1  ;;  %v31208_v49 = vmax.f32 %v27780_v31, 0.0  ;;  %v27805_v42 = vld [vmem:[%s31084_s3] sm:$0x3] }
 0x813   : > { %v31206_v22 = vmax.f32 %v27786_v41, 0.0  ;;  %v21144_v56 = vpop.f32.mrb[40].mxu0 }
 0x814   : > { %v9989_v60 = vadd.f32 %v9988_v36, %v9987_v25  ;;  %v27794_v15 = vadd.f32 %v21144_v56, %v27517_v33  ;;  %v9592_v62 = vpop.f32.mrb[41].mxu0  ;;  %v9978_v50 = vadd.f32 %v9977_v40, %v9976_v55  ;;  %v9992_v36 = vsel %vm283_vm0, %v31208_v49, 0.0 }
 0x815   : > { %v9990_v61 = vsel %vm283_vm0, %v31206_v22, 0.0  ;;  %v27800_v17 = vadd.f32 %v27517_v33, %v9592_v62 }
 0x816   : > { %v9991_v44 = vadd.f32 %v9990_v61, %v9989_v60  ;;  %v10049_v5 = vmul.f32 0.00390625, %v9978_v50  ;;  %v31212_v40 = vmax.f32 %v27794_v15, 0.0 }
 0x817   : > { %v31211_v55 = vmax.f32 %v27800_v17, 0.0  ;;  %v21147_v25 = vpop.f32.mrb[42].mxu0 }
 0x818   : > { %v9993_v56 = vadd.f32 %v9992_v36, %v9991_v44  ;;  %v27813_v62 = vadd.f32 %v21147_v25, %v27517_v33  ;;  %v9602_v22 = vpop.f32.mrb[43].mxu0  ;;  %v10052_v11 = vmul.f32 %v27805_v42, %v10049_v5  ;;  %v9996_v44 = vsel %vm283_vm0, %v31212_v40, 0.0 }
 0x819   : > { %v9994_v60 = vsel %vm283_vm0, %v31211_v55, 0.0  ;;  %v27820_v50 = vadd.f32 %v27517_v33, %v9602_v22 }
 0x81a   : > { %v9995_v61 = vadd.f32 %v9994_v60, %v9993_v56  ;;  %v10054_v49 = vsel %vm286_vm1, %v10052_v11, 0.0  ;;  %v31214_v36 = vmax.f32 %v27813_v62, 0.0 }
 0x81b   : > { %v31215_v25 = vmax.f32 %v27820_v50, 0.0  ;;  %10055 = vadd.xlane.f32.xlu0 %v10054_v49  ;;  %v21150_v5 = vpop.f32.mrb[44].mxu0 }
 0x81c   : > { %v9997_v13 = vadd.f32 %v9996_v44, %v9995_v61  ;;  %v27829_v12 = vadd.f32 %v21150_v5, %v27517_v33  ;;  %v9612_v55 = vpop.f32.mrb[45].mxu0  ;;  %v10000_v60 = vsel %vm283_vm0, %v31214_v36, 0.0 }
 0x81d   : > { %v9998_v22 = vsel %vm283_vm0, %v31215_v25, 0.0  ;;  %v27835_v11 = vadd.f32 %v27517_v33, %v9612_v55 }
 0x81e   : > { %31566 = vst [vmem:[#allocation22_spill] sm:$0xff] %v27829_v12  ;;  %v9999_v56 = vadd.f32 %v9998_v22, %v9997_v13  ;;  %v31218_v49 = vmax.f32 %v27829_v12, 0.0 }
 0x81f   : > { %v31219_v61 = vmax.f32 %v27835_v11, 0.0  ;;  %v21153_v44 = vpop.f32.mrb[46].mxu0 }
 0x820   : > { %v10001_v5 = vadd.f32 %v10000_v60, %v9999_v56  ;;  %v27843_v40 = vadd.f32 %v21153_v44, %v27517_v33  ;;  %v9622_v35 = vpop.f32.mrb[47].mxu0  ;;  %v10004_v36 = vsel %vm283_vm0, %v31218_v49, 0.0 }
 0x821   : > { %v10002_v55 = vsel %vm283_vm0, %v31219_v61, 0.0  ;;  %v27849_v13 = vadd.f32 %v27517_v33, %v9622_v35 }
 0x822   : > { %31567 = vst [vmem:[#allocation23_spill] sm:$0xff] %v27843_v40  ;;  %v10003_v22 = vadd.f32 %v10002_v55, %v10001_v5  ;;  %v31222_v25 = vmax.f32 %v27843_v40, 0.0 }
 0x823   : > { %31568 = vst [vmem:[#allocation24_spill] sm:$0xff] %v27849_v13  ;;  %v31223_v56 = vmax.f32 %v27849_v13, 0.0  ;;  %v21156_v60 = vpop.f32.mrb[48].mxu0 }
 0x824   : > { %v10005_v44 = vadd.f32 %v10004_v36, %v10003_v22  ;;  %v27857_v39 = vadd.f32 %v21156_v60, %v27517_v33  ;;  %v9632_v37 = vpop.f32.mrb[49].mxu0  ;;  %v10008_v49 = vsel %vm283_vm0, %v31222_v25, 0.0 }
 0x825   : > { %v10006_v35 = vsel %vm283_vm0, %v31223_v56, 0.0  ;;  %v27863_v5 = vadd.f32 %v27517_v33, %v9632_v37 }
 0x826   : > { %31569 = vst [vmem:[#allocation25_spill] sm:$0xff] %v27857_v39  ;;  %v10007_v55 = vadd.f32 %v10006_v35, %v10005_v44  ;;  %v31226_v61 = vmax.f32 %v27857_v39, 0.0 }
 0x827   : > { %31570 = vst [vmem:[#allocation26_spill] sm:$0xff] %v27863_v5  ;;  %v31227_v36 = vmax.f32 %v27863_v5, 0.0  ;;  %v21159_v22 = vpop.f32.mrb[50].mxu0 }
 0x828   : > { %v10009_v60 = vadd.f32 %v10008_v49, %v10007_v55  ;;  %v27871_v51 = vadd.f32 %v21159_v22, %v27517_v33  ;;  %v9642_v13 = vpop.f32.mrb[51].mxu0  ;;  %v10012_v25 = vsel %vm283_vm0, %v31226_v61, 0.0 }
 0x829   : > { %v10010_v37 = vsel %vm283_vm0, %v31227_v36, 0.0  ;;  %v27877_v44 = vadd.f32 %v27517_v33, %v9642_v13 }
 0x82a   : > { %31571 = vst [vmem:[#allocation27_spill] sm:$0xff] %v27871_v51  ;;  %v10011_v35 = vadd.f32 %v10010_v37, %v10009_v60  ;;  %v31230_v56 = vmax.f32 %v27871_v51, 0.0 }
 0x82b   : > { %31572 = vst [vmem:[#allocation28_spill] sm:$0xff] %v27877_v44  ;;  %v31231_v49 = vmax.f32 %v27877_v44, 0.0  ;;  %v21162_v55 = vpop.f32.mrb[52].mxu0 }
 0x82c   : > { %v10013_v22 = vadd.f32 %v10012_v25, %v10011_v35  ;;  %v27885_v40 = vadd.f32 %v21162_v55, %v27517_v33  ;;  %v9652_v5 = vpop.f32.mrb[53].mxu0  ;;  %v10016_v61 = vsel %vm283_vm0, %v31230_v56, 0.0 }
 0x82d   : > { %v10014_v13 = vsel %vm283_vm0, %v31231_v49, 0.0  ;;  %v27891_v60 = vadd.f32 %v27517_v33, %v9652_v5 }
 0x82e   : > { %31573 = vst [vmem:[#allocation29_spill] sm:$0xff] %v27885_v40  ;;  %v10015_v37 = vadd.f32 %v10014_v13, %v10013_v22  ;;  %v31234_v36 = vmax.f32 %v27885_v40, 0.0 }
 0x82f   : > { %31574 = vst [vmem:[#allocation30_spill] sm:$0xff] %v27891_v60  ;;  %v31235_v25 = vmax.f32 %v27891_v60, 0.0  ;;  %v21165_v35 = vpop.f32.mrb[54].mxu0 }
 0x830   : > { %v10017_v55 = vadd.f32 %v10016_v61, %v10015_v37  ;;  %v27899_v39 = vadd.f32 %v21165_v35, %v27517_v33  ;;  %v9662_v44 = vpop.f32.mrb[55].mxu0  ;;  %v10020_v56 = vsel %vm283_vm0, %v31234_v36, 0.0 }
 0x831   : > { %v10018_v5 = vsel %vm283_vm0, %v31235_v25, 0.0  ;;  %v27905_v22 = vadd.f32 %v27517_v33, %v9662_v44 }
 0x832   : > { %31575 = vst [vmem:[#allocation31_spill] sm:$0xff] %v27899_v39  ;;  %v10019_v13 = vadd.f32 %v10018_v5, %v10017_v55  ;;  %v31238_v49 = vmax.f32 %v27899_v39, 0.0 }
 0x833   : > { %31576 = vst [vmem:[#allocation32_spill] sm:$0xff] %v27905_v22  ;;  %v31239_v61 = vmax.f32 %v27905_v22, 0.0  ;;  %v21168_v37 = vpop.f32.mrb[56].mxu0 }
 0x834   : > { %v10021_v35 = vadd.f32 %v10020_v56, %v10019_v13  ;;  %v27913_v51 = vadd.f32 %v21168_v37, %v27517_v33  ;;  %v9672_v60 = vpop.f32.mrb[57].mxu0  ;;  %v10024_v36 = vsel %vm283_vm0, %v31238_v49, 0.0 }
 0x835   : > { %v10022_v44 = vsel %vm283_vm0, %v31239_v61, 0.0  ;;  %v27919_v55 = vadd.f32 %v27517_v33, %v9672_v60 }
 0x836   : > { %31577 = vst [vmem:[#allocation33_spill] sm:$0xff] %v27913_v51  ;;  %v10023_v5 = vadd.f32 %v10022_v44, %v10021_v35  ;;  %v31242_v25 = vmax.f32 %v27913_v51, 0.0 }
 0x837   : > { %31578 = vst [vmem:[#allocation34_spill] sm:$0xff] %v27919_v55  ;;  %v31243_v56 = vmax.f32 %v27919_v55, 0.0  ;;  %v21171_v13 = vpop.f32.mrb[58].mxu0 }
 0x838   : > { %v10025_v37 = vadd.f32 %v10024_v36, %v10023_v5  ;;  %v27927_v40 = vadd.f32 %v21171_v13, %v27517_v33  ;;  %v9682_v22 = vpop.f32.mrb[59].mxu0  ;;  %v10028_v49 = vsel %vm283_vm0, %v31242_v25, 0.0 }
 0x839   : > { %v10026_v60 = vsel %vm283_vm0, %v31243_v56, 0.0  ;;  %v27933_v35 = vadd.f32 %v27517_v33, %v9682_v22 }
 0x83a   : > { %31579 = vst [vmem:[#allocation35_spill] sm:$0xff] %v27927_v40  ;;  %v10027_v44 = vadd.f32 %v10026_v60, %v10025_v37  ;;  %v31246_v61 = vmax.f32 %v27927_v40, 0.0 }
 0x83b   : > { %31580 = vst [vmem:[#allocation36_spill] sm:$0xff] %v27933_v35  ;;  %v31247_v36 = vmax.f32 %v27933_v35, 0.0  ;;  %v21174_v5 = vpop.f32.mrb[60].mxu0 }
 0x83c   : > { %v10029_v13 = vadd.f32 %v10028_v49, %v10027_v44  ;;  %v27941_v39 = vadd.f32 %v21174_v5, %v27517_v33  ;;  %v9692_v55 = vpop.f32.mrb[61].mxu0  ;;  %v10032_v25 = vsel %vm283_vm0, %v31246_v61, 0.0 }
 0x83d   : > { %v10030_v22 = vsel %vm283_vm0, %v31247_v36, 0.0  ;;  %v27947_v37 = vadd.f32 %v27517_v33, %v9692_v55 }
 0x83e   : > { %31581 = vst [vmem:[#allocation37_spill] sm:$0xff] %v27941_v39  ;;  %v10031_v60 = vadd.f32 %v10030_v22, %v10029_v13  ;;  %v31251_v56 = vmax.f32 %v27941_v39, 0.0 }
 0x83f   : > { %31582 = vst [vmem:[#allocation38_spill] sm:$0xff] %v27947_v37  ;;  %v31249_v49 = vmax.f32 %v27947_v37, 0.0  ;;  %v21177_v44 = vpop.f32.mrb[62].mxu0 }
 0x840   : > { %v10033_v5 = vadd.f32 %v10032_v25, %v10031_v60  ;;  %v27955_v51 = vadd.f32 %v21177_v44, %v27517_v33  ;;  %v9702_v35 = vpop.f32.mrb[63].mxu0  ;;  %v10036_v61 = vsel %vm283_vm0, %v31251_v56, 0.0 }
 0x841   : > { %v10034_v55 = vsel %vm283_vm0, %v31249_v49, 0.0  ;;  %v27961_v13 = vadd.f32 %v27517_v33, %v9702_v35 }
 0x842   : > { %31583 = vst [vmem:[#allocation39_spill] sm:$0xff] %v27955_v51  ;;  %v10035_v22 = vadd.f32 %v10034_v55, %v10033_v5  ;;  %v31254_v36 = vmax.f32 %v27955_v51, 0.0 }
 0x843   : > { %v31255_v25 = vmax.f32 %v27961_v13, 0.0 }
 0x844   : > { %v10037_v60 = vadd.f32 %v10036_v61, %v10035_v22  ;;  %v10040_v33 = vsel %vm283_vm0, %v31254_v36, 0.0  ;;  %v10351_v61 = vld [vmem:[%s31086_s5 + $0x20] sm:$0xff]  ;;  %v10352_v22 = vld [vmem:[%s31086_s5 + $0x28] sm:$0xff]  ;;  %v31584_v36 = vmax.f32 %v27523_v28, 0.0  ;;  %v31591_v28 = vmax.f32 %v27556_v2, 0.0 }
 0x845   : > { %v10038_v44 = vsel %vm283_vm0, %v31255_v25, 0.0 }
 0x846   : > { %v10039_v37 = vadd.f32 %v10038_v44, %v10037_v60  ;;  %v22186_v44 = vpack.c.bf16 %v10352_v22, %v10351_v61  ;;  %v28005_v22 = vld [vmem:[%s31085_s4] sm:$0x3] }
 0x848   : > { %v10041_v35 = vadd.f32 %v10040_v33, %v10039_v37  ;;  %22187 = vmatprep.subr.bf16.mxu1 %v22186_v44 }
 0x849   : > { %22189 = vmatpush3.bf16.msra.mxu1 %v22186_v44 }
 0x84a   : > { %v10042_v5 = vrot.slane %v10041_v35, 4 }
 0x84c   : > { %v10043_v55 = vadd.f32 %v10042_v5, %v10041_v35  ;;  %v10288_v35 = vld [vmem:[#allocation2 + $0x9] sm:$0xff] }
 0x84d   : > { %v10285_v5 = vld [vmem:[%s31086_s5 + $0x10] sm:$0xff] }
 0x84e   : > { %v10044_v49 = vrot.slane %v10043_v55, 2 }
 0x850   : > { %v10045_v39 = vadd.f32 %v10044_v49, %v10043_v55  ;;  %v10287_v49 = vld [vmem:[#allocation2 + $0x1] sm:$0xff]  ;;  %v10286_v55 = vld [vmem:[%s31086_s5 + $0x18] sm:$0xff] }
 0x851   : > { %21186 = vmatprep.mubr.msk.f32.mxu1 %vm283_vm0, %v10287_v49  ;;  %v22198_v61 = vpack.c.bf16 %v10286_v55, %v10285_v5 }
 0x852   : > { %v10046_v56 = vrot.slane %v10045_v39, 1 }
 0x854   : > { %v10047_v40 = vadd.f32 %v10046_v56, %v10045_v39  ;;  %v10353_v39 = vld [vmem:[%s31086_s5 + $0x30] sm:$0xff] }
 0x856   : > { %v10050_v12 = vmul.f32 0.00390625, %v10047_v40  ;;  %v10354_v40 = vld [vmem:[%s31086_s5 + $0x38] sm:$0xff] }
 0x857   : > { %v22190_v56 = vpack.c.bf16 %v10354_v40, %v10353_v39 }
 0x858   : > { %v10053_v60 = vmul.f32 %v27805_v42, %v10050_v12  ;;  %v10283_v12 = vld [vmem:[%s31086_s5] sm:$0xff]  ;;  %v10284_v42 = vld [vmem:[%s31086_s5 + $0x8] sm:$0xff] }
 0x859   : > { %22191 = vmatprep.subr.bf16.mxu1 %v22190_v56  ;;  %v22194_v33 = vpack.c.bf16 %v10284_v42, %v10283_v12 }
 0x85a   : > { %v10057_v37 = vsel %vm286_vm1, %v10053_v60, 0.0  ;;  %22193 = vmatpush3.bf16.msra.mxu1 %v22190_v56 }
 0x85b   : > { %10058 = vadd.xlane.f32.xlu1 %v10057_v37  ;;  %22195 = vmatprep.subr.bf16.mxu1 %v22194_v33 }
 0x85d   : > { %21187 = vmatmul.mubr.msk.f32.vlgmr.msra.gmra.mrb[0].mxu1 %vm283_vm0, %v10288_v35 }
 0x85e   : > { %22197 = vmatpush3.bf16.msra.mxu1 %v22194_v33 }
 0x85f   : > { %22199 = vmatprep.subr.bf16.mxu1 %v22198_v61 }
 0x862   : > { %22201 = vmatpush3.bf16.msra.mxu1 %v22198_v61 }
 0x8a8   : > { %v10056_v60 = vpop.xlane.xlu0 %10055 }
 0x8a9   : > { %v10060_v44 = vmax.f32 %v10056_v60, 0.0  ;;  %v31585_v60 = vmax.f32 %v27520_v53, 0.0  ;;  %v31592_v53 = vmax.f32 %v27576_v27, 0.0  ;;  %v31598_v27 = vmax.f32 %v27618_v57, 0.0 }
 0x8aa   : > { %v31602_v57 = vmax.f32 %v27646_v32, 0.0  ;;  %v31606_v32 = vmax.f32 %v27674_v54, 0.0  ;;  %v31608_v54 = vmax.f32 %v27688_v29, 0.0  ;;  %v31612_v29 = vmax.f32 %v27716_v0, 0.0 }
 0x8ab   : > { %v10063_v37 = vmul.f32 %v28005_v22, %v10060_v44 }
 0x8ad   : > { %v10065_v39 = vsel %vm286_vm1, %v10063_v37, 0.0  ;;  %v31586_v37 = vmax.f32 %v27537_v8, 0.0  ;;  %v31593_v8 = vmax.f32 %v27570_v46, 0.0 }
 0x8ae   : > { %v10066_v40 = vrot.slane %v10065_v39, 4 }
 0x8b0   : > { %v10067_v56 = vadd.f32 %v10066_v40, %v10065_v39  ;;  %v31587_v39 = vmax.f32 %v27528_v52, 0.0  ;;  %v31594_v52 = vmax.f32 %v27590_v19, 0.0 }
 0x8b2   : > { %v10068_v49 = vrot.slane %v10067_v56, 2 }
 0x8b4   : > { %v10069_v12 = vadd.f32 %v10068_v49, %v10067_v56  ;;  %v31588_v56 = vmax.f32 %v27548_v3, 0.0  ;;  %v31595_v3 = vmax.f32 %v27584_v23, 0.0  ;;  %v31599_v23 = vmax.f32 %v27612_v20, 0.0 }
 0x8b5   : > { %v31603_v20 = vmax.f32 %v27640_v1, 0.0  ;;  %v31607_v1 = vmax.f32 %v27668_v10, 0.0 }
 0x8b6   : > { %v10070_v42 = vrot.slane %v10069_v12, 1 }
 0x8b8   : > { %v10071_v33 = vadd.f32 %v10070_v42, %v10069_v12  ;;  %v31589_v12 = vmax.f32 %v27542_v63, 0.0  ;;  %v31596_v63 = vmax.f32 %v27604_v48, 0.0 }
 0x8ba   : > { %v18430_v35 = vmul.f32 -1.442695, %v10071_v33  ;;  %v31590_v33 = vmax.f32 %v27562_v24, 0.0  ;;  %v31597_v24 = vmax.f32 %v27598_v21, 0.0  ;;  %v31601_v21 = vmax.f32 %v27626_v47, 0.0 }
 0x8bb   : > { %v31605_v47 = vmax.f32 %v27654_v6, 0.0  ;;  %v11574_v6 = vld [vmem:[%s31086_s5 + $0x48] sm:$0xff] }
 0x8bc   : > { %23333 = vpow2.f32 %v18430_v35 }
 0x8c6   : > { %v23334_v5 = vpop.eup %23333 }
 0x8c7   : > { %v10085_v55 = vadd.f32 1.0, %v23334_v5 }
 0x8c9   : > { %23335 = vrcp.f32 %v10085_v55 }
 0x8d3   : > { %v23336_v61 = vpop.eup %23335 }
 0x8d4   : > { %v10091_v25 = vmul.f32 %v23336_v61, %v31584_v36  ;;  %v10092_v44 = vmul.f32 %v23336_v61, %v31585_v60  ;;  %v10093_v51 = vmul.f32 %v23336_v61, %v31586_v37  ;;  %v10094_v40 = vmul.f32 %v23336_v61, %v31587_v39 }
 0x8d5   : > { %v10095_v49 = vmul.f32 %v23336_v61, %v31588_v56  ;;  %v10096_v42 = vmul.f32 %v23336_v61, %v31589_v12  ;;  %v10097_v35 = vmul.f32 %v23336_v61, %v31590_v33  ;;  %v10098_v36 = vmul.f32 %v23336_v61, %v31591_v28 }
 0x8d6   : > { %v10099_v5 = vmul.f32 %v23336_v61, %v31592_v53  ;;  %v10100_v55 = vmul.f32 %v23336_v61, %v31593_v8  ;;  %v10101_v60 = vmul.f32 %v23336_v61, %v31594_v52  ;;  %v10102_v37 = vmul.f32 %v23336_v61, %v31595_v3  ;;  %10155 = vst.msk [vmem:[#allocation2 + $0x19] sm:$0xff] %vm283_vm0, %v10091_v25 }
 0x8d7   : > { %10156 = vst.msk [vmem:[#allocation2 + $0x21] sm:$0xff] %vm283_vm0, %v10092_v44  ;;  %10157 = vst.msk [vmem:[#allocation2 + $0x31] sm:$0xff] %vm283_vm0, %v10093_v51  ;;  %v10103_v2 = vmul.f32 %v23336_v61, %v31596_v63  ;;  %v10104_v46 = vmul.f32 %v23336_v61, %v31597_v24  ;;  %v10105_v19 = vmul.f32 %v23336_v61, %v31598_v27  ;;  %v31600_v51 = vmax.f32 %v27632_v58, 0.0 }
 0x8d8   : > { %10158 = vst.msk [vmem:[#allocation2 + $0x39] sm:$0xff] %vm283_vm0, %v10094_v40  ;;  %v10106_v39 = vmul.f32 %v23336_v61, %v31599_v23  ;;  %10159 = vst.msk [vmem:[#allocation2 + $0x49] sm:$0xff] %vm283_vm0, %v10095_v49  ;;  %v10108_v25 = vmul.f32 %v23336_v61, %v31601_v21  ;;  %v10109_v44 = vmul.f32 %v23336_v61, %v31602_v57  ;;  %v31604_v58 = vmax.f32 %v27660_v14, 0.0  ;;  %v11573_v14 = vld [vmem:[%s31086_s5 + $0x40] sm:$0xff] }
 0x8d9   : > { %10160 = vst.msk [vmem:[#allocation2 + $0x51] sm:$0xff] %vm283_vm0, %v10096_v42  ;;  %10161 = vst.msk [vmem:[#allocation2 + $0x61] sm:$0xff] %vm283_vm0, %v10097_v35  ;;  %v10107_v48 = vmul.f32 %v23336_v61, %v31600_v51  ;;  %v10110_v40 = vmul.f32 %v23336_v61, %v31603_v20  ;;  %v10112_v49 = vmul.f32 %v23336_v61, %v31605_v47  ;;  %v31609_v33 = vmax.f32 %v27682_v59, 0.0 }
 0x8da   : > { %10162 = vst.msk [vmem:[#allocation2 + $0x69] sm:$0xff] %vm283_vm0, %v10098_v36  ;;  %10163 = vst.msk [vmem:[#allocation2 + $0x79] sm:$0xff] %vm283_vm0, %v10099_v5  ;;  %v10111_v56 = vmul.f32 %v23336_v61, %v31604_v58  ;;  %v10113_v12 = vmul.f32 %v23336_v61, %v31606_v32  ;;  %v10114_v42 = vmul.f32 %v23336_v61, %v31607_v1  ;;  %v31610_v28 = vmax.f32 %v27702_v26, 0.0 }
 0x8db   : > { %10164 = vst.msk [vmem:[#allocation2 + $0x81] sm:$0xff] %vm283_vm0, %v10100_v55  ;;  %10165 = vst.msk [vmem:[#allocation2 + $0x91] sm:$0xff] %vm283_vm0, %v10101_v60  ;;  %v10115_v10 = vmul.f32 %v23336_v61, %v31608_v54  ;;  %v10116_v35 = vmul.f32 %v23336_v61, %v31609_v33  ;;  %v31611_v53 = vmax.f32 %v27696_v16, 0.0  ;;  %v10119_v8 = vmul.f32 %v23336_v61, %v31612_v29 }
 0x8dc   : > { %10166 = vst.msk [vmem:[#allocation2 + $0x99] sm:$0xff] %vm283_vm0, %v10102_v37  ;;  %10167 = vst.msk [vmem:[#allocation2 + $0xa9] sm:$0xff] %vm283_vm0, %v10103_v2  ;;  %v10117_v36 = vmul.f32 %v23336_v61, %v31610_v28  ;;  %v31613_v59 = vmax.f32 %v27710_v7, 0.0  ;;  %v31614_v26 = vmax.f32 %v27730_v43, 0.0  ;;  %v31615_v16 = vmax.f32 %v27724_v4, 0.0 }
 0x8dd   : > { %10168 = vst.msk [vmem:[#allocation2 + $0xb1] sm:$0xff] %vm283_vm0, %v10104_v46  ;;  %10169 = vst.msk [vmem:[#allocation2 + $0xc1] sm:$0xff] %vm283_vm0, %v10105_v19  ;;  %v10118_v5 = vmul.f32 %v23336_v61, %v31611_v53  ;;  %v28107_v7 = vpack.c.bf16 %v11574_v6, %v11573_v14  ;;  %v10289_v4 = vld [vmem:[#allocation2 + $0x19] sm:$0xff] }
 0x8de   : > { %10170 = vst.msk [vmem:[#allocation2 + $0xc9] sm:$0xff] %vm283_vm0, %v10106_v39  ;;  %10171 = vst.msk [vmem:[#allocation2 + $0xd9] sm:$0xff] %vm283_vm0, %v10107_v48  ;;  %v10120_v55 = vmul.f32 %v23336_v61, %v31613_v59  ;;  %v10121_v52 = vmul.f32 %v23336_v61, %v31614_v26  ;;  %v10122_v60 = vmul.f32 %v23336_v61, %v31615_v16  ;;  %v10290_v0 = vld [vmem:[#allocation2 + $0x21] sm:$0xff]  ;;  %21189 = vmatprep.mubr.msk.f32.mxu1 %vm283_vm0, %v10289_v4  ;;  %v10291_v43 = vld [vmem:[#allocation2 + $0x31] sm:$0xff] }
 0x8df   : > { %10172 = vst.msk [vmem:[#allocation2 + $0xe1] sm:$0xff] %vm283_vm0, %v10108_v25  ;;  %10173 = vst.msk [vmem:[#allocation2 + $0xf1] sm:$0xff] %vm283_vm0, %v10109_v44  ;;  %22203 = vmatprep.subr.bf16.mxu1 %v28107_v7  ;;  %21190 = vmatmul.mubr.msk.f32.gmra.mrb[2].mxu1 %vm283_vm0, %v10290_v0  ;;  %v10292_v61 = vld [vmem:[#allocation2 + $0x39] sm:$0xff]  ;;  %v10293_v3 = vld [vmem:[#allocation2 + $0x49] sm:$0xff]  ;;  %v31616_v59 = vmax.f32 %v27744_v45, 0.0  ;;  %v31617_v26 = vmax.f32 %v27738_v38, 0.0 }
 0x8e0   : > { %10174 = vst.msk [vmem:[#allocation2 + $0xf9] sm:$0xff] %vm283_vm0, %v10110_v40  ;;  %10175 = vst.msk [vmem:[#allocation2 + $0x109] sm:$0xff] %vm283_vm0, %v10111_v56  ;;  %21192 = vmatprep.mubr.msk.f32.mxu1 %vm283_vm0, %v10291_v43  ;;  %v10294_v37 = vld [vmem:[#allocation2 + $0x51] sm:$0xff]  ;;  %v10295_v63 = vld [vmem:[#allocation2 + $0x61] sm:$0xff]  ;;  %v31618_v16 = vmax.f32 %v27761_v18, 0.0  ;;  %v31619_v4 = vmax.f32 %v27752_v34, 0.0 }
 0x8e1   : > { %10176 = vst.msk [vmem:[#allocation2 + $0x111] sm:$0xff] %vm283_vm0, %v10112_v49  ;;  %10177 = vst.msk [vmem:[#allocation2 + $0x121] sm:$0xff] %vm283_vm0, %v10113_v12  ;;  %v10296_v46 = vld [vmem:[#allocation2 + $0x69] sm:$0xff]  ;;  %v10297_v19 = vld [vmem:[#allocation2 + $0x79] sm:$0xff]  ;;  %v31620_v43 = vmax.f32 %v27772_v30, 0.0  ;;  %v31622_v45 = vmax.f32 %v27786_v41, 0.0 }
 0x8e2   : > { %10178 = vst.msk [vmem:[#allocation2 + $0x129] sm:$0xff] %vm283_vm0, %v10114_v42  ;;  %10179 = vst.msk [vmem:[#allocation2 + $0x139] sm:$0xff] %vm283_vm0, %v10115_v10  ;;  %v10298_v51 = vld [vmem:[#allocation2 + $0x81] sm:$0xff]  ;;  %v10299_v48 = vld [vmem:[#allocation2 + $0x91] sm:$0xff]  ;;  %v31623_v38 = vmax.f32 %v27780_v31, 0.0  ;;  %v31624_v18 = vmax.f32 %v27800_v17, 0.0 }
 0x8e3   : > { %10180 = vst.msk [vmem:[#allocation2 + $0x141] sm:$0xff] %vm283_vm0, %v10116_v35  ;;  %10181 = vst.msk [vmem:[#allocation2 + $0x151] sm:$0xff] %vm283_vm0, %v10117_v36  ;;  %21193 = vmatmul.mubr.msk.f32.gmra.mrb[4].mxu1 %vm283_vm0, %v10292_v61  ;;  %v10300_v57 = vld [vmem:[#allocation2 + $0x99] sm:$0xff]  ;;  %v31625_v34 = vmax.f32 %v27794_v15, 0.0  ;;  %v31628_v41 = vmax.f32 %v27835_v11, 0.0 }
 0x8e4   : > { %10182 = vst.msk [vmem:[#allocation2 + $0x159] sm:$0xff] %vm283_vm0, %v10118_v5  ;;  %10183 = vst.msk [vmem:[#allocation2 + $0x169] sm:$0xff] %vm283_vm0, %v10119_v8  ;;  %21195 = vmatprep.mubr.msk.f32.mxu1 %vm283_vm0, %v10293_v3  ;;  %v10302_v40 = vld [vmem:[#allocation2 + $0xb1] sm:$0xff]  ;;  %v10303_v58 = vld [vmem:[#allocation2 + $0xc1] sm:$0xff]  ;;  %v31621_v3 = vmax.f32 %v27766_v9, 0.0 }
 0x8e5   : > { %10184 = vst.msk [vmem:[#allocation2 + $0x171] sm:$0xff] %vm283_vm0, %v10120_v55  ;;  %10185 = vst.msk [vmem:[#allocation2 + $0x181] sm:$0xff] %vm283_vm0, %v10121_v52  ;;  %v10304_v49 = vld [vmem:[#allocation2 + $0xc9] sm:$0xff]  ;;  %v10305_v32 = vld [vmem:[#allocation2 + $0xd9] sm:$0xff] }
 0x8e6   : > { %10186 = vst.msk [vmem:[#allocation2 + $0x189] sm:$0xff] %vm283_vm0, %v10122_v60  ;;  %v10306_v12 = vld [vmem:[#allocation2 + $0xe1] sm:$0xff]  ;;  %v10307_v1 = vld [vmem:[#allocation2 + $0xf1] sm:$0xff] }
 0x8e7   : > { %21196 = vmatmul.mubr.msk.f32.gmra.mrb[6].mxu1 %vm283_vm0, %v10294_v37  ;;  %v10308_v42 = vld [vmem:[#allocation2 + $0xf9] sm:$0xff]  ;;  %v10309_v14 = vld [vmem:[#allocation2 + $0x109] sm:$0xff] }
 0x8e8   : > { %21198 = vmatprep.mubr.msk.f32.mxu1 %vm283_vm0, %v10295_v63  ;;  %v10059_v2 = vpop.xlane.xlu1 %10058  ;;  %v10310_v54 = vld [vmem:[#allocation2 + $0x111] sm:$0xff]  ;;  %v10311_v33 = vld [vmem:[#allocation2 + $0x121] sm:$0xff] }
 0x8e9   : > { %v10061_v24 = vmax.f32 %v10059_v2, 0.0  ;;  %v10312_v35 = vld [vmem:[#allocation2 + $0x129] sm:$0xff]  ;;  %v10313_v28 = vld [vmem:[#allocation2 + $0x139] sm:$0xff] }
 0x8ea   : > { %v10314_v36 = vld [vmem:[#allocation2 + $0x141] sm:$0xff]  ;;  %v10315_v53 = vld [vmem:[#allocation2 + $0x151] sm:$0xff] }
 0x8eb   : > { %v10064_v27 = vmul.f32 %v28005_v22, %v10061_v24  ;;  %21199 = vmatmul.mubr.msk.f32.gmra.mrb[8].mxu1 %vm283_vm0, %v10296_v46  ;;  %v10301_v22 = vld [vmem:[#allocation2 + $0xa9] sm:$0xff]  ;;  %v10316_v5 = vld [vmem:[#allocation2 + $0x159] sm:$0xff]  ;;  %v10319_v24 = vld [vmem:[#allocation2 + $0x1b1] sm:$0xff] }
 0x8ec   : > { %21201 = vmatprep.mubr.msk.f32.mxu1 %vm283_vm0, %v10297_v19  ;;  %v10317_v8 = vld [vmem:[#allocation2 + $0x169] sm:$0xff]  ;;  %v31626_v19 = vmax.f32 %v27820_v50, 0.0  ;;  %v10318_v31 = vld [vmem:[#allocation2 + $0x171] sm:$0xff]  ;;  %v31629_v15 = vld [vmem:[#allocation22_spill] sm:$0xff] }
 0x8ed   : > { %v10072_v23 = vsel %vm286_vm1, %v10064_v27, 0.0  ;;  %v31631_v50 = vld [vmem:[#allocation24_spill] sm:$0xff]  ;;  %v31635_v11 = vld [vmem:[#allocation26_spill] sm:$0xff]  ;;  %vm17674_vm1 = vcmask 523264  }
 0x8ee   : > { %v10073_v39 = vrot.slane %v10072_v23, 4 }
 0x8ef   : > { %21202 = vmatmul.mubr.msk.f32.gmra.mrb[10].mxu1 %vm283_vm0, %v10298_v51 }
 0x8f0   : > { %v10074_v21 = vadd.f32 %v10073_v39, %v10072_v23  ;;  %21204 = vmatprep.mubr.msk.f32.mxu1 %vm283_vm0, %v10299_v48  ;;  %v31627_v23 = vmax.f32 %v27813_v62, 0.0  ;;  %v31630_v39 = vmax.f32 %v31629_v15, 0.0  ;;  %v31632_v48 = vmax.f32 %v31631_v50, 0.0  ;;  %v31633_v62 = vld [vmem:[#allocation23_spill] sm:$0xff] }
 0x8f2   : > { %v10075_v25 = vrot.slane %v10074_v21, 2 }
 0x8f3   : > { %21205 = vmatmul.mubr.msk.f32.gmra.mrb[12].mxu1 %vm283_vm0, %v10300_v57 }
 0x8f4   : > { %v10076_v44 = vadd.f32 %v10075_v25, %v10074_v21  ;;  %21207 = vmatprep.mubr.msk.f32.mxu1 %vm283_vm0, %v10301_v22  ;;  %v31634_v25 = vmax.f32 %v31633_v62, 0.0  ;;  %v31636_v22 = vmax.f32 %v31635_v11, 0.0 }
 0x8f6   : > { %v10077_v20 = vrot.slane %v10076_v44, 1 }
 0x8f7   : > { %21208 = vmatmul.mubr.msk.f32.gmra.mrb[14].mxu1 %vm283_vm0, %v10302_v40 }
 0x8f8   : > { %v10078_v56 = vadd.f32 %v10077_v20, %v10076_v44  ;;  %21210 = vmatprep.mubr.msk.f32.mxu1 %vm283_vm0, %v10303_v58  ;;  %v31637_v20 = vld [vmem:[#allocation25_spill] sm:$0xff] }
 0x8f9   : > { %v31638_v40 = vmax.f32 %v31637_v20, 0.0 }
 0x8fa   : > { %v18431_v47 = vmul.f32 -1.442695, %v10078_v56  ;;  %v31639_v56 = vld [vmem:[#allocation28_spill] sm:$0xff] }
 0x8fb   : > { %21211 = vmatmul.mubr.msk.f32.gmra.mrb[16].mxu1 %vm283_vm0, %v10304_v49 }
 0x8fc   : > { %23337 = vpow2.f32 %v18431_v47  ;;  %21213 = vmatprep.mubr.msk.f32.mxu1 %vm283_vm0, %v10305_v32  ;;  %v31640_v47 = vmax.f32 %v31639_v56, 0.0  ;;  %v31641_v32 = vld [vmem:[#allocation27_spill] sm:$0xff] }
 0x8ff   : > { %21214 = vmatmul.mubr.msk.f32.gmra.mrb[18].mxu1 %vm283_vm0, %v10306_v12  ;;  %v31642_v12 = vmax.f32 %v31641_v32, 0.0 }
 0x900   : > { %21216 = vmatprep.mubr.msk.f32.mxu1 %vm283_vm0, %v10307_v1 }
 0x903   : > { %21217 = vmatmul.mubr.msk.f32.gmra.mrb[20].mxu1 %vm283_vm0, %v10308_v42  ;;  %v10320_v42 = vld [vmem:[#allocation2 + $0x1b9] sm:$0xff] }
 0x904   : > { %21219 = vmatprep.mubr.msk.f32.mxu1 %vm283_vm0, %v10309_v14  ;;  %v31643_v14 = vld [vmem:[#allocation30_spill] sm:$0xff] }
 0x906   : > { %v23338_v6 = vpop.eup %23337 }
 0x907   : > { %v10086_v10 = vadd.f32 1.0, %v23338_v6  ;;  %21220 = vmatmul.mubr.msk.f32.gmra.mrb[22].mxu1 %vm283_vm0, %v10310_v54  ;;  %v31644_v6 = vmax.f32 %v31643_v14, 0.0 }
 0x908   : > { %21222 = vmatprep.mubr.msk.f32.mxu1 %vm283_vm0, %v10311_v33 }
 0x909   : > { %23339 = vrcp.f32 %v10086_v10  ;;  %v31645_v10 = vld [vmem:[#allocation29_spill] sm:$0xff] }
 0x90a   : > { %v31646_v33 = vmax.f32 %v31645_v10, 0.0  ;;  %v11575_v10 = vld [vmem:[%s31086_s5 + $0x50] sm:$0xff] }
 0x90b   : > { %21223 = vmatmul.mubr.msk.f32.gmra.mrb[24].mxu1 %vm283_vm0, %v10312_v35 }
 0x90c   : > { %21225 = vmatprep.mubr.msk.f32.mxu1 %vm283_vm0, %v10313_v28  ;;  %v31647_v28 = vld [vmem:[#allocation32_spill] sm:$0xff] }
 0x90f   : > { %21226 = vmatmul.mubr.msk.f32.gmra.mrb[26].mxu1 %vm283_vm0, %v10314_v36  ;;  %v31648_v36 = vmax.f32 %v31647_v28, 0.0 }
 0x910   : > { %21228 = vmatprep.mubr.msk.f32.mxu1 %vm283_vm0, %v10315_v53 }
 0x913   : > { %v23340_v29 = vpop.eup %23339  ;;  %21229 = vmatmul.mubr.msk.f32.gmra.mrb[28].mxu1 %vm283_vm0, %v10316_v5  ;;  %v31649_v5 = vld [vmem:[#allocation31_spill] sm:$0xff] }
 0x914   : > { %v10123_v55 = vmul.f32 %v23340_v29, %v31616_v59  ;;  %v10124_v52 = vmul.f32 %v23340_v29, %v31617_v26  ;;  %v10125_v60 = vmul.f32 %v23340_v29, %v31618_v16  ;;  %v10126_v0 = vmul.f32 %v23340_v29, %v31619_v4  ;;  %21231 = vmatprep.mubr.msk.f32.mxu1 %vm283_vm0, %v10317_v8  ;;  %v31653_v16 = vld [vmem:[#allocation33_spill] sm:$0xff] }
 0x915   : > { %v10127_v61 = vmul.f32 %v23340_v29, %v31620_v43  ;;  %v10128_v37 = vmul.f32 %v23340_v29, %v31621_v3  ;;  %v10129_v63 = vmul.f32 %v23340_v29, %v31622_v45  ;;  %v10130_v2 = vmul.f32 %v23340_v29, %v31623_v38  ;;  %v31657_v3 = vld [vmem:[#allocation35_spill] sm:$0xff] }
 0x916   : > { %v10131_v46 = vmul.f32 %v23340_v29, %v31624_v18  ;;  %v10132_v27 = vmul.f32 %v23340_v29, %v31625_v34  ;;  %v10133_v30 = vmul.f32 %v23340_v29, %v31626_v19  ;;  %v10134_v9 = vmul.f32 %v23340_v29, %v31627_v23  ;;  %10187 = vst.msk [vmem:[#allocation2 + $0x1c9] sm:$0xff] %vm283_vm0, %v10123_v55  ;;  %v31651_v55 = vld [vmem:[#allocation34_spill] sm:$0xff]  ;;  %v31664_v19 = vld [vmem:[#allocation39_spill] sm:$0xff] }
 0x917   : > { %10188 = vst.msk [vmem:[#allocation2 + $0x1d1] sm:$0xff] %vm283_vm0, %v10124_v52  ;;  %10189 = vst.msk [vmem:[#allocation2 + $0x1e1] sm:$0xff] %vm283_vm0, %v10125_v60  ;;  %v10135_v17 = vmul.f32 %v23340_v29, %v31628_v41  ;;  %v10136_v51 = vmul.f32 %v23340_v29, %v31630_v39  ;;  %v10137_v21 = vmul.f32 %v23340_v29, %v31632_v48  ;;  %21232 = vmatmul.mubr.msk.f32.gmra.mrb[30].mxu1 %vm283_vm0, %v10318_v31 }
 0x918   : > { %10190 = vst.msk [vmem:[#allocation2 + $0x1e9] sm:$0xff] %vm283_vm0, %v10126_v0  ;;  %v10138_v57 = vmul.f32 %v23340_v29, %v31634_v25  ;;  %10191 = vst.msk [vmem:[#allocation2 + $0x1f9] sm:$0xff] %vm283_vm0, %v10127_v61  ;;  %v10139_v44 = vmul.f32 %v23340_v29, %v31636_v22  ;;  %v10140_v58 = vmul.f32 %v23340_v29, %v31638_v40  ;;  %21234 = vmatprep.mubr.msk.f32.mxu1 %vm283_vm0, %v10319_v24  ;;  %v31655_v0 = vld [vmem:[#allocation36_spill] sm:$0xff]  ;;  %v31661_v24 = vld [vmem:[#allocation37_spill] sm:$0xff] }
 0x919   : > { %10192 = vst.msk [vmem:[#allocation2 + $0x201] sm:$0xff] %vm283_vm0, %v10128_v37  ;;  %10193 = vst.msk [vmem:[#allocation2 + $0x211] sm:$0xff] %vm283_vm0, %v10129_v63  ;;  %v10141_v49 = vmul.f32 %v23340_v29, %v31640_v47  ;;  %v10142_v1 = vmul.f32 %v23340_v29, %v31642_v12  ;;  %v10143_v54 = vmul.f32 %v23340_v29, %v31644_v6  ;;  %v31650_v8 = vmax.f32 %v31649_v5, 0.0  ;;  %v31659_v63 = vld [vmem:[#allocation38_spill] sm:$0xff]  ;;  %v28288_v5 = vld [vmem:[#allocation2 + $0x18] sm:$0xff] }
 0x91a   : > { %10194 = vst.msk [vmem:[#allocation2 + $0x219] sm:$0xff] %vm283_vm0, %v10130_v2  ;;  %10195 = vst.msk [vmem:[#allocation2 + $0x229] sm:$0xff] %vm283_vm0, %v10131_v46  ;;  %v10144_v35 = vmul.f32 %v23340_v29, %v31646_v33  ;;  %v10145_v53 = vmul.f32 %v23340_v29, %v31648_v36  ;;  %v31652_v26 = vmax.f32 %v31651_v55, 0.0  ;;  %v31654_v60 = vmax.f32 %v31653_v16, 0.0  ;;  %v10219_v6 = vld [vmem:[#allocation2] sm:$0xff]  ;;  %v11576_v33 = vld [vmem:[%s31086_s5 + $0x58] sm:$0xff] }
 0x91b   : > { %10196 = vst.msk [vmem:[#allocation2 + $0x231] sm:$0xff] %vm283_vm0, %v10132_v27  ;;  %10197 = vst.msk [vmem:[#allocation2 + $0x241] sm:$0xff] %vm283_vm0, %v10133_v30  ;;  %v10146_v59 = vmul.f32 %v23340_v29, %v31650_v8  ;;  %v31656_v43 = vmax.f32 %v31655_v0, 0.0  ;;  %v31658_v37 = vmax.f32 %v31657_v3, 0.0  ;;  %v31660_v38 = vmax.f32 %v31659_v63, 0.0  ;;  %21235 = vmatmul.mubr.msk.f32.gmra.mrb[32].mxu1 %vm283_vm0, %v10320_v42  ;;  %v12282_v36 = vld [vmem:[%s31086_s5 + $0x60] sm:$0xff] }
 0x91c   : > { %10198 = vst.msk [vmem:[#allocation2 + $0x249] sm:$0xff] %vm283_vm0, %v10134_v9  ;;  %10199 = vst.msk [vmem:[#allocation2 + $0x259] sm:$0xff] %vm283_vm0, %v10135_v17  ;;  %v10147_v52 = vmul.f32 %v23340_v29, %v31652_v26  ;;  %v10148_v4 = vmul.f32 %v23340_v29, %v31654_v60  ;;  %v31662_v18 = vmax.f32 %v31661_v24, 0.0  ;;  %v31663_v34 = vmax.f32 %v27961_v13, 0.0  ;;  %v28299_v55 = vld [vmem:[#allocation2 + $0x30] sm:$0xff]  ;;  %v28308_v26 = vld [vmem:[#allocation2 + $0x48] sm:$0xff] }
 0x91d   : > { %10200 = vst.msk [vmem:[#allocation2 + $0x261] sm:$0xff] %vm283_vm0, %v10136_v51  ;;  %10201 = vst.msk [vmem:[#allocation2 + $0x271] sm:$0xff] %vm283_vm0, %v10137_v21  ;;  %v10149_v61 = vmul.f32 %v23340_v29, %v31656_v43  ;;  %v10150_v45 = vmul.f32 %v23340_v29, %v31658_v37  ;;  %v10151_v2 = vmul.f32 %v23340_v29, %v31660_v38  ;;  %v31665_v30 = vmax.f32 %v31664_v19, 0.0  ;;  %v10321_v13 = vld [vmem:[#allocation2 + $0x1c9] sm:$0xff]  ;;  %v28316_v16 = vld [vmem:[#allocation2 + $0x60] sm:$0xff] }
 0x91e   : > { %10202 = vst.msk [vmem:[#allocation2 + $0x279] sm:$0xff] %vm283_vm0, %v10138_v57  ;;  %10203 = vst.msk [vmem:[#allocation2 + $0x289] sm:$0xff] %vm283_vm0, %v10139_v44  ;;  %v10152_v46 = vmul.f32 %v23340_v29, %v31662_v18  ;;  %v10153_v27 = vmul.f32 %v23340_v29, %v31663_v34  ;;  %21237 = vmatprep.mubr.msk.f32.mxu1 %vm283_vm0, %v10321_v13  ;;  %v10323_v9 = vld [vmem:[#allocation2 + $0x1e1] sm:$0xff]  ;;  %v22206_v28 = vpack.c.bf16 %v11576_v33, %v11575_v10  ;;  %v28332_v43 = vld [vmem:[#allocation2 + $0x90] sm:$0xff] }
 0x91f   : > { %10204 = vst.msk [vmem:[#allocation2 + $0x291] sm:$0xff] %vm283_vm0, %v10140_v58  ;;  %10205 = vst.msk [vmem:[#allocation2 + $0x2a1] sm:$0xff] %vm283_vm0, %v10141_v49  ;;  %v10154_v23 = vmul.f32 %v23340_v29, %v31665_v30  ;;  %v10322_v29 = vld [vmem:[#allocation2 + $0x1d1] sm:$0xff]  ;;  %v10324_v31 = vld [vmem:[#allocation2 + $0x1e9] sm:$0xff] }
 0x920   : > { %10206 = vst.msk [vmem:[#allocation2 + $0x2a9] sm:$0xff] %vm283_vm0, %v10142_v1  ;;  %10207 = vst.msk [vmem:[#allocation2 + $0x2b9] sm:$0xff] %vm283_vm0, %v10143_v54  ;;  %21238 = vmatmul.mubr.msk.f32.gmra.mrb[34].mxu1 %vm283_vm0, %v10322_v29  ;;  %v10325_v41 = vld [vmem:[#allocation2 + $0x1f9] sm:$0xff]  ;;  %v10326_v17 = vld [vmem:[#allocation2 + $0x201] sm:$0xff] }
 0x921   : > { %10208 = vst.msk [vmem:[#allocation2 + $0x2c1] sm:$0xff] %vm283_vm0, %v10144_v35  ;;  %10209 = vst.msk [vmem:[#allocation2 + $0x2d1] sm:$0xff] %vm283_vm0, %v10145_v53  ;;  %21240 = vmatprep.mubr.msk.f32.mxu1 %vm283_vm0, %v10323_v9  ;;  %v10327_v15 = vld [vmem:[#allocation2 + $0x211] sm:$0xff]  ;;  %v10328_v39 = vld [vmem:[#allocation2 + $0x219] sm:$0xff] }
 0x922   : > { %10210 = vst.msk [vmem:[#allocation2 + $0x2d9] sm:$0xff] %vm283_vm0, %v10146_v59  ;;  %10211 = vst.msk [vmem:[#allocation2 + $0x2e9] sm:$0xff] %vm283_vm0, %v10147_v52  ;;  %v10329_v51 = vld [vmem:[#allocation2 + $0x229] sm:$0xff]  ;;  %v10330_v50 = vld [vmem:[#allocation2 + $0x231] sm:$0xff] }
 0x923   : > { %10212 = vst.msk [vmem:[#allocation2 + $0x2f1] sm:$0xff] %vm283_vm0, %v10148_v4  ;;  %10213 = vst.msk [vmem:[#allocation2 + $0x301] sm:$0xff] %vm283_vm0, %v10149_v61  ;;  %v10331_v48 = vld [vmem:[#allocation2 + $0x241] sm:$0xff]  ;;  %v10332_v21 = vld [vmem:[#allocation2 + $0x249] sm:$0xff] }
 0x924   : > { %10214 = vst.msk [vmem:[#allocation2 + $0x309] sm:$0xff] %vm283_vm0, %v10150_v45  ;;  %10215 = vst.msk [vmem:[#allocation2 + $0x319] sm:$0xff] %vm283_vm0, %v10151_v2  ;;  %21241 = vmatmul.mubr.msk.f32.gmra.mrb[36].mxu1 %vm283_vm0, %v10324_v31  ;;  %v10333_v62 = vld [vmem:[#allocation2 + $0x259] sm:$0xff]  ;;  %v10334_v25 = vld [vmem:[#allocation2 + $0x261] sm:$0xff] }
 0x925   : > { %10216 = vst.msk [vmem:[#allocation2 + $0x321] sm:$0xff] %vm283_vm0, %v10152_v46  ;;  %10217 = vst.msk [vmem:[#allocation2 + $0x331] sm:$0xff] %vm283_vm0, %v10153_v27  ;;  %21243 = vmatprep.mubr.msk.f32.mxu1 %vm283_vm0, %v10325_v41  ;;  %v10335_v57 = vld [vmem:[#allocation2 + $0x271] sm:$0xff]  ;;  %v10336_v11 = vld [vmem:[#allocation2 + $0x279] sm:$0xff] }
 0x926   : > { %10218 = vst.msk [vmem:[#allocation2 + $0x339] sm:$0xff] %vm283_vm0, %v10154_v23  ;;  %v10337_v22 = vld [vmem:[#allocation2 + $0x289] sm:$0xff]  ;;  %v10338_v44 = vld [vmem:[#allocation2 + $0x291] sm:$0xff]  ;;  %v10339_v20 = vld [vmem:[#allocation2 + $0x2a1] sm:$0xff] }
 0x927   : > { %v10340_v40 = vld [vmem:[#allocation2 + $0x2a9] sm:$0xff]  ;;  %v10341_v58 = vld [vmem:[#allocation2 + $0x2b9] sm:$0xff] }
 0x928   : > { %21244 = vmatmul.mubr.msk.f32.gmra.mrb[38].mxu1 %vm283_vm0, %v10326_v17  ;;  %v10342_v56 = vld [vmem:[#allocation2 + $0x2c1] sm:$0xff]  ;;  %v10343_v47 = vld [vmem:[#allocation2 + $0x2d1] sm:$0xff] }
 0x929   : > { %21246 = vmatprep.mubr.msk.f32.mxu1 %vm283_vm0, %v10327_v15  ;;  %v10344_v49 = vld [vmem:[#allocation2 + $0x2d9] sm:$0xff]  ;;  %v10345_v32 = vld [vmem:[#allocation2 + $0x2e9] sm:$0xff] }
 0x92a   : > { %v10346_v12 = vld [vmem:[#allocation2 + $0x2f1] sm:$0xff]  ;;  %v10347_v1 = vld [vmem:[#allocation2 + $0x301] sm:$0xff] }
 0x92b   : > { %v10348_v42 = vld [vmem:[#allocation2 + $0x309] sm:$0xff]  ;;  %v10349_v14 = vld [vmem:[#allocation2 + $0x319] sm:$0xff] }
 0x92c   : > { %21247 = vmatmul.mubr.msk.f32.gmra.mrb[40].mxu1 %vm283_vm0, %v10328_v39  ;;  %v10350_v54 = vld [vmem:[#allocation2 + $0x321] sm:$0xff]  ;;  %v28312_v52 = vld [vmem:[#allocation2 + $0x50] sm:$0xff]  ;;  %v28324_v4 = vld [vmem:[#allocation2 + $0x78] sm:$0xff] }
 0x92d   : > { %21249 = vmatprep.mubr.msk.f32.mxu1 %vm283_vm0, %v10329_v51  ;;  %v10220_v35 = vld [vmem:[#allocation2 + $0x8] sm:$0xff]  ;;  %v28295_v59 = vld [vmem:[#allocation2 + $0x20] sm:$0xff]  ;;  %v28336_v61 = vld [vmem:[#allocation2 + $0x98] sm:$0xff] }
 0x92e   : > { %v12283_v53 = vld [vmem:[%s31086_s5 + $0x68] sm:$0xff]  ;;  %v28328_v0 = vld [vmem:[#allocation2 + $0x80] sm:$0xff]  ;;  %v28344_v37 = vld [vmem:[#allocation2 + $0xb0] sm:$0xff] }
 0x92f   : > { %v28293_v8 = vpack.c.bf16 %v12283_v53, %v12282_v36  ;;  %v28320_v60 = vld [vmem:[#allocation2 + $0x68] sm:$0xff]  ;;  %v28348_v45 = vld [vmem:[#allocation2 + $0xc0] sm:$0xff]  ;;  %v28356_v38 = vld [vmem:[#allocation2 + $0xd8] sm:$0xff] }
 0x930   : > { %21250 = vmatmul.mubr.msk.f32.gmra.mrb[42].mxu1 %vm283_vm0, %v10330_v50  ;;  %v28340_v3 = vld [vmem:[#allocation2 + $0xa8] sm:$0xff]  ;;  %v28360_v2 = vld [vmem:[#allocation2 + $0xe0] sm:$0xff]  ;;  %v28364_v24 = vld [vmem:[#allocation2 + $0xf0] sm:$0xff] }
 0x931   : > { %21252 = vmatprep.mubr.msk.f32.mxu1 %vm283_vm0, %v10331_v48  ;;  %v28352_v63 = vld [vmem:[#allocation2 + $0xc8] sm:$0xff]  ;;  %v28368_v18 = vld [vmem:[#allocation2 + $0xf8] sm:$0xff]  ;;  %v28376_v34 = vld [vmem:[#allocation2 + $0x110] sm:$0xff] }
 0x932   : > { %v28372_v46 = vld [vmem:[#allocation2 + $0x108] sm:$0xff]  ;;  %v28380_v27 = vld [vmem:[#allocation2 + $0x120] sm:$0xff]  ;;  %v28388_v30 = vld [vmem:[#allocation2 + $0x138] sm:$0xff] }
 0x933   : > { %v28384_v19 = vld [vmem:[#allocation2 + $0x128] sm:$0xff]  ;;  %v28392_v23 = vld [vmem:[#allocation2 + $0x140] sm:$0xff]  ;;  %v28396_v13 = vld [vmem:[#allocation2 + $0x150] sm:$0xff] }
 0x934   : > { %21253 = vmatmul.mubr.msk.f32.gmra.mrb[44].mxu1 %vm283_vm0, %v10332_v21  ;;  %v28400_v29 = vld [vmem:[#allocation2 + $0x158] sm:$0xff]  ;;  %v28404_v9 = vld [vmem:[#allocation2 + $0x168] sm:$0xff]  ;;  %v10251_v31 = vld [vmem:[#allocation2 + $0x1b0] sm:$0xff] }
 0x935   : > { %21255 = vmatprep.mubr.msk.f32.mxu1 %vm283_vm0, %v10333_v62  ;;  %v28408_v41 = vld [vmem:[#allocation2 + $0x170] sm:$0xff]  ;;  %v10252_v17 = vld [vmem:[#allocation2 + $0x1b8] sm:$0xff]  ;;  %v28414_v15 = vld [vmem:[#allocation2 + $0x1c8] sm:$0xff] }
 0x936   : > { %v28418_v39 = vld [vmem:[#allocation2 + $0x1d0] sm:$0xff]  ;;  %v28422_v51 = vld [vmem:[#allocation2 + $0x1e0] sm:$0xff]  ;;  %v28426_v50 = vld [vmem:[#allocation2 + $0x1e8] sm:$0xff] }
 0x937   : > { %v28430_v48 = vld [vmem:[#allocation2 + $0x1f8] sm:$0xff]  ;;  %v28434_v21 = vld [vmem:[#allocation2 + $0x200] sm:$0xff]  ;;  %v28438_v62 = vld [vmem:[#allocation2 + $0x210] sm:$0xff] }
 0x938   : > { %21256 = vmatmul.mubr.msk.f32.gmra.mrb[46].mxu1 %vm283_vm0, %v10334_v25  ;;  %v28442_v25 = vld [vmem:[#allocation2 + $0x218] sm:$0xff]  ;;  %v28514_v10 = vld [vmem:[#allocation2 + $0x2f0] sm:$0xff]  ;;  %v28518_v33 = vld [vmem:[#allocation2 + $0x300] sm:$0xff] }
 0x939   : > { %21258 = vmatprep.mubr.msk.f32.mxu1 %vm283_vm0, %v10335_v57  ;;  %v28446_v57 = vld [vmem:[#allocation2 + $0x228] sm:$0xff]  ;;  %31667 = vst [vmem:[#allocation41_spill] sm:$0xff] %v28514_v10  ;;  %31668 = vst [vmem:[#allocation42_spill] sm:$0xff] %v28518_v33  ;;  %v28530_v53 = vld [vmem:[#allocation2 + $0x320] sm:$0xff] }
 0x93a   : > { %v11509_v36 = vld [vmem:[#allocation2 + $0x2] sm:$0xff] }
 0x93c   : > { %21259 = vmatmul.mubr.msk.f32.gmra.mrb[48].mxu1 %vm283_vm0, %v10336_v11  ;;  %v28450_v11 = vld [vmem:[#allocation2 + $0x230] sm:$0xff] }
 0x93d   : > { %21261 = vmatprep.mubr.msk.f32.mxu1 %vm283_vm0, %v10337_v22  ;;  %v28454_v22 = vld [vmem:[#allocation2 + $0x240] sm:$0xff] }
 0x940   : > { %21262 = vmatmul.mubr.msk.f32.gmra.mrb[50].mxu1 %vm283_vm0, %v10338_v44  ;;  %v28458_v44 = vld [vmem:[#allocation2 + $0x248] sm:$0xff] }
 0x941   : > { %21264 = vmatprep.mubr.msk.f32.mxu1 %vm283_vm0, %v10339_v20  ;;  %v28462_v20 = vld [vmem:[#allocation2 + $0x258] sm:$0xff] }
 0x944   : > { %21265 = vmatmul.mubr.msk.f32.gmra.mrb[52].mxu1 %vm283_vm0, %v10340_v40  ;;  %v28466_v40 = vld [vmem:[#allocation2 + $0x260] sm:$0xff] }
 0x945   : > { %21267 = vmatprep.mubr.msk.f32.mxu1 %vm283_vm0, %v10341_v58  ;;  %v28470_v58 = vld [vmem:[#allocation2 + $0x270] sm:$0xff] }
 0x948   : > { %21268 = vmatmul.mubr.msk.f32.gmra.mrb[54].mxu1 %vm283_vm0, %v10342_v56  ;;  %v28474_v56 = vld [vmem:[#allocation2 + $0x278] sm:$0xff] }
 0x949   : > { %21270 = vmatprep.mubr.msk.f32.mxu1 %vm283_vm0, %v10343_v47  ;;  %v28478_v47 = vld [vmem:[#allocation2 + $0x288] sm:$0xff] }
 0x94c   : > { %21271 = vmatmul.mubr.msk.f32.gmra.mrb[56].mxu1 %vm283_vm0, %v10344_v49  ;;  %v28482_v49 = vld [vmem:[#allocation2 + $0x290] sm:$0xff] }
 0x94d   : > { %21273 = vmatprep.mubr.msk.f32.mxu1 %vm283_vm0, %v10345_v32  ;;  %v28486_v32 = vld [vmem:[#allocation2 + $0x2a0] sm:$0xff] }
 0x950   : > { %21274 = vmatmul.mubr.msk.f32.gmra.mrb[58].mxu1 %vm283_vm0, %v10346_v12  ;;  %v28490_v12 = vld [vmem:[#allocation2 + $0x2a8] sm:$0xff] }
 0x951   : > { %21276 = vmatprep.mubr.msk.f32.mxu1 %vm283_vm0, %v10347_v1  ;;  %v28494_v1 = vld [vmem:[#allocation2 + $0x2b8] sm:$0xff] }
 0x954   : > { %21277 = vmatmul.mubr.msk.f32.gmra.mrb[60].mxu1 %vm283_vm0, %v10348_v42  ;;  %v28498_v42 = vld [vmem:[#allocation2 + $0x2c0] sm:$0xff] }
 0x955   : > { %21279 = vmatprep.mubr.msk.f32.mxu1 %vm283_vm0, %v10349_v14  ;;  %v28502_v14 = vld [vmem:[#allocation2 + $0x2d0] sm:$0xff] }
 0x958   : > { %21280 = vmatmul.mubr.msk.f32.gmra.mrb[62].mxu1 %vm283_vm0, %v10350_v54  ;;  %v28510_v54 = vld [vmem:[#allocation2 + $0x2e8] sm:$0xff] }
 0x959   : > { %21290 = vmatprep.mubr.msk.f32.mxu1 %vm283_vm0, %v10219_v6  ;;  %v28506_v6 = vld [vmem:[#allocation2 + $0x2d8] sm:$0xff]  ;;  %31666 = vst [vmem:[#allocation40_spill] sm:$0xff] %v28510_v54 }
 0x95c   : > { %21291 = vmatmul.mubr.msk.f32.vlgmr.msra.gmra.mrb[0].mxu1 %vm283_vm0, %v10220_v35  ;;  %v28522_v35 = vld [vmem:[#allocation2 + $0x308] sm:$0xff] }
 0x95d   : > { %22205 = vmatpush3.bf16.msra.mxu1 %v28107_v7  ;;  %21293 = vmatprep.mubr.msk.f32.mxu1 %vm283_vm0, %v28288_v5  ;;  %v28304_v7 = vld [vmem:[#allocation2 + $0x38] sm:$0xff]  ;;  %31669 = vst [vmem:[#allocation43_spill] sm:$0xff] %v28522_v35 }
 0x95e   : > { %22207 = vmatprep.subr.bf16.mxu1 %v22206_v28 }
 0x960   : > { %21294 = vmatmul.mubr.msk.f32.gmra.mrb[2].mxu1 %vm283_vm0, %v28295_v59 }
 0x961   : > { %21296 = vmatprep.mubr.msk.f32.mxu1 %vm283_vm0, %v28299_v55  ;;  %22209 = vmatpush3.bf16.msra.mxu1 %v22206_v28  ;;  %v28526_v28 = vld [vmem:[#allocation2 + $0x318] sm:$0xff] }
 0x962   : > { %22211 = vmatprep.subr.bf16.mxu1 %v28293_v8  ;;  %31670 = vst [vmem:[#allocation44_spill] sm:$0xff] %v28526_v28 }
 0x964   : > { %21297 = vmatmul.mubr.msk.f32.gmra.mrb[4].mxu1 %vm283_vm0, %v28304_v7 }
 0x965   : > { %21299 = vmatprep.mubr.msk.f32.mxu1 %vm283_vm0, %v28308_v26 }
 0x968   : > { %21300 = vmatmul.mubr.msk.f32.gmra.mrb[6].mxu1 %vm283_vm0, %v28312_v52 }
 0x969   : > { %21302 = vmatprep.mubr.msk.f32.mxu1 %vm283_vm0, %v28316_v16 }
 0x96c   : > { %21303 = vmatmul.mubr.msk.f32.gmra.mrb[8].mxu1 %vm283_vm0, %v28320_v60 }
 0x96d   : > { %21305 = vmatprep.mubr.msk.f32.mxu1 %vm283_vm0, %v28324_v4 }
 0x970   : > { %21306 = vmatmul.mubr.msk.f32.gmra.mrb[10].mxu1 %vm283_vm0, %v28328_v0 }
 0x971   : > { %21308 = vmatprep.mubr.msk.f32.mxu1 %vm283_vm0, %v28332_v43 }
 0x974   : > { %21309 = vmatmul.mubr.msk.f32.gmra.mrb[12].mxu1 %vm283_vm0, %v28336_v61 }
 0x975   : > { %21311 = vmatprep.mubr.msk.f32.mxu1 %vm283_vm0, %v28340_v3 }
 0x978   : > { %21312 = vmatmul.mubr.msk.f32.gmra.mrb[14].mxu1 %vm283_vm0, %v28344_v37 }
 0x979   : > { %21314 = vmatprep.mubr.msk.f32.mxu1 %vm283_vm0, %v28348_v45 }
 0x97c   : > { %21315 = vmatmul.mubr.msk.f32.gmra.mrb[16].mxu1 %vm283_vm0, %v28352_v63 }
 0x97d   : > { %21317 = vmatprep.mubr.msk.f32.mxu1 %vm283_vm0, %v28356_v38 }
 0x980   : > { %21318 = vmatmul.mubr.msk.f32.gmra.mrb[18].mxu1 %vm283_vm0, %v28360_v2 }
 0x981   : > { %21320 = vmatprep.mubr.msk.f32.mxu1 %vm283_vm0, %v28364_v24 }
 0x984   : > { %21321 = vmatmul.mubr.msk.f32.gmra.mrb[20].mxu1 %vm283_vm0, %v28368_v18 }
 0x985   : > { %21323 = vmatprep.mubr.msk.f32.mxu1 %vm283_vm0, %v28372_v46 }
 0x988   : > { %21324 = vmatmul.mubr.msk.f32.gmra.mrb[22].mxu1 %vm283_vm0, %v28376_v34 }
 0x989   : > { %21326 = vmatprep.mubr.msk.f32.mxu1 %vm283_vm0, %v28380_v27 }
 0x98c   : > { %21327 = vmatmul.mubr.msk.f32.gmra.mrb[24].mxu1 %vm283_vm0, %v28384_v19 }
 0x98d   : > { %21329 = vmatprep.mubr.msk.f32.mxu1 %vm283_vm0, %v28388_v30 }
 0x990   : > { %21330 = vmatmul.mubr.msk.f32.gmra.mrb[26].mxu1 %vm283_vm0, %v28392_v23 }
 0x991   : > { %21332 = vmatprep.mubr.msk.f32.mxu1 %vm283_vm0, %v28396_v13 }
 0x994   : > { %21333 = vmatmul.mubr.msk.f32.gmra.mrb[28].mxu1 %vm283_vm0, %v28400_v29 }
 0x995   : > { %21335 = vmatprep.mubr.msk.f32.mxu1 %vm283_vm0, %v28404_v9 }
 0x998   : > { %21336 = vmatmul.mubr.msk.f32.gmra.mrb[30].mxu1 %vm283_vm0, %v28408_v41 }
 0x999   : > { %21338 = vmatprep.mubr.msk.f32.mxu1 %vm283_vm0, %v10251_v31  ;;  %v12284_v31 = vld [vmem:[%s31086_s5 + $0x70] sm:$0xff] }
 0x99c   : > { %21339 = vmatmul.mubr.msk.f32.gmra.mrb[32].mxu1 %vm283_vm0, %v10252_v17  ;;  %v12285_v17 = vld [vmem:[%s31086_s5 + $0x78] sm:$0xff] }
 0x99d   : > { %21341 = vmatprep.mubr.msk.f32.mxu1 %vm283_vm0, %v28414_v15 }
 0x9a0   : > { %21342 = vmatmul.mubr.msk.f32.gmra.mrb[34].mxu1 %vm283_vm0, %v28418_v39 }
 0x9a1   : > { %21344 = vmatprep.mubr.msk.f32.mxu1 %vm283_vm0, %v28422_v51 }
 0x9a4   : > { %21345 = vmatmul.mubr.msk.f32.gmra.mrb[36].mxu1 %vm283_vm0, %v28426_v50 }
 0x9a5   : > { %21347 = vmatprep.mubr.msk.f32.mxu1 %vm283_vm0, %v28430_v48 }
 0x9a8   : > { %21348 = vmatmul.mubr.msk.f32.gmra.mrb[38].mxu1 %vm283_vm0, %v28434_v21 }
 0x9a9   : > { %21350 = vmatprep.mubr.msk.f32.mxu1 %vm283_vm0, %v28438_v62 }
 0x9ac   : > { %21351 = vmatmul.mubr.msk.f32.gmra.mrb[40].mxu1 %vm283_vm0, %v28442_v25 }
 0x9ad   : > { %21353 = vmatprep.mubr.msk.f32.mxu1 %vm283_vm0, %v28446_v57 }
 0x9b0   : > { %21354 = vmatmul.mubr.msk.f32.gmra.mrb[42].mxu1 %vm283_vm0, %v28450_v11 }
 0x9b1   : > { %21356 = vmatprep.mubr.msk.f32.mxu1 %vm283_vm0, %v28454_v22 }
 0x9b4   : > { %21357 = vmatmul.mubr.msk.f32.gmra.mrb[44].mxu1 %vm283_vm0, %v28458_v44 }
 0x9b5   : > { %21359 = vmatprep.mubr.msk.f32.mxu1 %vm283_vm0, %v28462_v20 }
 0x9b8   : > { %21360 = vmatmul.mubr.msk.f32.gmra.mrb[46].mxu1 %vm283_vm0, %v28466_v40 }
 0x9b9   : > { %21362 = vmatprep.mubr.msk.f32.mxu1 %vm283_vm0, %v28470_v58 }
 0x9bc   : > { %21363 = vmatmul.mubr.msk.f32.gmra.mrb[48].mxu1 %vm283_vm0, %v28474_v56 }
 0x9bd   : > { %21365 = vmatprep.mubr.msk.f32.mxu1 %vm283_vm0, %v28478_v47 }
 0x9c0   : > { %21366 = vmatmul.mubr.msk.f32.gmra.mrb[50].mxu1 %vm283_vm0, %v28482_v49 }
 0x9c1   : > { %21368 = vmatprep.mubr.msk.f32.mxu1 %vm283_vm0, %v28486_v32 }
 0x9c4   : > { %21369 = vmatmul.mubr.msk.f32.gmra.mrb[52].mxu1 %vm283_vm0, %v28490_v12 }
 0x9c5   : > { %21371 = vmatprep.mubr.msk.f32.mxu1 %vm283_vm0, %v28494_v1 }
 0x9c8   : > { %21372 = vmatmul.mubr.msk.f32.gmra.mrb[54].mxu1 %vm283_vm0, %v28498_v42 }
 0x9c9   : > { %21374 = vmatprep.mubr.msk.f32.mxu1 %vm283_vm0, %v28502_v14 }
 0x9cc   : > { %21375 = vmatmul.mubr.msk.f32.gmra.mrb[56].mxu1 %vm283_vm0, %v28506_v6 }
 0x9cd   : > { %21377 = vmatprep.mubr.msk.f32.mxu1 %vm283_vm0, %v28510_v54  ;;  %v28548_v54 = vld [vmem:[#allocation2 + $0x1a] sm:$0xff] }
 0x9d0   : > { %21378 = vmatmul.mubr.msk.f32.gmra.mrb[58].mxu1 %vm283_vm0, %v28514_v10  ;;  %v12992_v10 = vld [vmem:[%s31086_s5 + $0x88] sm:$0xff] }
 0x9d1   : > { %21380 = vmatprep.mubr.msk.f32.mxu1 %vm283_vm0, %v28518_v33  ;;  %v22214_v33 = vpack.c.bf16 %v12285_v17, %v12284_v31  ;;  %v28555_v31 = vld [vmem:[#allocation2 + $0x22] sm:$0xff]  ;;  %v28559_v17 = vld [vmem:[#allocation2 + $0x32] sm:$0xff] }
 0x9d2   : > { %31671 = vst [vmem:[#allocation45_spill] sm:$0xff] %v28559_v17 }
 0x9d4   : > { %21381 = vmatmul.mubr.msk.f32.gmra.mrb[60].mxu1 %vm283_vm0, %v28522_v35  ;;  %v11510_v35 = vld [vmem:[#allocation2 + $0xa] sm:$0xff] }
 0x9d5   : > { %21383 = vmatprep.mubr.msk.f32.mxu1 %vm283_vm0, %v28526_v28  ;;  %v12991_v28 = vld [vmem:[%s31086_s5 + $0x80] sm:$0xff] }
 0x9d8   : > { %21384 = vmatmul.mubr.msk.f32.gmra.mrb[62].mxu1 %vm283_vm0, %v28530_v53 }
 0x9d9   : > { %21394 = vmatprep.mubr.msk.f32.mxu1 %vm283_vm0, %v11509_v36  ;;  %v28553_v36 = vpack.c.bf16 %v12992_v10, %v12991_v28  ;;  %v28568_v10 = vld [vmem:[#allocation2 + $0x4a] sm:$0xff]  ;;  %v28576_v28 = vld [vmem:[#allocation2 + $0x62] sm:$0xff] }
 0x9da   : > { %31673 = vst [vmem:[#allocation47_spill] sm:$0xff] %v28568_v10  ;;  %31675 = vst [vmem:[#allocation49_spill] sm:$0xff] %v28576_v28 }
 0x9dc   : > { %21395 = vmatmul.mubr.msk.f32.vlgmr.msra.gmra.mrb[0].mxu1 %vm283_vm0, %v11510_v35  ;;  %v28572_v35 = vld [vmem:[#allocation2 + $0x52] sm:$0xff] }
 0x9dd   : > { %22213 = vmatpush3.bf16.msra.mxu1 %v28293_v8  ;;  %21397 = vmatprep.mubr.msk.f32.mxu1 %vm283_vm0, %v28548_v54  ;;  %v28564_v8 = vld [vmem:[#allocation2 + $0x3a] sm:$0xff]  ;;  %31674 = vst [vmem:[#allocation48_spill] sm:$0xff] %v28572_v35 }
 0x9de   : > { %22215 = vmatprep.subr.bf16.mxu1 %v22214_v33  ;;  %31672 = vst [vmem:[#allocation46_spill] sm:$0xff] %v28564_v8 }
 0x9e0   : > { %21398 = vmatmul.mubr.msk.f32.gmra.mrb[2].mxu1 %vm283_vm0, %v28555_v31 }
 0x9e1   : > { %21400 = vmatprep.mubr.msk.f32.mxu1 %vm283_vm0, %v28559_v17  ;;  %22217 = vmatpush3.bf16.msra.mxu1 %v22214_v33  ;;  %v28580_v33 = vld [vmem:[#allocation2 + $0x6a] sm:$0xff]  ;;  %v28668_v17 = vld [vmem:[#allocation2 + $0x172] sm:$0xff] }
 0x9e2   : > { %22219 = vmatprep.subr.bf16.mxu1 %v28553_v36  ;;  %31676 = vst [vmem:[#allocation50_spill] sm:$0xff] %v28580_v33  ;;  %31698 = vst [vmem:[#allocation9_spill] sm:$0xff] %v28668_v17 }
 0x9e4   : > { %21401 = vmatmul.mubr.msk.f32.gmra.mrb[4].mxu1 %vm283_vm0, %v28564_v8  ;;  %v28584_v8 = vld [vmem:[#allocation2 + $0x7a] sm:$0xff] }
 0x9e5   : > { %21403 = vmatprep.mubr.msk.f32.mxu1 %vm283_vm0, %v28568_v10  ;;  %31677 = vst [vmem:[#allocation51_spill] sm:$0xff] %v28584_v8  ;;  %v28588_v10 = vld [vmem:[#allocation2 + $0x82] sm:$0xff] }
 0x9e6   : > { %31678 = vst [vmem:[#allocation52_spill] sm:$0xff] %v28588_v10 }
 0x9e8   : > { %21404 = vmatmul.mubr.msk.f32.gmra.mrb[6].mxu1 %vm283_vm0, %v28572_v35  ;;  %v28592_v35 = vld [vmem:[#allocation2 + $0x92] sm:$0xff] }
 0x9e9   : > { %21406 = vmatprep.mubr.msk.f32.mxu1 %vm283_vm0, %v28576_v28  ;;  %31679 = vst [vmem:[#allocation53_spill] sm:$0xff] %v28592_v35  ;;  %v28596_v28 = vld [vmem:[#allocation2 + $0x9a] sm:$0xff] }
 0x9ea   : > { %31680 = vst [vmem:[#allocation54_spill] sm:$0xff] %v28596_v28 }
 0x9ec   : > { %21407 = vmatmul.mubr.msk.f32.gmra.mrb[8].mxu1 %vm283_vm0, %v28580_v33  ;;  %v28600_v33 = vld [vmem:[#allocation2 + $0xaa] sm:$0xff] }
 0x9ed   : > { %21409 = vmatprep.mubr.msk.f32.mxu1 %vm283_vm0, %v28584_v8  ;;  %31681 = vst [vmem:[#allocation55_spill] sm:$0xff] %v28600_v33  ;;  %v28604_v8 = vld [vmem:[#allocation2 + $0xb2] sm:$0xff] }
 0x9ee   : > { %31682 = vst [vmem:[#allocation56_spill] sm:$0xff] %v28604_v8 }
 0x9f0   : > { %21410 = vmatmul.mubr.msk.f32.gmra.mrb[10].mxu1 %vm283_vm0, %v28588_v10  ;;  %v28608_v10 = vld [vmem:[#allocation2 + $0xc2] sm:$0xff] }
 0x9f1   : > { %21412 = vmatprep.mubr.msk.f32.mxu1 %vm283_vm0, %v28592_v35  ;;  %31683 = vst [vmem:[#allocation57_spill] sm:$0xff] %v28608_v10  ;;  %v28612_v35 = vld [vmem:[#allocation2 + $0xca] sm:$0xff] }
 0x9f2   : > { %31684 = vst [vmem:[#allocation58_spill] sm:$0xff] %v28612_v35 }
 0x9f4   : > { %21413 = vmatmul.mubr.msk.f32.gmra.mrb[12].mxu1 %vm283_vm0, %v28596_v28  ;;  %v28616_v28 = vld [vmem:[#allocation2 + $0xda] sm:$0xff] }
 0x9f5   : > { %21415 = vmatprep.mubr.msk.f32.mxu1 %vm283_vm0, %v28600_v33  ;;  %31685 = vst [vmem:[#allocation59_spill] sm:$0xff] %v28616_v28  ;;  %v28620_v33 = vld [vmem:[#allocation2 + $0xe2] sm:$0xff] }
 0x9f6   : > { %31686 = vst [vmem:[#allocation60_spill] sm:$0xff] %v28620_v33 }
 0x9f8   : > { %21416 = vmatmul.mubr.msk.f32.gmra.mrb[14].mxu1 %vm283_vm0, %v28604_v8  ;;  %v28624_v8 = vld [vmem:[#allocation2 + $0xf2] sm:$0xff] }
 0x9f9   : > { %21418 = vmatprep.mubr.msk.f32.mxu1 %vm283_vm0, %v28608_v10  ;;  %31687 = vst [vmem:[#allocation61_spill] sm:$0xff] %v28624_v8  ;;  %v28628_v10 = vld [vmem:[#allocation2 + $0xfa] sm:$0xff] }
 0x9fa   : > { %31688 = vst [vmem:[#allocation62_spill] sm:$0xff] %v28628_v10 }
 0x9fc   : > { %21419 = vmatmul.mubr.msk.f32.gmra.mrb[16].mxu1 %vm283_vm0, %v28612_v35  ;;  %v28632_v35 = vld [vmem:[#allocation2 + $0x10a] sm:$0xff] }
 0x9fd   : > { %21421 = vmatprep.mubr.msk.f32.mxu1 %vm283_vm0, %v28616_v28  ;;  %31689 = vst [vmem:[#allocation63_spill] sm:$0xff] %v28632_v35  ;;  %v28636_v28 = vld [vmem:[#allocation2 + $0x112] sm:$0xff] }
 0x9fe   : > { %31690 = vst [vmem:[#allocation64_spill] sm:$0xff] %v28636_v28 }
 0xa00   : > { %21422 = vmatmul.mubr.msk.f32.gmra.mrb[18].mxu1 %vm283_vm0, %v28620_v33  ;;  %v28640_v33 = vld [vmem:[#allocation2 + $0x122] sm:$0xff] }
 0xa01   : > { %21424 = vmatprep.mubr.msk.f32.mxu1 %vm283_vm0, %v28624_v8  ;;  %31691 = vst [vmem:[#allocation65_spill] sm:$0xff] %v28640_v33  ;;  %v28644_v8 = vld [vmem:[#allocation2 + $0x12a] sm:$0xff] }
 0xa02   : > { %31692 = vst [vmem:[#allocation66_spill] sm:$0xff] %v28644_v8 }
 0xa04   : > { %21425 = vmatmul.mubr.msk.f32.gmra.mrb[20].mxu1 %vm283_vm0, %v28628_v10  ;;  %v28648_v10 = vld [vmem:[#allocation2 + $0x13a] sm:$0xff] }
 0xa05   : > { %21427 = vmatprep.mubr.msk.f32.mxu1 %vm283_vm0, %v28632_v35  ;;  %31693 = vst [vmem:[#allocation67_spill] sm:$0xff] %v28648_v10  ;;  %v28652_v35 = vld [vmem:[#allocation2 + $0x142] sm:$0xff] }
 0xa06   : > { %31694 = vst [vmem:[#allocation68_spill] sm:$0xff] %v28652_v35 }
 0xa08   : > { %21428 = vmatmul.mubr.msk.f32.gmra.mrb[22].mxu1 %vm283_vm0, %v28636_v28  ;;  %v28656_v28 = vld [vmem:[#allocation2 + $0x152] sm:$0xff] }
 0xa09   : > { %21430 = vmatprep.mubr.msk.f32.mxu1 %vm283_vm0, %v28640_v33  ;;  %31695 = vst [vmem:[#allocation6_spill] sm:$0xff] %v28656_v28  ;;  %v28660_v33 = vld [vmem:[#allocation2 + $0x15a] sm:$0xff] }
 0xa0a   : > { %31696 = vst [vmem:[#allocation7_spill] sm:$0xff] %v28660_v33 }
 0xa0c   : > { %21431 = vmatmul.mubr.msk.f32.gmra.mrb[24].mxu1 %vm283_vm0, %v28644_v8  ;;  %v28664_v8 = vld [vmem:[#allocation2 + $0x16a] sm:$0xff] }
 0xa0d   : > { %21433 = vmatprep.mubr.msk.f32.mxu1 %vm283_vm0, %v28648_v10  ;;  %31697 = vst [vmem:[#allocation8_spill] sm:$0xff] %v28664_v8  ;;  %v11541_v10 = vld [vmem:[#allocation2 + $0x1b2] sm:$0xff] }
 0xa10   : > { %21434 = vmatmul.mubr.msk.f32.gmra.mrb[26].mxu1 %vm283_vm0, %v28652_v35  ;;  %v11542_v35 = vld [vmem:[#allocation2 + $0x1ba] sm:$0xff] }
 0xa11   : > { %21436 = vmatprep.mubr.msk.f32.mxu1 %vm283_vm0, %v28656_v28  ;;  %v28674_v28 = vld [vmem:[#allocation2 + $0x1ca] sm:$0xff] }
 0xa12   : > { %31699 = vst [vmem:[#allocation10_spill] sm:$0xff] %v28674_v28 }
 0xa14   : > { %21437 = vmatmul.mubr.msk.f32.gmra.mrb[28].mxu1 %vm283_vm0, %v28660_v33  ;;  %v28678_v33 = vld [vmem:[#allocation2 + $0x1d2] sm:$0xff] }
 0xa15   : > { %21439 = vmatprep.mubr.msk.f32.mxu1 %vm283_vm0, %v28664_v8  ;;  %31700 = vst [vmem:[#allocation11_spill] sm:$0xff] %v28678_v33  ;;  %v28682_v8 = vld [vmem:[#allocation2 + $0x1e2] sm:$0xff] }
 0xa16   : > { %31701 = vst [vmem:[#allocation12_spill] sm:$0xff] %v28682_v8 }
 0xa18   : > { %21440 = vmatmul.mubr.msk.f32.gmra.mrb[30].mxu1 %vm283_vm0, %v28668_v17  ;;  %v28686_v17 = vld [vmem:[#allocation2 + $0x1ea] sm:$0xff] }
 0xa19   : > { %21442 = vmatprep.mubr.msk.f32.mxu1 %vm283_vm0, %v11541_v10  ;;  %31702 = vst [vmem:[#allocation13_spill] sm:$0xff] %v28686_v17  ;;  %v28690_v10 = vld [vmem:[#allocation2 + $0x1fa] sm:$0xff] }
 0xa1a   : > { %31703 = vst [vmem:[#allocation14_spill] sm:$0xff] %v28690_v10 }
 0xa1c   : > { %21443 = vmatmul.mubr.msk.f32.gmra.mrb[32].mxu1 %vm283_vm0, %v11542_v35  ;;  %v28694_v35 = vld [vmem:[#allocation2 + $0x202] sm:$0xff] }
 0xa1d   : > { %21445 = vmatprep.mubr.msk.f32.mxu1 %vm283_vm0, %v28674_v28  ;;  %31704 = vst [vmem:[#allocation15_spill] sm:$0xff] %v28694_v35  ;;  %v13701_v28 = vld [vmem:[%s31086_s5 + $0xa8] sm:$0xff] }
 0xa20   : > { %21446 = vmatmul.mubr.msk.f32.gmra.mrb[34].mxu1 %vm283_vm0, %v28678_v33  ;;  %v28698_v33 = vld [vmem:[#allocation2 + $0x212] sm:$0xff] }
 0xa21   : > { %21448 = vmatprep.mubr.msk.f32.mxu1 %vm283_vm0, %v28682_v8  ;;  %31705 = vst [vmem:[#allocation16_spill] sm:$0xff] %v28698_v33  ;;  %v28702_v8 = vld [vmem:[#allocation2 + $0x21a] sm:$0xff] }
 0xa22   : > { %31706 = vst [vmem:[#allocation17_spill] sm:$0xff] %v28702_v8 }
 0xa24   : > { %21449 = vmatmul.mubr.msk.f32.gmra.mrb[36].mxu1 %vm283_vm0, %v28686_v17  ;;  %v28706_v17 = vld [vmem:[#allocation2 + $0x22a] sm:$0xff] }
 0xa25   : > { %21451 = vmatprep.mubr.msk.f32.mxu1 %vm283_vm0, %v28690_v10  ;;  %31707 = vst [vmem:[#allocation18_spill] sm:$0xff] %v28706_v17  ;;  %v28710_v10 = vld [vmem:[#allocation2 + $0x232] sm:$0xff] }
 0xa26   : > { %31708 = vst [vmem:[#allocation19_spill] sm:$0xff] %v28710_v10 }
 0xa28   : > { %21452 = vmatmul.mubr.msk.f32.gmra.mrb[38].mxu1 %vm283_vm0, %v28694_v35  ;;  %v28714_v35 = vld [vmem:[#allocation2 + $0x242] sm:$0xff] }
 0xa29   : > { %21454 = vmatprep.mubr.msk.f32.mxu1 %vm283_vm0, %v28698_v33  ;;  %31709 = vst [vmem:[#allocation20_spill] sm:$0xff] %v28714_v35  ;;  %v28718_v33 = vld [vmem:[#allocation2 + $0x24a] sm:$0xff] }
 0xa2a   : > { %31710 = vst [vmem:[#allocation21_spill] sm:$0xff] %v28718_v33 }
 0xa2c   : > { %21455 = vmatmul.mubr.msk.f32.gmra.mrb[40].mxu1 %vm283_vm0, %v28702_v8  ;;  %v28722_v8 = vld [vmem:[#allocation2 + $0x25a] sm:$0xff] }
 0xa2d   : > { %21457 = vmatprep.mubr.msk.f32.mxu1 %vm283_vm0, %v28706_v17  ;;  %31711 = vst [vmem:[#allocation69_spill] sm:$0xff] %v28722_v8  ;;  %v28726_v17 = vld [vmem:[#allocation2 + $0x262] sm:$0xff] }
 0xa2e   : > { %31712 = vst [vmem:[#allocation70_spill] sm:$0xff] %v28726_v17 }
 0xa30   : > { %21458 = vmatmul.mubr.msk.f32.gmra.mrb[42].mxu1 %vm283_vm0, %v28710_v10  ;;  %v28730_v10 = vld [vmem:[#allocation2 + $0x272] sm:$0xff] }
 0xa31   : > { %21460 = vmatprep.mubr.msk.f32.mxu1 %vm283_vm0, %v28714_v35  ;;  %31713 = vst [vmem:[#allocation71_spill] sm:$0xff] %v28730_v10  ;;  %v28734_v35 = vld [vmem:[#allocation2 + $0x27a] sm:$0xff] }
 0xa32   : > { %31714 = vst [vmem:[#allocation72_spill] sm:$0xff] %v28734_v35 }
 0xa34   : > { %21461 = vmatmul.mubr.msk.f32.gmra.mrb[44].mxu1 %vm283_vm0, %v28718_v33  ;;  %v28738_v33 = vld [vmem:[#allocation2 + $0x28a] sm:$0xff] }
 0xa35   : > { %21463 = vmatprep.mubr.msk.f32.mxu1 %vm283_vm0, %v28722_v8  ;;  %31715 = vst [vmem:[#allocation73_spill] sm:$0xff] %v28738_v33  ;;  %v28742_v8 = vld [vmem:[#allocation2 + $0x292] sm:$0xff] }
 0xa36   : > { %31716 = vst [vmem:[#allocation74_spill] sm:$0xff] %v28742_v8 }
 0xa38   : > { %21464 = vmatmul.mubr.msk.f32.gmra.mrb[46].mxu1 %vm283_vm0, %v28726_v17  ;;  %v28746_v17 = vld [vmem:[#allocation2 + $0x2a2] sm:$0xff] }
 0xa39   : > { %21466 = vmatprep.mubr.msk.f32.mxu1 %vm283_vm0, %v28730_v10  ;;  %31717 = vst [vmem:[#allocation75_spill] sm:$0xff] %v28746_v17  ;;  %v28750_v10 = vld [vmem:[#allocation2 + $0x2aa] sm:$0xff] }
 0xa3a   : > { %31718 = vst [vmem:[#allocation22_spill] sm:$0xff] %v28750_v10 }
 0xa3c   : > { %21467 = vmatmul.mubr.msk.f32.gmra.mrb[48].mxu1 %vm283_vm0, %v28734_v35  ;;  %v28754_v35 = vld [vmem:[#allocation2 + $0x2ba] sm:$0xff] }
 0xa3d   : > { %21469 = vmatprep.mubr.msk.f32.mxu1 %vm283_vm0, %v28738_v33  ;;  %31719 = vst [vmem:[#allocation24_spill] sm:$0xff] %v28754_v35  ;;  %v28758_v33 = vld [vmem:[#allocation2 + $0x2c2] sm:$0xff] }
 0xa3e   : > { %31720 = vst [vmem:[#allocation23_spill] sm:$0xff] %v28758_v33 }
 0xa40   : > { %21470 = vmatmul.mubr.msk.f32.gmra.mrb[50].mxu1 %vm283_vm0, %v28742_v8  ;;  %v28762_v8 = vld [vmem:[#allocation2 + $0x2d2] sm:$0xff] }
 0xa41   : > { %21472 = vmatprep.mubr.msk.f32.mxu1 %vm283_vm0, %v28746_v17  ;;  %31721 = vst [vmem:[#allocation26_spill] sm:$0xff] %v28762_v8  ;;  %v28766_v17 = vld [vmem:[#allocation2 + $0x2da] sm:$0xff] }
 0xa42   : > { %31722 = vst [vmem:[#allocation25_spill] sm:$0xff] %v28766_v17 }
 0xa44   : > { %21473 = vmatmul.mubr.msk.f32.gmra.mrb[52].mxu1 %vm283_vm0, %v28750_v10  ;;  %v28770_v10 = vld [vmem:[#allocation2 + $0x2ea] sm:$0xff] }
 0xa45   : > { %21475 = vmatprep.mubr.msk.f32.mxu1 %vm283_vm0, %v28754_v35  ;;  %31723 = vst [vmem:[#allocation28_spill] sm:$0xff] %v28770_v10  ;;  %v28774_v35 = vld [vmem:[#allocation2 + $0x2f2] sm:$0xff] }
 0xa46   : > { %31724 = vst [vmem:[#allocation27_spill] sm:$0xff] %v28774_v35 }
 0xa48   : > { %21476 = vmatmul.mubr.msk.f32.gmra.mrb[54].mxu1 %vm283_vm0, %v28758_v33  ;;  %v28778_v33 = vld [vmem:[#allocation2 + $0x302] sm:$0xff] }
 0xa49   : > { %21478 = vmatprep.mubr.msk.f32.mxu1 %vm283_vm0, %v28762_v8  ;;  %31725 = vst [vmem:[#allocation30_spill] sm:$0xff] %v28778_v33  ;;  %v28782_v8 = vld [vmem:[#allocation2 + $0x30a] sm:$0xff] }
 0xa4a   : > { %31726 = vst [vmem:[#allocation29_spill] sm:$0xff] %v28782_v8 }
 0xa4c   : > { %21479 = vmatmul.mubr.msk.f32.gmra.mrb[56].mxu1 %vm283_vm0, %v28766_v17  ;;  %v28786_v17 = vld [vmem:[#allocation2 + $0x31a] sm:$0xff] }
 0xa4d   : > { %21481 = vmatprep.mubr.msk.f32.mxu1 %vm283_vm0, %v28770_v10  ;;  %31727 = vst [vmem:[#allocation32_spill] sm:$0xff] %v28786_v17  ;;  %v28790_v10 = vld [vmem:[#allocation2 + $0x322] sm:$0xff] }
 0xa4e   : > { %31728 = vst [vmem:[#allocation31_spill] sm:$0xff] %v28790_v10 }
 0xa50   : > { %21482 = vmatmul.mubr.msk.f32.gmra.mrb[58].mxu1 %vm283_vm0, %v28774_v35  ;;  %v12993_v35 = vld [vmem:[%s31086_s5 + $0x90] sm:$0xff] }
 0xa51   : > { %21484 = vmatprep.mubr.msk.f32.mxu1 %vm283_vm0, %v28778_v33  ;;  %v12994_v33 = vld [vmem:[%s31086_s5 + $0x98] sm:$0xff] }
 0xa54   : > { %21485 = vmatmul.mubr.msk.f32.gmra.mrb[60].mxu1 %vm283_vm0, %v28782_v8  ;;  %v22222_v8 = vpack.c.bf16 %v12994_v33, %v12993_v35  ;;  %v29126_v33 = vld [vmem:[#allocation2 + $0x259] sm:$0xff]  ;;  %v29134_v35 = vld [vmem:[#allocation2 + $0x271] sm:$0xff] }
 0xa55   : > { %21487 = vmatprep.mubr.msk.f32.mxu1 %vm283_vm0, %v28786_v17  ;;  %v13700_v17 = vld [vmem:[%s31086_s5 + $0xa0] sm:$0xff] }
 0xa58   : > { %21488 = vmatmul.mubr.msk.f32.gmra.mrb[62].mxu1 %vm283_vm0, %v28790_v10  ;;  %v28813_v10 = vpack.c.bf16 %v13701_v28, %v13700_v17  ;;  %v29114_v17 = vld [vmem:[#allocation2 + $0x231] sm:$0xff]  ;;  %v29122_v28 = vld [vmem:[#allocation2 + $0x249] sm:$0xff] }
 0xa59   : > { %21498 = vmatprep.mubr.msk.f32.mxu1 %vm283_vm0, %v28288_v5  ;;  %v28870_v5 = vld [vmem:[#allocation2 + $0x180] sm:$0xff] }
 0xa5c   : > { %21499 = vmatmul.mubr.msk.f32.vlgmr.msra.gmra.mrb[0].mxu1 %vm283_vm0, %v28295_v59  ;;  %v28874_v59 = vld [vmem:[#allocation2 + $0x188] sm:$0xff] }
 0xa5d   : > { %22221 = vmatpush3.bf16.msra.mxu1 %v28553_v36  ;;  %21501 = vmatprep.mubr.msk.f32.mxu1 %vm283_vm0, %v28299_v55  ;;  %v31729_v55 = vld [vmem:[#allocation40_spill] sm:$0xff] }
 0xa5e   : > { %22223 = vmatprep.subr.bf16.mxu1 %v22222_v8  ;;  %v29110_v36 = vld [vmem:[#allocation2 + $0x229] sm:$0xff] }
 0xa60   : > { %21502 = vmatmul.mubr.msk.f32.gmra.mrb[2].mxu1 %vm283_vm0, %v28304_v7  ;;  %v31730_v7 = vld [vmem:[#allocation41_spill] sm:$0xff] }
 0xa61   : > { %21504 = vmatprep.mubr.msk.f32.mxu1 %vm283_vm0, %v28308_v26  ;;  %22225 = vmatpush3.bf16.msra.mxu1 %v22222_v8  ;;  %v31731_v26 = vld [vmem:[#allocation42_spill] sm:$0xff] }
 0xa62   : > { %22227 = vmatprep.subr.bf16.mxu1 %v28813_v10  ;;  %v29118_v8 = vld [vmem:[#allocation2 + $0x241] sm:$0xff] }
 0xa64   : > { %21505 = vmatmul.mubr.msk.f32.gmra.mrb[4].mxu1 %vm283_vm0, %v28312_v52  ;;  %v31732_v52 = vld [vmem:[#allocation43_spill] sm:$0xff] }
 0xa65   : > { %21507 = vmatprep.mubr.msk.f32.mxu1 %vm283_vm0, %v28316_v16  ;;  %v31733_v16 = vld [vmem:[#allocation44_spill] sm:$0xff] }
 0xa68   : > { %21508 = vmatmul.mubr.msk.f32.gmra.mrb[6].mxu1 %vm283_vm0, %v28320_v60  ;;  %v28938_v60 = vld [vmem:[#allocation2 + $0x330] sm:$0xff] }
 0xa69   : > { %21510 = vmatprep.mubr.msk.f32.mxu1 %vm283_vm0, %v28324_v4  ;;  %v28942_v4 = vld [vmem:[#allocation2 + $0x338] sm:$0xff] }
 0xa6c   : > { %21511 = vmatmul.mubr.msk.f32.gmra.mrb[8].mxu1 %vm283_vm0, %v28328_v0  ;;  %v13702_v0 = vld [vmem:[%s31086_s5 + $0xb0] sm:$0xff] }
 0xa6d   : > { %21513 = vmatprep.mubr.msk.f32.mxu1 %vm283_vm0, %v28332_v43  ;;  %v13703_v43 = vld [vmem:[%s31086_s5 + $0xb8] sm:$0xff] }
 0xa70   : > { %21514 = vmatmul.mubr.msk.f32.gmra.mrb[10].mxu1 %vm283_vm0, %v28336_v61  ;;  %v12927_v61 = vld [vmem:[#allocation2 + $0x19] sm:$0xff] }
 0xa71   : > { %21516 = vmatprep.mubr.msk.f32.mxu1 %vm283_vm0, %v28340_v3  ;;  %v22230_v3 = vpack.c.bf16 %v13703_v43, %v13702_v0  ;;  %v29158_v0 = vld [vmem:[#allocation2 + $0x2b9] sm:$0xff]  ;;  %v29162_v43 = vld [vmem:[#allocation2 + $0x2c1] sm:$0xff] }
 0xa74   : > { %21517 = vmatmul.mubr.msk.f32.gmra.mrb[12].mxu1 %vm283_vm0, %v28344_v37  ;;  %v12928_v37 = vld [vmem:[#allocation2 + $0x21] sm:$0xff] }
 0xa75   : > { %21519 = vmatprep.mubr.msk.f32.mxu1 %vm283_vm0, %v28348_v45  ;;  %v14409_v45 = vld [vmem:[%s31086_s5 + $0xc0] sm:$0xff] }
 0xa78   : > { %21520 = vmatmul.mubr.msk.f32.gmra.mrb[14].mxu1 %vm283_vm0, %v28352_v63  ;;  %v14410_v63 = vld [vmem:[%s31086_s5 + $0xc8] sm:$0xff] }
 0xa79   : > { %21522 = vmatprep.mubr.msk.f32.mxu1 %vm283_vm0, %v28356_v38  ;;  %v28960_v38 = vld [vmem:[#allocation2 + $0x31] sm:$0xff] }
 0xa7c   : > { %21523 = vmatmul.mubr.msk.f32.gmra.mrb[16].mxu1 %vm283_vm0, %v28360_v2  ;;  %v28965_v2 = vpack.c.bf16 %v14410_v63, %v14409_v45  ;;  %v29178_v45 = vld [vmem:[#allocation2 + $0x2f1] sm:$0xff]  ;;  %v29182_v63 = vld [vmem:[#allocation2 + $0x301] sm:$0xff] }
 0xa7d   : > { %21525 = vmatprep.mubr.msk.f32.mxu1 %vm283_vm0, %v28364_v24  ;;  %v28967_v24 = vld [vmem:[#allocation2 + $0x39] sm:$0xff]  ;;  %31737 = vst [vmem:[#allocation35_spill] sm:$0xff] %v29178_v45  ;;  %31738 = vst [vmem:[#allocation38_spill] sm:$0xff] %v29182_v63 }
 0xa80   : > { %21526 = vmatmul.mubr.msk.f32.gmra.mrb[18].mxu1 %vm283_vm0, %v28368_v18  ;;  %v28971_v18 = vld [vmem:[#allocation2 + $0x49] sm:$0xff] }
 0xa81   : > { %21528 = vmatprep.mubr.msk.f32.mxu1 %vm283_vm0, %v28372_v46  ;;  %v28976_v46 = vld [vmem:[#allocation2 + $0x51] sm:$0xff] }
 0xa84   : > { %21529 = vmatmul.mubr.msk.f32.gmra.mrb[20].mxu1 %vm283_vm0, %v28376_v34  ;;  %v28980_v34 = vld [vmem:[#allocation2 + $0x61] sm:$0xff] }
 0xa85   : > { %21531 = vmatprep.mubr.msk.f32.mxu1 %vm283_vm0, %v28380_v27  ;;  %v28984_v27 = vld [vmem:[#allocation2 + $0x69] sm:$0xff] }
 0xa88   : > { %21532 = vmatmul.mubr.msk.f32.gmra.mrb[22].mxu1 %vm283_vm0, %v28384_v19  ;;  %v28988_v19 = vld [vmem:[#allocation2 + $0x79] sm:$0xff] }
 0xa89   : > { %21534 = vmatprep.mubr.msk.f32.mxu1 %vm283_vm0, %v28388_v30  ;;  %v28992_v30 = vld [vmem:[#allocation2 + $0x81] sm:$0xff] }
 0xa8c   : > { %21535 = vmatmul.mubr.msk.f32.gmra.mrb[24].mxu1 %vm283_vm0, %v28392_v23  ;;  %v28996_v23 = vld [vmem:[#allocation2 + $0x91] sm:$0xff] }
 0xa8d   : > { %21537 = vmatprep.mubr.msk.f32.mxu1 %vm283_vm0, %v28396_v13  ;;  %v29000_v13 = vld [vmem:[#allocation2 + $0x99] sm:$0xff] }
 0xa90   : > { %21538 = vmatmul.mubr.msk.f32.gmra.mrb[26].mxu1 %vm283_vm0, %v28400_v29  ;;  %v29004_v29 = vld [vmem:[#allocation2 + $0xa9] sm:$0xff] }
 0xa91   : > { %21540 = vmatprep.mubr.msk.f32.mxu1 %vm283_vm0, %v28404_v9  ;;  %v29008_v9 = vld [vmem:[#allocation2 + $0xb1] sm:$0xff] }
 0xa94   : > { %21541 = vmatmul.mubr.msk.f32.gmra.mrb[28].mxu1 %vm283_vm0, %v28408_v41  ;;  %v29012_v41 = vld [vmem:[#allocation2 + $0xc1] sm:$0xff] }
 0xa95   : > { %21543 = vmatprep.mubr.msk.f32.mxu1 %vm283_vm0, %v28870_v5 }
 0xa98   : > { %21544 = vmatmul.mubr.msk.f32.gmra.mrb[30].mxu1 %vm283_vm0, %v28874_v59 }
 0xa99   : > { %21546 = vmatprep.mubr.msk.f32.mxu1 %vm283_vm0, %v28414_v15  ;;  %v29016_v15 = vld [vmem:[#allocation2 + $0xc9] sm:$0xff] }
 0xa9c   : > { %21547 = vmatmul.mubr.msk.f32.gmra.mrb[32].mxu1 %vm283_vm0, %v28418_v39  ;;  %v29020_v39 = vld [vmem:[#allocation2 + $0xd9] sm:$0xff] }
 0xa9d   : > { %21549 = vmatprep.mubr.msk.f32.mxu1 %vm283_vm0, %v28422_v51  ;;  %v29024_v51 = vld [vmem:[#allocation2 + $0xe1] sm:$0xff] }
 0xaa0   : > { %21550 = vmatmul.mubr.msk.f32.gmra.mrb[34].mxu1 %vm283_vm0, %v28426_v50  ;;  %v29028_v50 = vld [vmem:[#allocation2 + $0xf1] sm:$0xff] }
 0xaa1   : > { %21552 = vmatprep.mubr.msk.f32.mxu1 %vm283_vm0, %v28430_v48  ;;  %v29032_v48 = vld [vmem:[#allocation2 + $0xf9] sm:$0xff] }
 0xaa4   : > { %21553 = vmatmul.mubr.msk.f32.gmra.mrb[36].mxu1 %vm283_vm0, %v28434_v21  ;;  %v29036_v21 = vld [vmem:[#allocation2 + $0x109] sm:$0xff] }
 0xaa5   : > { %21555 = vmatprep.mubr.msk.f32.mxu1 %vm283_vm0, %v28438_v62  ;;  %v29040_v62 = vld [vmem:[#allocation2 + $0x111] sm:$0xff] }
 0xaa8   : > { %21556 = vmatmul.mubr.msk.f32.gmra.mrb[38].mxu1 %vm283_vm0, %v28442_v25  ;;  %v29044_v25 = vld [vmem:[#allocation2 + $0x121] sm:$0xff] }
 0xaa9   : > { %21558 = vmatprep.mubr.msk.f32.mxu1 %vm283_vm0, %v28446_v57  ;;  %v29048_v57 = vld [vmem:[#allocation2 + $0x129] sm:$0xff] }
 0xaac   : > { %21559 = vmatmul.mubr.msk.f32.gmra.mrb[40].mxu1 %vm283_vm0, %v28450_v11  ;;  %v29052_v11 = vld [vmem:[#allocation2 + $0x139] sm:$0xff] }
 0xaad   : > { %21561 = vmatprep.mubr.msk.f32.mxu1 %vm283_vm0, %v28454_v22  ;;  %v29056_v22 = vld [vmem:[#allocation2 + $0x141] sm:$0xff] }
 0xab0   : > { %21562 = vmatmul.mubr.msk.f32.gmra.mrb[42].mxu1 %vm283_vm0, %v28458_v44  ;;  %v29060_v44 = vld [vmem:[#allocation2 + $0x151] sm:$0xff] }
 0xab1   : > { %21564 = vmatprep.mubr.msk.f32.mxu1 %vm283_vm0, %v28462_v20  ;;  %v29064_v20 = vld [vmem:[#allocation2 + $0x159] sm:$0xff] }
 0xab4   : > { %21565 = vmatmul.mubr.msk.f32.gmra.mrb[44].mxu1 %vm283_vm0, %v28466_v40  ;;  %v29068_v40 = vld [vmem:[#allocation2 + $0x169] sm:$0xff] }
 0xab5   : > { %21567 = vmatprep.mubr.msk.f32.mxu1 %vm283_vm0, %v28470_v58  ;;  %v29072_v58 = vld [vmem:[#allocation2 + $0x171] sm:$0xff] }
 0xab8   : > { %21568 = vmatmul.mubr.msk.f32.gmra.mrb[46].mxu1 %vm283_vm0, %v28474_v56  ;;  %v29076_v56 = vld [vmem:[#allocation2 + $0x181] sm:$0xff] }
 0xab9   : > { %21570 = vmatprep.mubr.msk.f32.mxu1 %vm283_vm0, %v28478_v47  ;;  %v29080_v47 = vld [vmem:[#allocation2 + $0x189] sm:$0xff] }
 0xabc   : > { %21571 = vmatmul.mubr.msk.f32.gmra.mrb[48].mxu1 %vm283_vm0, %v28482_v49  ;;  %v12959_v49 = vld [vmem:[#allocation2 + $0x1c9] sm:$0xff] }
 0xabd   : > { %21573 = vmatprep.mubr.msk.f32.mxu1 %vm283_vm0, %v28486_v32  ;;  %v12960_v32 = vld [vmem:[#allocation2 + $0x1d1] sm:$0xff] }
 0xac0   : > { %21574 = vmatmul.mubr.msk.f32.gmra.mrb[50].mxu1 %vm283_vm0, %v28490_v12  ;;  %v29086_v12 = vld [vmem:[#allocation2 + $0x1e1] sm:$0xff] }
 0xac1   : > { %21576 = vmatprep.mubr.msk.f32.mxu1 %vm283_vm0, %v28494_v1  ;;  %v29090_v1 = vld [vmem:[#allocation2 + $0x1e9] sm:$0xff] }
 0xac4   : > { %21577 = vmatmul.mubr.msk.f32.gmra.mrb[52].mxu1 %vm283_vm0, %v28498_v42  ;;  %v29094_v42 = vld [vmem:[#allocation2 + $0x1f9] sm:$0xff] }
 0xac5   : > { %21579 = vmatprep.mubr.msk.f32.mxu1 %vm283_vm0, %v28502_v14  ;;  %v29098_v14 = vld [vmem:[#allocation2 + $0x201] sm:$0xff] }
 0xac8   : > { %21580 = vmatmul.mubr.msk.f32.gmra.mrb[54].mxu1 %vm283_vm0, %v28506_v6  ;;  %v29102_v6 = vld [vmem:[#allocation2 + $0x211] sm:$0xff] }
 0xac9   : > { %21582 = vmatprep.mubr.msk.f32.mxu1 %vm283_vm0, %v31729_v55  ;;  %v29138_v55 = vld [vmem:[#allocation2 + $0x279] sm:$0xff] }
 0xacc   : > { %21583 = vmatmul.mubr.msk.f32.gmra.mrb[56].mxu1 %vm283_vm0, %v31730_v7  ;;  %v29142_v7 = vld [vmem:[#allocation2 + $0x289] sm:$0xff] }
 0xacd   : > { %21585 = vmatprep.mubr.msk.f32.mxu1 %vm283_vm0, %v31731_v26  ;;  %v29146_v26 = vld [vmem:[#allocation2 + $0x291] sm:$0xff] }
 0xad0   : > { %21586 = vmatmul.mubr.msk.f32.gmra.mrb[58].mxu1 %vm283_vm0, %v31732_v52  ;;  %v29150_v52 = vld [vmem:[#allocation2 + $0x2a1] sm:$0xff] }
 0xad1   : > { %21588 = vmatprep.mubr.msk.f32.mxu1 %vm283_vm0, %v31733_v16  ;;  %v29154_v16 = vld [vmem:[#allocation2 + $0x2a9] sm:$0xff] }
 0xad4   : > { %21589 = vmatmul.mubr.msk.f32.gmra.mrb[60].mxu1 %vm283_vm0, %v28530_v53  ;;  %v29106_v53 = vld [vmem:[#allocation2 + $0x219] sm:$0xff] }
 0xad5   : > { %21591 = vmatprep.mubr.msk.f32.mxu1 %vm283_vm0, %v28938_v60 }
 0xad8   : > { %21592 = vmatmul.mubr.msk.f32.gmra.mrb[62].mxu1 %vm283_vm0, %v28942_v4 }
 0xad9   : > { %21602 = vmatprep.mubr.msk.f32.mxu1 %vm283_vm0, %v12927_v61  ;;  %v29166_v61 = vld [vmem:[#allocation2 + $0x2d1] sm:$0xff] }
 0xada   : > { %31734 = vst [vmem:[#allocation34_spill] sm:$0xff] %v29166_v61 }
 0xadc   : > { %21603 = vmatmul.mubr.msk.f32.vlgmr.msra.gmra.mrb[0].mxu1 %vm283_vm0, %v12928_v37  ;;  %v29174_v37 = vld [vmem:[#allocation2 + $0x2e9] sm:$0xff] }
 0xadd   : > { %22229 = vmatpush3.bf16.msra.mxu1 %v28813_v10  ;;  %21605 = vmatprep.mubr.msk.f32.mxu1 %vm283_vm0, %v28960_v38  ;;  %v29130_v10 = vld [vmem:[#allocation2 + $0x261] sm:$0xff]  ;;  %31736 = vst [vmem:[#allocation36_spill] sm:$0xff] %v29174_v37 }
 0xade   : > { %22231 = vmatprep.subr.bf16.mxu1 %v22230_v3 }
 0xae0   : > { %21606 = vmatmul.mubr.msk.f32.gmra.mrb[2].mxu1 %vm283_vm0, %v28967_v24 }
 0xae1   : > { %21608 = vmatprep.mubr.msk.f32.mxu1 %vm283_vm0, %v28971_v18  ;;  %22233 = vmatpush3.bf16.msra.mxu1 %v22230_v3  ;;  %v29170_v3 = vld [vmem:[#allocation2 + $0x2d9] sm:$0xff] }
 0xae2   : > { %22235 = vmatprep.subr.bf16.mxu1 %v28965_v2  ;;  %31735 = vst [vmem:[#allocation33_spill] sm:$0xff] %v29170_v3 }
 0xae4   : > { %21609 = vmatmul.mubr.msk.f32.gmra.mrb[4].mxu1 %vm283_vm0, %v28976_v46 }
 0xae5   : > { %21611 = vmatprep.mubr.msk.f32.mxu1 %vm283_vm0, %v28980_v34 }
 0xae8   : > { %21612 = vmatmul.mubr.msk.f32.gmra.mrb[6].mxu1 %vm283_vm0, %v28984_v27 }
 0xae9   : > { %21614 = vmatprep.mubr.msk.f32.mxu1 %vm283_vm0, %v28988_v19 }
 0xaec   : > { %21615 = vmatmul.mubr.msk.f32.gmra.mrb[8].mxu1 %vm283_vm0, %v28992_v30 }
 0xaed   : > { %21617 = vmatprep.mubr.msk.f32.mxu1 %vm283_vm0, %v28996_v23 }
 0xaf0   : > { %21618 = vmatmul.mubr.msk.f32.gmra.mrb[10].mxu1 %vm283_vm0, %v29000_v13 }
 0xaf1   : > { %21620 = vmatprep.mubr.msk.f32.mxu1 %vm283_vm0, %v29004_v29 }
 0xaf4   : > { %21621 = vmatmul.mubr.msk.f32.gmra.mrb[12].mxu1 %vm283_vm0, %v29008_v9 }
 0xaf5   : > { %21623 = vmatprep.mubr.msk.f32.mxu1 %vm283_vm0, %v29012_v41 }
 0xaf8   : > { %21624 = vmatmul.mubr.msk.f32.gmra.mrb[14].mxu1 %vm283_vm0, %v29016_v15 }
 0xaf9   : > { %21626 = vmatprep.mubr.msk.f32.mxu1 %vm283_vm0, %v29020_v39 }
 0xafc   : > { %21627 = vmatmul.mubr.msk.f32.gmra.mrb[16].mxu1 %vm283_vm0, %v29024_v51 }
 0xafd   : > { %21629 = vmatprep.mubr.msk.f32.mxu1 %vm283_vm0, %v29028_v50 }
 0xb00   : > { %21630 = vmatmul.mubr.msk.f32.gmra.mrb[18].mxu1 %vm283_vm0, %v29032_v48 }
 0xb01   : > { %21632 = vmatprep.mubr.msk.f32.mxu1 %vm283_vm0, %v29036_v21 }
 0xb04   : > { %21633 = vmatmul.mubr.msk.f32.gmra.mrb[20].mxu1 %vm283_vm0, %v29040_v62 }
 0xb05   : > { %21635 = vmatprep.mubr.msk.f32.mxu1 %vm283_vm0, %v29044_v25 }
 0xb08   : > { %21636 = vmatmul.mubr.msk.f32.gmra.mrb[22].mxu1 %vm283_vm0, %v29048_v57 }
 0xb09   : > { %21638 = vmatprep.mubr.msk.f32.mxu1 %vm283_vm0, %v29052_v11 }
 0xb0c   : > { %21639 = vmatmul.mubr.msk.f32.gmra.mrb[24].mxu1 %vm283_vm0, %v29056_v22 }
 0xb0d   : > { %21641 = vmatprep.mubr.msk.f32.mxu1 %vm283_vm0, %v29060_v44 }
 0xb10   : > { %21642 = vmatmul.mubr.msk.f32.gmra.mrb[26].mxu1 %vm283_vm0, %v29064_v20 }
 0xb11   : > { %21644 = vmatprep.mubr.msk.f32.mxu1 %vm283_vm0, %v29068_v40 }
 0xb14   : > { %21645 = vmatmul.mubr.msk.f32.gmra.mrb[28].mxu1 %vm283_vm0, %v29072_v58 }
 0xb15   : > { %21647 = vmatprep.mubr.msk.f32.mxu1 %vm283_vm0, %v29076_v56 }
 0xb18   : > { %21648 = vmatmul.mubr.msk.f32.gmra.mrb[30].mxu1 %vm283_vm0, %v29080_v47 }
 0xb19   : > { %21650 = vmatprep.mubr.msk.f32.mxu1 %vm283_vm0, %v12959_v49  ;;  %v29186_v49 = vld [vmem:[#allocation2 + $0x309] sm:$0xff] }
 0xb1a   : > { %31739 = vst [vmem:[#allocation37_spill] sm:$0xff] %v29186_v49 }
 0xb1c   : > { %21651 = vmatmul.mubr.msk.f32.gmra.mrb[32].mxu1 %vm283_vm0, %v12960_v32  ;;  %v29190_v32 = vld [vmem:[#allocation2 + $0x319] sm:$0xff] }
 0xb1d   : > { %21653 = vmatprep.mubr.msk.f32.mxu1 %vm283_vm0, %v29086_v12  ;;  %31740 = vst [vmem:[#allocation39_spill] sm:$0xff] %v29190_v32 }
 0xb20   : > { %21654 = vmatmul.mubr.msk.f32.gmra.mrb[34].mxu1 %vm283_vm0, %v29090_v1 }
 0xb21   : > { %21656 = vmatprep.mubr.msk.f32.mxu1 %vm283_vm0, %v29094_v42 }
 0xb24   : > { %21657 = vmatmul.mubr.msk.f32.gmra.mrb[36].mxu1 %vm283_vm0, %v29098_v14 }
 0xb25   : > { %21659 = vmatprep.mubr.msk.f32.mxu1 %vm283_vm0, %v29102_v6 }
 0xb28   : > { %21660 = vmatmul.mubr.msk.f32.gmra.mrb[38].mxu1 %vm283_vm0, %v29106_v53 }
 0xb29   : > { %21662 = vmatprep.mubr.msk.f32.mxu1 %vm283_vm0, %v29110_v36 }
 0xb2c   : > { %21663 = vmatmul.mubr.msk.f32.gmra.mrb[40].mxu1 %vm283_vm0, %v29114_v17 }
 0xb2d   : > { %21665 = vmatprep.mubr.msk.f32.mxu1 %vm283_vm0, %v29118_v8 }
 0xb30   : > { %21666 = vmatmul.mubr.msk.f32.gmra.mrb[42].mxu1 %vm283_vm0, %v29122_v28 }
 0xb31   : > { %21668 = vmatprep.mubr.msk.f32.mxu1 %vm283_vm0, %v29126_v33 }
 0xb34   : > { %21669 = vmatmul.mubr.msk.f32.gmra.mrb[44].mxu1 %vm283_vm0, %v29130_v10 }
 0xb35   : > { %21671 = vmatprep.mubr.msk.f32.mxu1 %vm283_vm0, %v29134_v35 }
 0xb38   : > { %21672 = vmatmul.mubr.msk.f32.gmra.mrb[46].mxu1 %vm283_vm0, %v29138_v55 }
 0xb39   : > { %21674 = vmatprep.mubr.msk.f32.mxu1 %vm283_vm0, %v29142_v7 }
 0xb3c   : > { %21675 = vmatmul.mubr.msk.f32.gmra.mrb[48].mxu1 %vm283_vm0, %v29146_v26 }
 0xb3d   : > { %21677 = vmatprep.mubr.msk.f32.mxu1 %vm283_vm0, %v29150_v52 }
 0xb40   : > { %21678 = vmatmul.mubr.msk.f32.gmra.mrb[50].mxu1 %vm283_vm0, %v29154_v16 }
 0xb41   : > { %21680 = vmatprep.mubr.msk.f32.mxu1 %vm283_vm0, %v29158_v0 }
 0xb44   : > { %21681 = vmatmul.mubr.msk.f32.gmra.mrb[52].mxu1 %vm283_vm0, %v29162_v43 }
 0xb45   : > { %21683 = vmatprep.mubr.msk.f32.mxu1 %vm283_vm0, %v29166_v61  ;;  %v31744_v61 = vld [vmem:[#allocation45_spill] sm:$0xff] }
 0xb48   : > { %21684 = vmatmul.mubr.msk.f32.gmra.mrb[54].mxu1 %vm283_vm0, %v29170_v3  ;;  %v15119_v3 = vld [vmem:[%s31086_s5 + $0xe8] sm:$0xff] }
 0xb49   : > { %21686 = vmatprep.mubr.msk.f32.mxu1 %vm283_vm0, %v29174_v37  ;;  %v29194_v37 = vld [vmem:[#allocation2 + $0x321] sm:$0xff] }
 0xb4a   : > { %31741 = vst [vmem:[#allocation40_spill] sm:$0xff] %v29194_v37 }
 0xb4c   : > { %21687 = vmatmul.mubr.msk.f32.gmra.mrb[56].mxu1 %vm283_vm0, %v29178_v45  ;;  %v29198_v45 = vld [vmem:[#allocation2 + $0x331] sm:$0xff] }
 0xb4d   : > { %21689 = vmatprep.mubr.msk.f32.mxu1 %vm283_vm0, %v29182_v63  ;;  %31742 = vst [vmem:[#allocation41_spill] sm:$0xff] %v29198_v45  ;;  %v29202_v63 = vld [vmem:[#allocation2 + $0x339] sm:$0xff] }
 0xb4e   : > { %31743 = vst [vmem:[#allocation42_spill] sm:$0xff] %v29202_v63 }
 0xb50   : > { %21690 = vmatmul.mubr.msk.f32.gmra.mrb[58].mxu1 %vm283_vm0, %v29186_v49  ;;  %v14411_v49 = vld [vmem:[%s31086_s5 + $0xd0] sm:$0xff] }
 0xb51   : > { %21692 = vmatprep.mubr.msk.f32.mxu1 %vm283_vm0, %v29190_v32  ;;  %v14412_v32 = vld [vmem:[%s31086_s5 + $0xd8] sm:$0xff] }
 0xb54   : > { %21693 = vmatmul.mubr.msk.f32.gmra.mrb[60].mxu1 %vm283_vm0, %v29194_v37  ;;  %v22238_v37 = vpack.c.bf16 %v14412_v32, %v14411_v49  ;;  %v31746_v49 = vld [vmem:[#allocation47_spill] sm:$0xff]  ;;  %v31747_v32 = vld [vmem:[#allocation48_spill] sm:$0xff] }
 0xb55   : > { %21695 = vmatprep.mubr.msk.f32.mxu1 %vm283_vm0, %v29198_v45  ;;  %v15118_v45 = vld [vmem:[%s31086_s5 + $0xe0] sm:$0xff] }
 0xb58   : > { %21696 = vmatmul.mubr.msk.f32.gmra.mrb[62].mxu1 %vm283_vm0, %v29202_v63  ;;  %v29225_v63 = vpack.c.bf16 %v15119_v3, %v15118_v45  ;;  %v31751_v3 = vld [vmem:[#allocation52_spill] sm:$0xff]  ;;  %v31752_v45 = vld [vmem:[#allocation53_spill] sm:$0xff] }
 0xb59   : > { %21706 = vmatprep.mubr.msk.f32.mxu1 %vm283_vm0, %v28548_v54  ;;  %v31745_v54 = vld [vmem:[#allocation46_spill] sm:$0xff] }
 0xb5c   : > { %21707 = vmatmul.mubr.msk.f32.vlgmr.msra.gmra.mrb[0].mxu1 %vm283_vm0, %v28555_v31  ;;  %v31748_v31 = vld [vmem:[#allocation49_spill] sm:$0xff] }
 0xb5d   : > { %22237 = vmatpush3.bf16.msra.mxu1 %v28965_v2  ;;  %21709 = vmatprep.mubr.msk.f32.mxu1 %vm283_vm0, %v31744_v61  ;;  %v31749_v2 = vld [vmem:[#allocation50_spill] sm:$0xff]  ;;  %v31750_v61 = vld [vmem:[#allocation51_spill] sm:$0xff] }
 0xb5e   : > { %22239 = vmatprep.subr.bf16.mxu1 %v22238_v37 }
 0xb60   : > { %21710 = vmatmul.mubr.msk.f32.gmra.mrb[2].mxu1 %vm283_vm0, %v31745_v54  ;;  %v31754_v54 = vld [vmem:[#allocation55_spill] sm:$0xff] }
 0xb61   : > { %21712 = vmatprep.mubr.msk.f32.mxu1 %vm283_vm0, %v31746_v49  ;;  %22241 = vmatpush3.bf16.msra.mxu1 %v22238_v37  ;;  %v31753_v37 = vld [vmem:[#allocation54_spill] sm:$0xff]  ;;  %v31755_v49 = vld [vmem:[#allocation56_spill] sm:$0xff] }
 0xb62   : > { %22243 = vmatprep.subr.bf16.mxu1 %v29225_v63 }
 0xb64   : > { %21713 = vmatmul.mubr.msk.f32.gmra.mrb[4].mxu1 %vm283_vm0, %v31747_v32  ;;  %v31756_v32 = vld [vmem:[#allocation57_spill] sm:$0xff] }
 0xb65   : > { %21715 = vmatprep.mubr.msk.f32.mxu1 %vm283_vm0, %v31748_v31  ;;  %v31757_v31 = vld [vmem:[#allocation58_spill] sm:$0xff] }
 0xb68   : > { %21716 = vmatmul.mubr.msk.f32.gmra.mrb[6].mxu1 %vm283_vm0, %v31749_v2  ;;  %v31758_v2 = vld [vmem:[#allocation59_spill] sm:$0xff] }
 0xb69   : > { %21718 = vmatprep.mubr.msk.f32.mxu1 %vm283_vm0, %v31750_v61  ;;  %v31759_v61 = vld [vmem:[#allocation60_spill] sm:$0xff] }
 0xb6c   : > { %21719 = vmatmul.mubr.msk.f32.gmra.mrb[8].mxu1 %vm283_vm0, %v31751_v3  ;;  %v31760_v3 = vld [vmem:[#allocation61_spill] sm:$0xff] }
 0xb6d   : > { %21721 = vmatprep.mubr.msk.f32.mxu1 %vm283_vm0, %v31752_v45  ;;  %v31761_v45 = vld [vmem:[#allocation62_spill] sm:$0xff] }
 0xb70   : > { %21722 = vmatmul.mubr.msk.f32.gmra.mrb[10].mxu1 %vm283_vm0, %v31753_v37  ;;  %v31762_v37 = vld [vmem:[#allocation63_spill] sm:$0xff] }
 0xb71   : > { %21724 = vmatprep.mubr.msk.f32.mxu1 %vm283_vm0, %v31754_v54  ;;  %v31763_v54 = vld [vmem:[#allocation64_spill] sm:$0xff] }
 0xb74   : > { %21725 = vmatmul.mubr.msk.f32.gmra.mrb[12].mxu1 %vm283_vm0, %v31755_v49  ;;  %v31764_v49 = vld [vmem:[#allocation65_spill] sm:$0xff] }
 0xb75   : > { %21727 = vmatprep.mubr.msk.f32.mxu1 %vm283_vm0, %v31756_v32  ;;  %v31765_v32 = vld [vmem:[#allocation66_spill] sm:$0xff] }
 0xb78   : > { %21728 = vmatmul.mubr.msk.f32.gmra.mrb[14].mxu1 %vm283_vm0, %v31757_v31  ;;  %v31766_v31 = vld [vmem:[#allocation67_spill] sm:$0xff] }
 0xb79   : > { %21730 = vmatprep.mubr.msk.f32.mxu1 %vm283_vm0, %v31758_v2  ;;  %v31767_v2 = vld [vmem:[#allocation68_spill] sm:$0xff] }
 0xb7c   : > { %21731 = vmatmul.mubr.msk.f32.gmra.mrb[16].mxu1 %vm283_vm0, %v31759_v61  ;;  %v31768_v61 = vld [vmem:[#allocation6_spill] sm:$0xff] }
 0xb7d   : > { %21733 = vmatprep.mubr.msk.f32.mxu1 %vm283_vm0, %v31760_v3  ;;  %v31769_v3 = vld [vmem:[#allocation7_spill] sm:$0xff] }
 0xb80   : > { %21734 = vmatmul.mubr.msk.f32.gmra.mrb[18].mxu1 %vm283_vm0, %v31761_v45  ;;  %v31770_v45 = vld [vmem:[#allocation8_spill] sm:$0xff] }
 0xb81   : > { %21736 = vmatprep.mubr.msk.f32.mxu1 %vm283_vm0, %v31762_v37  ;;  %v31771_v37 = vld [vmem:[#allocation9_spill] sm:$0xff] }
 0xb84   : > { %21737 = vmatmul.mubr.msk.f32.gmra.mrb[20].mxu1 %vm283_vm0, %v31763_v54  ;;  %v29282_v54 = vld [vmem:[#allocation2 + $0x182] sm:$0xff] }
 0xb85   : > { %21739 = vmatprep.mubr.msk.f32.mxu1 %vm283_vm0, %v31764_v49  ;;  %31772 = vst [vmem:[#allocation43_spill] sm:$0xff] %v29282_v54  ;;  %v29286_v49 = vld [vmem:[#allocation2 + $0x18a] sm:$0xff] }
 0xb86   : > { %31773 = vst [vmem:[#allocation44_spill] sm:$0xff] %v29286_v49 }
 0xb88   : > { %21740 = vmatmul.mubr.msk.f32.gmra.mrb[22].mxu1 %vm283_vm0, %v31765_v32  ;;  %v31774_v32 = vld [vmem:[#allocation10_spill] sm:$0xff] }
 0xb89   : > { %21742 = vmatprep.mubr.msk.f32.mxu1 %vm283_vm0, %v31766_v31  ;;  %v31775_v31 = vld [vmem:[#allocation11_spill] sm:$0xff] }
 0xb8c   : > { %21743 = vmatmul.mubr.msk.f32.gmra.mrb[24].mxu1 %vm283_vm0, %v31767_v2  ;;  %v31776_v2 = vld [vmem:[#allocation12_spill] sm:$0xff] }
 0xb8d   : > { %21745 = vmatprep.mubr.msk.f32.mxu1 %vm283_vm0, %v31768_v61  ;;  %v31777_v61 = vld [vmem:[#allocation13_spill] sm:$0xff] }
 0xb90   : > { %21746 = vmatmul.mubr.msk.f32.gmra.mrb[26].mxu1 %vm283_vm0, %v31769_v3  ;;  %v31778_v3 = vld [vmem:[#allocation14_spill] sm:$0xff] }
 0xb91   : > { %21748 = vmatprep.mubr.msk.f32.mxu1 %vm283_vm0, %v31770_v45  ;;  %v31779_v45 = vld [vmem:[#allocation15_spill] sm:$0xff] }
 0xb94   : > { %21749 = vmatmul.mubr.msk.f32.gmra.mrb[28].mxu1 %vm283_vm0, %v31771_v37  ;;  %v31780_v37 = vld [vmem:[#allocation16_spill] sm:$0xff] }
 0xb95   : > { %21751 = vmatprep.mubr.msk.f32.mxu1 %vm283_vm0, %v29282_v54  ;;  %v14347_v54 = vld [vmem:[#allocation2 + $0x48] sm:$0xff] }
 0xb98   : > { %21752 = vmatmul.mubr.msk.f32.gmra.mrb[30].mxu1 %vm283_vm0, %v29286_v49  ;;  %v31781_v49 = vld [vmem:[#allocation17_spill] sm:$0xff] }
 0xb99   : > { %21754 = vmatprep.mubr.msk.f32.mxu1 %vm283_vm0, %v31774_v32  ;;  %v31782_v32 = vld [vmem:[#allocation18_spill] sm:$0xff] }
 0xb9c   : > { %21755 = vmatmul.mubr.msk.f32.gmra.mrb[32].mxu1 %vm283_vm0, %v31775_v31  ;;  %v31783_v31 = vld [vmem:[#allocation19_spill] sm:$0xff] }
 0xb9d   : > { %21757 = vmatprep.mubr.msk.f32.mxu1 %vm283_vm0, %v31776_v2  ;;  %v31784_v2 = vld [vmem:[#allocation20_spill] sm:$0xff] }
 0xba0   : > { %21758 = vmatmul.mubr.msk.f32.gmra.mrb[34].mxu1 %vm283_vm0, %v31777_v61  ;;  %v31785_v61 = vld [vmem:[#allocation21_spill] sm:$0xff] }
 0xba1   : > { %21760 = vmatprep.mubr.msk.f32.mxu1 %vm283_vm0, %v31778_v3  ;;  %v31786_v3 = vld [vmem:[#allocation69_spill] sm:$0xff] }
 0xba4   : > { %21761 = vmatmul.mubr.msk.f32.gmra.mrb[36].mxu1 %vm283_vm0, %v31779_v45  ;;  %v31787_v45 = vld [vmem:[#allocation70_spill] sm:$0xff] }
 0xba5   : > { %21763 = vmatprep.mubr.msk.f32.mxu1 %vm283_vm0, %v31780_v37  ;;  %v31788_v37 = vld [vmem:[#allocation71_spill] sm:$0xff] }
 0xba8   : > { %21764 = vmatmul.mubr.msk.f32.gmra.mrb[38].mxu1 %vm283_vm0, %v31781_v49  ;;  %v31789_v49 = vld [vmem:[#allocation72_spill] sm:$0xff] }
 0xba9   : > { %21766 = vmatprep.mubr.msk.f32.mxu1 %vm283_vm0, %v31782_v32  ;;  %v31790_v32 = vld [vmem:[#allocation73_spill] sm:$0xff] }
 0xbac   : > { %21767 = vmatmul.mubr.msk.f32.gmra.mrb[40].mxu1 %vm283_vm0, %v31783_v31  ;;  %v31791_v31 = vld [vmem:[#allocation74_spill] sm:$0xff] }
 0xbad   : > { %21769 = vmatprep.mubr.msk.f32.mxu1 %vm283_vm0, %v31784_v2  ;;  %v31792_v2 = vld [vmem:[#allocation75_spill] sm:$0xff] }
 0xbb0   : > { %21770 = vmatmul.mubr.msk.f32.gmra.mrb[42].mxu1 %vm283_vm0, %v31785_v61  ;;  %v31793_v61 = vld [vmem:[#allocation22_spill] sm:$0xff] }
 0xbb1   : > { %21772 = vmatprep.mubr.msk.f32.mxu1 %vm283_vm0, %v31786_v3  ;;  %v31794_v3 = vld [vmem:[#allocation24_spill] sm:$0xff] }
 0xbb4   : > { %21773 = vmatmul.mubr.msk.f32.gmra.mrb[44].mxu1 %vm283_vm0, %v31787_v45  ;;  %v31795_v45 = vld [vmem:[#allocation23_spill] sm:$0xff] }
 0xbb5   : > { %21775 = vmatprep.mubr.msk.f32.mxu1 %vm283_vm0, %v31788_v37  ;;  %v31796_v37 = vld [vmem:[#allocation26_spill] sm:$0xff] }
 0xbb8   : > { %21776 = vmatmul.mubr.msk.f32.gmra.mrb[46].mxu1 %vm283_vm0, %v31789_v49  ;;  %v31797_v49 = vld [vmem:[#allocation25_spill] sm:$0xff] }
 0xbb9   : > { %21778 = vmatprep.mubr.msk.f32.mxu1 %vm283_vm0, %v31790_v32  ;;  %v31798_v32 = vld [vmem:[#allocation28_spill] sm:$0xff] }
 0xbbc   : > { %21779 = vmatmul.mubr.msk.f32.gmra.mrb[48].mxu1 %vm283_vm0, %v31791_v31  ;;  %v31799_v31 = vld [vmem:[#allocation27_spill] sm:$0xff] }
 0xbbd   : > { %21781 = vmatprep.mubr.msk.f32.mxu1 %vm283_vm0, %v31792_v2  ;;  %v31800_v2 = vld [vmem:[#allocation30_spill] sm:$0xff] }
 0xbc0   : > { %21782 = vmatmul.mubr.msk.f32.gmra.mrb[50].mxu1 %vm283_vm0, %v31793_v61  ;;  %v31801_v61 = vld [vmem:[#allocation29_spill] sm:$0xff] }
 0xbc1   : > { %21784 = vmatprep.mubr.msk.f32.mxu1 %vm283_vm0, %v31794_v3  ;;  %v31802_v3 = vld [vmem:[#allocation32_spill] sm:$0xff] }
 0xbc4   : > { %21785 = vmatmul.mubr.msk.f32.gmra.mrb[52].mxu1 %vm283_vm0, %v31795_v45  ;;  %v31803_v45 = vld [vmem:[#allocation31_spill] sm:$0xff] }
 0xbc5   : > { %21787 = vmatprep.mubr.msk.f32.mxu1 %vm283_vm0, %v31796_v37  ;;  %v29350_v37 = vld [vmem:[#allocation2 + $0x332] sm:$0xff] }
 0xbc6   : > { %31804 = vst [vmem:[#allocation45_spill] sm:$0xff] %v29350_v37 }
 0xbc8   : > { %21788 = vmatmul.mubr.msk.f32.gmra.mrb[54].mxu1 %vm283_vm0, %v31797_v49  ;;  %v29354_v49 = vld [vmem:[#allocation2 + $0x33a] sm:$0xff] }
 0xbc9   : > { %21790 = vmatprep.mubr.msk.f32.mxu1 %vm283_vm0, %v31798_v32  ;;  %31805 = vst [vmem:[#allocation46_spill] sm:$0xff] %v29354_v49  ;;  %v15120_v32 = vld [vmem:[%s31086_s5 + $0xf0] sm:$0xff] }
 0xbcc   : > { %21791 = vmatmul.mubr.msk.f32.gmra.mrb[56].mxu1 %vm283_vm0, %v31799_v31  ;;  %v15121_v31 = vld [vmem:[%s31086_s5 + $0xf8] sm:$0xff] }
 0xbcd   : > { %21793 = vmatprep.mubr.msk.f32.mxu1 %vm283_vm0, %v31800_v2  ;;  %v14345_v2 = vld [vmem:[#allocation2 + $0x30] sm:$0xff] }
 0xbd0   : > { %21794 = vmatmul.mubr.msk.f32.gmra.mrb[58].mxu1 %vm283_vm0, %v31801_v61  ;;  %v22246_v61 = vpack.c.bf16 %v15121_v31, %v15120_v32  ;;  %v14348_v32 = vld [vmem:[#allocation2 + $0x50] sm:$0xff]  ;;  %v14349_v31 = vld [vmem:[#allocation2 + $0x60] sm:$0xff] }
 0xbd1   : > { %21796 = vmatprep.mubr.msk.f32.mxu1 %vm283_vm0, %v31802_v3  ;;  %v14346_v3 = vld [vmem:[#allocation2 + $0x38] sm:$0xff] }
 0xbd4   : > { %21797 = vmatmul.mubr.msk.f32.gmra.mrb[60].mxu1 %vm283_vm0, %v31803_v45  ;;  %v15827_v45 = vld [vmem:[%s31086_s5 + $0x100] sm:$0xff] }
 0xbd5   : > { %21799 = vmatprep.mubr.msk.f32.mxu1 %vm283_vm0, %v29350_v37  ;;  %v15828_v37 = vld [vmem:[%s31086_s5 + $0x108] sm:$0xff] }
 0xbd8   : > { %21800 = vmatmul.mubr.msk.f32.gmra.mrb[62].mxu1 %vm283_vm0, %v29354_v49  ;;  %v29374_v49 = vpack.c.bf16 %v15828_v37, %v15827_v45  ;;  %v14354_v37 = vld [vmem:[#allocation2 + $0x98] sm:$0xff]  ;;  %v14355_v45 = vld [vmem:[#allocation2 + $0xa8] sm:$0xff] }
 0xbd9   : > { %21810 = vmatprep.mubr.msk.f32.mxu1 %vm283_vm0, %v14345_v2  ;;  %v14350_v2 = vld [vmem:[#allocation2 + $0x68] sm:$0xff] }
 0xbdc   : > { %21811 = vmatmul.mubr.msk.f32.vlgmr.msra.gmra.mrb[0].mxu1 %vm283_vm0, %v14346_v3  ;;  %v14351_v3 = vld [vmem:[#allocation2 + $0x78] sm:$0xff] }
 0xbdd   : > { %22245 = vmatpush3.bf16.msra.mxu1 %v29225_v63  ;;  %21813 = vmatprep.mubr.msk.f32.mxu1 %vm283_vm0, %v14347_v54  ;;  %v14352_v63 = vld [vmem:[#allocation2 + $0x80] sm:$0xff]  ;;  %v14353_v54 = vld [vmem:[#allocation2 + $0x90] sm:$0xff] }
 0xbde   : > { %22247 = vmatprep.subr.bf16.mxu1 %v22246_v61 }
 0xbe0   : > { %21814 = vmatmul.mubr.msk.f32.gmra.mrb[2].mxu1 %vm283_vm0, %v14348_v32  ;;  %v14357_v32 = vld [vmem:[#allocation2 + $0xc0] sm:$0xff] }
 0xbe1   : > { %21816 = vmatprep.mubr.msk.f32.mxu1 %vm283_vm0, %v14349_v31  ;;  %22249 = vmatpush3.bf16.msra.mxu1 %v22246_v61  ;;  %v14356_v61 = vld [vmem:[#allocation2 + $0xb0] sm:$0xff]  ;;  %v14358_v31 = vld [vmem:[#allocation2 + $0xc8] sm:$0xff] }
 0xbe2   : > { %22251 = vmatprep.subr.bf16.mxu1 %v29374_v49 }
 0xbe4   : > { %21817 = vmatmul.mubr.msk.f32.gmra.mrb[4].mxu1 %vm283_vm0, %v14350_v2  ;;  %v14359_v2 = vld [vmem:[#allocation2 + $0xd8] sm:$0xff] }
 0xbe5   : > { %21819 = vmatprep.mubr.msk.f32.mxu1 %vm283_vm0, %v14351_v3  ;;  %v14360_v3 = vld [vmem:[#allocation2 + $0xe0] sm:$0xff] }
 0xbe8   : > { %21820 = vmatmul.mubr.msk.f32.gmra.mrb[6].mxu1 %vm283_vm0, %v14352_v63  ;;  %v14361_v63 = vld [vmem:[#allocation2 + $0xf0] sm:$0xff] }
 0xbe9   : > { %21822 = vmatprep.mubr.msk.f32.mxu1 %vm283_vm0, %v14353_v54  ;;  %v14362_v54 = vld [vmem:[#allocation2 + $0xf8] sm:$0xff] }
 0xbec   : > { %21823 = vmatmul.mubr.msk.f32.gmra.mrb[8].mxu1 %vm283_vm0, %v14354_v37  ;;  %v14363_v37 = vld [vmem:[#allocation2 + $0x108] sm:$0xff] }
 0xbed   : > { %21825 = vmatprep.mubr.msk.f32.mxu1 %vm283_vm0, %v14355_v45  ;;  %v14364_v45 = vld [vmem:[#allocation2 + $0x110] sm:$0xff] }
 0xbf0   : > { %21826 = vmatmul.mubr.msk.f32.gmra.mrb[10].mxu1 %vm283_vm0, %v14356_v61  ;;  %v14365_v61 = vld [vmem:[#allocation2 + $0x120] sm:$0xff] }
 0xbf1   : > { %21828 = vmatprep.mubr.msk.f32.mxu1 %vm283_vm0, %v14357_v32  ;;  %v14366_v32 = vld [vmem:[#allocation2 + $0x128] sm:$0xff] }
 0xbf4   : > { %21829 = vmatmul.mubr.msk.f32.gmra.mrb[12].mxu1 %vm283_vm0, %v14358_v31  ;;  %v14367_v31 = vld [vmem:[#allocation2 + $0x138] sm:$0xff] }
 0xbf5   : > { %21831 = vmatprep.mubr.msk.f32.mxu1 %vm283_vm0, %v14359_v2  ;;  %v14368_v2 = vld [vmem:[#allocation2 + $0x140] sm:$0xff] }
 0xbf8   : > { %21832 = vmatmul.mubr.msk.f32.gmra.mrb[14].mxu1 %vm283_vm0, %v14360_v3  ;;  %v14369_v3 = vld [vmem:[#allocation2 + $0x150] sm:$0xff] }
 0xbf9   : > { %21834 = vmatprep.mubr.msk.f32.mxu1 %vm283_vm0, %v14361_v63  ;;  %v14370_v63 = vld [vmem:[#allocation2 + $0x158] sm:$0xff] }
 0xbfc   : > { %21835 = vmatmul.mubr.msk.f32.gmra.mrb[16].mxu1 %vm283_vm0, %v14362_v54  ;;  %v14371_v54 = vld [vmem:[#allocation2 + $0x168] sm:$0xff] }
 0xbfd   : > { %21837 = vmatprep.mubr.msk.f32.mxu1 %vm283_vm0, %v14363_v37  ;;  %v14372_v37 = vld [vmem:[#allocation2 + $0x170] sm:$0xff] }
 0xc00   : > { %21838 = vmatmul.mubr.msk.f32.gmra.mrb[18].mxu1 %vm283_vm0, %v14364_v45  ;;  %v14375_v45 = vld [vmem:[#allocation2 + $0x198] sm:$0xff] }
 0xc01   : > { %21840 = vmatprep.mubr.msk.f32.mxu1 %vm283_vm0, %v14365_v61  ;;  %v14376_v61 = vld [vmem:[#allocation2 + $0x1a0] sm:$0xff] }
 0xc04   : > { %21841 = vmatmul.mubr.msk.f32.gmra.mrb[20].mxu1 %vm283_vm0, %v14366_v32  ;;  %v14377_v32 = vld [vmem:[#allocation2 + $0x1e0] sm:$0xff] }
 0xc05   : > { %21843 = vmatprep.mubr.msk.f32.mxu1 %vm283_vm0, %v14367_v31  ;;  %v14378_v31 = vld [vmem:[#allocation2 + $0x1e8] sm:$0xff] }
 0xc08   : > { %21844 = vmatmul.mubr.msk.f32.gmra.mrb[22].mxu1 %vm283_vm0, %v14368_v2  ;;  %v14379_v2 = vld [vmem:[#allocation2 + $0x1f8] sm:$0xff] }
 0xc09   : > { %21846 = vmatprep.mubr.msk.f32.mxu1 %vm283_vm0, %v14369_v3  ;;  %v14380_v3 = vld [vmem:[#allocation2 + $0x200] sm:$0xff] }
 0xc0c   : > { %21847 = vmatmul.mubr.msk.f32.gmra.mrb[24].mxu1 %vm283_vm0, %v14370_v63  ;;  %v14383_v63 = vld [vmem:[#allocation2 + $0x228] sm:$0xff] }
 0xc0d   : > { %21849 = vmatprep.mubr.msk.f32.mxu1 %vm283_vm0, %v14371_v54  ;;  %v14384_v54 = vld [vmem:[#allocation2 + $0x230] sm:$0xff] }
 0xc10   : > { %21850 = vmatmul.mubr.msk.f32.gmra.mrb[26].mxu1 %vm283_vm0, %v14372_v37  ;;  %v14385_v37 = vld [vmem:[#allocation2 + $0x240] sm:$0xff] }
 0xc11   : > { %21852 = vmatprep.mubr.msk.f32.mxu1 %vm283_vm0, %v28870_v5  ;;  %v14381_v5 = vld [vmem:[#allocation2 + $0x210] sm:$0xff] }
 0xc14   : > { %21853 = vmatmul.mubr.msk.f32.gmra.mrb[28].mxu1 %vm283_vm0, %v28874_v59  ;;  %v14382_v59 = vld [vmem:[#allocation2 + $0x218] sm:$0xff] }
 0xc15   : > { %21855 = vmatprep.mubr.msk.f32.mxu1 %vm283_vm0, %v14375_v45  ;;  %v14386_v45 = vld [vmem:[#allocation2 + $0x248] sm:$0xff] }
 0xc18   : > { %21856 = vmatmul.mubr.msk.f32.gmra.mrb[30].mxu1 %vm283_vm0, %v14376_v61  ;;  %v14387_v61 = vld [vmem:[#allocation2 + $0x258] sm:$0xff] }
 0xc19   : > { %21858 = vmatprep.mubr.msk.f32.mxu1 %vm283_vm0, %v14377_v32  ;;  %v14388_v32 = vld [vmem:[#allocation2 + $0x260] sm:$0xff] }
 0xc1c   : > { %21859 = vmatmul.mubr.msk.f32.gmra.mrb[32].mxu1 %vm283_vm0, %v14378_v31  ;;  %v14389_v31 = vld [vmem:[#allocation2 + $0x270] sm:$0xff] }
 0xc1d   : > { %21861 = vmatprep.mubr.msk.f32.mxu1 %vm283_vm0, %v14379_v2  ;;  %v14390_v2 = vld [vmem:[#allocation2 + $0x278] sm:$0xff] }
 0xc20   : > { %21862 = vmatmul.mubr.msk.f32.gmra.mrb[34].mxu1 %vm283_vm0, %v14380_v3  ;;  %v14391_v3 = vld [vmem:[#allocation2 + $0x288] sm:$0xff] }
 0xc21   : > { %21864 = vmatprep.mubr.msk.f32.mxu1 %vm283_vm0, %v14381_v5  ;;  %v14392_v5 = vld [vmem:[#allocation2 + $0x290] sm:$0xff] }
 0xc24   : > { %21865 = vmatmul.mubr.msk.f32.gmra.mrb[36].mxu1 %vm283_vm0, %v14382_v59  ;;  %v14393_v59 = vld [vmem:[#allocation2 + $0x2a0] sm:$0xff] }
 0xc25   : > { %21867 = vmatprep.mubr.msk.f32.mxu1 %vm283_vm0, %v14383_v63  ;;  %v14394_v63 = vld [vmem:[#allocation2 + $0x2a8] sm:$0xff] }
 0xc28   : > { %21868 = vmatmul.mubr.msk.f32.gmra.mrb[38].mxu1 %vm283_vm0, %v14384_v54  ;;  %v14395_v54 = vld [vmem:[#allocation2 + $0x2b8] sm:$0xff] }
 0xc29   : > { %21870 = vmatprep.mubr.msk.f32.mxu1 %vm283_vm0, %v14385_v37  ;;  %v14396_v37 = vld [vmem:[#allocation2 + $0x2c0] sm:$0xff] }
 0xc2c   : > { %21871 = vmatmul.mubr.msk.f32.gmra.mrb[40].mxu1 %vm283_vm0, %v14386_v45  ;;  %v14397_v45 = vld [vmem:[#allocation2 + $0x2d0] sm:$0xff] }
 0xc2d   : > { %21873 = vmatprep.mubr.msk.f32.mxu1 %vm283_vm0, %v14387_v61  ;;  %v14398_v61 = vld [vmem:[#allocation2 + $0x2d8] sm:$0xff] }
 0xc30   : > { %21874 = vmatmul.mubr.msk.f32.gmra.mrb[42].mxu1 %vm283_vm0, %v14388_v32  ;;  %v14399_v32 = vld [vmem:[#allocation2 + $0x2e8] sm:$0xff] }
 0xc31   : > { %21876 = vmatprep.mubr.msk.f32.mxu1 %vm283_vm0, %v14389_v31  ;;  %v14400_v31 = vld [vmem:[#allocation2 + $0x2f0] sm:$0xff] }
 0xc34   : > { %21877 = vmatmul.mubr.msk.f32.gmra.mrb[44].mxu1 %vm283_vm0, %v14390_v2  ;;  %v14401_v2 = vld [vmem:[#allocation2 + $0x300] sm:$0xff] }
 0xc35   : > { %21879 = vmatprep.mubr.msk.f32.mxu1 %vm283_vm0, %v14391_v3  ;;  %v14402_v3 = vld [vmem:[#allocation2 + $0x308] sm:$0xff] }
 0xc38   : > { %21880 = vmatmul.mubr.msk.f32.gmra.mrb[46].mxu1 %vm283_vm0, %v14392_v5  ;;  %v14403_v5 = vld [vmem:[#allocation2 + $0x318] sm:$0xff] }
 0xc39   : > { %21882 = vmatprep.mubr.msk.f32.mxu1 %vm283_vm0, %v14393_v59  ;;  %v14404_v59 = vld [vmem:[#allocation2 + $0x320] sm:$0xff] }
 0xc3c   : > { %21883 = vmatmul.mubr.msk.f32.gmra.mrb[48].mxu1 %vm283_vm0, %v14394_v63  ;;  %v14407_v63 = vld [vmem:[#allocation2 + $0x348] sm:$0xff] }
 0xc3d   : > { %21885 = vmatprep.mubr.msk.f32.mxu1 %vm283_vm0, %v14395_v54  ;;  %v14408_v54 = vld [vmem:[#allocation2 + $0x350] sm:$0xff] }
 0xc40   : > { %21886 = vmatmul.mubr.msk.f32.gmra.mrb[50].mxu1 %vm283_vm0, %v14396_v37  ;;  %v15829_v37 = vld [vmem:[%s31086_s5 + $0x110] sm:$0xff] }
 0xc41   : > { %21888 = vmatprep.mubr.msk.f32.mxu1 %vm283_vm0, %v14397_v45  ;;  %v15830_v45 = vld [vmem:[%s31086_s5 + $0x118] sm:$0xff] }
 0xc44   : > { %21889 = vmatmul.mubr.msk.f32.gmra.mrb[52].mxu1 %vm283_vm0, %v14398_v61  ;;  %v15801_v61 = vld [vmem:[#allocation2 + $0x22a] sm:$0xff] }
 0xc45   : > { %21891 = vmatprep.mubr.msk.f32.mxu1 %vm283_vm0, %v14399_v32  ;;  %v15802_v32 = vld [vmem:[#allocation2 + $0x232] sm:$0xff] }
 0xc48   : > { %21892 = vmatmul.mubr.msk.f32.gmra.mrb[54].mxu1 %vm283_vm0, %v14400_v31  ;;  %v15803_v31 = vld [vmem:[#allocation2 + $0x242] sm:$0xff] }
 0xc49   : > { %21894 = vmatprep.mubr.msk.f32.mxu1 %vm283_vm0, %v14401_v2  ;;  %v15804_v2 = vld [vmem:[#allocation2 + $0x24a] sm:$0xff] }
 0xc4c   : > { %21895 = vmatmul.mubr.msk.f32.gmra.mrb[56].mxu1 %vm283_vm0, %v14402_v3  ;;  %v15805_v3 = vld [vmem:[#allocation2 + $0x25a] sm:$0xff] }
 0xc4d   : > { %21897 = vmatprep.mubr.msk.f32.mxu1 %vm283_vm0, %v14403_v5  ;;  %v15806_v5 = vld [vmem:[#allocation2 + $0x262] sm:$0xff] }
 0xc50   : > { %21898 = vmatmul.mubr.msk.f32.gmra.mrb[58].mxu1 %vm283_vm0, %v14404_v59  ;;  %v15807_v59 = vld [vmem:[#allocation2 + $0x272] sm:$0xff] }
 0xc51   : > { %21900 = vmatprep.mubr.msk.f32.mxu1 %vm283_vm0, %v28938_v60  ;;  %v22254_v60 = vpack.c.bf16 %v15830_v45, %v15829_v37  ;;  %v15810_v37 = vld [vmem:[#allocation2 + $0x292] sm:$0xff]  ;;  %v15811_v45 = vld [vmem:[#allocation2 + $0x2a2] sm:$0xff] }
 0xc54   : > { %21901 = vmatmul.mubr.msk.f32.gmra.mrb[60].mxu1 %vm283_vm0, %v28942_v4  ;;  %v15084_v4 = vld [vmem:[#allocation2 + $0x199] sm:$0xff] }
 0xc55   : > { %21903 = vmatprep.mubr.msk.f32.mxu1 %vm283_vm0, %v14407_v63  ;;  %v15808_v63 = vld [vmem:[#allocation2 + $0x27a] sm:$0xff] }
 0xc58   : > { %21904 = vmatmul.mubr.msk.f32.gmra.mrb[62].mxu1 %vm283_vm0, %v14408_v54  ;;  %v15809_v54 = vld [vmem:[#allocation2 + $0x28a] sm:$0xff] }
 0xc59   : > { %21914 = vmatprep.mubr.msk.f32.mxu1 %vm283_vm0, %v28960_v38  ;;  %v15085_v38 = vld [vmem:[#allocation2 + $0x1a1] sm:$0xff] }
 0xc5c   : > { %21915 = vmatmul.mubr.msk.f32.vlgmr.msra.gmra.mrb[0].mxu1 %vm283_vm0, %v28967_v24  ;;  %v31806_v24 = vld [vmem:[#allocation34_spill] sm:$0xff] }
 0xc5d   : > { %22253 = vmatpush3.bf16.msra.mxu1 %v29374_v49  ;;  %21917 = vmatprep.mubr.msk.f32.mxu1 %vm283_vm0, %v28971_v18  ;;  %v31807_v18 = vld [vmem:[#allocation33_spill] sm:$0xff] }
 0xc5e   : > { %22255 = vmatprep.subr.bf16.mxu1 %v22254_v60  ;;  %v15800_v49 = vld [vmem:[#allocation2 + $0x21a] sm:$0xff] }
 0xc60   : > { %21918 = vmatmul.mubr.msk.f32.gmra.mrb[2].mxu1 %vm283_vm0, %v28976_v46  ;;  %v31808_v46 = vld [vmem:[#allocation36_spill] sm:$0xff] }
 0xc61   : > { %21920 = vmatprep.mubr.msk.f32.mxu1 %vm283_vm0, %v28980_v34  ;;  %22257 = vmatpush3.bf16.msra.mxu1 %v22254_v60  ;;  %v31809_v34 = vld [vmem:[#allocation35_spill] sm:$0xff] }
 0xc62   : > { %v15812_v60 = vld [vmem:[#allocation2 + $0x2aa] sm:$0xff] }
 0xc64   : > { %21921 = vmatmul.mubr.msk.f32.gmra.mrb[4].mxu1 %vm283_vm0, %v28984_v27  ;;  %v31810_v27 = vld [vmem:[#allocation38_spill] sm:$0xff] }
 0xc65   : > { %21923 = vmatprep.mubr.msk.f32.mxu1 %vm283_vm0, %v28988_v19  ;;  %v31811_v19 = vld [vmem:[#allocation37_spill] sm:$0xff] }
 0xc68   : > { %21924 = vmatmul.mubr.msk.f32.gmra.mrb[6].mxu1 %vm283_vm0, %v28992_v30  ;;  %v31812_v30 = vld [vmem:[#allocation39_spill] sm:$0xff] }
 0xc69   : > { %21926 = vmatprep.mubr.msk.f32.mxu1 %vm283_vm0, %v28996_v23  ;;  %v31813_v23 = vld [vmem:[#allocation40_spill] sm:$0xff] }
 0xc6c   : > { %21927 = vmatmul.mubr.msk.f32.gmra.mrb[8].mxu1 %vm283_vm0, %v29000_v13  ;;  %v31814_v13 = vld [vmem:[#allocation41_spill] sm:$0xff] }
 0xc6d   : > { %21929 = vmatprep.mubr.msk.f32.mxu1 %vm283_vm0, %v29004_v29  ;;  %v15116_v29 = vld [vmem:[#allocation2 + $0x349] sm:$0xff] }
 0xc70   : > { %21930 = vmatmul.mubr.msk.f32.gmra.mrb[10].mxu1 %vm283_vm0, %v29008_v9  ;;  %v31815_v9 = vld [vmem:[#allocation42_spill] sm:$0xff] }
 0xc71   : > { %21932 = vmatprep.mubr.msk.f32.mxu1 %vm283_vm0, %v29012_v41  ;;  %v15117_v41 = vld [vmem:[#allocation2 + $0x351] sm:$0xff] }
 0xc74   : > { %21933 = vmatmul.mubr.msk.f32.gmra.mrb[12].mxu1 %vm283_vm0, %v29016_v15  ;;  %v15763_v15 = vld [vmem:[#allocation2 + $0x32] sm:$0xff] }
 0xc75   : > { %21935 = vmatprep.mubr.msk.f32.mxu1 %vm283_vm0, %v29020_v39  ;;  %v15764_v39 = vld [vmem:[#allocation2 + $0x3a] sm:$0xff] }
 0xc78   : > { %21936 = vmatmul.mubr.msk.f32.gmra.mrb[14].mxu1 %vm283_vm0, %v29024_v51  ;;  %v15765_v51 = vld [vmem:[#allocation2 + $0x4a] sm:$0xff] }
 0xc79   : > { %21938 = vmatprep.mubr.msk.f32.mxu1 %vm283_vm0, %v29028_v50  ;;  %v15766_v50 = vld [vmem:[#allocation2 + $0x52] sm:$0xff] }
 0xc7c   : > { %21939 = vmatmul.mubr.msk.f32.gmra.mrb[16].mxu1 %vm283_vm0, %v29032_v48  ;;  %v15767_v48 = vld [vmem:[#allocation2 + $0x62] sm:$0xff] }
 0xc7d   : > { %21941 = vmatprep.mubr.msk.f32.mxu1 %vm283_vm0, %v29036_v21  ;;  %v15768_v21 = vld [vmem:[#allocation2 + $0x6a] sm:$0xff] }
 0xc80   : > { %21942 = vmatmul.mubr.msk.f32.gmra.mrb[18].mxu1 %vm283_vm0, %v29040_v62  ;;  %v15769_v62 = vld [vmem:[#allocation2 + $0x7a] sm:$0xff] }
 0xc81   : > { %21944 = vmatprep.mubr.msk.f32.mxu1 %vm283_vm0, %v29044_v25  ;;  %v15770_v25 = vld [vmem:[#allocation2 + $0x82] sm:$0xff] }
 0xc84   : > { %21945 = vmatmul.mubr.msk.f32.gmra.mrb[20].mxu1 %vm283_vm0, %v29048_v57  ;;  %v15771_v57 = vld [vmem:[#allocation2 + $0x92] sm:$0xff] }
 0xc85   : > { %21947 = vmatprep.mubr.msk.f32.mxu1 %vm283_vm0, %v29052_v11  ;;  %v15772_v11 = vld [vmem:[#allocation2 + $0x9a] sm:$0xff] }
 0xc88   : > { %21948 = vmatmul.mubr.msk.f32.gmra.mrb[22].mxu1 %vm283_vm0, %v29056_v22  ;;  %v15773_v22 = vld [vmem:[#allocation2 + $0xaa] sm:$0xff] }
 0xc89   : > { %21950 = vmatprep.mubr.msk.f32.mxu1 %vm283_vm0, %v29060_v44  ;;  %v15774_v44 = vld [vmem:[#allocation2 + $0xb2] sm:$0xff] }
 0xc8c   : > { %21951 = vmatmul.mubr.msk.f32.gmra.mrb[24].mxu1 %vm283_vm0, %v29064_v20  ;;  %v15775_v20 = vld [vmem:[#allocation2 + $0xc2] sm:$0xff] }
 0xc8d   : > { %21953 = vmatprep.mubr.msk.f32.mxu1 %vm283_vm0, %v29068_v40  ;;  %v15776_v40 = vld [vmem:[#allocation2 + $0xca] sm:$0xff] }
 0xc90   : > { %21954 = vmatmul.mubr.msk.f32.gmra.mrb[26].mxu1 %vm283_vm0, %v29072_v58  ;;  %v15777_v58 = vld [vmem:[#allocation2 + $0xda] sm:$0xff] }
 0xc91   : > { %21956 = vmatprep.mubr.msk.f32.mxu1 %vm283_vm0, %v29076_v56  ;;  %v15778_v56 = vld [vmem:[#allocation2 + $0xe2] sm:$0xff] }
 0xc94   : > { %21957 = vmatmul.mubr.msk.f32.gmra.mrb[28].mxu1 %vm283_vm0, %v29080_v47  ;;  %v15779_v47 = vld [vmem:[#allocation2 + $0xf2] sm:$0xff] }
 0xc95   : > { %21959 = vmatprep.mubr.msk.f32.mxu1 %vm283_vm0, %v15084_v4  ;;  %v15813_v4 = vld [vmem:[#allocation2 + $0x2ba] sm:$0xff] }
 0xc98   : > { %21960 = vmatmul.mubr.msk.f32.gmra.mrb[30].mxu1 %vm283_vm0, %v15085_v38  ;;  %v15814_v38 = vld [vmem:[#allocation2 + $0x2c2] sm:$0xff] }
 0xc99   : > { %21962 = vmatprep.mubr.msk.f32.mxu1 %vm283_vm0, %v29086_v12  ;;  %v15780_v12 = vld [vmem:[#allocation2 + $0xfa] sm:$0xff] }
 0xc9c   : > { %21963 = vmatmul.mubr.msk.f32.gmra.mrb[32].mxu1 %vm283_vm0, %v29090_v1  ;;  %v15781_v1 = vld [vmem:[#allocation2 + $0x10a] sm:$0xff] }
 0xc9d   : > { %21965 = vmatprep.mubr.msk.f32.mxu1 %vm283_vm0, %v29094_v42  ;;  %v15782_v42 = vld [vmem:[#allocation2 + $0x112] sm:$0xff] }
 0xca0   : > { %21966 = vmatmul.mubr.msk.f32.gmra.mrb[34].mxu1 %vm283_vm0, %v29098_v14  ;;  %v15783_v14 = vld [vmem:[#allocation2 + $0x122] sm:$0xff] }
 0xca1   : > { %21968 = vmatprep.mubr.msk.f32.mxu1 %vm283_vm0, %v29102_v6  ;;  %v15784_v6 = vld [vmem:[#allocation2 + $0x12a] sm:$0xff] }
 0xca4   : > { %21969 = vmatmul.mubr.msk.f32.gmra.mrb[36].mxu1 %vm283_vm0, %v29106_v53  ;;  %v15785_v53 = vld [vmem:[#allocation2 + $0x13a] sm:$0xff] }
 0xca5   : > { %21971 = vmatprep.mubr.msk.f32.mxu1 %vm283_vm0, %v29110_v36  ;;  %v15786_v36 = vld [vmem:[#allocation2 + $0x142] sm:$0xff] }
 0xca8   : > { %21972 = vmatmul.mubr.msk.f32.gmra.mrb[38].mxu1 %vm283_vm0, %v29114_v17  ;;  %v15787_v17 = vld [vmem:[#allocation2 + $0x152] sm:$0xff] }
 0xca9   : > { %21974 = vmatprep.mubr.msk.f32.mxu1 %vm283_vm0, %v29118_v8  ;;  %v15788_v8 = vld [vmem:[#allocation2 + $0x15a] sm:$0xff] }
 0xcac   : > { %21975 = vmatmul.mubr.msk.f32.gmra.mrb[40].mxu1 %vm283_vm0, %v29122_v28  ;;  %v15789_v28 = vld [vmem:[#allocation2 + $0x16a] sm:$0xff] }
 0xcad   : > { %21977 = vmatprep.mubr.msk.f32.mxu1 %vm283_vm0, %v29126_v33  ;;  %v15790_v33 = vld [vmem:[#allocation2 + $0x172] sm:$0xff] }
 0xcb0   : > { %21978 = vmatmul.mubr.msk.f32.gmra.mrb[42].mxu1 %vm283_vm0, %v29130_v10  ;;  %v31816_v10 = vld [vmem:[#allocation43_spill] sm:$0xff] }
 0xcb1   : > { %21980 = vmatprep.mubr.msk.f32.mxu1 %vm283_vm0, %v29134_v35  ;;  %v15793_v35 = vld [vmem:[#allocation2 + $0x19a] sm:$0xff] }
 0xcb4   : > { %21981 = vmatmul.mubr.msk.f32.gmra.mrb[44].mxu1 %vm283_vm0, %v29138_v55  ;;  %v31817_v55 = vld [vmem:[#allocation44_spill] sm:$0xff] }
 0xcb5   : > { %21983 = vmatprep.mubr.msk.f32.mxu1 %vm283_vm0, %v29142_v7  ;;  %v15794_v7 = vld [vmem:[#allocation2 + $0x1a2] sm:$0xff] }
 0xcb8   : > { %21984 = vmatmul.mubr.msk.f32.gmra.mrb[46].mxu1 %vm283_vm0, %v29146_v26  ;;  %v15795_v26 = vld [vmem:[#allocation2 + $0x1e2] sm:$0xff] }
 0xcb9   : > { %21986 = vmatprep.mubr.msk.f32.mxu1 %vm283_vm0, %v29150_v52  ;;  %v15796_v52 = vld [vmem:[#allocation2 + $0x1ea] sm:$0xff] }
 0xcbc   : > { %21987 = vmatmul.mubr.msk.f32.gmra.mrb[48].mxu1 %vm283_vm0, %v29154_v16  ;;  %v15797_v16 = vld [vmem:[#allocation2 + $0x1fa] sm:$0xff] }
 0xcbd   : > { %21989 = vmatprep.mubr.msk.f32.mxu1 %vm283_vm0, %v29158_v0  ;;  %v15798_v0 = vld [vmem:[#allocation2 + $0x202] sm:$0xff] }
 0xcc0   : > { %21990 = vmatmul.mubr.msk.f32.gmra.mrb[50].mxu1 %vm283_vm0, %v29162_v43  ;;  %v15799_v43 = vld [vmem:[#allocation2 + $0x212] sm:$0xff] }
 0xcc1   : > { %21992 = vmatprep.mubr.msk.f32.mxu1 %vm283_vm0, %v31806_v24  ;;  %v15815_v24 = vld [vmem:[#allocation2 + $0x2d2] sm:$0xff] }
 0xcc4   : > { %21993 = vmatmul.mubr.msk.f32.gmra.mrb[52].mxu1 %vm283_vm0, %v31807_v18  ;;  %v15816_v18 = vld [vmem:[#allocation2 + $0x2da] sm:$0xff] }
 0xcc5   : > { %21995 = vmatprep.mubr.msk.f32.mxu1 %vm283_vm0, %v31808_v46  ;;  %v15817_v46 = vld [vmem:[#allocation2 + $0x2ea] sm:$0xff] }
 0xcc8   : > { %21996 = vmatmul.mubr.msk.f32.gmra.mrb[54].mxu1 %vm283_vm0, %v31809_v34  ;;  %v15818_v34 = vld [vmem:[#allocation2 + $0x2f2] sm:$0xff] }
 0xcc9   : > { %21998 = vmatprep.mubr.msk.f32.mxu1 %vm283_vm0, %v31810_v27  ;;  %v15819_v27 = vld [vmem:[#allocation2 + $0x302] sm:$0xff] }
 0xccc   : > { %21999 = vmatmul.mubr.msk.f32.gmra.mrb[56].mxu1 %vm283_vm0, %v31811_v19  ;;  %v15820_v19 = vld [vmem:[#allocation2 + $0x30a] sm:$0xff] }
 0xccd   : > { %22001 = vmatprep.mubr.msk.f32.mxu1 %vm283_vm0, %v31812_v30  ;;  %v15821_v30 = vld [vmem:[#allocation2 + $0x31a] sm:$0xff] }
 0xcd0   : > { %22002 = vmatmul.mubr.msk.f32.gmra.mrb[58].mxu1 %vm283_vm0, %v31813_v23  ;;  %v15822_v23 = vld [vmem:[#allocation2 + $0x322] sm:$0xff] }
 0xcd1   : > { %22004 = vmatprep.mubr.msk.f32.mxu1 %vm283_vm0, %v31814_v13  ;;  %v31818_v13 = vld [vmem:[#allocation45_spill] sm:$0xff] }
 0xcd4   : > { %22005 = vmatmul.mubr.msk.f32.gmra.mrb[60].mxu1 %vm283_vm0, %v31815_v9  ;;  %v31819_v9 = vld [vmem:[#allocation46_spill] sm:$0xff] }
 0xcd5   : > { %22007 = vmatprep.mubr.msk.f32.mxu1 %vm283_vm0, %v15116_v29  ;;  %v15825_v29 = vld [vmem:[#allocation2 + $0x34a] sm:$0xff] }
 0xcd8   : > { %22008 = vmatmul.mubr.msk.f32.gmra.mrb[62].mxu1 %vm283_vm0, %v15117_v41  ;;  %v15826_v41 = vld [vmem:[#allocation2 + $0x352] sm:$0xff] }
 0xcd9   : > { %22018 = vmatprep.mubr.msk.f32.mxu1 %vm283_vm0, %v15763_v15  ;;  %v29644_v15 = vld [vmem:[%s31087_s6] ss:$0 sm:$0xff] }
 0xcdc   : > { %22019 = vmatmul.mubr.msk.f32.vlgmr.msra.gmra.mrb[0].mxu1 %vm283_vm0, %v15764_v39 }
 0xcdd   : > { %22021 = vmatprep.mubr.msk.f32.mxu1 %vm283_vm0, %v15765_v51 }
 0xce0   : > { %22022 = vmatmul.mubr.msk.f32.gmra.mrb[2].mxu1 %vm283_vm0, %v15766_v50 }
 0xce1   : > { %22024 = vmatprep.mubr.msk.f32.mxu1 %vm283_vm0, %v15767_v48 }
 0xce4   : > { %22025 = vmatmul.mubr.msk.f32.gmra.mrb[4].mxu1 %vm283_vm0, %v15768_v21 }
 0xce5   : > { %22027 = vmatprep.mubr.msk.f32.mxu1 %vm283_vm0, %v15769_v62 }
 0xce8   : > { %22028 = vmatmul.mubr.msk.f32.gmra.mrb[6].mxu1 %vm283_vm0, %v15770_v25 }
 0xce9   : > { %22030 = vmatprep.mubr.msk.f32.mxu1 %vm283_vm0, %v15771_v57 }
 0xcec   : > { %22031 = vmatmul.mubr.msk.f32.gmra.mrb[8].mxu1 %vm283_vm0, %v15772_v11 }
 0xced   : > { %22033 = vmatprep.mubr.msk.f32.mxu1 %vm283_vm0, %v15773_v22 }
 0xcf0   : > { %22034 = vmatmul.mubr.msk.f32.gmra.mrb[10].mxu1 %vm283_vm0, %v15774_v44 }
 0xcf1   : > { %22036 = vmatprep.mubr.msk.f32.mxu1 %vm283_vm0, %v15775_v20 }
 0xcf4   : > { %22037 = vmatmul.mubr.msk.f32.gmra.mrb[12].mxu1 %vm283_vm0, %v15776_v40 }
 0xcf5   : > { %22039 = vmatprep.mubr.msk.f32.mxu1 %vm283_vm0, %v15777_v58 }
 0xcf8   : > { %22040 = vmatmul.mubr.msk.f32.gmra.mrb[14].mxu1 %vm283_vm0, %v15778_v56 }
 0xcf9   : > { %22042 = vmatprep.mubr.msk.f32.mxu1 %vm283_vm0, %v15779_v47 }
 0xcfc   : > { %22043 = vmatmul.mubr.msk.f32.gmra.mrb[16].mxu1 %vm283_vm0, %v15780_v12 }
 0xcfd   : > { %22045 = vmatprep.mubr.msk.f32.mxu1 %vm283_vm0, %v15781_v1 }
 0xd00   : > { %22046 = vmatmul.mubr.msk.f32.gmra.mrb[18].mxu1 %vm283_vm0, %v15782_v42 }
 0xd01   : > { %22048 = vmatprep.mubr.msk.f32.mxu1 %vm283_vm0, %v15783_v14 }
 0xd04   : > { %22049 = vmatmul.mubr.msk.f32.gmra.mrb[20].mxu1 %vm283_vm0, %v15784_v6 }
 0xd05   : > { %22051 = vmatprep.mubr.msk.f32.mxu1 %vm283_vm0, %v15785_v53 }
 0xd08   : > { %22052 = vmatmul.mubr.msk.f32.gmra.mrb[22].mxu1 %vm283_vm0, %v15786_v36 }
 0xd09   : > { %22054 = vmatprep.mubr.msk.f32.mxu1 %vm283_vm0, %v15787_v17 }
 0xd0c   : > { %22055 = vmatmul.mubr.msk.f32.gmra.mrb[24].mxu1 %vm283_vm0, %v15788_v8 }
 0xd0d   : > { %22057 = vmatprep.mubr.msk.f32.mxu1 %vm283_vm0, %v15789_v28 }
 0xd10   : > { %22058 = vmatmul.mubr.msk.f32.gmra.mrb[26].mxu1 %vm283_vm0, %v15790_v33 }
 0xd11   : > { %22060 = vmatprep.mubr.msk.f32.mxu1 %vm283_vm0, %v31816_v10 }
 0xd14   : > { %22061 = vmatmul.mubr.msk.f32.gmra.mrb[28].mxu1 %vm283_vm0, %v31817_v55 }
 0xd15   : > { %22063 = vmatprep.mubr.msk.f32.mxu1 %vm283_vm0, %v15793_v35 }
 0xd18   : > { %22064 = vmatmul.mubr.msk.f32.gmra.mrb[30].mxu1 %vm283_vm0, %v15794_v7 }
 0xd19   : > { %22066 = vmatprep.mubr.msk.f32.mxu1 %vm283_vm0, %v15795_v26 }
 0xd1c   : > { %22067 = vmatmul.mubr.msk.f32.gmra.mrb[32].mxu1 %vm283_vm0, %v15796_v52 }
 0xd1d   : > { %22069 = vmatprep.mubr.msk.f32.mxu1 %vm283_vm0, %v15797_v16 }
 0xd20   : > { %22070 = vmatmul.mubr.msk.f32.gmra.mrb[34].mxu1 %vm283_vm0, %v15798_v0 }
 0xd21   : > { %22072 = vmatprep.mubr.msk.f32.mxu1 %vm283_vm0, %v15799_v43 }
 0xd24   : > { %22073 = vmatmul.mubr.msk.f32.gmra.mrb[36].mxu1 %vm283_vm0, %v15800_v49 }
 0xd25   : > { %22075 = vmatprep.mubr.msk.f32.mxu1 %vm283_vm0, %v15801_v61 }
 0xd28   : > { %22076 = vmatmul.mubr.msk.f32.gmra.mrb[38].mxu1 %vm283_vm0, %v15802_v32 }
 0xd29   : > { %22078 = vmatprep.mubr.msk.f32.mxu1 %vm283_vm0, %v15803_v31 }
 0xd2c   : > { %22079 = vmatmul.mubr.msk.f32.gmra.mrb[40].mxu1 %vm283_vm0, %v15804_v2 }
 0xd2d   : > { %22081 = vmatprep.mubr.msk.f32.mxu1 %vm283_vm0, %v15805_v3 }
 0xd30   : > { %22082 = vmatmul.mubr.msk.f32.gmra.mrb[42].mxu1 %vm283_vm0, %v15806_v5 }
 0xd31   : > { %22084 = vmatprep.mubr.msk.f32.mxu1 %vm283_vm0, %v15807_v59 }
 0xd34   : > { %22085 = vmatmul.mubr.msk.f32.gmra.mrb[44].mxu1 %vm283_vm0, %v15808_v63 }
 0xd35   : > { %22087 = vmatprep.mubr.msk.f32.mxu1 %vm283_vm0, %v15809_v54 }
 0xd38   : > { %22088 = vmatmul.mubr.msk.f32.gmra.mrb[46].mxu1 %vm283_vm0, %v15810_v37 }
 0xd39   : > { %22090 = vmatprep.mubr.msk.f32.mxu1 %vm283_vm0, %v15811_v45 }
 0xd3c   : > { %22091 = vmatmul.mubr.msk.f32.gmra.mrb[48].mxu1 %vm283_vm0, %v15812_v60 }
 0xd3d   : > { %22093 = vmatprep.mubr.msk.f32.mxu1 %vm283_vm0, %v15813_v4 }
 0xd40   : > { %22094 = vmatmul.mubr.msk.f32.gmra.mrb[50].mxu1 %vm283_vm0, %v15814_v38 }
 0xd41   : > { %22096 = vmatprep.mubr.msk.f32.mxu1 %vm283_vm0, %v15815_v24 }
 0xd44   : > { %22097 = vmatmul.mubr.msk.f32.gmra.mrb[52].mxu1 %vm283_vm0, %v15816_v18 }
 0xd45   : > { %22099 = vmatprep.mubr.msk.f32.mxu1 %vm283_vm0, %v15817_v46 }
 0xd48   : > { %22100 = vmatmul.mubr.msk.f32.gmra.mrb[54].mxu1 %vm283_vm0, %v15818_v34 }
 0xd49   : > { %22102 = vmatprep.mubr.msk.f32.mxu1 %vm283_vm0, %v15819_v27 }
 0xd4c   : > { %22103 = vmatmul.mubr.msk.f32.gmra.mrb[56].mxu1 %vm283_vm0, %v15820_v19 }
 0xd4d   : > { %22105 = vmatprep.mubr.msk.f32.mxu1 %vm283_vm0, %v15821_v30 }
 0xd50   : > { %22106 = vmatmul.mubr.msk.f32.gmra.mrb[58].mxu1 %vm283_vm0, %v15822_v23 }
 0xd51   : > { %22108 = vmatprep.mubr.msk.f32.mxu1 %vm283_vm0, %v31818_v13 }
 0xd54   : > { %22109 = vmatmul.mubr.msk.f32.gmra.mrb[60].mxu1 %vm283_vm0, %v31819_v9 }
 0xd55   : > { %22111 = vmatprep.mubr.msk.f32.mxu1 %vm283_vm0, %v15825_v29 }
 0xd58   : > { %22112 = vmatmul.mubr.msk.f32.gmra.mrb[62].mxu1 %vm283_vm0, %v15826_v41 }
 0xdaf   : > { %v22020_v39 = vpop.f32.mrb[0].mxu1 }
 0xdb0   : > { %v29647_v51 = vadd.f32 %v22020_v39, %v29644_v15  ;;  %v16089_v50 = vpop.f32.mrb[1].mxu1 }
 0xdb1   : > { %v29650_v48 = vadd.f32 %v29644_v15, %v16089_v50 }
 0xdb2   : > { %v17602_v21 = vrot.slane %v29647_v51, 7  ;;  %v17202_v62 = vrot.slane %v29647_v51, 1  ;;  %v17466_v11 = vrot.slane %v29647_v51, 5  ;;  %v17270_v22 = vrot.slane %v29647_v51, 2 }
 0xdb3   : > { %31820 = vst [vmem:[#allocation47_spill] sm:$0xff] %v29650_v48  ;;  %v22023_v25 = vpop.f32.mrb[2].mxu1  ;;  %v17042_v57 = vrot.slane %v29650_v48, 7  ;;  %v17534_v44 = vrot.slane %v29647_v51, 6  ;;  %v17338_v58 = vrot.slane %v29647_v51, 3  ;;  %v16642_v56 = vrot.slane %v29650_v48, 1 }
 0xdb4   : > { %v29659_v20 = vadd.f32 %v22023_v25, %v29644_v15  ;;  %v16099_v40 = vpop.f32.mrb[3].mxu1  ;;  %v16710_v47 = vrot.slane %v29650_v48, 2  ;;  %v16778_v1 = vrot.slane %v29650_v48, 3  ;;  %v16906_v42 = vrot.slane %v29650_v48, 5 }
 0xdb5   : > { %v29665_v12 = vadd.f32 %v29644_v15, %v16099_v40  ;;  %v16974_v14 = vrot.slane %v29650_v48, 6 }
 0xdb6   : > { %v17603_v6 = vrot.slane %v29659_v20, 6  ;;  %v17203_v53 = vsel %vm16576_vm9, %v29659_v20, %v17202_v62  ;;  %v17467_v36 = vrot.slane %v29659_v20, 4  ;;  %v17271_v17 = vrot.slane %v29659_v20, 1 }
 0xdb7   : > { %v22026_v8 = vpop.f32.mrb[4].mxu1  ;;  %v17043_v28 = vrot.slane %v29665_v12, 6  ;;  %v17535_v33 = vrot.slane %v29659_v20, 5  ;;  %v17339_v10 = vrot.slane %v29659_v20, 2  ;;  %v16643_v35 = vsel %vm16576_vm9, %v29665_v12, %v16642_v56 }
 0xdb8   : > { %v29681_v55 = vadd.f32 %v22026_v8, %v29644_v15  ;;  %v16109_v7 = vpop.f32.mrb[5].mxu1  ;;  %v17604_v26 = vsel %vm16576_vm9, %v17603_v6, %v17602_v21  ;;  %v17468_v52 = vsel %vm16576_vm9, %v17467_v36, %v17466_v11  ;;  %v17272_v16 = vsel %vm16576_vm9, %v17271_v17, %v17270_v22 }
 0xdb9   : > { %v29687_v0 = vadd.f32 %v29644_v15, %v16109_v7  ;;  %v17044_v43 = vsel %vm16576_vm9, %v17043_v28, %v17042_v57  ;;  %v17536_v49 = vsel %vm16576_vm9, %v17535_v33, %v17534_v44  ;;  %v17340_v61 = vsel %vm16576_vm9, %v17339_v10, %v17338_v58 }
 0xdba   : > { %v17605_v32 = vrot.slane %v29681_v55, 5  ;;  %v17204_v31 = vrot.slane %v29681_v55, 7  ;;  %v17469_v2 = vrot.slane %v29681_v55, 3  ;;  %v17273_v3 = vsel %vm16579_vm10, %v29681_v55, %v17272_v16 }
 0xdbb   : > { %v22029_v5 = vpop.f32.mrb[6].mxu1  ;;  %v17045_v59 = vrot.slane %v29687_v0, 5  ;;  %v17537_v63 = vrot.slane %v29681_v55, 4  ;;  %v17341_v54 = vrot.slane %v29681_v55, 1  ;;  %v16644_v37 = vrot.slane %v29687_v0, 7 }
 0xdbc   : > { %v29702_v45 = vadd.f32 %v22029_v5, %v29644_v15  ;;  %v16119_v60 = vpop.f32.mrb[7].mxu1  ;;  %v17606_v4 = vsel %vm16579_vm10, %v17605_v32, %v17604_v26  ;;  %v17205_v38 = vsel %vm16579_vm10, %v17204_v31, %v17203_v53  ;;  %v17470_v24 = vsel %vm16579_vm10, %v17469_v2, %v17468_v52 }
 0xdbd   : > { %v29708_v18 = vadd.f32 %v29644_v15, %v16119_v60  ;;  %v17046_v46 = vsel %vm16579_vm10, %v17045_v59, %v17044_v43  ;;  %v17538_v34 = vsel %vm16579_vm10, %v17537_v63, %v17536_v49  ;;  %v17342_v27 = vsel %vm16579_vm10, %v17341_v54, %v17340_v61 }
 0xdbe   : > { %v17607_v19 = vrot.slane %v29702_v45, 4  ;;  %v17206_v30 = vrot.slane %v29702_v45, 6  ;;  %v17471_v23 = vrot.slane %v29702_v45, 2  ;;  %v17274_v13 = vrot.slane %v29702_v45, 7 }
 0xdbf   : > { %v22032_v29 = vpop.f32.mrb[8].mxu1  ;;  %v17047_v9 = vrot.slane %v29708_v18, 4  ;;  %v17539_v41 = vrot.slane %v29702_v45, 3  ;;  %v17343_v39 = vsel %vm16582_vm11, %v29702_v45, %v17342_v27  ;;  %v16645_v50 = vsel %vm16579_vm10, %v16644_v37, %v16643_v35 }
 0xdc0   : > { %v29723_v21 = vadd.f32 %v22032_v29, %v29644_v15  ;;  %v16129_v62 = vpop.f32.mrb[9].mxu1  ;;  %v17608_v25 = vsel %vm16582_vm11, %v17607_v19, %v17606_v4  ;;  %v17207_v57 = vsel %vm16582_vm11, %v17206_v30, %v17205_v38  ;;  %v17472_v11 = vsel %vm16582_vm11, %v17471_v23, %v17470_v24 }
 0xdc1   : > { %v29729_v22 = vadd.f32 %v29644_v15, %v16129_v62  ;;  %v17048_v44 = vsel %vm16582_vm11, %v17047_v9, %v17046_v46  ;;  %v17275_v40 = vsel %vm16582_vm11, %v17274_v13, %v17273_v3  ;;  %v17540_v58 = vsel %vm16582_vm11, %v17539_v41, %v17538_v34 }
 0xdc2   : > { %v17609_v56 = vrot.slane %v29723_v21, 3  ;;  %v17208_v6 = vrot.slane %v29723_v21, 5  ;;  %v17473_v53 = vrot.slane %v29723_v21, 1  ;;  %v17276_v36 = vrot.slane %v29723_v21, 6 }
 0xdc3   : > { %31821 = vst [vmem:[#allocation48_spill] sm:$0xff] %v29729_v22  ;;  %v22035_v17 = vpop.f32.mrb[10].mxu1  ;;  %v17049_v8 = vrot.slane %v29729_v22, 3  ;;  %v17541_v28 = vrot.slane %v29723_v21, 2  ;;  %v17344_v33 = vrot.slane %v29723_v21, 7  ;;  %v16646_v10 = vrot.slane %v29708_v18, 6 }
 0xdc4   : > { %v29743_v35 = vadd.f32 %v22035_v17, %v29644_v15  ;;  %v16139_v7 = vpop.f32.mrb[11].mxu1  ;;  %v17610_v26 = vsel %vm16585_vm12, %v17609_v56, %v17608_v25  ;;  %v17209_v52 = vsel %vm16585_vm12, %v17208_v6, %v17207_v57  ;;  %v17474_v16 = vsel %vm16585_vm12, %v17473_v53, %v17472_v11 }
 0xdc5   : > { %v29749_v43 = vadd.f32 %v29644_v15, %v16139_v7  ;;  %v17050_v49 = vsel %vm16585_vm12, %v17049_v8, %v17048_v44  ;;  %v17277_v61 = vsel %vm16585_vm12, %v17276_v36, %v17275_v40  ;;  %v17542_v32 = vsel %vm16585_vm12, %v17541_v28, %v17540_v58 }
 0xdc6   : > { %v17611_v31 = vrot.slane %v29743_v35, 2  ;;  %v17210_v2 = vrot.slane %v29743_v35, 4  ;;  %v17475_v3 = vsel %vm16588_vm13, %v29743_v35, %v17474_v16  ;;  %v17278_v5 = vrot.slane %v29743_v35, 5 }
 0xdc7   : > { %31822 = vst [vmem:[#allocation49_spill] sm:$0xff] %v29749_v43  ;;  %v22038_v59 = vpop.f32.mrb[12].mxu1  ;;  %v17051_v63 = vrot.slane %v29749_v43, 2  ;;  %v17543_v54 = vrot.slane %v29743_v35, 1  ;;  %v17345_v37 = vsel %vm16585_vm12, %v17344_v33, %v17343_v39  ;;  %v17346_v60 = vrot.slane %v29743_v35, 6 }
 0xdc8   : > { %v29764_v4 = vadd.f32 %v22038_v59, %v29644_v15  ;;  %v16149_v38 = vpop.f32.mrb[13].mxu1  ;;  %v17612_v24 = vsel %vm16588_vm13, %v17611_v31, %v17610_v26  ;;  %v17211_v46 = vsel %vm16588_vm13, %v17210_v2, %v17209_v52  ;;  %v17279_v34 = vsel %vm16588_vm13, %v17278_v5, %v17277_v61 }
 0xdc9   : > { %v29770_v27 = vadd.f32 %v29644_v15, %v16149_v38  ;;  %v17052_v19 = vsel %vm16588_vm13, %v17051_v63, %v17050_v49  ;;  %v17544_v30 = vsel %vm16588_vm13, %v17543_v54, %v17542_v32  ;;  %v17347_v23 = vsel %vm16588_vm13, %v17346_v60, %v17345_v37 }
 0xdca   : > { %v17613_v13 = vrot.slane %v29764_v4, 1  ;;  %v17212_v29 = vrot.slane %v29764_v4, 3  ;;  %v17476_v9 = vrot.slane %v29764_v4, 7  ;;  %v17280_v41 = vrot.slane %v29764_v4, 4 }
 0xdcb   : > { %31823 = vst [vmem:[#allocation50_spill] sm:$0xff] %v29770_v27  ;;  %v22041_v39 = vpop.f32.mrb[14].mxu1  ;;  %v17053_v62 = vrot.slane %v29770_v27, 1  ;;  %v17545_v25 = vsel %vm16591_vm14, %v29764_v4, %v17544_v30  ;;  %v17348_v57 = vrot.slane %v29764_v4, 5  ;;  %v16647_v11 = vsel %vm16582_vm11, %v16646_v10, %v16645_v50 }
 0xdcc   : > { %v29785_v44 = vadd.f32 %v22041_v39, %v29644_v15  ;;  %v16159_v40 = vpop.f32.mrb[15].mxu1  ;;  %v17614_v58 = vsel %vm16591_vm14, %v17613_v13, %v17612_v24  ;;  %v17213_v56 = vsel %vm16591_vm14, %v17212_v29, %v17211_v46  ;;  %v17477_v6 = vsel %vm16591_vm14, %v17476_v9, %v17475_v3 }
 0xdcd   : > { %v29791_v53 = vadd.f32 %v29644_v15, %v16159_v40  ;;  %v17054_v36 = vsel %vm16591_vm14, %v17053_v62, %v17052_v19  ;;  %v17281_v17 = vsel %vm16591_vm14, %v17280_v41, %v17279_v34  ;;  %v17349_v8 = vsel %vm16591_vm14, %v17348_v57, %v17347_v23 }
 0xdce   : > { %v17615_v50 = vsel %vm16594_vm15, %v29785_v44, %v17614_v58  ;;  %v17214_v28 = vrot.slane %v29785_v44, 2  ;;  %v17478_v33 = vrot.slane %v29785_v44, 6  ;;  %v17282_v10 = vrot.slane %v29785_v44, 3 }
 0xdcf   : > { %31824 = vst [vmem:[#allocation51_spill] sm:$0xff] %v29791_v53  ;;  %17658 = vrot.lane.b32.xlu0 %v17615_v50, %s23407_s18  ;;  %v22044_v7 = vpop.f32.mrb[16].mxu1  ;;  %v17055_v26 = vsel %vm16594_vm15, %v29791_v53, %v17054_v36  ;;  %v17546_v52 = vrot.slane %v29785_v44, 7  ;;  %v17350_v16 = vrot.slane %v29785_v44, 4  ;;  %v16648_v49 = vrot.slane %v29729_v22, 5 }
 0xdd0   : > { %v29808_v61 = vadd.f32 %v22044_v7, %v29644_v15  ;;  %v16169_v32 = vpop.f32.mrb[17].mxu1  ;;  %v17215_v31 = vsel %vm16594_vm15, %v17214_v28, %v17213_v56  ;;  %v17479_v2 = vsel %vm16594_vm15, %v17478_v33, %v17477_v6  ;;  %v29813_v3 = vsel %vm16594_vm15, %v17282_v10, %v17281_v17 }
 0xdd1   : > { %v29816_v5 = vadd.f32 %v29644_v15, %v16169_v32  ;;  %v29819_v59 = vsel %vm16594_vm15, %v17546_v52, %v17545_v25  ;;  %v29822_v63 = vsel %vm16594_vm15, %v17350_v16, %v17349_v8  ;;  %v16649_v54 = vsel %vm16585_vm12, %v16648_v49, %v16647_v11 }
 0xdd2   : > { %31825 = vst [vmem:[#allocation52_spill] sm:$0xff] %v29808_v61  ;;  %v16650_v37 = vrot.slane %v29749_v43, 4  ;;  %v16652_v60 = vrot.slane %v29770_v27, 3  ;;  %v16654_v38 = vrot.slane %v29791_v53, 2  ;;  %v16711_v24 = vrot.slane %v29665_v12, 1 }
 0xdd3   : > { %31826 = vst [vmem:[#allocation53_spill] sm:$0xff] %v29816_v5  ;;  %17098 = vrot.lane.b32.xlu0 %v17055_v26, %s23407_s18  ;;  %v22047_v46 = vpop.f32.mrb[18].mxu1  ;;  %v16714_v34 = vrot.slane %v29708_v18, 7  ;;  %v16716_v19 = vrot.slane %v29729_v22, 6  ;;  %v16718_v30 = vrot.slane %v29749_v43, 5  ;;  %v16720_v23 = vrot.slane %v29770_v27, 4 }
 0xdd4   : > { %v29835_v13 = vadd.f32 %v22047_v46, %v29644_v15  ;;  %v16179_v29 = vpop.f32.mrb[19].mxu1  ;;  %v16651_v9 = vsel %vm16588_vm13, %v16650_v37, %v16649_v54  ;;  %v16712_v41 = vsel %vm16576_vm9, %v16711_v24, %v16710_v47  ;;  %v16722_v39 = vrot.slane %v29791_v53, 3 }
 0xdd5   : > { %v29843_v62 = vadd.f32 %v29644_v15, %v16179_v29  ;;  %v16653_v25 = vsel %vm16591_vm14, %v16652_v60, %v16651_v9  ;;  %v16713_v57 = vsel %vm16579_vm10, %v29687_v0, %v16712_v41  ;;  %v17616_v11 = vrot.slane %v29808_v61, 7 }
 0xdd6   : > { %31827 = vst [vmem:[#allocation54_spill] sm:$0xff] %v29835_v13  ;;  %v29850_v40 = vsel %vm16594_vm15, %v16654_v38, %v16653_v25  ;;  %v16715_v58 = vsel %vm16582_vm11, %v16714_v34, %v16713_v57  ;;  %v17617_v56 = vrot.slane %v29835_v13, 6  ;;  %v16779_v47 = vrot.slane %v29665_v12, 2 }
 0xdd7   : > { %31828 = vst [vmem:[#allocation55_spill] sm:$0xff] %v29843_v62  ;;  %17258 = vrot.lane.b32.xlu0 %v17215_v31, %s23408_s19  ;;  %v22050_v6 = vpop.f32.mrb[20].mxu1  ;;  %v16717_v36 = vsel %vm16585_vm12, %v16716_v19, %v16715_v58  ;;  %v16781_v17 = vrot.slane %v29687_v0, 1  ;;  %v16784_v8 = vrot.slane %v29729_v22, 7  ;;  %v16786_v50 = vrot.slane %v29749_v43, 6 }
 0xdd8   : > { %v29861_v28 = vadd.f32 %v22050_v6, %v29644_v15  ;;  %v16189_v33 = vpop.f32.mrb[21].mxu1  ;;  %v16719_v10 = vsel %vm16588_vm13, %v16718_v30, %v16717_v36  ;;  %v17618_v7 = vsel %vm16576_vm9, %v17617_v56, %v17616_v11  ;;  %v16780_v26 = vsel %vm16576_vm9, %v16779_v47, %v16778_v1 }
 0xdd9   : > { %v29869_v52 = vadd.f32 %v29644_v15, %v16189_v33  ;;  %v16721_v16 = vsel %vm16591_vm14, %v16720_v23, %v16719_v10  ;;  %v16782_v49 = vsel %vm16579_vm10, %v16781_v17, %v16780_v26  ;;  %v16788_v32 = vrot.slane %v29770_v27, 5 }
 0xdda   : > { %31829 = vst [vmem:[#allocation56_spill] sm:$0xff] %v29861_v28  ;;  %v29875_v31 = vsel %vm16594_vm15, %v16722_v39, %v16721_v16  ;;  %v17619_v54 = vrot.slane %v29861_v28, 5  ;;  %v16783_v37 = vsel %vm16582_vm11, %v29708_v18, %v16782_v49  ;;  %v16790_v60 = vrot.slane %v29791_v53, 4 }
 0xddb   : > { %31830 = vst [vmem:[#allocation57_spill] sm:$0xff] %v29869_v52  ;;  %17522 = vrot.lane.b32.xlu0 %v17479_v2, %s23408_s19  ;;  %v22053_v1 = vpop.f32.mrb[22].mxu1  ;;  %v16785_v38 = vsel %vm16585_vm12, %v16784_v8, %v16783_v37  ;;  %v17056_v24 = vrot.slane %v29816_v5, 7  ;;  %v17057_v46 = vrot.slane %v29843_v62, 6  ;;  %v17059_v34 = vrot.slane %v29869_v52, 5 }
 0xddc   : > { %v29887_v19 = vadd.f32 %v22053_v1, %v29644_v15  ;;  %v16199_v30 = vpop.f32.mrb[23].mxu1  ;;  %v17620_v23 = vsel %vm16579_vm10, %v17619_v54, %v17618_v7  ;;  %v16787_v29 = vsel %vm16588_vm13, %v16786_v50, %v16785_v38  ;;  %v16907_v9 = vrot.slane %v29665_v12, 4 }
 0xddd   : > { %v29893_v2 = vadd.f32 %v29644_v15, %v16199_v30  ;;  %v16789_v41 = vsel %vm16591_vm14, %v16788_v32, %v16787_v29  ;;  %v17058_v39 = vsel %vm16576_vm9, %v17057_v46, %v17056_v24  ;;  %v16909_v25 = vrot.slane %v29687_v0, 3 }
 0xdde   : > { %31831 = vst [vmem:[#allocation58_spill] sm:$0xff] %v29887_v19  ;;  %v17621_v57 = vrot.slane %v29887_v19, 4  ;;  %v29900_v11 = vsel %vm16594_vm15, %v16790_v60, %v16789_v41  ;;  %v17060_v58 = vsel %vm16579_vm10, %v17059_v34, %v17058_v39  ;;  %v16908_v56 = vsel %vm16576_vm9, %v16907_v9, %v16906_v42 }
 0xddf   : > { %31832 = vst [vmem:[#allocation59_spill] sm:$0xff] %v29893_v2  ;;  %17326 = vrot.lane.b32.xlu0 %v29813_v3, %s23409_s20  ;;  %v22056_v47 = vpop.f32.mrb[24].mxu1  ;;  %v17061_v6 = vrot.slane %v29893_v2, 4  ;;  %v16910_v36 = vsel %vm16579_vm10, %v16909_v25, %v16908_v56  ;;  %v16911_v17 = vrot.slane %v29708_v18, 2  ;;  %v16913_v8 = vrot.slane %v29729_v22, 1 }
 0xde0   : > { %v29913_v50 = vadd.f32 %v22056_v47, %v29644_v15  ;;  %v16209_v33 = vpop.f32.mrb[25].mxu1  ;;  %v17622_v10 = vsel %vm16582_vm11, %v17621_v57, %v17620_v23  ;;  %v16916_v42 = vrot.slane %v29770_v27, 7  ;;  %v16918_v7 = vrot.slane %v29791_v53, 6 }
 0xde1   : > { %v29919_v3 = vadd.f32 %v29644_v15, %v16209_v33  ;;  %v17062_v26 = vsel %vm16582_vm11, %v17061_v6, %v17060_v58  ;;  %v16912_v16 = vsel %vm16582_vm11, %v16911_v17, %v16910_v36  ;;  %v17216_v49 = vrot.slane %v29808_v61, 1 }
 0xde2   : > { %31833 = vst [vmem:[#allocation60_spill] sm:$0xff] %v29913_v50  ;;  %v17623_v32 = vrot.slane %v29913_v50, 3  ;;  %v16914_v54 = vsel %vm16585_vm12, %v16913_v8, %v16912_v16  ;;  %v17218_v37 = vrot.slane %v29861_v28, 7  ;;  %v17220_v60 = vrot.slane %v29887_v19, 6 }
 0xde3   : > { %31834 = vst [vmem:[#allocation61_spill] sm:$0xff] %v29919_v3  ;;  %17590 = vrot.lane.b32.xlu0 %v29819_v59, %s23409_s20  ;;  %v22059_v1 = vpop.f32.mrb[26].mxu1  ;;  %v17063_v38 = vrot.slane %v29919_v3, 3  ;;  %v16915_v24 = vsel %vm16588_vm13, %v29749_v43, %v16914_v54  ;;  %v17217_v46 = vsel %vm16576_vm9, %v29835_v13, %v17216_v49  ;;  %v17222_v34 = vrot.slane %v29913_v50, 5 }
 0xde4   : > { %v29937_v30 = vadd.f32 %v22059_v1, %v29644_v15  ;;  %v16219_v23 = vpop.f32.mrb[27].mxu1  ;;  %v17624_v29 = vsel %vm16585_vm12, %v17623_v32, %v17622_v10  ;;  %v16917_v9 = vsel %vm16591_vm14, %v16916_v42, %v16915_v24  ;;  %v17219_v59 = vsel %vm16579_vm10, %v17218_v37, %v17217_v46 }
 0xde5   : > { %v29943_v41 = vadd.f32 %v29644_v15, %v16219_v23  ;;  %v17064_v39 = vsel %vm16585_vm12, %v17063_v38, %v17062_v26  ;;  %v29947_v25 = vsel %vm16594_vm15, %v16918_v7, %v16917_v9  ;;  %v17221_v57 = vsel %vm16582_vm11, %v17220_v60, %v17219_v59 }
 0xde6   : > { %31835 = vst [vmem:[#allocation62_spill] sm:$0xff] %v29937_v30  ;;  %v17625_v58 = vrot.slane %v29937_v30, 2  ;;  %v17223_v56 = vsel %vm16585_vm12, %v17222_v34, %v17221_v57  ;;  %v17224_v47 = vrot.slane %v29937_v30, 4  ;;  %v16975_v6 = vrot.slane %v29665_v12, 5 }
 0xde7   : > { %31836 = vst [vmem:[#allocation63_spill] sm:$0xff] %v29943_v41  ;;  %17394 = vrot.lane.b32.xlu0 %v29822_v63, %s23407_s18  ;;  %v22062_v36 = vpop.f32.mrb[28].mxu1  ;;  %v17065_v17 = vrot.slane %v29943_v41, 2  ;;  %v16977_v8 = vrot.slane %v29687_v0, 4  ;;  %v16979_v33 = vrot.slane %v29708_v18, 3  ;;  %v16981_v10 = vrot.slane %v29729_v22, 2 }
 0xde8   : > { %v29961_v42 = vadd.f32 %v22062_v36, %v29644_v15  ;;  %v16229_v7 = vpop.f32.mrb[29].mxu1  ;;  %v17626_v26 = vsel %vm16588_vm13, %v17625_v58, %v17624_v29  ;;  %v17225_v16 = vsel %vm16588_vm13, %v17224_v47, %v17223_v56  ;;  %v16976_v63 = vsel %vm16576_vm9, %v16975_v6, %v16974_v14 }
 0xde9   : > { %v29969_v49 = vadd.f32 %v29644_v15, %v16229_v7  ;;  %v17066_v32 = vsel %vm16588_vm13, %v17065_v17, %v17064_v39  ;;  %v16978_v54 = vsel %vm16579_vm10, %v16977_v8, %v16976_v63  ;;  %v16983_v37 = vrot.slane %v29749_v43, 1 }
 0xdea   : > { %31837 = vst [vmem:[#allocation64_spill] sm:$0xff] %v29961_v42  ;;  %v17627_v60 = vrot.slane %v29961_v42, 1  ;;  %v17226_v1 = vrot.slane %v29961_v42, 3  ;;  %v16980_v38 = vsel %vm16582_vm11, %v16979_v33, %v16978_v54  ;;  %v16986_v24 = vrot.slane %v29791_v53, 7 }
 0xdeb   : > { %31838 = vst [vmem:[#allocation65_spill] sm:$0xff] %v29969_v49  ;;  %16698 = vrot.lane.b32.xlu0 %v29850_v40, %s23408_s19  ;;  %v22065_v14 = vpop.f32.mrb[30].mxu1  ;;  %v17067_v46 = vrot.slane %v29969_v49, 1  ;;  %v16982_v34 = vsel %vm16585_vm12, %v16981_v10, %v16980_v38  ;;  %v17480_v23 = vrot.slane %v29808_v61, 5  ;;  %v17481_v29 = vrot.slane %v29835_v13, 4 }
 0xdec   : > { %v29985_v9 = vadd.f32 %v22065_v14, %v29644_v15  ;;  %v16239_v59 = vpop.f32.mrb[31].mxu1  ;;  %v17628_v39 = vsel %vm16591_vm14, %v17627_v60, %v17626_v26  ;;  %v17227_v57 = vsel %vm16591_vm14, %v17226_v1, %v17225_v16  ;;  %v16984_v58 = vsel %vm16588_vm13, %v16983_v37, %v16982_v34 }
 0xded   : > { %v29991_v40 = vadd.f32 %v29644_v15, %v16239_v59  ;;  %v17068_v56 = vsel %vm16591_vm14, %v17067_v46, %v17066_v32  ;;  %v16985_v47 = vsel %vm16591_vm14, %v29770_v27, %v16984_v58  ;;  %v17482_v6 = vsel %vm16576_vm9, %v17481_v29, %v17480_v23 }
 0xdee   : > { %31839 = vst [vmem:[#allocation66_spill] sm:$0xff] %v29985_v9  ;;  %v17629_v36 = vsel %vm16594_vm15, %v29985_v9, %v17628_v39  ;;  %v17228_v17 = vrot.slane %v29985_v9, 2  ;;  %v16987_v8 = vsel %vm16594_vm15, %v16986_v24, %v16985_v47  ;;  %v17483_v33 = vrot.slane %v29861_v28, 3 }
 0xdef   : > { %31840 = vst [vmem:[#allocation67_spill] sm:$0xff] %v29991_v40  ;;  %16766 = vrot.lane.b32.xlu0 %v29875_v31, %s23409_s20  ;;  %17660 = vrot.lane.b32.xlu1 %v17629_v36, %s23407_s18  ;;  %v22068_v10 = vpop.f32.mrb[32].mxu1  ;;  %v17069_v7 = vsel %vm16594_vm15, %v29991_v40, %v17068_v56  ;;  %v17485_v26 = vrot.slane %v29887_v19, 2  ;;  %v17487_v16 = vrot.slane %v29913_v50, 1  ;;  %v17490_v63 = vrot.slane %v29961_v42, 7 }
 0xdf0   : > { %v30011_v32 = vadd.f32 %v22068_v10, %v29644_v15  ;;  %v16249_v54 = vpop.f32.mrb[33].mxu1  ;;  %v17229_v37 = vsel %vm16594_vm15, %v17228_v17, %v17227_v57  ;;  %v17484_v31 = vsel %vm16579_vm10, %v17483_v33, %v17482_v6  ;;  %v17492_v60 = vrot.slane %v29985_v9, 6 }
 0xdf1   : > { %v30017_v1 = vadd.f32 %v29644_v15, %v16249_v54  ;;  %v17486_v38 = vsel %vm16582_vm11, %v17485_v26, %v17484_v31  ;;  %v17284_v24 = vrot.slane %v29808_v61, 2  ;;  %v17285_v14 = vrot.slane %v29835_v13, 1 }
 0xdf2   : > { %v17488_v46 = vsel %vm16585_vm12, %v17487_v16, %v17486_v38  ;;  %v17288_v34 = vrot.slane %v29887_v19, 7  ;;  %v17290_v23 = vrot.slane %v29913_v50, 6  ;;  %v17292_v29 = vrot.slane %v29937_v30, 5 }
 0xdf3   : > { %31841 = vst [vmem:[#allocation68_spill] sm:$0xff] %v30017_v1  ;;  %16834 = vrot.lane.b32.xlu0 %v29900_v11, %s23407_s18  ;;  %17100 = vrot.lane.b32.xlu1 %v17069_v7, %s23407_s18  ;;  %v22071_v59 = vpop.f32.mrb[34].mxu1  ;;  %v17489_v39 = vsel %vm16588_vm13, %v29937_v30, %v17488_v46  ;;  %v17286_v57 = vsel %vm16576_vm9, %v17285_v14, %v17284_v24  ;;  %v17294_v58 = vrot.slane %v29961_v42, 4  ;;  %v17296_v56 = vrot.slane %v29985_v9, 3 }
 0xdf4   : > { %v30035_v47 = vadd.f32 %v22071_v59, %v29644_v15  ;;  %v16259_v6 = vpop.f32.mrb[35].mxu1  ;;  %v17491_v36 = vsel %vm16591_vm14, %v17490_v63, %v17489_v39  ;;  %v17287_v11 = vsel %vm16579_vm10, %v29861_v28, %v17286_v57  ;;  %v17548_v17 = vrot.slane %v29808_v61, 6 }
 0xdf5   : > { %v30042_v33 = vadd.f32 %v29644_v15, %v16259_v6  ;;  %v17493_v10 = vsel %vm16594_vm15, %v17492_v60, %v17491_v36  ;;  %v17289_v7 = vsel %vm16582_vm11, %v17288_v34, %v17287_v11  ;;  %v17549_v26 = vrot.slane %v29835_v13, 5 }
 0xdf6   : > { %v17291_v16 = vsel %vm16585_vm12, %v17290_v23, %v17289_v7  ;;  %v17551_v54 = vrot.slane %v29861_v28, 4  ;;  %v17553_v63 = vrot.slane %v29887_v19, 3  ;;  %v17555_v31 = vrot.slane %v29913_v50, 2 }
 0xdf7   : > { %16962 = vrot.lane.b32.xlu0 %v29947_v25, %s23408_s19  ;;  %17260 = vrot.lane.b32.xlu1 %v17229_v37, %s23408_s19  ;;  %v22074_v38 = vpop.f32.mrb[36].mxu1  ;;  %v17293_v60 = vsel %vm16588_vm13, %v17292_v29, %v17291_v16  ;;  %v17550_v24 = vsel %vm16576_vm9, %v17549_v26, %v17548_v17  ;;  %v17557_v14 = vrot.slane %v29937_v30, 1  ;;  %v17560_v46 = vrot.slane %v29985_v9, 7 }
 0xdf8   : > { %v30059_v34 = vadd.f32 %v22074_v38, %v29644_v15  ;;  %v16269_v23 = vpop.f32.mrb[37].mxu1  ;;  %v17295_v59 = vsel %vm16591_vm14, %v17294_v58, %v17293_v60  ;;  %v17552_v39 = vsel %vm16579_vm10, %v17551_v54, %v17550_v24  ;;  %v17352_v25 = vrot.slane %v29808_v61, 3 }
 0xdf9   : > { %v30065_v37 = vadd.f32 %v29644_v15, %v16269_v23  ;;  %v17297_v29 = vsel %vm16594_vm15, %v17296_v56, %v17295_v59  ;;  %v17554_v57 = vsel %vm16582_vm11, %v17553_v63, %v17552_v39  ;;  %v17353_v6 = vrot.slane %v29835_v13, 2 }
 0xdfa   : > { %v17556_v36 = vsel %vm16585_vm12, %v17555_v31, %v17554_v57  ;;  %v17355_v11 = vrot.slane %v29861_v28, 1  ;;  %v17358_v17 = vrot.slane %v29913_v50, 7  ;;  %v17360_v58 = vrot.slane %v29937_v30, 6 }
 0xdfb   : > { %17030 = vrot.lane.b32.xlu0 %v16987_v8, %s23409_s20  ;;  %17524 = vrot.lane.b32.xlu1 %v17493_v10, %s23408_s19  ;;  %v22077_v7 = vpop.f32.mrb[38].mxu1  ;;  %v17558_v26 = vsel %vm16588_vm13, %v17557_v14, %v17556_v36  ;;  %v17354_v56 = vsel %vm16576_vm9, %v17353_v6, %v17352_v25  ;;  %v17362_v16 = vrot.slane %v29961_v42, 5  ;;  %v17364_v54 = vrot.slane %v29985_v9, 4 }
 0xdfc   : > { %v30081_v63 = vadd.f32 %v22077_v7, %v29644_v15  ;;  %v16279_v31 = vpop.f32.mrb[39].mxu1  ;;  %v17559_v38 = vsel %vm16591_vm14, %v29961_v42, %v17558_v26  ;;  %v17356_v8 = vsel %vm16579_vm10, %v17355_v11, %v17354_v56  ;;  %v16656_v10 = vrot.slane %v29816_v5, 1 }
 0xdfd   : > { %v30088_v60 = vadd.f32 %v29644_v15, %v16279_v31  ;;  %v17561_v24 = vsel %vm16594_vm15, %v17560_v46, %v17559_v38  ;;  %v17357_v14 = vsel %vm16582_vm11, %v29887_v19, %v17356_v8  ;;  %v16658_v23 = vrot.slane %v29869_v52, 7 }
 0xdfe   : > { %v17359_v59 = vsel %vm16585_vm12, %v17358_v17, %v17357_v14  ;;  %v16657_v39 = vsel %vm16576_vm9, %v29843_v62, %v16656_v10  ;;  %v16660_v25 = vrot.slane %v29893_v2, 6  ;;  %v16662_v57 = vrot.slane %v29919_v3, 5 }
 0xdff   : > { %17328 = vrot.lane.b32.xlu1 %v17297_v29, %s23409_s20  ;;  %v22080_v6 = vpop.f32.mrb[40].mxu1  ;;  %v17361_v36 = vsel %vm16588_vm13, %v17360_v58, %v17359_v59  ;;  %v16659_v46 = vsel %vm16579_vm10, %v16658_v23, %v16657_v39  ;;  %v16664_v11 = vrot.slane %v29943_v41, 4  ;;  %v16666_v7 = vrot.slane %v29969_v49, 3 }
 0xe00   : > { %v30105_v17 = vadd.f32 %v22080_v6, %v29644_v15  ;;  %v16289_v26 = vpop.f32.mrb[41].mxu1  ;;  %v17363_v56 = vsel %vm16591_vm14, %v17362_v16, %v17361_v36  ;;  %v16661_v31 = vsel %vm16582_vm11, %v16660_v25, %v16659_v46  ;;  %v16668_v38 = vrot.slane %v29991_v40, 2 }
 0xe01   : > { %v30111_v29 = vadd.f32 %v29644_v15, %v16289_v26  ;;  %v17365_v58 = vsel %vm16594_vm15, %v17364_v54, %v17363_v56  ;;  %v16663_v8 = vsel %vm16585_vm12, %v16662_v57, %v16661_v31  ;;  %v16724_v10 = vrot.slane %v29816_v5, 2 }
 0xe02   : > { %v16665_v14 = vsel %vm16588_vm13, %v16664_v11, %v16663_v8  ;;  %v16725_v23 = vrot.slane %v29843_v62, 1  ;;  %v16728_v59 = vrot.slane %v29893_v2, 7  ;;  %v16730_v16 = vrot.slane %v29919_v3, 6 }
 0xe03   : > { %17592 = vrot.lane.b32.xlu1 %v17561_v24, %s23409_s20  ;;  %v22083_v39 = vpop.f32.mrb[42].mxu1  ;;  %v16667_v25 = vsel %vm16591_vm14, %v16666_v7, %v16665_v14  ;;  %v16732_v6 = vrot.slane %v29943_v41, 5  ;;  %v16734_v54 = vrot.slane %v29969_v49, 4  ;;  %v16736_v57 = vrot.slane %v29991_v40, 3 }
 0xe04   : > { %v30126_v36 = vadd.f32 %v22083_v39, %v29644_v15  ;;  %v16299_v46 = vpop.f32.mrb[43].mxu1  ;;  %v16669_v11 = vsel %vm16594_vm15, %v16668_v38, %v16667_v25  ;;  %v16726_v26 = vsel %vm16576_vm9, %v16725_v23, %v16724_v10  ;;  %v17070_v56 = vrot.slane %v30017_v1, 7 }
 0xe05   : > { %v30132_v24 = vadd.f32 %v29644_v15, %v16299_v46  ;;  %v16727_v7 = vsel %vm16579_vm10, %v29869_v52, %v16726_v26  ;;  %v17071_v31 = vrot.slane %v30042_v33, 6  ;;  %v17073_v8 = vrot.slane %v30065_v37, 5 }
 0xe06   : > { %v16729_v14 = vsel %vm16582_vm11, %v16728_v59, %v16727_v7  ;;  %v17075_v39 = vrot.slane %v30088_v60, 4  ;;  %v17077_v38 = vrot.slane %v30111_v29, 3  ;;  %v16792_v10 = vrot.slane %v29816_v5, 3 }
 0xe07   : > { %31842 = vst [vmem:[#allocation6_spill] sm:$0xff] %v30132_v24  ;;  %17396 = vrot.lane.b32.xlu1 %v17365_v58, %s23407_s18  ;;  %v22086_v23 = vpop.f32.mrb[44].mxu1  ;;  %v16731_v25 = vsel %vm16585_vm12, %v16730_v16, %v16729_v14  ;;  %v17072_v46 = vsel %vm16576_vm9, %v17071_v31, %v17070_v56  ;;  %v17079_v26 = vrot.slane %v30132_v24, 2  ;;  %v16793_v9 = vrot.slane %v29843_v62, 2 }
 0xe08   : > { %v30148_v42 = vadd.f32 %v22086_v23, %v29644_v15  ;;  %v16309_v59 = vpop.f32.mrb[45].mxu1  ;;  %v16733_v7 = vsel %vm16588_vm13, %v16732_v6, %v16731_v25  ;;  %v17074_v30 = vsel %vm16579_vm10, %v17073_v8, %v17072_v46  ;;  %v16795_v61 = vrot.slane %v29869_v52, 1 }
 0xe09   : > { %v30154_v58 = vadd.f32 %v29644_v15, %v16309_v59  ;;  %v16735_v16 = vsel %vm16591_vm14, %v16734_v54, %v16733_v7  ;;  %v17076_v56 = vsel %vm16582_vm11, %v17075_v39, %v17074_v30  ;;  %v16794_v31 = vsel %vm16576_vm9, %v16793_v9, %v16792_v10 }
 0xe0a   : > { %v16737_v14 = vsel %vm16594_vm15, %v16736_v57, %v16735_v16  ;;  %v17078_v23 = vsel %vm16585_vm12, %v17077_v38, %v17076_v56  ;;  %v16796_v50 = vsel %vm16579_vm10, %v16795_v61, %v16794_v31  ;;  %v16798_v6 = vrot.slane %v29919_v3, 7 }
 0xe0b   : > { %31843 = vst [vmem:[#allocation7_spill] sm:$0xff] %v30154_v58  ;;  %16700 = vrot.lane.b32.xlu1 %v16669_v11, %s23408_s19  ;;  %v22089_v8 = vpop.f32.mrb[46].mxu1  ;;  %v17080_v25 = vsel %vm16588_vm13, %v17079_v26, %v17078_v23  ;;  %v17081_v46 = vrot.slane %v30154_v58, 1  ;;  %v16797_v30 = vsel %vm16582_vm11, %v29893_v2, %v16796_v50  ;;  %v16800_v9 = vrot.slane %v29943_v41, 6 }
 0xe0c   : > { %v30170_v54 = vadd.f32 %v22089_v8, %v29644_v15  ;;  %v16319_v57 = vpop.f32.mrb[47].mxu1  ;;  %v16799_v61 = vsel %vm16585_vm12, %v16798_v6, %v16797_v30  ;;  %v16802_v39 = vrot.slane %v29969_v49, 5  ;;  %v16804_v11 = vrot.slane %v29991_v40, 4 }
 0xe0d   : > { %v30176_v38 = vadd.f32 %v29644_v15, %v16319_v57  ;;  %v17082_v10 = vsel %vm16591_vm14, %v17081_v46, %v17080_v25  ;;  %v16801_v26 = vsel %vm16588_vm13, %v16800_v9, %v16799_v61  ;;  %v17230_v50 = vrot.slane %v30011_v32, 1 }
 0xe0e   : > { %v16803_v59 = vsel %vm16591_vm14, %v16802_v39, %v16801_v26  ;;  %v17232_v7 = vrot.slane %v30059_v34, 7  ;;  %v17234_v16 = vrot.slane %v30081_v63, 6  ;;  %v17236_v56 = vrot.slane %v30105_v17, 5 }
 0xe0f   : > { %31844 = vst [vmem:[#allocation8_spill] sm:$0xff] %v30176_v38  ;;  %16768 = vrot.lane.b32.xlu1 %v16737_v14, %s23409_s20  ;;  %v22092_v31 = vpop.f32.mrb[48].mxu1  ;;  %v17083_v23 = vsel %vm16594_vm15, %v30176_v38, %v17082_v10  ;;  %v16805_v6 = vsel %vm16594_vm15, %v16804_v11, %v16803_v59  ;;  %v17231_v8 = vsel %vm16576_vm9, %v30035_v47, %v17230_v50  ;;  %v17238_v25 = vrot.slane %v30126_v36, 4 }
 0xe10   : > { %v30193_v46 = vadd.f32 %v22092_v31, %v29644_v15  ;;  %17102 = vrot.lane.b32.xlu0 %v17083_v23, %s23407_s18  ;;  %v16329_v30 = vpop.f32.mrb[49].mxu1  ;;  %v17233_v9 = vsel %vm16579_vm10, %v17232_v7, %v17231_v8  ;;  %v17240_v14 = vrot.slane %v30148_v42, 3  ;;  %v17242_v57 = vrot.slane %v30170_v54, 2 }
 0xe11   : > { %v30200_v61 = vadd.f32 %v29644_v15, %v16329_v30  ;;  %v17235_v39 = vsel %vm16582_vm11, %v17234_v16, %v17233_v9  ;;  %v16920_v11 = vrot.slane %v29816_v5, 5  ;;  %v16921_v10 = vrot.slane %v29843_v62, 4 }
 0xe12   : > { %v17237_v26 = vsel %vm16585_vm12, %v17236_v56, %v17235_v39  ;;  %v16923_v50 = vrot.slane %v29869_v52, 3  ;;  %v16925_v59 = vrot.slane %v29893_v2, 2  ;;  %v16927_v7 = vrot.slane %v29919_v3, 1 }
 0xe13   : > { %31845 = vst [vmem:[#allocation9_spill] sm:$0xff] %v30200_v61  ;;  %16836 = vrot.lane.b32.xlu1 %v16805_v6, %s23407_s18  ;;  %v22095_v31 = vpop.f32.mrb[50].mxu1  ;;  %v17239_v23 = vsel %vm16588_vm13, %v17238_v25, %v17237_v26  ;;  %v16922_v8 = vsel %vm16576_vm9, %v16921_v10, %v16920_v11  ;;  %v16930_v16 = vrot.slane %v29969_v49, 7  ;;  %v16932_v30 = vrot.slane %v29991_v40, 6 }
 0xe14   : > { %v30215_v9 = vadd.f32 %v22095_v31, %v29644_v15  ;;  %v17241_v56 = vsel %vm16591_vm14, %v17240_v14, %v17239_v23  ;;  %v16339_v39 = vpop.f32.mrb[51].mxu1  ;;  %v16924_v19 = vsel %vm16579_vm10, %v16923_v50, %v16922_v8  ;;  %v17494_v28 = vrot.slane %v30011_v32, 5 }
 0xe15   : > { %v17243_v6 = vsel %vm16594_vm15, %v17242_v57, %v17241_v56  ;;  %v30222_v25 = vadd.f32 %v29644_v15, %v16339_v39  ;;  %v16926_v11 = vsel %vm16582_vm11, %v16925_v59, %v16924_v19  ;;  %v17495_v10 = vrot.slane %v30035_v47, 4 }
 0xe16   : > { %17262 = vrot.lane.b32.xlu0 %v17243_v6, %s23408_s19  ;;  %v16928_v26 = vsel %vm16585_vm12, %v16927_v7, %v16926_v11  ;;  %v17497_v14 = vrot.slane %v30059_v34, 3  ;;  %v17499_v31 = vrot.slane %v30081_v63, 2  ;;  %v17501_v50 = vrot.slane %v30105_v17, 1 }
 0xe17   : > { %v16929_v57 = vsel %vm16588_vm13, %v29943_v41, %v16928_v26  ;;  %v22098_v23 = vpop.f32.mrb[52].mxu1  ;;  %v17496_v8 = vsel %vm16576_vm9, %v17495_v10, %v17494_v28  ;;  %v17504_v19 = vrot.slane %v30148_v42, 7  ;;  %v17506_v59 = vrot.slane %v30170_v54, 6 }
 0xe18   : > { %v16931_v56 = vsel %vm16591_vm14, %v16930_v16, %v16929_v57  ;;  %v30238_v7 = vadd.f32 %v22098_v23, %v29644_v15  ;;  %v17498_v39 = vsel %vm16579_vm10, %v17497_v14, %v17496_v8  ;;  %v16349_v6 = vpop.f32.mrb[53].mxu1  ;;  %v16988_v11 = vrot.slane %v29816_v5, 6 }
 0xe19   : > { %v16933_v13 = vsel %vm16594_vm15, %v16932_v30, %v16931_v56  ;;  %v17500_v26 = vsel %vm16582_vm11, %v17499_v31, %v17498_v39  ;;  %v30245_v28 = vadd.f32 %v29644_v15, %v16349_v6  ;;  %v16989_v10 = vrot.slane %v29843_v62, 5  ;;  %v30263_v39 = vld [vmem:[%s31087_s6] ss:$0 sm:$0xff] }
 0xe1a   : > { %16964 = vrot.lane.b32.xlu1 %v16933_v13, %s23408_s19  ;;  %v17502_v16 = vsel %vm16585_vm12, %v17501_v50, %v17500_v26  ;;  %v16991_v57 = vrot.slane %v29869_v52, 4  ;;  %v16993_v14 = vrot.slane %v29893_v2, 3  ;;  %v16995_v23 = vrot.slane %v29919_v3, 2 }
 0xe1b   : > { %v17503_v30 = vsel %vm16588_vm13, %v30126_v36, %v17502_v16  ;;  %v16990_v31 = vsel %vm16576_vm9, %v16989_v10, %v16988_v11  ;;  %v16997_v15 = vrot.slane %v29943_v41, 1  ;;  %v17000_v8 = vrot.slane %v29991_v40, 7  ;;  %v22101_v56 = vpop.f32.mrb[54].mxu1 }
 0xe1c   : > { %v17505_v13 = vsel %vm16591_vm14, %v17504_v19, %v17503_v30  ;;  %v16992_v50 = vsel %vm16579_vm10, %v16991_v57, %v16990_v31  ;;  %v30266_v6 = vadd.f32 %v30263_v39, %v22101_v56  ;;  %v17298_v26 = vrot.slane %v30011_v32, 2  ;;  %v16359_v11 = vpop.f32.mrb[55].mxu1 }
 0xe1d   : > { %v17507_v10 = vsel %vm16594_vm15, %v17506_v59, %v17505_v13  ;;  %v16994_v16 = vsel %vm16582_vm11, %v16993_v14, %v16992_v50  ;;  %v17299_v40 = vrot.slane %v30035_v47, 1  ;;  %v17302_v19 = vrot.slane %v30081_v63, 7 }
 0xe1e   : > { %17526 = vrot.lane.b32.xlu0 %v17507_v10, %s23408_s19  ;;  %v16996_v57 = vsel %vm16585_vm12, %v16995_v23, %v16994_v16  ;;  %v17304_v30 = vrot.slane %v30105_v17, 6  ;;  %v17306_v31 = vrot.slane %v30126_v36, 5  ;;  %v17308_v56 = vrot.slane %v30148_v42, 4 }
 0xe1f   : > { %v16998_v41 = vsel %vm16588_vm13, %v16997_v15, %v16996_v57  ;;  %v17300_v59 = vsel %vm16576_vm9, %v17299_v40, %v17298_v26  ;;  %v17310_v14 = vrot.slane %v30170_v54, 3  ;;  %v30282_v13 = vadd.f32 %v30263_v39, %v16359_v11  ;;  %v22104_v50 = vpop.f32.mrb[56].mxu1 }
 0xe20   : > { %v16999_v10 = vsel %vm16591_vm14, %v29969_v49, %v16998_v41  ;;  %v17301_v23 = vsel %vm16579_vm10, %v30059_v34, %v17300_v59  ;;  %v30289_v16 = vadd.f32 %v30263_v39, %v22104_v50  ;;  %v17562_v3 = vrot.slane %v30011_v32, 6  ;;  %v16369_v15 = vpop.f32.mrb[57].mxu1 }
 0xe21   : > { %v17001_v40 = vsel %vm16594_vm15, %v17000_v8, %v16999_v10  ;;  %v17303_v26 = vsel %vm16582_vm11, %v17302_v19, %v17301_v23  ;;  %v17563_v11 = vrot.slane %v30035_v47, 5  ;;  %v17565_v57 = vrot.slane %v30059_v34, 4 }
 0xe22   : > { %17032 = vrot.lane.b32.xlu1 %v17001_v40, %s23409_s20  ;;  %v17305_v41 = vsel %vm16585_vm12, %v17304_v30, %v17303_v26  ;;  %v17567_v59 = vrot.slane %v30081_v63, 3  ;;  %v17569_v50 = vrot.slane %v30105_v17, 2  ;;  %v17571_v49 = vrot.slane %v30126_v36, 1 }
 0xe23   : > { %v17307_v5 = vsel %vm16588_vm13, %v17306_v31, %v17305_v41  ;;  %v17564_v8 = vsel %vm16576_vm9, %v17563_v11, %v17562_v3  ;;  %v17574_v19 = vrot.slane %v30170_v54, 7  ;;  %v30305_v10 = vadd.f32 %v30263_v39, %v16369_v15  ;;  %v22107_v23 = vpop.f32.mrb[58].mxu1 }
 0xe24   : > { %v17309_v40 = vsel %vm16591_vm14, %v17308_v56, %v17307_v5  ;;  %v17566_v30 = vsel %vm16579_vm10, %v17565_v57, %v17564_v8  ;;  %v30310_v26 = vadd.f32 %v30263_v39, %v22107_v23  ;;  %v17366_v2 = vrot.slane %v30011_v32, 3  ;;  %v16379_v52 = vpop.f32.mrb[59].mxu1 }
 0xe25   : > { %v17311_v31 = vsel %vm16594_vm15, %v17310_v14, %v17309_v40  ;;  %v17568_v3 = vsel %vm16582_vm11, %v17567_v59, %v17566_v30  ;;  %v17367_v11 = vrot.slane %v30035_v47, 2  ;;  %v17369_v15 = vrot.slane %v30059_v34, 1 }
 0xe26   : > { %17330 = vrot.lane.b32.xlu0 %v17311_v31, %s23409_s20  ;;  %v17570_v5 = vsel %vm16585_vm12, %v17569_v50, %v17568_v3  ;;  %v17372_v56 = vrot.slane %v30105_v17, 7  ;;  %v17374_v57 = vrot.slane %v30126_v36, 6  ;;  %v17376_v41 = vrot.slane %v30148_v42, 5 }
 0xe27   : > { %v17572_v8 = vsel %vm16588_vm13, %v17571_v49, %v17570_v5  ;;  %v17368_v14 = vsel %vm16576_vm9, %v17367_v11, %v17366_v2  ;;  %v17378_v59 = vrot.slane %v30170_v54, 4  ;;  %v30326_v23 = vadd.f32 %v30263_v39, %v16379_v52  ;;  %v22110_v40 = vpop.f32.mrb[60].mxu1 }
 0xe28   : > { %v17573_v30 = vsel %vm16591_vm14, %v30148_v42, %v17572_v8  ;;  %v17370_v50 = vsel %vm16579_vm10, %v17369_v15, %v17368_v14  ;;  %v30332_v31 = vadd.f32 %v30263_v39, %v22110_v40  ;;  %v16670_v3 = vrot.slane %v30017_v1, 1  ;;  %v16389_v62 = vpop.f32.mrb[61].mxu1 }
 0xe29   : > { %31846 = vst [vmem:[#allocation10_spill] sm:$0xff] %v30326_v23  ;;  %v17575_v49 = vsel %vm16594_vm15, %v17574_v19, %v17573_v30  ;;  %v17371_v2 = vsel %vm16582_vm11, %v30081_v63, %v17370_v50  ;;  %v16672_v52 = vrot.slane %v30065_v37, 7  ;;  %v16674_v11 = vrot.slane %v30088_v60, 6 }
 0xe2a   : > { %17594 = vrot.lane.b32.xlu0 %v17575_v49, %s23409_s20  ;;  %v17373_v5 = vsel %vm16585_vm12, %v17372_v56, %v17371_v2  ;;  %v16671_v15 = vsel %vm16576_vm9, %v30042_v33, %v16670_v3  ;;  %v16676_v8 = vrot.slane %v30111_v29, 5  ;;  %v16678_v14 = vrot.slane %v30132_v24, 4 }
 0xe2b   : > { %v17375_v19 = vsel %vm16588_vm13, %v17374_v57, %v17373_v5  ;;  %v16673_v40 = vsel %vm16579_vm10, %v16672_v52, %v16671_v15  ;;  %v16680_v30 = vrot.slane %v30154_v58, 3  ;;  %v16682_v50 = vrot.slane %v30176_v38, 2  ;;  %v22113_v53 = vpop.f32.mrb[62].mxu1 }
 0xe2c   : > { %v17377_v49 = vsel %vm16591_vm14, %v17376_v41, %v17375_v19  ;;  %v16675_v56 = vsel %vm16582_vm11, %v16674_v11, %v16673_v40  ;;  %v30353_v2 = vadd.f32 %v30263_v39, %v16389_v62  ;;  %v30356_v3 = vadd.f32 %v30263_v39, %v22113_v53  ;;  %v16399_v27 = vpop.f32.mrb[63].mxu1 }
 0xe2d   : > { %v17379_v57 = vsel %vm16594_vm15, %v17378_v59, %v17377_v49  ;;  %v16677_v52 = vsel %vm16585_vm12, %v16676_v8, %v16675_v56  ;;  %v16738_v5 = vrot.slane %v30017_v1, 2  ;;  %v16739_v15 = vrot.slane %v30042_v33, 1 }
 0xe2e   : > { %31847 = vst [vmem:[#allocation11_spill] sm:$0xff] %v30353_v2  ;;  %17398 = vrot.lane.b32.xlu0 %v17379_v57, %s23407_s18  ;;  %v16679_v41 = vsel %vm16588_vm13, %v16678_v14, %v16677_v52  ;;  %v16742_v11 = vrot.slane %v30088_v60, 7  ;;  %v16744_v62 = vrot.slane %v30111_v29, 6  ;;  %v16746_v53 = vrot.slane %v30132_v24, 5 }
 0xe2f   : > { %v16681_v19 = vsel %vm16591_vm14, %v16680_v30, %v16679_v41  ;;  %v16740_v59 = vsel %vm16576_vm9, %v16739_v15, %v16738_v5  ;;  %v16748_v8 = vrot.slane %v30154_v58, 4  ;;  %v16750_v40 = vrot.slane %v30176_v38, 3 }
 0xe30   : > { %v16683_v49 = vsel %vm16594_vm15, %v16682_v50, %v16681_v19  ;;  %v16741_v56 = vsel %vm16579_vm10, %v30065_v37, %v16740_v59  ;;  %v30375_v14 = vadd.f32 %v30263_v39, %v16399_v27  ;;  %v16806_v57 = vrot.slane %v30017_v1, 3 }
 0xe31   : > { %v16743_v52 = vsel %vm16582_vm11, %v16742_v11, %v16741_v56  ;;  %v16807_v30 = vrot.slane %v30042_v33, 2  ;;  %v16809_v5 = vrot.slane %v30065_v37, 1  ;;  %v16812_v15 = vrot.slane %v30111_v29, 7 }
 0xe32   : > { %31848 = vst [vmem:[#allocation12_spill] sm:$0xff] %v30375_v14  ;;  %16702 = vrot.lane.b32.xlu0 %v16683_v49, %s23408_s19  ;;  %v16745_v50 = vsel %vm16585_vm12, %v16744_v62, %v16743_v52  ;;  %v16814_v41 = vrot.slane %v30132_v24, 6  ;;  %v16816_v19 = vrot.slane %v30154_v58, 5  ;;  %v16818_v27 = vrot.slane %v30176_v38, 4 }
 0xe33   : > { %v16747_v39 = vsel %vm16588_vm13, %v16746_v53, %v16745_v50  ;;  %v16808_v11 = vsel %vm16576_vm9, %v16807_v30, %v16806_v57  ;;  %v17084_v59 = vrot.slane %v30200_v61, 7  ;;  %v17085_v56 = vrot.slane %v30222_v25, 6 }
 0xe34   : > { %v16749_v43 = vsel %vm16591_vm14, %v16748_v8, %v16747_v39  ;;  %v16810_v49 = vsel %vm16579_vm10, %v16809_v5, %v16808_v11  ;;  %v17087_v62 = vrot.slane %v30245_v28, 5  ;;  %v17089_v52 = vrot.slane %v30282_v13, 4 }
 0xe35   : > { %v16751_v22 = vsel %vm16594_vm15, %v16750_v40, %v16749_v43  ;;  %v16811_v48 = vsel %vm16582_vm11, %v30088_v60, %v16810_v49  ;;  %v17086_v53 = vsel %vm16576_vm9, %v17085_v56, %v17084_v59  ;;  %v17091_v57 = vrot.slane %v30305_v10, 3 }
 0xe36   : > { %16770 = vrot.lane.b32.xlu0 %v16751_v22, %s23409_s20  ;;  %v16813_v30 = vsel %vm16585_vm12, %v16812_v15, %v16811_v48  ;;  %v17088_v8 = vsel %vm16579_vm10, %v17087_v62, %v17086_v53  ;;  %v17093_v5 = vrot.slane %v30326_v23, 2  ;;  %v17095_v50 = vrot.slane %v30353_v2, 1 }
 0xe37   : > { %v16815_v39 = vsel %vm16588_vm13, %v16814_v41, %v16813_v30  ;;  %v17090_v43 = vsel %vm16582_vm11, %v17089_v52, %v17088_v8  ;;  %v16934_v40 = vrot.slane %v30017_v1, 5  ;;  %v16935_v11 = vrot.slane %v30042_v33, 4 }
 0xe38   : > { %v16817_v59 = vsel %vm16591_vm14, %v16816_v19, %v16815_v39  ;;  %v17092_v22 = vsel %vm16585_vm12, %v17091_v57, %v17090_v43  ;;  %v16937_v48 = vrot.slane %v30065_v37, 3  ;;  %v16939_v15 = vrot.slane %v30088_v60, 2 }
 0xe39   : > { %v16819_v56 = vsel %vm16594_vm15, %v16818_v27, %v16817_v59  ;;  %v17094_v49 = vsel %vm16588_vm13, %v17093_v5, %v17092_v22  ;;  %v16936_v41 = vsel %vm16576_vm9, %v16935_v11, %v16934_v40  ;;  %v16941_v62 = vrot.slane %v30111_v29, 1 }
 0xe3a   : > { %16838 = vrot.lane.b32.xlu0 %v16819_v56, %s23407_s18  ;;  %v17096_v52 = vsel %vm16591_vm14, %v17095_v50, %v17094_v49  ;;  %v16938_v19 = vsel %vm16579_vm10, %v16937_v48, %v16936_v41  ;;  %v16944_v53 = vrot.slane %v30154_v58, 7  ;;  %v16946_v57 = vrot.slane %v30176_v38, 6 }
 0xe3b   : > { %v17097_v30 = vsel %vm16594_vm15, %v30375_v14, %v17096_v52  ;;  %v16940_v27 = vsel %vm16582_vm11, %v16939_v15, %v16938_v19  ;;  %v17244_v8 = vrot.slane %v30193_v46, 1  ;;  %v17246_v5 = vrot.slane %v30238_v7, 7 }
 0xe3c   : > { %17104 = vrot.lane.b32.xlu1 %v17097_v30, %s23407_s18  ;;  %v16942_v39 = vsel %vm16585_vm12, %v16941_v62, %v16940_v27  ;;  %v17248_v50 = vrot.slane %v30266_v6, 6  ;;  %v17250_v43 = vrot.slane %v30289_v16, 5  ;;  %v17252_v40 = vrot.slane %v30310_v26, 4 }
 0xe3d   : > { %v16943_v11 = vsel %vm16588_vm13, %v30132_v24, %v16942_v39  ;;  %v17245_v59 = vsel %vm16576_vm9, %v30215_v9, %v17244_v8  ;;  %v17254_v22 = vrot.slane %v30332_v31, 3  ;;  %v17256_v48 = vrot.slane %v30356_v3, 2 }
 0xe3e   : > { %v16945_v15 = vsel %vm16591_vm14, %v16944_v53, %v16943_v11  ;;  %v17247_v56 = vsel %vm16579_vm10, %v17246_v5, %v17245_v59  ;;  %v17002_v49 = vrot.slane %v30017_v1, 6  ;;  %v17003_v41 = vrot.slane %v30042_v33, 5 }
 0xe3f   : > { %v16947_v62 = vsel %vm16594_vm15, %v16946_v57, %v16945_v15  ;;  %v17249_v52 = vsel %vm16582_vm11, %v17248_v50, %v17247_v56  ;;  %v17005_v19 = vrot.slane %v30065_v37, 4  ;;  %v17007_v30 = vrot.slane %v30088_v60, 3 }
 0xe40   : > { %16966 = vrot.lane.b32.xlu0 %v16947_v62, %s23408_s19  ;;  %v17251_v27 = vsel %vm16585_vm12, %v17250_v43, %v17249_v52  ;;  %v17004_v53 = vsel %vm16576_vm9, %v17003_v41, %v17002_v49  ;;  %v17009_v8 = vrot.slane %v30111_v29, 2  ;;  %v17011_v5 = vrot.slane %v30132_v24, 1 }
 0xe41   : > { %v17253_v39 = vsel %vm16588_vm13, %v17252_v40, %v17251_v27  ;;  %v17006_v57 = vsel %vm16579_vm10, %v17005_v19, %v17004_v53  ;;  %v17014_v50 = vrot.slane %v30176_v38, 7  ;;  %v17508_v11 = vrot.slane %v30193_v46, 5  ;;  %v30455_v59 = vpop.permute.xlu0 %17658 }
 0xe42   : > { %v17255_v15 = vsel %vm16591_vm14, %v17254_v22, %v17253_v39  ;;  %v17008_v43 = vsel %vm16582_vm11, %v17007_v30, %v17006_v57  ;;  %v17509_v56 = vrot.slane %v30215_v9, 4  ;;  %v17511_v49 = vrot.slane %v30238_v7, 3 }
 0xe43   : > { %v17257_v41 = vsel %vm16594_vm15, %v17256_v48, %v17255_v15  ;;  %v17010_v40 = vsel %vm16585_vm12, %v17009_v8, %v17008_v43  ;;  %v17513_v62 = vrot.slane %v30266_v6, 2  ;;  %v17515_v52 = vrot.slane %v30289_v16, 1 }
 0xe44   : > { %17264 = vrot.lane.b32.xlu1 %v17257_v41, %s23408_s19  ;;  %v17012_v19 = vsel %vm16588_vm13, %v17011_v5, %v17010_v40  ;;  %v17510_v22 = vsel %vm16576_vm9, %v17509_v56, %v17508_v11  ;;  %v17518_v30 = vrot.slane %v30332_v31, 7  ;;  %v17520_v27 = vrot.slane %v30356_v3, 6 }
 0xe45   : > { %v17013_v53 = vsel %vm16591_vm14, %v30154_v58, %v17012_v19  ;;  %v17512_v48 = vsel %vm16579_vm10, %v17511_v49, %v17510_v22  ;;  %v17630_v8 = vrot.slane %v30011_v32, 7  ;;  %v17631_v39 = vrot.slane %v30035_v47, 6  ;;  %v30475_v57 = vpop.permute.xlu0 %17098 }
 0xe46   : > { %v17015_v15 = vsel %vm16594_vm15, %v17014_v50, %v17013_v53  ;;  %v17514_v5 = vsel %vm16582_vm11, %v17513_v62, %v17512_v48  ;;  %v17633_v11 = vrot.slane %v30059_v34, 5  ;;  %v17635_v43 = vrot.slane %v30081_v63, 4 }
 0xe47   : > { %17034 = vrot.lane.b32.xlu0 %v17015_v15, %s23409_s20  ;;  %v17516_v56 = vsel %vm16585_vm12, %v17515_v52, %v17514_v5  ;;  %v17632_v49 = vsel %vm16576_vm9, %v17631_v39, %v17630_v8  ;;  %v17637_v41 = vrot.slane %v30105_v17, 3  ;;  %v17639_v40 = vrot.slane %v30126_v36, 2 }
 0xe48   : > { %v17517_v19 = vsel %vm16588_vm13, %v30310_v26, %v17516_v56  ;;  %v17634_v50 = vsel %vm16579_vm10, %v17633_v11, %v17632_v49  ;;  %v17641_v62 = vrot.slane %v30148_v42, 1  ;;  %v17312_v22 = vrot.slane %v30193_v46, 2 }
 0xe49   : > { %v17519_v53 = vsel %vm16591_vm14, %v17518_v30, %v17517_v19  ;;  %v17636_v48 = vsel %vm16582_vm11, %v17635_v43, %v17634_v50  ;;  %v17313_v52 = vrot.slane %v30215_v9, 1  ;;  %v17316_v8 = vrot.slane %v30266_v6, 7  ;;  %v30495_v39 = vpop.permute.xlu0 %17258 }
 0xe4a   : > { %v17521_v15 = vsel %vm16594_vm15, %v17520_v27, %v17519_v53  ;;  %v17638_v5 = vsel %vm16585_vm12, %v17637_v41, %v17636_v48  ;;  %v17318_v11 = vrot.slane %v30289_v16, 6  ;;  %v17320_v56 = vrot.slane %v30310_v26, 5 }
 0xe4b   : > { %17528 = vrot.lane.b32.xlu1 %v17521_v15, %s23408_s19  ;;  %v17640_v30 = vsel %vm16588_vm13, %v17639_v40, %v17638_v5  ;;  %v17314_v43 = vsel %vm16576_vm9, %v17313_v52, %v17312_v22  ;;  %v17322_v49 = vrot.slane %v30332_v31, 4  ;;  %v17324_v19 = vrot.slane %v30356_v3, 3 }
 0xe4c   : > { %v17642_v50 = vsel %vm16591_vm14, %v17641_v62, %v17640_v30  ;;  %v17315_v27 = vsel %vm16579_vm10, %v30238_v7, %v17314_v43  ;;  %v17576_v41 = vrot.slane %v30193_v46, 6  ;;  %v17577_v53 = vrot.slane %v30215_v9, 5 }
 0xe4d   : > { %v17643_v48 = vsel %vm16594_vm15, %v30170_v54, %v17642_v50  ;;  %v17317_v40 = vsel %vm16582_vm11, %v17316_v8, %v17315_v27  ;;  %v17579_v22 = vrot.slane %v30238_v7, 4  ;;  %v17581_v52 = vrot.slane %v30266_v6, 3  ;;  %v30516_v15 = vpop.permute.xlu0 %17522 }
 0xe4e   : > { %17662 = vrot.lane.b32.xlu0 %v17643_v48, %s23407_s18  ;;  %v17319_v62 = vsel %vm16585_vm12, %v17318_v11, %v17317_v40  ;;  %v17578_v5 = vsel %vm16576_vm9, %v17577_v53, %v17576_v41  ;;  %v17583_v30 = vrot.slane %v30289_v16, 2  ;;  %v17585_v43 = vrot.slane %v30310_v26, 1 }
 0xe4f   : > { %v17321_v50 = vsel %vm16588_vm13, %v17320_v56, %v17319_v62  ;;  %v17580_v8 = vsel %vm16579_vm10, %v17579_v22, %v17578_v5  ;;  %v17588_v27 = vrot.slane %v30356_v3, 7  ;;  %v17380_v38 = vrot.slane %v30193_v46, 3 }
 0xe50   : > { %v17323_v58 = vsel %vm16591_vm14, %v17322_v49, %v17321_v50  ;;  %v17582_v48 = vsel %vm16582_vm11, %v17581_v52, %v17580_v8  ;;  %v17381_v11 = vrot.slane %v30215_v9, 2  ;;  %v17383_v41 = vrot.slane %v30238_v7, 1 }
 0xe51   : > { %v17325_v53 = vsel %vm16594_vm15, %v17324_v19, %v17323_v58  ;;  %v17584_v40 = vsel %vm16585_vm12, %v17583_v30, %v17582_v48  ;;  %v17386_v56 = vrot.slane %v30289_v16, 7  ;;  %v17388_v22 = vrot.slane %v30310_v26, 6  ;;  %v30540_v50 = vpop.permute.xlu0 %17326 }
 0xe52   : > { %17332 = vrot.lane.b32.xlu1 %v17325_v53, %s23409_s20  ;;  %v17586_v62 = vsel %vm16588_vm13, %v17585_v43, %v17584_v40  ;;  %v17382_v49 = vsel %vm16576_vm9, %v17381_v11, %v17380_v38  ;;  %v17390_v52 = vrot.slane %v30332_v31, 5  ;;  %v17392_v5 = vrot.slane %v30356_v3, 4 }
 0xe53   : > { %v17587_v58 = vsel %vm16591_vm14, %v30332_v31, %v17586_v62  ;;  %v17384_v19 = vsel %vm16579_vm10, %v17383_v41, %v17382_v49  ;;  %v16684_v30 = vrot.slane %v30200_v61, 1  ;;  %v16686_v8 = vrot.slane %v30245_v28, 7 }
 0xe54   : > { %v17589_v48 = vsel %vm16594_vm15, %v17588_v27, %v17587_v58  ;;  %v17385_v38 = vsel %vm16582_vm11, %v30266_v6, %v17384_v19  ;;  %v16688_v43 = vrot.slane %v30282_v13, 6  ;;  %v16690_v11 = vrot.slane %v30305_v10, 5 }
 0xe55   : > { %v17387_v53 = vsel %vm16585_vm12, %v17386_v56, %v17385_v38  ;;  %v16685_v40 = vsel %vm16576_vm9, %v30222_v25, %v16684_v30  ;;  %v16692_v41 = vrot.slane %v30326_v23, 4  ;;  %v16694_v62 = vrot.slane %v30353_v2, 3 }
 0xe56   : > { %17596 = vrot.lane.b32.xlu1 %v17589_v48, %s23409_s20  ;;  %v17389_v27 = vsel %vm16588_vm13, %v17388_v22, %v17387_v53  ;;  %v16687_v49 = vsel %vm16579_vm10, %v16686_v8, %v16685_v40  ;;  %v16696_v58 = vrot.slane %v30375_v14, 2  ;;  %v17142_v19 = vrot.slane %v29659_v20, 7  ;;  %v30571_v53 = vpop.permute.xlu0 %17590 }
 0xe57   : > { %v17391_v24 = vsel %vm16591_vm14, %v17390_v52, %v17389_v27  ;;  %v16689_v56 = vsel %vm16582_vm11, %v16688_v43, %v16687_v49  ;;  %v17144_v30 = vrot.slane %v29681_v55, 6  ;;  %v17146_v38 = vrot.slane %v29702_v45, 5 }
 0xe58   : > { %v17393_v1 = vsel %vm16594_vm15, %v17392_v5, %v17391_v24  ;;  %v16691_v48 = vsel %vm16585_vm12, %v16690_v11, %v16689_v56  ;;  %v17143_v22 = vsel %vm16576_vm9, %v17142_v19, %v29647_v51  ;;  %v17148_v8 = vrot.slane %v29723_v21, 4 }
 0xe59   : > { %v16693_v40 = vsel %vm16588_vm13, %v16692_v41, %v16691_v48  ;;  %v17145_v52 = vsel %vm16579_vm10, %v17144_v30, %v17143_v22  ;;  %v17150_v43 = vrot.slane %v29743_v35, 3  ;;  %v17152_v27 = vrot.slane %v29764_v4, 2 }
 0xe5a   : > { %17400 = vrot.lane.b32.xlu1 %v17393_v1, %s23407_s18  ;;  %v16695_v24 = vsel %vm16591_vm14, %v16694_v62, %v16693_v40  ;;  %v17147_v5 = vsel %vm16582_vm11, %v17146_v38, %v17145_v52  ;;  %v17154_v11 = vrot.slane %v29785_v44, 1  ;;  %v16752_v49 = vrot.slane %v30200_v61, 2 }
 0xe5b   : > { %v16697_v19 = vsel %vm16594_vm15, %v16696_v58, %v16695_v24  ;;  %v17149_v41 = vsel %vm16585_vm12, %v17148_v8, %v17147_v5  ;;  %v16753_v56 = vrot.slane %v30222_v25, 1  ;;  %v16756_v30 = vrot.slane %v30282_v13, 7 }
 0xe5c   : > { %v17151_v48 = vsel %vm16588_vm13, %v17150_v43, %v17149_v41  ;;  %v16758_v1 = vrot.slane %v30305_v10, 6  ;;  %v16760_v62 = vrot.slane %v30326_v23, 5  ;;  %v16762_v38 = vrot.slane %v30353_v2, 4  ;;  %v30600_v41 = vpop.permute.xlu0 %17394 }
 0xe5d   : > { %v17153_v22 = vsel %vm16591_vm14, %v17152_v27, %v17151_v48  ;;  %v16754_v40 = vsel %vm16576_vm9, %v16753_v56, %v16752_v49  ;;  %v16764_v58 = vrot.slane %v30375_v14, 3  ;;  %v17406_v8 = vrot.slane %v29647_v51, 4 }
 0xe5e   : > { %16704 = vrot.lane.b32.xlu1 %v16697_v19, %s23408_s19  ;;  %v17155_v52 = vsel %vm16594_vm15, %v17154_v11, %v17153_v22  ;;  %v16755_v43 = vsel %vm16579_vm10, %v30245_v28, %v16754_v40  ;;  %v17407_v24 = vrot.slane %v29659_v20, 3  ;;  %v17409_v5 = vrot.slane %v29681_v55, 2 }
 0xe5f   : > { %v17696_v27 = vsel %vm283_vm0, %v17155_v52, %v30495_v39  ;;  %v16757_v49 = vsel %vm16582_vm11, %v16756_v30, %v16755_v43  ;;  %v17411_v51 = vrot.slane %v29702_v45, 1  ;;  %v17414_v19 = vrot.slane %v29743_v35, 7 }
 0xe60   : > { %v16759_v11 = vsel %vm16585_vm12, %v16758_v1, %v16757_v49  ;;  %v17408_v56 = vsel %vm16576_vm9, %v17407_v24, %v17406_v8  ;;  %v17416_v48 = vrot.slane %v29764_v4, 6  ;;  %v17418_v20 = vrot.slane %v29785_v44, 5  ;;  %v30631_v49 = vpop.permute.xlu0 %16698 }
 0xe61   : > { %v16761_v55 = vsel %vm16588_vm13, %v16760_v62, %v16759_v11  ;;  %v17410_v22 = vsel %vm16579_vm10, %v17409_v5, %v17408_v56  ;;  %v16820_v39 = vrot.slane %v30200_v61, 3  ;;  %v16821_v30 = vrot.slane %v30222_v25, 2  ;;  %v30615_v40 = vpop.permute.xlu1 %17660 }
 0xe62   : > { %v16763_v45 = vsel %vm16591_vm14, %v16762_v38, %v16761_v55  ;;  %v17412_v35 = vsel %vm16582_vm11, %v17411_v51, %v17410_v22  ;;  %v16823_v1 = vrot.slane %v30245_v28, 1  ;;  %v16826_v4 = vrot.slane %v30305_v10, 7 }
 0xe63   : > { %v16765_v44 = vsel %vm16594_vm15, %v16764_v58, %v16763_v45  ;;  %v17413_v62 = vsel %vm16585_vm12, %v29723_v21, %v17412_v35  ;;  %v16822_v8 = vsel %vm16576_vm9, %v16821_v30, %v16820_v39  ;;  %v16828_v52 = vrot.slane %v30326_v23, 6 }
 0xe64   : > { %16772 = vrot.lane.b32.xlu1 %v16765_v44, %s23409_s20  ;;  %v17415_v38 = vsel %vm16588_vm13, %v17414_v19, %v17413_v62  ;;  %v16824_v43 = vsel %vm16579_vm10, %v16823_v1, %v16822_v8  ;;  %v16830_v24 = vrot.slane %v30353_v2, 5  ;;  %v16832_v5 = vrot.slane %v30375_v14, 4  ;;  %v17723_v44 = vld [vmem:[%s23507_s17 + $0x18] sm:$0xff] }
 0xe65   : > { %v17417_v58 = vsel %vm16591_vm14, %v17416_v48, %v17415_v38  ;;  %v16825_v21 = vsel %vm16582_vm11, %v30282_v13, %v16824_v43  ;;  %v16948_v51 = vrot.slane %v30200_v61, 5  ;;  %v30638_v11 = vpop.permute.xlu1 %17100  ;;  %v17700_v55 = vsel %vm17674_vm1, %v17696_v27, %v30540_v50 }
 0xe66   : > { %v17419_v19 = vsel %vm16594_vm15, %v17418_v20, %v17417_v58  ;;  %v16827_v56 = vsel %vm16585_vm12, %v16826_v4, %v16825_v21  ;;  %v16949_v48 = vrot.slane %v30222_v25, 4  ;;  %v16951_v30 = vrot.slane %v30245_v28, 3 }
 0xe67   : > { %v17708_v22 = vsel %vm283_vm0, %v17419_v19, %v30516_v15  ;;  %v16829_v39 = vsel %vm16588_vm13, %v16828_v52, %v16827_v56  ;;  %v16953_v45 = vrot.slane %v30282_v13, 2  ;;  %v16955_v1 = vrot.slane %v30305_v10, 1 }
 0xe68   : > { %v16831_v35 = vsel %vm16591_vm14, %v16830_v24, %v16829_v39  ;;  %v16950_v20 = vsel %vm16576_vm9, %v16949_v48, %v16948_v51  ;;  %v16958_v4 = vrot.slane %v30353_v2, 7  ;;  %v16960_v27 = vrot.slane %v30375_v14, 6  ;;  %v30668_v24 = vpop.permute.xlu0 %16766 }
 0xe69   : > { %v16833_v50 = vsel %vm16594_vm15, %v16832_v5, %v16831_v35  ;;  %v16952_v15 = vsel %vm16579_vm10, %v16951_v30, %v16950_v20  ;;  %v30660_v62 = vpop.permute.xlu1 %17260  ;;  %v17712_v52 = vsel %vm17674_vm1, %v17708_v22, %v30571_v53  ;;  %v17016_v38 = vrot.slane %v30200_v61, 6  ;;  %v17722_v22 = vld [vmem:[%s23507_s17 + $0x10] sm:$0xff] }
 0xe6a   : > { %16840 = vrot.lane.b32.xlu1 %v16833_v50, %s23407_s18  ;;  %v16954_v8 = vsel %vm16582_vm11, %v16953_v45, %v16952_v15  ;;  %v17017_v43 = vrot.slane %v30222_v25, 5  ;;  %v17716_v58 = vsel %vm17679_vm2, %v17712_v52, %v30455_v59  ;;  %v17019_v21 = vrot.slane %v30245_v28, 4 }
 0xe6b   : > { %v16956_v5 = vsel %vm16585_vm12, %v16955_v1, %v16954_v8  ;;  %v17021_v51 = vrot.slane %v30282_v13, 3  ;;  %v17739_v56 = vadd.f32 %v17723_v44, %v17716_v58  ;;  %v17023_v48 = vrot.slane %v30305_v10, 2 }
 0xe6c   : > { %v16957_v19 = vsel %vm16588_vm13, %v30326_v23, %v16956_v5  ;;  %v17018_v53 = vsel %vm16576_vm9, %v17017_v43, %v17016_v38  ;;  %v17025_v45 = vrot.slane %v30326_v23, 1  ;;  %v17028_v59 = vrot.slane %v30375_v14, 7 }
 0xe6d   : > { %v16959_v39 = vsel %vm16591_vm14, %v16958_v4, %v16957_v19  ;;  %v17020_v30 = vsel %vm16579_vm10, %v17019_v21, %v17018_v53  ;;  %v30684_v35 = vpop.permute.xlu1 %17524  ;;  %17755 = vst [vmem:[%s30687_s13 + $0x18] sm:$0xff] %v17739_v56  ;;  %v17704_v4 = vsel %vm17679_vm2, %v17700_v55, %v30600_v41  ;;  %v17644_v50 = vrot.slane %v30193_v46, 7  ;;  %v16835_v41 = vpop.permute.xlu0 %16834 }
 0xe6e   : > { %v16961_v20 = vsel %vm16594_vm15, %v16960_v27, %v16959_v39  ;;  %v17022_v1 = vsel %vm16582_vm11, %v17021_v51, %v17020_v30  ;;  %v17738_v44 = vadd.f32 %v17722_v22, %v17704_v4  ;;  %v17645_v8 = vrot.slane %v30215_v9, 6  ;;  %v31849_v30 = vld [vmem:[#allocation47_spill] sm:$0xff]  ;;  %v31851_v4 = vld [vmem:[#allocation49_spill] sm:$0xff] }
 0xe6f   : > { %16968 = vrot.lane.b32.xlu1 %v16961_v20, %s23408_s19  ;;  %v17024_v15 = vsel %vm16585_vm12, %v17023_v48, %v17022_v1  ;;  %v17647_v27 = vrot.slane %v30238_v7, 5  ;;  %v17649_v38 = vrot.slane %v30266_v6, 4  ;;  %v17651_v43 = vrot.slane %v30289_v16, 3  ;;  %v31850_v20 = vld [vmem:[#allocation48_spill] sm:$0xff] }
 0xe70   : > { %v17026_v52 = vsel %vm16588_vm13, %v17025_v45, %v17024_v15  ;;  %v17653_v5 = vrot.slane %v30310_v26, 2  ;;  %17754 = vst [vmem:[%s30687_s13 + $0x10] sm:$0xff] %v17738_v44  ;;  %v17646_v58 = vsel %vm16576_vm9, %v17645_v8, %v17644_v50  ;;  %v17655_v21 = vrot.slane %v30332_v31, 1  ;;  %v31852_v44 = vld [vmem:[#allocation50_spill] sm:$0xff] }
 0xe71   : > { %v17027_v55 = vsel %vm16591_vm14, %v30353_v2, %v17026_v52  ;;  %v16575_v51 = vrot.slane %v29665_v12, 7  ;;  %v30708_v19 = vpop.permute.xlu1 %17328  ;;  %v17648_v53 = vsel %vm16579_vm10, %v17647_v27, %v17646_v58  ;;  %v16578_v48 = vrot.slane %v29687_v0, 6  ;;  %v31853_v27 = vld [vmem:[#allocation51_spill] sm:$0xff] }
 0xe72   : > { %v17029_v56 = vsel %vm16594_vm15, %v17028_v59, %v17027_v55  ;;  %v16581_v22 = vrot.slane %v29708_v18, 5  ;;  %v17650_v39 = vsel %vm16582_vm11, %v17649_v38, %v17648_v53  ;;  %v16584_v1 = vrot.slane %v31850_v20, 4 }
 0xe73   : > { %17036 = vrot.lane.b32.xlu1 %v17029_v56, %s23409_s20  ;;  %v16577_v45 = vsel %vm16576_vm9, %v16575_v51, %v31849_v30  ;;  %v16587_v50 = vrot.slane %v31851_v4, 3  ;;  %v17652_v15 = vsel %vm16585_vm12, %v17651_v43, %v17650_v39  ;;  %v16590_v8 = vrot.slane %v31852_v44, 2  ;;  %s17783_s20 = sshll.u32 %s30687_s13, 4  ;;  %s31034_s20 = int_to_ptr.vmem [resolvable:$true] %s17783_s20 }
 0xe74   : > { %v16580_v59 = vsel %vm16579_vm10, %v16578_v48, %v16577_v45  ;;  %v16593_v52 = vrot.slane %v31853_v27, 1  ;;  %v17654_v55 = vsel %vm16588_vm13, %v17653_v5, %v17652_v15  ;;  %v16846_v38 = vrot.slane %v31849_v30, 4  ;;  %v16963_v45 = vpop.permute.xlu0 %16962  ;;  %p23349_p0 = scmp.lt.s32.totalorder %s31034_s20, %s23347_s22 }
 0xe75   : > { %v16583_v58 = vsel %vm16582_vm11, %v16581_v22, %v16580_v59  ;;  %v16847_v51 = vrot.slane %v29665_v12, 3  ;;  %v30728_v56 = vpop.permute.xlu1 %17592  ;;  %v17656_v53 = vsel %vm16591_vm14, %v17655_v21, %v17654_v55  ;;  %v16849_v48 = vrot.slane %v29687_v0, 2  ;;  %v31854_v55 = vld [vmem:[#allocation54_spill] sm:$0xff] }
 0xe76   : > { %v16586_v43 = vsel %vm16585_vm12, %v16584_v1, %v16583_v58  ;;  %v16851_v39 = vrot.slane %v29708_v18, 1  ;;  %v17657_v5 = vsel %vm16594_vm15, %v30356_v3, %v17656_v53  ;;  %v16854_v12 = vrot.slane %v31851_v4, 7  ;;  %v31855_v58 = vld [vmem:[#allocation56_spill] sm:$0xff]  ;;  %v17720_v53 = vld [vmem:[%s23507_s17] sm:$0xff] }
 0xe77   : > { %v16589_v22 = vsel %vm16588_vm13, %v16587_v50, %v16586_v43  ;;  %v16848_v30 = vsel %vm16576_vm9, %v16847_v51, %v16846_v38  ;;  %17664 = vrot.lane.b32.xlu1 %v17657_v5, %s23407_s18  ;;  %v16856_v0 = vrot.slane %v31852_v44, 6  ;;  %v16858_v18 = vrot.slane %v31853_v27, 5  ;;  %v31856_v43 = vld [vmem:[#allocation58_spill] sm:$0xff]  ;;  %v31858_v5 = vld [vmem:[#allocation52_spill] sm:$0xff]  ;;  %s19017_s18 = sshll.u32 %s23474_s28, 11  ;;  %s31039_s28 = scalar_lea.sflag [#allocation4], %s272_s8 }
 0xe78   : > { %v16592_v21 = vsel %vm16591_vm14, %v16590_v8, %v16589_v22  ;;  %v16850_v1 = vsel %vm16579_vm10, %v16849_v48, %v16848_v30  ;;  %v17156_v50 = vrot.slane %v31854_v55, 7  ;;  %v17158_v38 = vrot.slane %v31855_v58, 6  ;;  %v31857_v48 = vld [vmem:[#allocation60_spill] sm:$0xff]  ;;  %v31859_v30 = vld [vmem:[#allocation62_spill] sm:$0xff]  ;;  %v17031_v14 = vpop.permute.xlu0 %17030  ;;  %s31032_s16 = scalar_lea.hbm %s31088_s7, %s19017_s18 }
 0xe79   : > { %v16595_v15 = vsel %vm16594_vm15, %v16593_v52, %v16592_v21  ;;  %v16852_v59 = vsel %vm16582_vm11, %v16851_v39, %v16850_v1  ;;  %v17397_v51 = vpop.permute.xlu1 %17396  ;;  %v17160_v44 = vrot.slane %v31856_v43, 5  ;;  %v17162_v27 = vrot.slane %v31857_v48, 4 }
 0xe7a   : > { %v17670_v4 = vsel %vm283_vm0, %v16595_v15, %v30631_v49  ;;  %v16853_v8 = vsel %vm16585_vm12, %v31850_v20, %v16852_v59  ;;  %v17157_v22 = vsel %vm16576_vm9, %v17156_v50, %v31858_v5  ;;  %v17164_v21 = vrot.slane %v31859_v30, 3  ;;  %v31860_v15 = vld [vmem:[#allocation64_spill] sm:$0xff] }
 0xe7b   : > { %v17675_v52 = vsel %vm17674_vm1, %v17670_v4, %v30668_v24  ;;  %v16855_v39 = vsel %vm16588_vm13, %v16854_v12, %v16853_v8  ;;  %v17159_v1 = vsel %vm16579_vm10, %v17158_v38, %v17157_v22  ;;  %v17166_v59 = vrot.slane %v31860_v15, 2  ;;  %v31861_v4 = vld [vmem:[#allocation66_spill] sm:$0xff]  ;;  %v17726_v22 = vld [vmem:[%s23507_s17 + $0x30] sm:$0xff] }
 0xe7c   : > { %v17680_v49 = vsel %vm17679_vm2, %v17675_v52, %v16835_v41  ;;  %v16857_v20 = vsel %vm16591_vm14, %v16856_v0, %v16855_v39  ;;  %v17161_v12 = vsel %vm16582_vm11, %v17160_v44, %v17159_v1  ;;  %v17168_v8 = vrot.slane %v31861_v4, 1  ;;  %v17721_v41 = vld [vmem:[%s23507_s17 + $0x8] sm:$0xff]  ;;  %v31863_v1 = vld [vmem:[#allocation57_spill] sm:$0xff] }
 0xe7d   : > { %v17736_v2 = vadd.f32 %v17720_v53, %v17680_v49  ;;  %v16859_v24 = vsel %vm16594_vm15, %v16858_v18, %v16857_v20  ;;  %v16701_v50 = vpop.permute.xlu1 %16700  ;;  %v17163_v61 = vsel %vm16585_vm12, %v17162_v27, %v17161_v12  ;;  %v17420_v0 = vrot.slane %v31858_v5, 4 }
 0xe7e   : > { %v17684_v23 = vsel %vm283_vm0, %v16859_v24, %v16963_v45  ;;  %v17421_v38 = vrot.slane %v31854_v55, 3  ;;  %v17165_v53 = vsel %vm16588_vm13, %v17164_v21, %v17163_v61  ;;  %v17423_v44 = vrot.slane %v31855_v58, 2 }
 0xe7f   : > { %17752 = vst [vmem:[%s30687_s13] sm:$0xff] %v17736_v2  ;;  %v17688_v18 = vsel %vm17674_vm1, %v17684_v23, %v17031_v14  ;;  %v17425_v52 = vrot.slane %v31856_v43, 1  ;;  %v17167_v45 = vsel %vm16591_vm14, %v17166_v59, %v17165_v53  ;;  %v17428_v55 = vrot.slane %v31859_v30, 7  ;;  %v31864_v59 = vld [vmem:[#allocation59_spill] sm:$0xff] }
 0xe80   : > { %v17692_v27 = vsel %vm17679_vm2, %v17688_v18, %v30475_v57  ;;  %v17422_v39 = vsel %vm16576_vm9, %v17421_v38, %v17420_v0  ;;  %v17169_v2 = vsel %vm16594_vm15, %v17168_v8, %v17167_v45  ;;  %v17430_v23 = vrot.slane %v31860_v15, 6  ;;  %v31862_v57 = vld [vmem:[#allocation55_spill] sm:$0xff]  ;;  %v31868_v45 = vld [vmem:[#allocation65_spill] sm:$0xff] }
 0xe81   : > { %v17737_v5 = vadd.f32 %v17721_v41, %v17692_v27  ;;  %v17424_v61 = vsel %vm16579_vm10, %v17423_v44, %v17422_v39  ;;  %v17697_v14 = vsel %vm283_vm0, %v17169_v2, %v30660_v62  ;;  %v17432_v43 = vrot.slane %v31861_v4, 5  ;;  %v16769_v49 = vpop.permute.xlu1 %16768  ;;  %v31865_v4 = vld [vmem:[#allocation53_spill] sm:$0xff]  ;;  %v31867_v53 = vld [vmem:[#allocation63_spill] sm:$0xff] }
 0xe82   : > { %v17426_v58 = vsel %vm16582_vm11, %v17425_v52, %v17424_v61  ;;  %v16596_v21 = vrot.slane %v31862_v57, 7  ;;  %v17701_v20 = vsel %vm17674_vm1, %v17697_v14, %v30708_v19  ;;  %v16598_v15 = vrot.slane %v31863_v1, 6  ;;  %v31866_v41 = vld [vmem:[#allocation61_spill] sm:$0xff] }
 0xe83   : > { %17753 = vst [vmem:[%s30687_s13 + $0x8] sm:$0xff] %v17737_v5  ;;  %v17427_v30 = vsel %vm16585_vm12, %v31857_v48, %v17426_v58  ;;  %v16600_v62 = vrot.slane %v31864_v59, 5  ;;  %v17705_v12 = vsel %vm17679_vm2, %v17701_v20, %v17397_v51  ;;  %v16602_v0 = vrot.slane %v31866_v41, 4  ;;  %v31869_v51 = vld [vmem:[#allocation67_spill] sm:$0xff]  ;;  %v17727_v5 = vld [vmem:[%s23507_s17 + $0x38] sm:$0xff]  ;;  %v17724_v20 = vld [vmem:[%s23507_s17 + $0x20] sm:$0xff] }
 0xe84   : > { %v17429_v24 = vsel %vm16588_vm13, %v17428_v55, %v17427_v30  ;;  %v16597_v8 = vsel %vm16576_vm9, %v16596_v21, %v31865_v4  ;;  %v17742_v38 = vadd.f32 %v17726_v22, %v17705_v12  ;;  %v16604_v18 = vrot.slane %v31867_v53, 3  ;;  %v30811_v55 = vpop.permute.xlu0 %17102 }
 0xe85   : > { %v17431_v48 = vsel %vm16591_vm14, %v17430_v23, %v17429_v24  ;;  %v16599_v19 = vsel %vm16579_vm10, %v16598_v15, %v16597_v8  ;;  %v16606_v27 = vrot.slane %v31868_v45, 2  ;;  %v16608_v39 = vrot.slane %v31869_v51, 1  ;;  %v16837_v58 = vpop.permute.xlu1 %16836 }
 0xe86   : > { %v17433_v44 = vsel %vm16594_vm15, %v17432_v43, %v17431_v48  ;;  %v16601_v52 = vsel %vm16582_vm11, %v16600_v62, %v16599_v19  ;;  %17758 = vst [vmem:[%s30687_s13 + $0x30] sm:$0xff] %v17742_v38  ;;  %v16861_v24 = vrot.slane %v31862_v57, 3  ;;  %v16863_v12 = vrot.slane %v31863_v1, 2 }
 0xe87   : > { %v17709_v2 = vsel %vm283_vm0, %v17433_v44, %v30684_v35  ;;  %v16603_v61 = vsel %vm16585_vm12, %v16602_v0, %v16601_v52  ;;  %v16865_v8 = vrot.slane %v31864_v59, 1  ;;  %v16870_v19 = vrot.slane %v31868_v45, 6 }
 0xe88   : > { %v17713_v23 = vsel %vm17674_vm1, %v17709_v2, %v30728_v56  ;;  %v16605_v14 = vsel %vm16588_vm13, %v16604_v18, %v16603_v61  ;;  %v17263_v62 = vpop.permute.xlu0 %17262  ;;  %v16860_v56 = vrot.slane %v31865_v4, 4  ;;  %v16872_v1 = vrot.slane %v31869_v51, 5  ;;  %v17725_v51 = vld [vmem:[%s23507_s17 + $0x28] sm:$0xff] }
 0xe89   : > { %v17717_v43 = vsel %vm17679_vm2, %v17713_v23, %v30615_v40  ;;  %v16607_v22 = vsel %vm16591_vm14, %v16606_v27, %v16605_v14  ;;  %v17170_v44 = vrot.slane %v30035_v47, 7  ;;  %v17172_v45 = vrot.slane %v30059_v34, 6 }
 0xe8a   : > { %v17743_v21 = vadd.f32 %v17727_v5, %v17717_v43  ;;  %v16609_v30 = vsel %vm16594_vm15, %v16608_v39, %v16607_v22  ;;  %v16862_v48 = vsel %vm16576_vm9, %v16861_v24, %v16860_v56  ;;  %v17174_v2 = vrot.slane %v30081_v63, 5 }
 0xe8b   : > { %v17671_v35 = vsel %vm283_vm0, %v16609_v30, %v16701_v50  ;;  %v16868_v50 = vrot.slane %v31867_v53, 7  ;;  %v17176_v5 = vrot.slane %v30105_v17, 4  ;;  %v17171_v23 = vsel %vm16576_vm9, %v17170_v44, %v30011_v32 }
 0xe8c   : > { %17759 = vst [vmem:[%s30687_s13 + $0x38] sm:$0xff] %v17743_v21  ;;  %v17676_v15 = vsel %vm17674_vm1, %v17671_v35, %v16769_v49  ;;  %v16965_v38 = vpop.permute.xlu1 %16964  ;;  %v16864_v49 = vsel %vm16579_vm10, %v16863_v12, %v16862_v48  ;;  %v17178_v14 = vrot.slane %v30126_v36, 3  ;;  %v17173_v22 = vsel %vm16579_vm10, %v17172_v45, %v17171_v23 }
 0xe8d   : > { %v17681_v40 = vsel %vm17679_vm2, %v17676_v15, %v16837_v58  ;;  %v16866_v57 = vsel %vm16582_vm11, %v16865_v8, %v16864_v49  ;;  %v17180_v21 = vrot.slane %v30148_v42, 2  ;;  %v17175_v30 = vsel %vm16582_vm11, %v17174_v2, %v17173_v22 }
 0xe8e   : > { %v17740_v0 = vadd.f32 %v17724_v20, %v17681_v40  ;;  %v16867_v4 = vsel %vm16585_vm12, %v31866_v41, %v16866_v57  ;;  %v17182_v35 = vrot.slane %v30170_v54, 1  ;;  %v17730_v40 = vld [vmem:[%s23507_s17 + $0x50] sm:$0xff]  ;;  %v16610_v48 = vrot.slane %v30042_v33, 7 }
 0xe8f   : > { %v16869_v59 = vsel %vm16588_vm13, %v16868_v50, %v16867_v4  ;;  %v16616_v57 = vrot.slane %v30111_v29, 4  ;;  %v31871_v4 = vld [vmem:[#allocation6_spill] sm:$0xff] }
 0xe90   : > { %17756 = vst [vmem:[%s30687_s13 + $0x20] sm:$0xff] %v17740_v0  ;;  %v30844_v18 = vpop.permute.xlu0 %17526  ;;  %v16871_v53 = vsel %vm16591_vm14, %v16870_v19, %v16869_v59  ;;  %v16614_v19 = vrot.slane %v30088_v60, 5  ;;  %v16618_v59 = vrot.slane %v31871_v4, 3 }
 0xe91   : > { %v16873_v52 = vsel %vm16594_vm15, %v16872_v1, %v16871_v53  ;;  %v31870_v1 = vld [vmem:[#allocation68_spill] sm:$0xff] }
 0xe92   : > { %v17685_v39 = vsel %vm283_vm0, %v16873_v52, %v16965_v38  ;;  %v16612_v38 = vrot.slane %v30065_v37, 6  ;;  %v31872_v52 = vld [vmem:[#allocation7_spill] sm:$0xff] }
 0xe94   : > { %v17033_v27 = vpop.permute.xlu1 %17032 }
 0xe95   : > { %v17689_v41 = vsel %vm17674_vm1, %v17685_v39, %v17033_v27  ;;  %v16620_v27 = vrot.slane %v31872_v52, 2  ;;  %v31873_v39 = vld [vmem:[#allocation8_spill] sm:$0xff] }
 0xe96   : > { %v17693_v61 = vsel %vm17679_vm2, %v17689_v41, %v30638_v11  ;;  %v17177_v11 = vsel %vm16585_vm12, %v17176_v5, %v17175_v30 }
 0xe97   : > { %v17741_v58 = vadd.f32 %v17725_v51, %v17693_v61  ;;  %v17179_v20 = vsel %vm16588_vm13, %v17178_v14, %v17177_v11  ;;  %v16622_v51 = vrot.slane %v31873_v39, 1 }
 0xe98   : > { %v17331_v43 = vpop.permute.xlu0 %17330  ;;  %v17181_v56 = vsel %vm16591_vm14, %v17180_v21, %v17179_v20  ;;  %v16875_v21 = vrot.slane %v30042_v33, 3  ;;  %v16874_v20 = vrot.slane %v31870_v1, 4 }
 0xe99   : > { %17757 = vst [vmem:[%s30687_s13 + $0x28] sm:$0xff] %v17741_v58  ;;  %v17183_v24 = vsel %vm16594_vm15, %v17182_v35, %v17181_v56  ;;  %v17728_v58 = vld [vmem:[%s23507_s17 + $0x40] sm:$0xff]  ;;  %v16877_v35 = vrot.slane %v30065_v37, 2  ;;  %v16879_v56 = vrot.slane %v30088_v60, 1  ;;  %v17437_v37 = vrot.slane %v30059_v34, 2 }
 0xe9a   : > { %v17698_v12 = vsel %vm283_vm0, %v17183_v24, %v17263_v62  ;;  %v16611_v62 = vsel %vm16576_vm9, %v16610_v48, %v31870_v1  ;;  %v16876_v24 = vsel %vm16576_vm9, %v16875_v21, %v16874_v20  ;;  %v16884_v48 = vrot.slane %v31872_v52, 6 }
 0xe9b   : > { %v17702_v8 = vsel %vm17674_vm1, %v17698_v12, %v17331_v43  ;;  %v16613_v44 = vsel %vm16579_vm10, %v16612_v38, %v16611_v62  ;;  %v16878_v12 = vsel %vm16579_vm10, %v16877_v35, %v16876_v24  ;;  %v17434_v60 = vrot.slane %v30011_v32, 4 }
 0xe9c   : > { %v30867_v15 = vpop.permute.xlu0 %17594  ;;  %v16615_v45 = vsel %vm16582_vm11, %v16614_v19, %v16613_v44  ;;  %v16880_v33 = vsel %vm16582_vm11, %v16879_v56, %v16878_v12  ;;  %v17439_v38 = vrot.slane %v30081_v63, 1  ;;  %v17442_v32 = vrot.slane %v30126_v36, 7 }
 0xe9d   : > { %v16617_v2 = vsel %vm16585_vm12, %v16616_v57, %v16615_v45  ;;  %v17446_v52 = vrot.slane %v30170_v54, 5  ;;  %v17192_v21 = vrot.slane %v30310_v26, 3  ;;  %v17194_v35 = vrot.slane %v30332_v31, 2 }
 0xe9e   : > { %v16619_v41 = vsel %vm16588_vm13, %v16618_v59, %v16617_v2  ;;  %v17444_v59 = vrot.slane %v30148_v42, 6  ;;  %v17196_v20 = vrot.slane %v30356_v3, 1 }
 0xe9f   : > { %v16621_v61 = vsel %vm16591_vm14, %v16620_v27, %v16619_v41 }
 0xea0   : > { %v17399_v0 = vpop.permute.xlu0 %17398  ;;  %v16623_v23 = vsel %vm16594_vm15, %v16622_v51, %v16621_v61 }
 0xea1   : > { %v17706_v50 = vsel %vm17679_vm2, %v17702_v8, %v17399_v0  ;;  %v16882_v0 = vrot.slane %v31871_v4, 7 }
 0xea2   : > { %v17746_v49 = vadd.f32 %v17730_v40, %v17706_v50  ;;  %v17435_v40 = vrot.slane %v30035_v47, 3  ;;  %v16881_v47 = vsel %vm16585_vm12, %v30111_v29, %v16880_v33 }
 0xea3   : > { %v16883_v57 = vsel %vm16588_vm13, %v16882_v0, %v16881_v47 }
 0xea4   : > { %17762 = vst [vmem:[%s30687_s13 + $0x50] sm:$0xff] %v17746_v49  ;;  %v16703_v53 = vpop.permute.xlu0 %16702  ;;  %v16886_v49 = vrot.slane %v31873_v39, 5  ;;  %v17436_v19 = vsel %vm16576_vm9, %v17435_v40, %v17434_v60  ;;  %v16885_v34 = vsel %vm16591_vm14, %v16884_v48, %v16883_v57  ;;  %v16628_v57 = vrot.slane %v30282_v13, 5 }
 0xea5   : > { %v17672_v14 = vsel %vm283_vm0, %v16623_v23, %v16703_v53  ;;  %v17438_v1 = vsel %vm16579_vm10, %v17437_v37, %v17436_v19  ;;  %v17729_v53 = vld [vmem:[%s23507_s17 + $0x48] sm:$0xff]  ;;  %v17186_v23 = vrot.slane %v30238_v7, 6  ;;  %v17734_v37 = vld [vmem:[%s23507_s17 + $0x70] sm:$0xff]  ;;  %v16626_v19 = vrot.slane %v30245_v28, 6 }
 0xea6   : > { %v17440_v62 = vsel %vm16582_vm11, %v17439_v38, %v17438_v1  ;;  %v16887_v63 = vsel %vm16594_vm15, %v16886_v49, %v16885_v34  ;;  %v16624_v49 = vrot.slane %v30222_v25, 7  ;;  %v16630_v1 = vrot.slane %v30305_v10, 4  ;;  %v31874_v34 = vld [vmem:[#allocation9_spill] sm:$0xff] }
 0xea7   : > { %v17441_v45 = vsel %vm16585_vm12, %v30105_v17, %v17440_v62 }
 0xea8   : > { %v16771_v5 = vpop.permute.xlu0 %16770  ;;  %v17443_v39 = vsel %vm16588_vm13, %v17442_v32, %v17441_v45  ;;  %v16625_v62 = vsel %vm16576_vm9, %v16624_v49, %v31874_v34  ;;  %v31875_v32 = vld [vmem:[#allocation10_spill] sm:$0xff] }
 0xea9   : > { %v17677_v43 = vsel %vm17674_vm1, %v17672_v14, %v16771_v5  ;;  %v17445_v2 = vsel %vm16591_vm14, %v17444_v59, %v17443_v39  ;;  %v17731_v5 = vld [vmem:[%s23507_s17 + $0x58] sm:$0xff]  ;;  %v31876_v59 = vld [vmem:[#allocation11_spill] sm:$0xff]  ;;  %v16889_v39 = vrot.slane %v30222_v25, 3 }
 0xeaa   : > { %v17447_v42 = vsel %vm16594_vm15, %v17446_v52, %v17445_v2  ;;  %v16891_v2 = vrot.slane %v30245_v28, 2  ;;  %v17451_v28 = vrot.slane %v30238_v7, 2 }
 0xeab   : > { %v17710_v54 = vsel %vm283_vm0, %v17447_v42, %v30844_v18 }
 0xeac   : > { %v16839_v22 = vpop.permute.xlu0 %16838  ;;  %v17714_v17 = vsel %vm17674_vm1, %v17710_v54, %v30867_v15  ;;  %v16888_v54 = vrot.slane %v31874_v34, 4 }
 0xead   : > { %v17682_v30 = vsel %vm17679_vm2, %v17677_v43, %v16839_v22  ;;  %v17190_v22 = vrot.slane %v30289_v16, 4 }
 0xeae   : > { %v17744_v11 = vadd.f32 %v17728_v58, %v17682_v30  ;;  %v30903_v8 = vpop.permute.xlu1 %17104  ;;  %v17188_v58 = vrot.slane %v30266_v6, 5  ;;  %v16890_v25 = vsel %vm16576_vm9, %v16889_v39, %v16888_v54 }
 0xeb0   : > { %17760 = vst [vmem:[%s30687_s13 + $0x40] sm:$0xff] %v17744_v11 }
 0xeb2   : > { %v16967_v50 = vpop.permute.xlu0 %16966 }
 0xeb3   : > { %v17686_v29 = vsel %vm283_vm0, %v16887_v63, %v16967_v50  ;;  %v16632_v63 = vrot.slane %v31875_v32, 3 }
 0xeb6   : > { %v17265_v4 = vpop.permute.xlu1 %17264 }
 0xeb9   : > { %v17035_v44 = vpop.permute.xlu0 %17034 }
 0xeba   : > { %v17690_v27 = vsel %vm17674_vm1, %v17686_v29, %v17035_v44  ;;  %v16634_v29 = vrot.slane %v31876_v59, 2  ;;  %v31877_v44 = vld [vmem:[#allocation12_spill] sm:$0xff] }
 0xebb   : > { %v17694_v36 = vsel %vm17679_vm2, %v17690_v27, %v30811_v55  ;;  %v17184_v55 = vrot.slane %v30215_v9, 7  ;;  %v16636_v52 = vrot.slane %v31877_v44, 1 }
 0xebc   : > { %v17745_v51 = vadd.f32 %v17729_v53, %v17694_v36 }
 0xebd   : > { %v30934_v41 = vpop.permute.xlu1 %17528  ;;  %v17185_v18 = vsel %vm16576_vm9, %v17184_v55, %v30193_v46  ;;  %v17732_v55 = vld [vmem:[%s23507_s17 + $0x60] sm:$0xff] }
 0xebe   : > { %17761 = vst [vmem:[%s30687_s13 + $0x48] sm:$0xff] %v17745_v51  ;;  %v17187_v30 = vsel %vm16579_vm10, %v17186_v23, %v17185_v18 }
 0xebf   : > { %v17189_v11 = vsel %vm16582_vm11, %v17188_v58, %v17187_v30  ;;  %v17448_v58 = vrot.slane %v30193_v46, 4  ;;  %v16900_v46 = vrot.slane %v31877_v44, 5 }
 0xec0   : > { %v17663_v61 = vpop.permute.xlu0 %17662  ;;  %v17191_v56 = vsel %vm16585_vm12, %v17190_v22, %v17189_v11  ;;  %v16892_v22 = vsel %vm16579_vm10, %v16891_v2, %v16890_v25 }
 0xec1   : > { %v17718_v14 = vsel %vm17679_vm2, %v17714_v17, %v17663_v61  ;;  %v17193_v24 = vsel %vm16588_vm13, %v17192_v21, %v17191_v56  ;;  %v17449_v61 = vrot.slane %v30215_v9, 3  ;;  %v16896_v9 = vrot.slane %v31875_v32, 7 }
 0xec2   : > { %v17747_v43 = vadd.f32 %v17731_v5, %v17718_v14  ;;  %v17195_v40 = vsel %vm16591_vm14, %v17194_v35, %v17193_v24  ;;  %v16893_v5 = vrot.slane %v30282_v13, 1  ;;  %v17453_v13 = vrot.slane %v30266_v6, 1 }
 0xec3   : > { %v17197_v33 = vsel %vm16594_vm15, %v17196_v20, %v17195_v40  ;;  %v17450_v30 = vsel %vm16576_vm9, %v17449_v61, %v17448_v58  ;;  %v17456_v20 = vrot.slane %v30310_v26, 7  ;;  %v17458_v24 = vrot.slane %v30332_v31, 6  ;;  %v17733_v26 = vld [vmem:[%s23507_s17 + $0x68] sm:$0xff] }
 0xec4   : > { %17763 = vst [vmem:[%s30687_s13 + $0x58] sm:$0xff] %v17747_v43  ;;  %v17333_v15 = vpop.permute.xlu1 %17332  ;;  %v17699_v0 = vsel %vm283_vm0, %v17197_v33, %v17265_v4  ;;  %v16627_v4 = vsel %vm16579_vm10, %v16626_v19, %v16625_v62  ;;  %v16894_v21 = vsel %vm16582_vm11, %v16893_v5, %v16892_v22  ;;  %v17452_v7 = vsel %vm16579_vm10, %v17451_v28, %v17450_v30 }
 0xec5   : > { %v17703_v48 = vsel %vm17674_vm1, %v17699_v0, %v17333_v15  ;;  %v16629_v53 = vsel %vm16582_vm11, %v16628_v57, %v16627_v4  ;;  %v16898_v15 = vrot.slane %v31876_v59, 6  ;;  %v16895_v35 = vsel %vm16585_vm12, %v30305_v10, %v16894_v21 }
 0xec6   : > { %v16631_v45 = vsel %vm16585_vm12, %v16630_v1, %v16629_v53  ;;  %v17454_v6 = vsel %vm16582_vm11, %v17453_v13, %v17452_v7  ;;  %v16897_v56 = vsel %vm16588_vm13, %v16896_v9, %v16895_v35  ;;  %v17460_v33 = vrot.slane %v30356_v3, 5 }
 0xec7   : > { %v16633_v36 = vsel %vm16588_vm13, %v16632_v63, %v16631_v45  ;;  %v16899_v40 = vsel %vm16591_vm14, %v16898_v15, %v16897_v56  ;;  %v17455_v10 = vsel %vm16585_vm12, %v30289_v16, %v17454_v6 }
 0xec8   : > { %v30956_v12 = vpop.permute.xlu1 %17596  ;;  %v16635_v51 = vsel %vm16591_vm14, %v16634_v29, %v16633_v36  ;;  %v16901_v0 = vsel %vm16594_vm15, %v16900_v46, %v16899_v40 }
 0xec9   : > { %v16637_v42 = vsel %vm16594_vm15, %v16636_v52, %v16635_v51 }
 0xecc   : > { %v17401_v50 = vpop.permute.xlu1 %17400 }
 0xecd   : > { %v17707_v60 = vsel %vm17679_vm2, %v17703_v48, %v17401_v50  ;;  %v17457_v50 = vsel %vm16588_vm13, %v17456_v20, %v17455_v10 }
 0xece   : > { %v17750_v38 = vadd.f32 %v17734_v37, %v17707_v60  ;;  %v17459_v60 = vsel %vm16591_vm14, %v17458_v24, %v17457_v50 }
 0xed0   : > { %17766 = vst [vmem:[%s30687_s13 + $0x70] sm:$0xff] %v17750_v38  ;;  %v16705_v47 = vpop.permute.xlu1 %16704  ;;  %v17461_v38 = vsel %vm16594_vm15, %v17460_v33, %v17459_v60 }
 0xed1   : > { %v17673_v17 = vsel %vm283_vm0, %v16637_v42, %v16705_v47  ;;  %v17711_v16 = vsel %vm283_vm0, %v17461_v38, %v30934_v41  ;;  %v17735_v47 = vld [vmem:[%s23507_s17 + $0x78] sm:$0xff]  ;;  %s23342_s17 = scalar_lea.vmem %s31034_s20, 2048 }
 0xed2   : > { %v17715_v19 = vsel %vm17674_vm1, %v17711_v16, %v30956_v12  ;;  %p23343_p11 = scmp.ne.s32.totalorder %s31034_s20, %s23342_s17  ;;  %p23350_p1 = scmp.lt.s32.totalorder %s23348_s23, %s23342_s17 }
 0xed4   : > { %p23344_p12 = pnand %p23343_p11, %p23491_p5  ;;  %p23351_p2 = por %p23350_p1, %p23349_p0 }
 0xed6   : > { %v16773_v27 = vpop.permute.xlu1 %16772  ;;  %p23345_p13 = pneg %p23344_p12 }
 0xed7   : > { %v17678_v23 = vsel %vm17674_vm1, %v17673_v17, %v16773_v27 }
 0xed8   : > { %p23352_p3 = pnand %p23351_p2, %p23345_p13 }
 0xedc   : > { %v16841_v14 = vpop.permute.xlu1 %16840 }
 0xedd   : > { %v17683_v43 = vsel %vm17679_vm2, %v17678_v23, %v16841_v14 }
 0xede   : > { %v17748_v18 = vadd.f32 %v17732_v55, %v17683_v43 }
 0xee0   : > { %17764 = vst [vmem:[%s30687_s13 + $0x60] sm:$0xff] %v17748_v18 }
 0xee1   : > { %v16969_v11 = vpop.permute.xlu1 %16968 }
 0xee2   : > { %v17687_v37 = vsel %vm283_vm0, %v16901_v0, %v16969_v11 }
 0xee5   : > { %v17037_v48 = vpop.permute.xlu1 %17036 }
 0xee6   : > { %v17691_v31 = vsel %vm17674_vm1, %v17687_v37, %v17037_v48 }
 0xee7   : > { %v17695_v3 = vsel %vm17679_vm2, %v17691_v31, %v30903_v8 }
 0xee8   : > { %v17749_v49 = vadd.f32 %v17733_v26, %v17695_v3 }
 0xee9   : > { %v17665_v57 = vpop.permute.xlu1 %17664 }
 0xeea   : > { %17765 = vst [vmem:[%s30687_s13 + $0x68] sm:$0xff] %v17749_v49  ;;  %v17719_v1 = vsel %vm17679_vm2, %v17715_v19, %v17665_v57 }
 0xeeb   : > { %v17751_v8 = vadd.f32 %v17735_v47, %v17719_v1 }
 0xeed   : > { %17767 = vst [vmem:[%s30687_s13 + $0x78] sm:$0xff] %v17751_v8 }
 0xeee   : > { %23355 = shalt.err (!%p23352_p3)
}
 0xeef   : > { %s23356_s29 = scalar_lea.hbm %s31032_s16, 2048  ;;  %s23360_s13 = scalar_lea.hbm %s31088_s7, 4096 }
 0xef0   : > { %p23357_p4 = scmp.ne.s32.totalorder %s31032_s16, %s23356_s29  ;;  %p23361_p9 = scmp.lt.u32.totalorder %s31032_s16, %s31088_s7 }
 0xef1   : > { %p23362_p10 = scmp.lt.u32.totalorder %s23360_s13, %s23356_s29  ;;  %p23364_p12 = scmp.lt.u32.totalorder %s23356_s29, %s31032_s16 }
 0xef2   : > { %p23358_p7 = pnand %p23357_p4, %p23491_p5 }
 0xef3   : > { %p23363_p11 = por %p23362_p10, %p23361_p9 }
 0xef4   : > { %p23359_p8 = pneg %p23358_p7 }
 0xef5   : > { %p23365_p13 = por %p23364_p12, %p23363_p11 }
 0xef7   : > { %p23366_p0 = pnand %p23365_p13, %p23359_p8 }
 0xef9   : > { %23369 = shalt.err (!%p23366_p0)
}
 0xefa   : > { %s23412_s15 = smov 512  }
 0xefb   : > { %23282 = dma.vmem_to_hbm [thread:$0]  (%p23491_p5), %s31034_s20, 2048, %s31032_s16, %s31039_s28, %s23412_s15, %s23412_s15, %s23408_s19  }
 0xefc PF: > { %p23288_p1 = scmp.ge.s32.totalorder %s23404_s27, 2  ;;  %s17798_s17 = sand.u32 1, %s23392_s24  }
 0xefd   : > { %s17799_s21 = scalar_lea.sflag [#allocation4], %s17798_s17 }
 0xefe   : > { %p23285_p2 = pnand %p23288_p1, %p23495_p6 }
 0xf00   : > { %23387 = dma.done.wait (!%p23285_p2), %s17799_s21, 2048  }
 0xf01   : > { %23389 = vsyncadd (!%p23285_p2), %s17799_s21, 4294965248  ;;  %p17_p3 = scmp.ge.s32.totalorder %s23478_s30, 4   ;;  %s31878_s24 = smov %s23396_s25 }
 0xf02   : > { %s31879_s25 = smov %s23400_s26  ;;  %s31880_s26 = smov %s23489_s10 }
 0xf03   : > { %s31881_s27 = smov %s23478_s30  ;;  %19 = sbr.rel (!%p17_p3) target bundleno = 3 (0x3), region = 85 }
 0xf0a   :  { %17804 = vsyncpa [#allocation4], 1 }
 0xf0b   :  { %17806 = vsyncpa [#allocation4 + $0x1], 1 }

</bundles_post_ra>
